<compile_context>
chip_gen: v5e
topology: v5e:2x2
jax: 0.10.0
libtpu: 0.0.40
codegen_flags: <defaults>
</compile_context>

<pallas_src>
import jax
import jax.numpy as jnp
from jax.experimental import pallas as pl
from jax.experimental.pallas import tpu as pltpu


def residual_kernel(xp_ref, w1_ref, g1_ref, be1_ref, w2_ref, g2_ref, be2_ref,
                    o_ref, patch_ref, y1pad_ref):
    """Fused conv1 -> bn1 -> relu -> conv2 -> bn2 -> add skip -> relu.

    xp_ref    : (B, H+2, W+2, C) zero-padded input (NHWC), f32
    w1_ref    : (9*C, C) conv1 weight, im2col-flattened HWIO, bf16
    w2_ref    : (9*C, C) conv2 weight, im2col-flattened HWIO, bf16
    g*/be*    : (1, C)   BN gamma / beta, f32
    o_ref     : (B, H, W, C) output, f32
    patch_ref : VMEM scratch (B*H*W, 9*C) f32 -- im2col patches (reused by both convs)
    y1pad_ref : VMEM scratch (B, H+2, W+2, C) f32 -- padded intermediate activation
    """
    B, Hp, Wp, C = xp_ref.shape
    H, W = Hp - 2, Wp - 2
    M = B * H * W
    eps = 1e-5
    inv_n = jnp.float32(1.0 / M)

    taps = [(kh, kw) for kh in range(3) for kw in range(3)]

    # ---- conv1: im2col (9 static-slice stores) + one K=9*C MXU matmul ----
    for t, (kh, kw) in enumerate(taps):
        patch_ref[:, t * C:(t + 1) * C] = (
            xp_ref[:, kh:kh + H, kw:kw + W, :].reshape(M, C))
    y1 = jnp.dot(patch_ref[...].astype(jnp.bfloat16), w1_ref[...],
                 preferred_element_type=jnp.float32)            # (M, C) f32

    # ---- bn1 (training-mode batch stats, single reduction sweep) + relu ----
    s1 = jnp.sum(y1, axis=0, keepdims=True)
    ss1 = jnp.sum(y1 * y1, axis=0, keepdims=True)
    m1 = s1 * inv_n
    v1 = jnp.maximum(ss1 * inv_n - m1 * m1, 0.0)
    y1 = (y1 - m1) * jax.lax.rsqrt(v1 + eps) * g1_ref[...] + be1_ref[...]
    y1 = jnp.maximum(y1, 0.0)

    # ---- re-pad the intermediate activation: zero only the 1-pixel halo ----
    y1pad_ref[:, 0:1, :, :] = jnp.zeros((B, 1, Wp, C), jnp.float32)
    y1pad_ref[:, H + 1:Hp, :, :] = jnp.zeros((B, 1, Wp, C), jnp.float32)
    y1pad_ref[:, :, 0:1, :] = jnp.zeros((B, Hp, 1, C), jnp.float32)
    y1pad_ref[:, :, W + 1:Wp, :] = jnp.zeros((B, Hp, 1, C), jnp.float32)
    y1pad_ref[:, 1:H + 1, 1:W + 1, :] = y1.reshape(B, H, W, C)

    # ---- conv2: im2col from the padded ref + one K=9*C matmul ----
    for t, (kh, kw) in enumerate(taps):
        patch_ref[:, t * C:(t + 1) * C] = (
            y1pad_ref[:, kh:kh + H, kw:kw + W, :].reshape(M, C))
    y2 = jnp.dot(patch_ref[...].astype(jnp.bfloat16), w2_ref[...],
                 preferred_element_type=jnp.float32)            # (M, C) f32

    # ---- bn2 ----
    s2 = jnp.sum(y2, axis=0, keepdims=True)
    ss2 = jnp.sum(y2 * y2, axis=0, keepdims=True)
    m2 = s2 * inv_n
    v2 = jnp.maximum(ss2 * inv_n - m2 * m2, 0.0)
    y2 = (y2 - m2) * jax.lax.rsqrt(v2 + eps) * g2_ref[...] + be2_ref[...]

    # ---- identity skip (use_1x1conv=False, stride=1) + final relu ----
    x_id = xp_ref[:, 1:H + 1, 1:W + 1, :].reshape(M, C)
    out = jnp.maximum(y2 + x_id, 0.0)
    o_ref[...] = out.reshape(B, H, W, C).astype(o_ref.dtype)


def residual_forward(x_nchw, params):
    """x_nchw: (B, C, H, W) float32, PyTorch layout. Returns (B, C, H, W)."""
    x = jnp.transpose(x_nchw, (0, 2, 3, 1))             # NCHW -> NHWC
    B, H, W, C = x.shape
    Cout = params["w1"].shape[-1]
    assert Cout == C, "identity skip (use_1x1conv=False) needs Cin == Cout"

    xp = jnp.pad(x, ((0, 0), (1, 1), (1, 1), (0, 0)))   # pad=1 for the first conv

    # im2col-flattened HWIO weights, bf16 operands for the MXU (f32 accumulate).
    # Conv biases are intentionally not passed: bias followed by training-mode
    # BN is exactly cancelled by the mean subtraction.
    w1f = params["w1"].reshape(9 * C, Cout).astype(jnp.bfloat16)
    w2f = params["w2"].reshape(9 * Cout, Cout).astype(jnp.bfloat16)

    def full(shape):
        return pl.BlockSpec(shape, lambda i, s=shape: (0,) * len(s))

    vec = (1, Cout)
    out = pl.pallas_call(
        residual_kernel,
        out_shape=jax.ShapeDtypeStruct((B, H, W, Cout), x.dtype),
        grid=(1,),
        in_specs=[
            full(xp.shape),
            full(w1f.shape), full(vec), full(vec),
            full(w2f.shape), full(vec), full(vec),
        ],
        out_specs=full((B, H, W, Cout)),
        scratch_shapes=[
            pltpu.VMEM((B * H * W, 9 * C), jnp.float32),        # im2col patches
            pltpu.VMEM((B, H + 2, W + 2, Cout), jnp.float32),   # padded activation
        ],
        compiler_params=pltpu.CompilerParams(
            dimension_semantics=("arbitrary",),
            vmem_limit_bytes=32 * 1024 * 1024),
    )(xp, w1f, params["g1"], params["be1"], w2f, params["g2"], params["be2"])

    return jnp.transpose(out, (0, 3, 1, 2))              # NHWC -> NCHW


def residual_reference(x_nchw, params):
    """Pure-JAX/XLA reference (same bf16 MXU-operand precision as the kernel)."""
    x = jnp.transpose(x_nchw, (0, 2, 3, 1)).astype(jnp.float32)   # NHWC
    eps = 1e-5

    def conv3x3(inp, w):
        return jax.lax.conv_general_dilated(
            inp.astype(jnp.bfloat16), w.astype(jnp.bfloat16),
            window_strides=(1, 1), padding=((1, 1), (1, 1)),
            dimension_numbers=("NHWC", "HWIO", "NHWC"),
            preferred_element_type=jnp.float32)

    def bn(y, g, b):
        m = jnp.mean(y, axis=(0, 1, 2), keepdims=True)
        v = jnp.mean((y - m) ** 2, axis=(0, 1, 2), keepdims=True)
        return ((y - m) * jax.lax.rsqrt(v + eps) * g.reshape(1, 1, 1, -1)
                + b.reshape(1, 1, 1, -1))

    y = jnp.maximum(bn(conv3x3(x, params["w1"]), params["g1"], params["be1"]), 0.0)
    y = bn(conv3x3(y, params["w2"]), params["g2"], params["be2"])
    y = jnp.maximum(y + x, 0.0)
    return jnp.transpose(y, (0, 3, 1, 2))


def make_params(key, c_in, c_out):
    k1, k2 = jax.random.split(key)
    # Conv weights in HWIO (PyTorch Conv2d weight (O,I,3,3) transposed to (3,3,I,O)).
    # Conv biases omitted: exactly cancelled by the following training-mode BN.
    return {
        "w1": jax.random.normal(k1, (3, 3, c_in, c_out), jnp.float32) / jnp.sqrt(9.0 * c_in),
        "g1": jnp.ones((1, c_out), jnp.float32),     # BatchNorm2d default weight
        "be1": jnp.zeros((1, c_out), jnp.float32),   # BatchNorm2d default bias
        "w2": jax.random.normal(k2, (3, 3, c_out, c_out), jnp.float32) / jnp.sqrt(9.0 * c_out),
        "g2": jnp.ones((1, c_out), jnp.float32),
        "be2": jnp.zeros((1, c_out), jnp.float32),
    }


if __name__ == "__main__":
    key = jax.random.PRNGKey(0)
    kx, kp = jax.random.split(key)

    # Residual(in_channels=8, out_channels=8) -- identity skip needs Cin == Cout
    B, C, H, W = 2, 8, 16, 16
    x = jax.random.normal(kx, (B, C, H, W), jnp.float32)
    params = make_params(kp, C, C)

    y = jax.block_until_ready(residual_forward(x, params))
    y_ref = jax.block_until_ready(residual_reference(x, params))

    assert y.shape == (B, C, H, W), y.shape
    assert bool(jnp.all(jnp.isfinite(y)))
    assert bool(jnp.all(y >= 0.0))                       # final ReLU
    max_err = float(jnp.max(jnp.abs(y - y_ref)))
    assert max_err < 2e-2, f"mismatch vs reference: max abs err {max_err}"
    print("KERNEL_OK")
</pallas_src>

<mosaic_0001>
module attributes {stable_mosaic.version = 11 : i64} {
  func.func @residual_kernel(%arg0: i32, %arg1: memref<2x18x18x8xf32, #tpu.memory_space<vmem>>, %arg2: memref<72x8xbf16, #tpu.memory_space<vmem>>, %arg3: memref<1x8xf32, #tpu.memory_space<vmem>>, %arg4: memref<1x8xf32, #tpu.memory_space<vmem>>, %arg5: memref<72x8xbf16, #tpu.memory_space<vmem>>, %arg6: memref<1x8xf32, #tpu.memory_space<vmem>>, %arg7: memref<1x8xf32, #tpu.memory_space<vmem>>, %arg8: memref<2x16x16x8xf32, #tpu.memory_space<vmem>>, %arg9: memref<512x72xf32, #tpu.memory_space<vmem>>, %arg10: memref<2x18x18x8xf32, #tpu.memory_space<vmem>>) attributes {dimension_semantics = [#tpu.dimension_semantics<arbitrary>], iteration_bounds = array<i64: 1>, scalar_prefetch = 0 : i64, scratch_operands = 2 : i64, tpu.core_type = #tpu.core_type<tc>, window_params = [{pipeline_mode = #tpu.pipeline_mode<synchronous>, transform_indices = @transform_0, window_bounds = array<i64: 2, 18, 18, 8>}, {pipeline_mode = #tpu.pipeline_mode<synchronous>, transform_indices = @transform_1, window_bounds = array<i64: 72, 8>}, {pipeline_mode = #tpu.pipeline_mode<synchronous>, transform_indices = @transform_2, window_bounds = array<i64: 1, 8>}, {pipeline_mode = #tpu.pipeline_mode<synchronous>, transform_indices = @transform_3, window_bounds = array<i64: 1, 8>}, {pipeline_mode = #tpu.pipeline_mode<synchronous>, transform_indices = @transform_4, window_bounds = array<i64: 72, 8>}, {pipeline_mode = #tpu.pipeline_mode<synchronous>, transform_indices = @transform_5, window_bounds = array<i64: 1, 8>}, {pipeline_mode = #tpu.pipeline_mode<synchronous>, transform_indices = @transform_6, window_bounds = array<i64: 1, 8>}, {pipeline_mode = #tpu.pipeline_mode<synchronous>, transform_indices = @transform_7, window_bounds = array<i64: 2, 16, 16, 8>}]} {
    %c0 = arith.constant 0 : index
    %c0_0 = arith.constant 0 : index
    %c0_1 = arith.constant 0 : index
    %c0_2 = arith.constant 0 : index
    %0 = vector.load %arg1[%c0, %c0_0, %c0_1, %c0_2] : memref<2x18x18x8xf32, #tpu.memory_space<vmem>>, vector<2x16x16x8xf32>
    %1 = vector.shape_cast %0 : vector<2x16x16x8xf32> to vector<512x8xf32>
    %c0_3 = arith.constant 0 : index
    %c0_4 = arith.constant 0 : index
    %2 = vector.load %arg9[%c0_3, %c0_4] : memref<512x72xf32, #tpu.memory_space<vmem>>, vector<512x8xf32>
    tpu.vector_store %arg9[%c0_3, %c0_4], %1 {strides = array<i32>} : memref<512x72xf32, #tpu.memory_space<vmem>>, vector<512x8xf32>,
    %c0_5 = arith.constant 0 : index
    %c0_6 = arith.constant 0 : index
    %c1 = arith.constant 1 : index
    %c0_7 = arith.constant 0 : index
    %3 = vector.load %arg1[%c0_5, %c0_6, %c1, %c0_7] : memref<2x18x18x8xf32, #tpu.memory_space<vmem>>, vector<2x16x16x8xf32>
    %4 = vector.shape_cast %3 : vector<2x16x16x8xf32> to vector<512x8xf32>
    %c0_8 = arith.constant 0 : index
    %c8 = arith.constant 8 : index
    %5 = vector.load %arg9[%c0_8, %c8] : memref<512x72xf32, #tpu.memory_space<vmem>>, vector<512x8xf32>
    tpu.vector_store %arg9[%c0_8, %c8], %4 {strides = array<i32>} : memref<512x72xf32, #tpu.memory_space<vmem>>, vector<512x8xf32>,
    %c0_9 = arith.constant 0 : index
    %c0_10 = arith.constant 0 : index
    %c2 = arith.constant 2 : index
    %c0_11 = arith.constant 0 : index
    %6 = vector.load %arg1[%c0_9, %c0_10, %c2, %c0_11] : memref<2x18x18x8xf32, #tpu.memory_space<vmem>>, vector<2x16x16x8xf32>
    %7 = vector.shape_cast %6 : vector<2x16x16x8xf32> to vector<512x8xf32>
    %c0_12 = arith.constant 0 : index
    %c16 = arith.constant 16 : index
    %8 = vector.load %arg9[%c0_12, %c16] : memref<512x72xf32, #tpu.memory_space<vmem>>, vector<512x8xf32>
    tpu.vector_store %arg9[%c0_12, %c16], %7 {strides = array<i32>} : memref<512x72xf32, #tpu.memory_space<vmem>>, vector<512x8xf32>,
    %c0_13 = arith.constant 0 : index
    %c1_14 = arith.constant 1 : index
    %c0_15 = arith.constant 0 : index
    %c0_16 = arith.constant 0 : index
    %9 = vector.load %arg1[%c0_13, %c1_14, %c0_15, %c0_16] : memref<2x18x18x8xf32, #tpu.memory_space<vmem>>, vector<2x16x16x8xf32>
    %10 = vector.shape_cast %9 : vector<2x16x16x8xf32> to vector<512x8xf32>
    %c0_17 = arith.constant 0 : index
    %c24 = arith.constant 24 : index
    %11 = vector.load %arg9[%c0_17, %c24] : memref<512x72xf32, #tpu.memory_space<vmem>>, vector<512x8xf32>
    tpu.vector_store %arg9[%c0_17, %c24], %10 {strides = array<i32>} : memref<512x72xf32, #tpu.memory_space<vmem>>, vector<512x8xf32>,
    %c0_18 = arith.constant 0 : index
    %c1_19 = arith.constant 1 : index
    %c1_20 = arith.constant 1 : index
    %c0_21 = arith.constant 0 : index
    %12 = vector.load %arg1[%c0_18, %c1_19, %c1_20, %c0_21] : memref<2x18x18x8xf32, #tpu.memory_space<vmem>>, vector<2x16x16x8xf32>
    %13 = vector.shape_cast %12 : vector<2x16x16x8xf32> to vector<512x8xf32>
    %c0_22 = arith.constant 0 : index
    %c32 = arith.constant 32 : index
    %14 = vector.load %arg9[%c0_22, %c32] : memref<512x72xf32, #tpu.memory_space<vmem>>, vector<512x8xf32>
    tpu.vector_store %arg9[%c0_22, %c32], %13 {strides = array<i32>} : memref<512x72xf32, #tpu.memory_space<vmem>>, vector<512x8xf32>,
    %c0_23 = arith.constant 0 : index
    %c1_24 = arith.constant 1 : index
    %c2_25 = arith.constant 2 : index
    %c0_26 = arith.constant 0 : index
    %15 = vector.load %arg1[%c0_23, %c1_24, %c2_25, %c0_26] : memref<2x18x18x8xf32, #tpu.memory_space<vmem>>, vector<2x16x16x8xf32>
    %16 = vector.shape_cast %15 : vector<2x16x16x8xf32> to vector<512x8xf32>
    %c0_27 = arith.constant 0 : index
    %c40 = arith.constant 40 : index
    %17 = vector.load %arg9[%c0_27, %c40] : memref<512x72xf32, #tpu.memory_space<vmem>>, vector<512x8xf32>
    tpu.vector_store %arg9[%c0_27, %c40], %16 {strides = array<i32>} : memref<512x72xf32, #tpu.memory_space<vmem>>, vector<512x8xf32>,
    %c0_28 = arith.constant 0 : index
    %c2_29 = arith.constant 2 : index
    %c0_30 = arith.constant 0 : index
    %c0_31 = arith.constant 0 : index
    %18 = vector.load %arg1[%c0_28, %c2_29, %c0_30, %c0_31] : memref<2x18x18x8xf32, #tpu.memory_space<vmem>>, vector<2x16x16x8xf32>
    %19 = vector.shape_cast %18 : vector<2x16x16x8xf32> to vector<512x8xf32>
    %c0_32 = arith.constant 0 : index
    %c48 = arith.constant 48 : index
    %20 = vector.load %arg9[%c0_32, %c48] : memref<512x72xf32, #tpu.memory_space<vmem>>, vector<512x8xf32>
    tpu.vector_store %arg9[%c0_32, %c48], %19 {strides = array<i32>} : memref<512x72xf32, #tpu.memory_space<vmem>>, vector<512x8xf32>,
    %c0_33 = arith.constant 0 : index
    %c2_34 = arith.constant 2 : index
    %c1_35 = arith.constant 1 : index
    %c0_36 = arith.constant 0 : index
    %21 = vector.load %arg1[%c0_33, %c2_34, %c1_35, %c0_36] : memref<2x18x18x8xf32, #tpu.memory_space<vmem>>, vector<2x16x16x8xf32>
    %22 = vector.shape_cast %21 : vector<2x16x16x8xf32> to vector<512x8xf32>
    %c0_37 = arith.constant 0 : index
    %c56 = arith.constant 56 : index
    %23 = vector.load %arg9[%c0_37, %c56] : memref<512x72xf32, #tpu.memory_space<vmem>>, vector<512x8xf32>
    tpu.vector_store %arg9[%c0_37, %c56], %22 {strides = array<i32>} : memref<512x72xf32, #tpu.memory_space<vmem>>, vector<512x8xf32>,
    %c0_38 = arith.constant 0 : index
    %c2_39 = arith.constant 2 : index
    %c2_40 = arith.constant 2 : index
    %c0_41 = arith.constant 0 : index
    %24 = vector.load %arg1[%c0_38, %c2_39, %c2_40, %c0_41] : memref<2x18x18x8xf32, #tpu.memory_space<vmem>>, vector<2x16x16x8xf32>
    %25 = vector.shape_cast %24 : vector<2x16x16x8xf32> to vector<512x8xf32>
    %c0_42 = arith.constant 0 : index
    %c64 = arith.constant 64 : index
    %26 = vector.load %arg9[%c0_42, %c64] : memref<512x72xf32, #tpu.memory_space<vmem>>, vector<512x8xf32>
    tpu.vector_store %arg9[%c0_42, %c64], %25 {strides = array<i32>} : memref<512x72xf32, #tpu.memory_space<vmem>>, vector<512x8xf32>,
    %c0_43 = arith.constant 0 : index
    %c0_44 = arith.constant 0 : index
    %27 = vector.load %arg9[%c0_43, %c0_44] : memref<512x72xf32, #tpu.memory_space<vmem>>, vector<512x72xf32>
    %28 = arith.truncf %27 : vector<512x72xf32> to vector<512x72xbf16>
    %c0_45 = arith.constant 0 : index
    %c0_46 = arith.constant 0 : index
    %29 = vector.load %arg2[%c0_45, %c0_46] : memref<72x8xbf16, #tpu.memory_space<vmem>>, vector<72x8xbf16>
    %cst = arith.constant dense<0.000000e+00> : vector<512x8xf32>
    %30 = tpu.matmul %28, %29, %cst {dimension_numbers = #tpu.dot_dimension_numbers<[1], [0], [0], [1], [0, 0, 1, 1], [], []>} : vector<512x72xbf16>, vector<72x8xbf16>, vector<512x8xf32> -> vector<512x8xf32>
    %cst_47 = arith.constant dense<0.000000e+00> : vector<8xf32>
    %31 = vector.multi_reduction <add>, %30, %cst_47 [0] : vector<512x8xf32> to vector<8xf32>
    %32 = vector.shape_cast %31 : vector<8xf32> to vector<1x8xf32>
    %33 = arith.mulf %30, %30 : vector<512x8xf32>
    %cst_48 = arith.constant dense<0.000000e+00> : vector<8xf32>
    %34 = vector.multi_reduction <add>, %33, %cst_48 [0] : vector<512x8xf32> to vector<8xf32>
    %35 = vector.shape_cast %34 : vector<8xf32> to vector<1x8xf32>
    %cst_49 = arith.constant 0.001953125 : f32
    %36 = vector.broadcast %cst_49 : f32 to vector<1x8xf32>
    %37 = arith.mulf %32, %36 : vector<1x8xf32>
    %cst_50 = arith.constant 0.001953125 : f32
    %38 = vector.broadcast %cst_50 : f32 to vector<1x8xf32>
    %39 = arith.mulf %35, %38 : vector<1x8xf32>
    %40 = arith.mulf %37, %37 : vector<1x8xf32>
    %41 = arith.subf %39, %40 : vector<1x8xf32>
    %cst_51 = arith.constant 0.000000e+00 : f32
    %42 = vector.broadcast %cst_51 : f32 to vector<1x8xf32>
    %43 = arith.maximumf %41, %42 : vector<1x8xf32>
    %44 = vector.broadcast %37 : vector<1x8xf32> to vector<512x8xf32>
    %45 = arith.subf %30, %44 : vector<512x8xf32>
    %cst_52 = arith.constant 9.99999974E-6 : f32
    %46 = vector.broadcast %cst_52 : f32 to vector<1x8xf32>
    %47 = arith.addf %43, %46 : vector<1x8xf32>
    %48 = math.rsqrt %47 : vector<1x8xf32>
    %49 = vector.broadcast %48 : vector<1x8xf32> to vector<512x8xf32>
    %50 = arith.mulf %45, %49 : vector<512x8xf32>
    %c0_53 = arith.constant 0 : index
    %c0_54 = arith.constant 0 : index
    %51 = vector.load %arg3[%c0_53, %c0_54] : memref<1x8xf32, #tpu.memory_space<vmem>>, vector<1x8xf32>
    %52 = vector.broadcast %51 : vector<1x8xf32> to vector<512x8xf32>
    %53 = arith.mulf %50, %52 : vector<512x8xf32>
    %c0_55 = arith.constant 0 : index
    %c0_56 = arith.constant 0 : index
    %54 = vector.load %arg4[%c0_55, %c0_56] : memref<1x8xf32, #tpu.memory_space<vmem>>, vector<1x8xf32>
    %55 = vector.broadcast %54 : vector<1x8xf32> to vector<512x8xf32>
    %56 = arith.addf %53, %55 : vector<512x8xf32>
    %cst_57 = arith.constant 0.000000e+00 : f32
    %57 = vector.broadcast %cst_57 : f32 to vector<512x8xf32>
    %58 = arith.maximumf %56, %57 : vector<512x8xf32>
    %cst_58 = arith.constant 0.000000e+00 : f32
    %59 = vector.broadcast %cst_58 : f32 to vector<2x1x18x8xf32>
    %c0_59 = arith.constant 0 : index
    %c0_60 = arith.constant 0 : index
    %c0_61 = arith.constant 0 : index
    %c0_62 = arith.constant 0 : index
    %60 = vector.load %arg10[%c0_59, %c0_60, %c0_61, %c0_62] : memref<2x18x18x8xf32, #tpu.memory_space<vmem>>, vector<2x1x18x8xf32>
    tpu.vector_store %arg10[%c0_59, %c0_60, %c0_61, %c0_62], %59 {strides = array<i32>} : memref<2x18x18x8xf32, #tpu.memory_space<vmem>>, vector<2x1x18x8xf32>,
    %cst_63 = arith.constant 0.000000e+00 : f32
    %61 = vector.broadcast %cst_63 : f32 to vector<2x1x18x8xf32>
    %c0_64 = arith.constant 0 : index
    %c17 = arith.constant 17 : index
    %c0_65 = arith.constant 0 : index
    %c0_66 = arith.constant 0 : index
    %62 = vector.load %arg10[%c0_64, %c17, %c0_65, %c0_66] : memref<2x18x18x8xf32, #tpu.memory_space<vmem>>, vector<2x1x18x8xf32>
    tpu.vector_store %arg10[%c0_64, %c17, %c0_65, %c0_66], %61 {strides = array<i32>} : memref<2x18x18x8xf32, #tpu.memory_space<vmem>>, vector<2x1x18x8xf32>,
    %cst_67 = arith.constant 0.000000e+00 : f32
    %63 = vector.broadcast %cst_67 : f32 to vector<2x18x1x8xf32>
    %c0_68 = arith.constant 0 : index
    %c0_69 = arith.constant 0 : index
    %c0_70 = arith.constant 0 : index
    %c0_71 = arith.constant 0 : index
    %64 = vector.load %arg10[%c0_68, %c0_69, %c0_70, %c0_71] : memref<2x18x18x8xf32, #tpu.memory_space<vmem>>, vector<2x18x1x8xf32>
    tpu.vector_store %arg10[%c0_68, %c0_69, %c0_70, %c0_71], %63 {strides = array<i32>} : memref<2x18x18x8xf32, #tpu.memory_space<vmem>>, vector<2x18x1x8xf32>,
    %cst_72 = arith.constant 0.000000e+00 : f32
    %65 = vector.broadcast %cst_72 : f32 to vector<2x18x1x8xf32>
    %c0_73 = arith.constant 0 : index
    %c0_74 = arith.constant 0 : index
    %c17_75 = arith.constant 17 : index
    %c0_76 = arith.constant 0 : index
    %66 = vector.load %arg10[%c0_73, %c0_74, %c17_75, %c0_76] : memref<2x18x18x8xf32, #tpu.memory_space<vmem>>, vector<2x18x1x8xf32>
    tpu.vector_store %arg10[%c0_73, %c0_74, %c17_75, %c0_76], %65 {strides = array<i32>} : memref<2x18x18x8xf32, #tpu.memory_space<vmem>>, vector<2x18x1x8xf32>,
    %67 = vector.shape_cast %58 : vector<512x8xf32> to vector<2x16x16x8xf32>
    %c0_77 = arith.constant 0 : index
    %c1_78 = arith.constant 1 : index
    %c1_79 = arith.constant 1 : index
    %c0_80 = arith.constant 0 : index
    %68 = vector.load %arg10[%c0_77, %c1_78, %c1_79, %c0_80] : memref<2x18x18x8xf32, #tpu.memory_space<vmem>>, vector<2x16x16x8xf32>
    tpu.vector_store %arg10[%c0_77, %c1_78, %c1_79, %c0_80], %67 {strides = array<i32>} : memref<2x18x18x8xf32, #tpu.memory_space<vmem>>, vector<2x16x16x8xf32>,
    %c0_81 = arith.constant 0 : index
    %c0_82 = arith.constant 0 : index
    %c0_83 = arith.constant 0 : index
    %c0_84 = arith.constant 0 : index
    %69 = vector.load %arg10[%c0_81, %c0_82, %c0_83, %c0_84] : memref<2x18x18x8xf32, #tpu.memory_space<vmem>>, vector<2x16x16x8xf32>
    %70 = vector.shape_cast %69 : vector<2x16x16x8xf32> to vector<512x8xf32>
    %c0_85 = arith.constant 0 : index
    %c0_86 = arith.constant 0 : index
    %71 = vector.load %arg9[%c0_85, %c0_86] : memref<512x72xf32, #tpu.memory_space<vmem>>, vector<512x8xf32>
    tpu.vector_store %arg9[%c0_85, %c0_86], %70 {strides = array<i32>} : memref<512x72xf32, #tpu.memory_space<vmem>>, vector<512x8xf32>,
    %c0_87 = arith.constant 0 : index
    %c0_88 = arith.constant 0 : index
    %c1_89 = arith.constant 1 : index
    %c0_90 = arith.constant 0 : index
    %72 = vector.load %arg10[%c0_87, %c0_88, %c1_89, %c0_90] : memref<2x18x18x8xf32, #tpu.memory_space<vmem>>, vector<2x16x16x8xf32>
    %73 = vector.shape_cast %72 : vector<2x16x16x8xf32> to vector<512x8xf32>
    %c0_91 = arith.constant 0 : index
    %c8_92 = arith.constant 8 : index
    %74 = vector.load %arg9[%c0_91, %c8_92] : memref<512x72xf32, #tpu.memory_space<vmem>>, vector<512x8xf32>
    tpu.vector_store %arg9[%c0_91, %c8_92], %73 {strides = array<i32>} : memref<512x72xf32, #tpu.memory_space<vmem>>, vector<512x8xf32>,
    %c0_93 = arith.constant 0 : index
    %c0_94 = arith.constant 0 : index
    %c2_95 = arith.constant 2 : index
    %c0_96 = arith.constant 0 : index
    %75 = vector.load %arg10[%c0_93, %c0_94, %c2_95, %c0_96] : memref<2x18x18x8xf32, #tpu.memory_space<vmem>>, vector<2x16x16x8xf32>
    %76 = vector.shape_cast %75 : vector<2x16x16x8xf32> to vector<512x8xf32>
    %c0_97 = arith.constant 0 : index
    %c16_98 = arith.constant 16 : index
    %77 = vector.load %arg9[%c0_97, %c16_98] : memref<512x72xf32, #tpu.memory_space<vmem>>, vector<512x8xf32>
    tpu.vector_store %arg9[%c0_97, %c16_98], %76 {strides = array<i32>} : memref<512x72xf32, #tpu.memory_space<vmem>>, vector<512x8xf32>,
    %c0_99 = arith.constant 0 : index
    %c1_100 = arith.constant 1 : index
    %c0_101 = arith.constant 0 : index
    %c0_102 = arith.constant 0 : index
    %78 = vector.load %arg10[%c0_99, %c1_100, %c0_101, %c0_102] : memref<2x18x18x8xf32, #tpu.memory_space<vmem>>, vector<2x16x16x8xf32>
    %79 = vector.shape_cast %78 : vector<2x16x16x8xf32> to vector<512x8xf32>
    %c0_103 = arith.constant 0 : index
    %c24_104 = arith.constant 24 : index
    %80 = vector.load %arg9[%c0_103, %c24_104] : memref<512x72xf32, #tpu.memory_space<vmem>>, vector<512x8xf32>
    tpu.vector_store %arg9[%c0_103, %c24_104], %79 {strides = array<i32>} : memref<512x72xf32, #tpu.memory_space<vmem>>, vector<512x8xf32>,
    %c0_105 = arith.constant 0 : index
    %c1_106 = arith.constant 1 : index
    %c1_107 = arith.constant 1 : index
    %c0_108 = arith.constant 0 : index
    %81 = vector.load %arg10[%c0_105, %c1_106, %c1_107, %c0_108] : memref<2x18x18x8xf32, #tpu.memory_space<vmem>>, vector<2x16x16x8xf32>
    %82 = vector.shape_cast %81 : vector<2x16x16x8xf32> to vector<512x8xf32>
    %c0_109 = arith.constant 0 : index
    %c32_110 = arith.constant 32 : index
    %83 = vector.load %arg9[%c0_109, %c32_110] : memref<512x72xf32, #tpu.memory_space<vmem>>, vector<512x8xf32>
    tpu.vector_store %arg9[%c0_109, %c32_110], %82 {strides = array<i32>} : memref<512x72xf32, #tpu.memory_space<vmem>>, vector<512x8xf32>,
    %c0_111 = arith.constant 0 : index
    %c1_112 = arith.constant 1 : index
    %c2_113 = arith.constant 2 : index
    %c0_114 = arith.constant 0 : index
    %84 = vector.load %arg10[%c0_111, %c1_112, %c2_113, %c0_114] : memref<2x18x18x8xf32, #tpu.memory_space<vmem>>, vector<2x16x16x8xf32>
    %85 = vector.shape_cast %84 : vector<2x16x16x8xf32> to vector<512x8xf32>
    %c0_115 = arith.constant 0 : index
    %c40_116 = arith.constant 40 : index
    %86 = vector.load %arg9[%c0_115, %c40_116] : memref<512x72xf32, #tpu.memory_space<vmem>>, vector<512x8xf32>
    tpu.vector_store %arg9[%c0_115, %c40_116], %85 {strides = array<i32>} : memref<512x72xf32, #tpu.memory_space<vmem>>, vector<512x8xf32>,
    %c0_117 = arith.constant 0 : index
    %c2_118 = arith.constant 2 : index
    %c0_119 = arith.constant 0 : index
    %c0_120 = arith.constant 0 : index
    %87 = vector.load %arg10[%c0_117, %c2_118, %c0_119, %c0_120] : memref<2x18x18x8xf32, #tpu.memory_space<vmem>>, vector<2x16x16x8xf32>
    %88 = vector.shape_cast %87 : vector<2x16x16x8xf32> to vector<512x8xf32>
    %c0_121 = arith.constant 0 : index
    %c48_122 = arith.constant 48 : index
    %89 = vector.load %arg9[%c0_121, %c48_122] : memref<512x72xf32, #tpu.memory_space<vmem>>, vector<512x8xf32>
    tpu.vector_store %arg9[%c0_121, %c48_122], %88 {strides = array<i32>} : memref<512x72xf32, #tpu.memory_space<vmem>>, vector<512x8xf32>,
    %c0_123 = arith.constant 0 : index
    %c2_124 = arith.constant 2 : index
    %c1_125 = arith.constant 1 : index
    %c0_126 = arith.constant 0 : index
    %90 = vector.load %arg10[%c0_123, %c2_124, %c1_125, %c0_126] : memref<2x18x18x8xf32, #tpu.memory_space<vmem>>, vector<2x16x16x8xf32>
    %91 = vector.shape_cast %90 : vector<2x16x16x8xf32> to vector<512x8xf32>
    %c0_127 = arith.constant 0 : index
    %c56_128 = arith.constant 56 : index
    %92 = vector.load %arg9[%c0_127, %c56_128] : memref<512x72xf32, #tpu.memory_space<vmem>>, vector<512x8xf32>
    tpu.vector_store %arg9[%c0_127, %c56_128], %91 {strides = array<i32>} : memref<512x72xf32, #tpu.memory_space<vmem>>, vector<512x8xf32>,
    %c0_129 = arith.constant 0 : index
    %c2_130 = arith.constant 2 : index
    %c2_131 = arith.constant 2 : index
    %c0_132 = arith.constant 0 : index
    %93 = vector.load %arg10[%c0_129, %c2_130, %c2_131, %c0_132] : memref<2x18x18x8xf32, #tpu.memory_space<vmem>>, vector<2x16x16x8xf32>
    %94 = vector.shape_cast %93 : vector<2x16x16x8xf32> to vector<512x8xf32>
    %c0_133 = arith.constant 0 : index
    %c64_134 = arith.constant 64 : index
    %95 = vector.load %arg9[%c0_133, %c64_134] : memref<512x72xf32, #tpu.memory_space<vmem>>, vector<512x8xf32>
    tpu.vector_store %arg9[%c0_133, %c64_134], %94 {strides = array<i32>} : memref<512x72xf32, #tpu.memory_space<vmem>>, vector<512x8xf32>,
    %c0_135 = arith.constant 0 : index
    %c0_136 = arith.constant 0 : index
    %96 = vector.load %arg9[%c0_135, %c0_136] : memref<512x72xf32, #tpu.memory_space<vmem>>, vector<512x72xf32>
    %97 = arith.truncf %96 : vector<512x72xf32> to vector<512x72xbf16>
    %c0_137 = arith.constant 0 : index
    %c0_138 = arith.constant 0 : index
    %98 = vector.load %arg5[%c0_137, %c0_138] : memref<72x8xbf16, #tpu.memory_space<vmem>>, vector<72x8xbf16>
    %cst_139 = arith.constant dense<0.000000e+00> : vector<512x8xf32>
    %99 = tpu.matmul %97, %98, %cst_139 {dimension_numbers = #tpu.dot_dimension_numbers<[1], [0], [0], [1], [0, 0, 1, 1], [], []>} : vector<512x72xbf16>, vector<72x8xbf16>, vector<512x8xf32> -> vector<512x8xf32>
    %cst_140 = arith.constant dense<0.000000e+00> : vector<8xf32>
    %100 = vector.multi_reduction <add>, %99, %cst_140 [0] : vector<512x8xf32> to vector<8xf32>
    %101 = vector.shape_cast %100 : vector<8xf32> to vector<1x8xf32>
    %102 = arith.mulf %99, %99 : vector<512x8xf32>
    %cst_141 = arith.constant dense<0.000000e+00> : vector<8xf32>
    %103 = vector.multi_reduction <add>, %102, %cst_141 [0] : vector<512x8xf32> to vector<8xf32>
    %104 = vector.shape_cast %103 : vector<8xf32> to vector<1x8xf32>
    %cst_142 = arith.constant 0.001953125 : f32
    %105 = vector.broadcast %cst_142 : f32 to vector<1x8xf32>
    %106 = arith.mulf %101, %105 : vector<1x8xf32>
    %cst_143 = arith.constant 0.001953125 : f32
    %107 = vector.broadcast %cst_143 : f32 to vector<1x8xf32>
    %108 = arith.mulf %104, %107 : vector<1x8xf32>
    %109 = arith.mulf %106, %106 : vector<1x8xf32>
    %110 = arith.subf %108, %109 : vector<1x8xf32>
    %cst_144 = arith.constant 0.000000e+00 : f32
    %111 = vector.broadcast %cst_144 : f32 to vector<1x8xf32>
    %112 = arith.maximumf %110, %111 : vector<1x8xf32>
    %113 = vector.broadcast %106 : vector<1x8xf32> to vector<512x8xf32>
    %114 = arith.subf %99, %113 : vector<512x8xf32>
    %cst_145 = arith.constant 9.99999974E-6 : f32
    %115 = vector.broadcast %cst_145 : f32 to vector<1x8xf32>
    %116 = arith.addf %112, %115 : vector<1x8xf32>
    %117 = math.rsqrt %116 : vector<1x8xf32>
    %118 = vector.broadcast %117 : vector<1x8xf32> to vector<512x8xf32>
    %119 = arith.mulf %114, %118 : vector<512x8xf32>
    %c0_146 = arith.constant 0 : index
    %c0_147 = arith.constant 0 : index
    %120 = vector.load %arg6[%c0_146, %c0_147] : memref<1x8xf32, #tpu.memory_space<vmem>>, vector<1x8xf32>
    %121 = vector.broadcast %120 : vector<1x8xf32> to vector<512x8xf32>
    %122 = arith.mulf %119, %121 : vector<512x8xf32>
    %c0_148 = arith.constant 0 : index
    %c0_149 = arith.constant 0 : index
    %123 = vector.load %arg7[%c0_148, %c0_149] : memref<1x8xf32, #tpu.memory_space<vmem>>, vector<1x8xf32>
    %124 = vector.broadcast %123 : vector<1x8xf32> to vector<512x8xf32>
    %125 = arith.addf %122, %124 : vector<512x8xf32>
    %c0_150 = arith.constant 0 : index
    %c1_151 = arith.constant 1 : index
    %c1_152 = arith.constant 1 : index
    %c0_153 = arith.constant 0 : index
    %126 = vector.load %arg1[%c0_150, %c1_151, %c1_152, %c0_153] : memref<2x18x18x8xf32, #tpu.memory_space<vmem>>, vector<2x16x16x8xf32>
    %127 = vector.shape_cast %126 : vector<2x16x16x8xf32> to vector<512x8xf32>
    %128 = arith.addf %125, %127 : vector<512x8xf32>
    %cst_154 = arith.constant 0.000000e+00 : f32
    %129 = vector.broadcast %cst_154 : f32 to vector<512x8xf32>
    %130 = arith.maximumf %128, %129 : vector<512x8xf32>
    %131 = vector.shape_cast %130 : vector<512x8xf32> to vector<2x16x16x8xf32>
    %c0_155 = arith.constant 0 : index
    %c0_156 = arith.constant 0 : index
    %c0_157 = arith.constant 0 : index
    %c0_158 = arith.constant 0 : index
    %132 = vector.load %arg8[%c0_155, %c0_156, %c0_157, %c0_158] : memref<2x16x16x8xf32, #tpu.memory_space<vmem>>, vector<2x16x16x8xf32>
    tpu.vector_store %arg8[%c0_155, %c0_156, %c0_157, %c0_158], %131 {strides = array<i32>} : memref<2x16x16x8xf32, #tpu.memory_space<vmem>>, vector<2x16x16x8xf32>,
    return
  }
  func.func @transform_0(%arg0: i32) -> (i32, i32, i32, i32) {
    %c0_i32 = arith.constant 0 : i32
    %c0_i32_0 = arith.constant 0 : i32
    %c0_i32_1 = arith.constant 0 : i32
    %c0_i32_2 = arith.constant 0 : i32
    %c0_i32_3 = arith.constant 0 : i32
    return %c0_i32, %c0_i32_0, %c0_i32_1, %c0_i32_2 : i32, i32, i32, i32
  }
  func.func @transform_1(%arg0: i32) -> (i32, i32) {
    %c0_i32 = arith.constant 0 : i32
    %c0_i32_0 = arith.constant 0 : i32
    %c0_i32_1 = arith.constant 0 : i32
    return %c0_i32, %c0_i32_0 : i32, i32
  }
  func.func @transform_2(%arg0: i32) -> (i32, i32) {
    %c0_i32 = arith.constant 0 : i32
    %c0_i32_0 = arith.constant 0 : i32
    %c0_i32_1 = arith.constant 0 : i32
    return %c0_i32, %c0_i32_0 : i32, i32
  }
  func.func @transform_3(%arg0: i32) -> (i32, i32) {
    %c0_i32 = arith.constant 0 : i32
    %c0_i32_0 = arith.constant 0 : i32
    %c0_i32_1 = arith.constant 0 : i32
    return %c0_i32, %c0_i32_0 : i32, i32
  }
  func.func @transform_4(%arg0: i32) -> (i32, i32) {
    %c0_i32 = arith.constant 0 : i32
    %c0_i32_0 = arith.constant 0 : i32
    %c0_i32_1 = arith.constant 0 : i32
    return %c0_i32, %c0_i32_0 : i32, i32
  }
  func.func @transform_5(%arg0: i32) -> (i32, i32) {
    %c0_i32 = arith.constant 0 : i32
    %c0_i32_0 = arith.constant 0 : i32
    %c0_i32_1 = arith.constant 0 : i32
    return %c0_i32, %c0_i32_0 : i32, i32
  }
  func.func @transform_6(%arg0: i32) -> (i32, i32) {
    %c0_i32 = arith.constant 0 : i32
    %c0_i32_0 = arith.constant 0 : i32
    %c0_i32_1 = arith.constant 0 : i32
    return %c0_i32, %c0_i32_0 : i32, i32
  }
  func.func @transform_7(%arg0: i32) -> (i32, i32, i32, i32) {
    %c0_i32 = arith.constant 0 : i32
    %c0_i32_0 = arith.constant 0 : i32
    %c0_i32_1 = arith.constant 0 : i32
    %c0_i32_2 = arith.constant 0 : i32
    %c0_i32_3 = arith.constant 0 : i32
    return %c0_i32, %c0_i32_0, %c0_i32_1, %c0_i32_2 : i32, i32, i32, i32
  }
}

</mosaic_0001>

<bundles_post_ra>
// kernel: tpu_custom_call.1
= control target key start
LH: loop header
LB: loop body
LE: loop exit
PB: predicated region body
PF: predicated region fallthrough
CT: control target
= control target key end

     0   :  { %s9516_s28 = smov 8   ;;  %vm91_vm0 = vcmask 64512   ;;  %vm476_vm1 = vcmask 130112   ;;  %s9517_s24 = smov 16   ;;  %vm861_vm2 = vcmask 195712   ;;  %vm1247_vm3 = vcmask 261312   ;;  %s17019_s0 = inlined_call_operand.vmem [shape: f32[2,18,18,8], index: 0, kind: input, shape index: {}]   ;;  %s17020_s1 = inlined_call_operand.vmem [shape: bf16[72,8], index: 1, kind: input, shape index: {}]   ;;  %s17021_s2 = inlined_call_operand.vmem [shape: f32[1,8], index: 2, kind: input, shape index: {}]   ;;  %s17022_s3 = inlined_call_operand.vmem [shape: f32[1,8], index: 3, kind: input, shape index: {}]   ;;  %s17023_s4 = inlined_call_operand.vmem [shape: bf16[72,8], index: 4, kind: input, shape index: {}]   ;;  %s17024_s5 = inlined_call_operand.vmem [shape: f32[1,8], index: 5, kind: input, shape index: {}]   ;;  %s17025_s6 = inlined_call_operand.vmem [shape: f32[1,8], index: 6, kind: input, shape index: {}]   ;;  %s17026_s7 = inlined_call_operand.vmem [shape: f32[2,16,16,8], index: 7, kind: output, shape index: {}]  }
   0x1   :  { %v158_v0 = vld [vmem:[%s17019_s0 + $0x19] sm:$0xff]  ;;  %v156_v1 = vld [vmem:[%s17019_s0 + $0x1] sm:$0xff]  ;;  %v160_v2 = vld [vmem:[%s17019_s0 + $0x31] sm:$0xff]  ;;  %s9518_s21 = smov 24   ;;  %s9519_s15 = smov 32   ;;  %vm1632_vm4 = vcmask 326912  }
   0x2   :  { %288 = vrot.lane.b32.xlu1 %v158_v0, %s9516_s28  ;;  %284 = vrot.lane.b32.xlu0 %v156_v1, %s9516_s28  ;;  %v159_v3 = vld [vmem:[%s17019_s0 + $0x21] sm:$0xff]  ;;  %v157_v4 = vld [vmem:[%s17019_s0 + $0x9] sm:$0xff]  ;;  %s9520_s8 = smov 40   ;;  %vm2017_vm5 = vcmask 392512   ;;  %s9521_s9 = smov 48   ;;  %vm2403_vm6 = vcmask 458112  }
   0x3   :  { %292 = vrot.lane.b32.xlu2 %v160_v2, %s9516_s28  ;;  %v161_v5 = vld [vmem:[%s17019_s0 + $0x39] sm:$0xff]  ;;  %v163_v6 = vld [vmem:[%s17019_s0 + $0x51] sm:$0xff]  ;;  %v162_v7 = vld [vmem:[%s17019_s0 + $0x49] sm:$0xff]  ;;  %s9522_s26 = smov 56   ;;  %vm2788_vm7 = vcmask 523712   ;;  %s9523_s23 = smov 64  }
   0x4   :  { %v164_v8 = vld [vmem:[%s17019_s0 + $0x61] sm:$0xff]  ;;  %v166_v9 = vld [vmem:[%s17019_s0 + $0x79] sm:$0xff]  ;;  %v165_v10 = vld [vmem:[%s17019_s0 + $0x69] sm:$0xff]  ;;  %vm3467_vm8 = vcmask 1043456   ;;  %vm3173_vm9 = vcmask 589312   ;;  %vm3370_vm10 = vcmask 588800  }
   0x5   :  { %v167_v11 = vld [vmem:[%s17019_s0 + $0x81] sm:$0xff]  ;;  %v169_v12 = vld [vmem:[%s17019_s0 + $0x99] sm:$0xff]  ;;  %v168_v13 = vld [vmem:[%s17019_s0 + $0x91] sm:$0xff]  ;;  %vm4328_vm12 = vcmask 57344   ;;  %vm4316_vm15 = vcmask 58368  }
   0x6   :  { %v170_v14 = vld [vmem:[%s17019_s0 + $0xa9] sm:$0xff]  ;;  %v172_v15 = vld [vmem:[%s17019_s0 + $0xc1] sm:$0xff]  ;;  %v171_v16 = vld [vmem:[%s17019_s0 + $0xb1] sm:$0xff] }
   0x7   :  { %v173_v17 = vld [vmem:[%s17019_s0 + $0xc9] sm:$0xff]  ;;  %v175_v18 = vld [vmem:[%s17019_s0 + $0xe1] sm:$0xff]  ;;  %v174_v19 = vld [vmem:[%s17019_s0 + $0xd9] sm:$0xff] }
   0x8   :  { %v176_v20 = vld [vmem:[%s17019_s0 + $0xf1] sm:$0xff]  ;;  %v178_v21 = vld [vmem:[%s17019_s0 + $0x109] sm:$0xff]  ;;  %v177_v22 = vld [vmem:[%s17019_s0 + $0xf9] sm:$0xff] }
   0x9   :  { %v179_v23 = vld [vmem:[%s17019_s0 + $0x111] sm:$0xff]  ;;  %v181_v24 = vld [vmem:[%s17019_s0 + $0x129] sm:$0xff]  ;;  %v180_v25 = vld [vmem:[%s17019_s0 + $0x121] sm:$0xff] }
   0xa   :  { %290 = vrot.lane.b32.xlu1 %v159_v3, %s9516_s28  ;;  %286 = vrot.lane.b32.xlu0 %v157_v4, %s9516_s28  ;;  %v182_v26 = vld [vmem:[%s17019_s0 + $0x139] sm:$0xff]  ;;  %v184_v27 = vld [vmem:[%s17019_s0 + $0x151] sm:$0xff] }
   0xb   :  { %294 = vrot.lane.b32.xlu2 %v161_v5, %s9516_s28  ;;  %v183_v28 = vld [vmem:[%s17019_s0 + $0x141] sm:$0xff]  ;;  %v185_v29 = vld [vmem:[%s17019_s0 + $0x159] sm:$0xff]  ;;  %v187_v30 = vld [vmem:[%s17019_s0 + $0x171] sm:$0xff] }
   0xc   :  { %v186_v31 = vld [vmem:[%s17019_s0 + $0x169] sm:$0xff]  ;;  %v188_v32 = vld [vmem:[%s17019_s0 + $0x1b1] sm:$0xff]  ;;  %v27_v35 = vld [vmem:[%s17019_s0] sm:$0xff] }
   0xd   :  { %v9699_v33 = vld [vmem:[%s17019_s0 + $0x30] sm:$0xff]  ;;  %v9706_v34 = vld [vmem:[%s17019_s0 + $0x18] sm:$0xff]  ;;  %92 = vst.msk [vmem:[#allocation2] sm:$0xff] %vm91_vm0, %v27_v35  ;;  %v9737_v40 = vld [vmem:[%s17019_s0 + $0x20] sm:$0xff] }
   0xe   :  { %96 = vst.msk [vmem:[#allocation2 + $0x20] sm:$0xff] %vm91_vm0, %v9699_v33  ;;  %v190_v36 = vld [vmem:[%s17019_s0 + $0x1c9] sm:$0xff]  ;;  %v189_v37 = vld [vmem:[%s17019_s0 + $0x1b9] sm:$0xff]  ;;  %v191_v38 = vld [vmem:[%s17019_s0 + $0x1d1] sm:$0xff] }
   0xf   :  { %94 = vst.msk [vmem:[#allocation2 + $0x10] sm:$0xff] %vm91_vm0, %v9706_v34  ;;  %v9729_v39 = vld [vmem:[%s17019_s0 + $0x38] sm:$0xff]  ;;  %v28_v41 = vld [vmem:[%s17019_s0 + $0x8] sm:$0xff]  ;;  %v9760_v46 = vld [vmem:[%s17019_s0 + $0x60] sm:$0xff] }
  0x10   :  { %97 = vst.msk [vmem:[#allocation2 + $0x28] sm:$0xff] %vm91_vm0, %v9729_v39  ;;  %v193_v43 = vld [vmem:[%s17019_s0 + $0x1e9] sm:$0xff]  ;;  %v192_v44 = vld [vmem:[%s17019_s0 + $0x1e1] sm:$0xff]  ;;  %v194_v45 = vld [vmem:[%s17019_s0 + $0x1f9] sm:$0xff] }
  0x11   :  { %95 = vst.msk [vmem:[#allocation2 + $0x18] sm:$0xff] %vm91_vm0, %v9737_v40  ;;  %v9768_v47 = vld [vmem:[%s17019_s0 + $0x50] sm:$0xff]  ;;  %v9773_v48 = vld [vmem:[%s17019_s0 + $0x48] sm:$0xff]  ;;  %v197_v52 = vld [vmem:[%s17019_s0 + $0x219] sm:$0xff] }
  0x12   :  { %298 = vrot.lane.b32.xlu1 %v163_v6, %s9516_s28  ;;  %296 = vrot.lane.b32.xlu0 %v162_v7, %s9516_s28  ;;  %93 = vst.msk [vmem:[#allocation2 + $0x8] sm:$0xff] %vm91_vm0, %v28_v41  ;;  %v196_v50 = vld [vmem:[%s17019_s0 + $0x211] sm:$0xff]  ;;  %v195_v51 = vld [vmem:[%s17019_s0 + $0x201] sm:$0xff] }
  0x13   :  { %300 = vrot.lane.b32.xlu2 %v164_v8, %s9516_s28  ;;  %100 = vst.msk [vmem:[#allocation2 + $0x40] sm:$0xff] %vm91_vm0, %v9760_v46  ;;  %v9794_v53 = vld [vmem:[%s17019_s0 + $0x80] sm:$0xff]  ;;  %v9802_v54 = vld [vmem:[%s17019_s0 + $0x78] sm:$0xff]  ;;  %v9807_v55 = vld [vmem:[%s17019_s0 + $0x68] sm:$0xff] }
  0x14   :  { %99 = vst.msk [vmem:[#allocation2 + $0x38] sm:$0xff] %vm91_vm0, %v9768_v47  ;;  %v199_v57 = vld [vmem:[%s17019_s0 + $0x231] sm:$0xff]  ;;  %v198_v58 = vld [vmem:[%s17019_s0 + $0x229] sm:$0xff]  ;;  %v200_v59 = vld [vmem:[%s17019_s0 + $0x241] sm:$0xff] }
  0x15   :  { %98 = vst.msk [vmem:[#allocation2 + $0x30] sm:$0xff] %vm91_vm0, %v9773_v48  ;;  %v9828_v60 = vld [vmem:[%s17019_s0 + $0xa8] sm:$0xff]  ;;  %v9837_v63 = vld [vmem:[%s17019_s0 + $0x98] sm:$0xff]  ;;  %v9843_v1 = vld [vmem:[%s17019_s0 + $0x90] sm:$0xff] }
  0x16   :  { %103 = vst.msk [vmem:[#allocation2 + $0x58] sm:$0xff] %vm91_vm0, %v9794_v53  ;;  %v202_v2 = vld [vmem:[%s17019_s0 + $0x259] sm:$0xff]  ;;  %v201_v3 = vld [vmem:[%s17019_s0 + $0x249] sm:$0xff]  ;;  %v203_v4 = vld [vmem:[%s17019_s0 + $0x261] sm:$0xff] }
  0x17   :  { %102 = vst.msk [vmem:[#allocation2 + $0x50] sm:$0xff] %vm91_vm0, %v9802_v54  ;;  %v9864_v5 = vld [vmem:[%s17019_s0 + $0xc8] sm:$0xff]  ;;  %v9873_v8 = vld [vmem:[%s17019_s0 + $0xc0] sm:$0xff] }
  0x18   :  { %101 = vst.msk [vmem:[#allocation2 + $0x48] sm:$0xff] %vm91_vm0, %v9807_v55  ;;  %v9987_v41 = vld [vmem:[%s17019_s0 + $0x120] sm:$0xff] }
  0x19   :  { %106 = vst.msk [vmem:[#allocation2 + $0x70] sm:$0xff] %vm91_vm0, %v9828_v60 }
  0x1a   :  { %304 = vrot.lane.b32.xlu1 %v166_v9, %s9516_s28  ;;  %302 = vrot.lane.b32.xlu0 %v165_v10, %s9516_s28  ;;  %105 = vst.msk [vmem:[#allocation2 + $0x68] sm:$0xff] %vm91_vm0, %v9837_v63  ;;  %v9879_v10 = vld [vmem:[%s17019_s0 + $0xb0] sm:$0xff] }
  0x1b   :  { %306 = vrot.lane.b32.xlu2 %v167_v11, %s9516_s28  ;;  %104 = vst.msk [vmem:[#allocation2 + $0x60] sm:$0xff] %vm91_vm0, %v9843_v1  ;;  %v205_v11 = vld [vmem:[%s17019_s0 + $0x279] sm:$0xff] }
  0x1c   :  { %109 = vst.msk [vmem:[#allocation2 + $0x88] sm:$0xff] %vm91_vm0, %v9864_v5 }
  0x1d   :  { %108 = vst.msk [vmem:[#allocation2 + $0x80] sm:$0xff] %vm91_vm0, %v9873_v8 }
  0x1e   :  { %107 = vst.msk [vmem:[#allocation2 + $0x78] sm:$0xff] %vm91_vm0, %v9879_v10 }
  0x1f   :  { %116 = vst.msk [vmem:[#allocation2 + $0xc0] sm:$0xff] %vm91_vm0, %v9987_v41 }
  0x22   :  { %310 = vrot.lane.b32.xlu1 %v169_v12, %s9516_s28  ;;  %308 = vrot.lane.b32.xlu0 %v168_v13, %s9516_s28  ;;  %v204_v12 = vld [vmem:[%s17019_s0 + $0x271] sm:$0xff]  ;;  %v206_v13 = vld [vmem:[%s17019_s0 + $0x289] sm:$0xff] }
  0x23   :  { %312 = vrot.lane.b32.xlu2 %v170_v14, %s9516_s28  ;;  %v9900_v14 = vld [vmem:[%s17019_s0 + $0xf0] sm:$0xff] }
  0x24   :  { %112 = vst.msk [vmem:[#allocation2 + $0xa0] sm:$0xff] %vm91_vm0, %v9900_v14 }
  0x2a   :  { %316 = vrot.lane.b32.xlu1 %v172_v15, %s9516_s28  ;;  %314 = vrot.lane.b32.xlu0 %v171_v16, %s9516_s28 }
  0x2b   :  { %318 = vrot.lane.b32.xlu2 %v173_v17, %s9516_s28  ;;  %v9909_v17 = vld [vmem:[%s17019_s0 + $0xe0] sm:$0xff] }
  0x2c   :  { %111 = vst.msk [vmem:[#allocation2 + $0x98] sm:$0xff] %vm91_vm0, %v9909_v17 }
  0x32   :  { %322 = vrot.lane.b32.xlu1 %v175_v18, %s9516_s28  ;;  %320 = vrot.lane.b32.xlu0 %v174_v19, %s9516_s28  ;;  %v9915_v19 = vld [vmem:[%s17019_s0 + $0xd8] sm:$0xff] }
  0x33   :  { %324 = vrot.lane.b32.xlu2 %v176_v20, %s9516_s28  ;;  %v208_v20 = vld [vmem:[%s17019_s0 + $0x2a1] sm:$0xff]  ;;  %110 = vst.msk [vmem:[#allocation2 + $0x90] sm:$0xff] %vm91_vm0, %v9915_v19 }
  0x3a   :  { %328 = vrot.lane.b32.xlu1 %v178_v21, %s9516_s28  ;;  %326 = vrot.lane.b32.xlu0 %v177_v22, %s9516_s28  ;;  %v207_v21 = vld [vmem:[%s17019_s0 + $0x291] sm:$0xff]  ;;  %v209_v22 = vld [vmem:[%s17019_s0 + $0x2a9] sm:$0xff] }
  0x3b   :  { %330 = vrot.lane.b32.xlu2 %v179_v23, %s9516_s28  ;;  %v9936_v23 = vld [vmem:[%s17019_s0 + $0x110] sm:$0xff] }
  0x3c   :  { %115 = vst.msk [vmem:[#allocation2 + $0xb8] sm:$0xff] %vm91_vm0, %v9936_v23 }
  0x42   :  { %334 = vrot.lane.b32.xlu1 %v181_v24, %s9516_s28  ;;  %332 = vrot.lane.b32.xlu0 %v180_v25, %s9516_s28 }
  0x43   :  { %336 = vrot.lane.b32.xlu2 %v182_v26, %s9516_s28  ;;  %v9945_v26 = vld [vmem:[%s17019_s0 + $0x108] sm:$0xff] }
  0x44   :  { %114 = vst.msk [vmem:[#allocation2 + $0xb0] sm:$0xff] %vm91_vm0, %v9945_v26 }
  0x4a   :  { %340 = vrot.lane.b32.xlu1 %v184_v27, %s9516_s28  ;;  %338 = vrot.lane.b32.xlu0 %v183_v28, %s9516_s28  ;;  %v9951_v28 = vld [vmem:[%s17019_s0 + $0xf8] sm:$0xff] }
  0x4b   :  { %342 = vrot.lane.b32.xlu2 %v185_v29, %s9516_s28  ;;  %v211_v29 = vld [vmem:[%s17019_s0 + $0x2c1] sm:$0xff]  ;;  %113 = vst.msk [vmem:[#allocation2 + $0xa8] sm:$0xff] %vm91_vm0, %v9951_v28 }
  0x52   :  { %346 = vrot.lane.b32.xlu1 %v187_v30, %s9516_s28  ;;  %344 = vrot.lane.b32.xlu0 %v186_v31, %s9516_s28  ;;  %v210_v30 = vld [vmem:[%s17019_s0 + $0x2b9] sm:$0xff]  ;;  %v212_v31 = vld [vmem:[%s17019_s0 + $0x2d1] sm:$0xff] }
  0x53   :  { %348 = vrot.lane.b32.xlu2 %v188_v32, %s9516_s28  ;;  %v9972_v32 = vld [vmem:[%s17019_s0 + $0x138] sm:$0xff] }
  0x54   :  { %118 = vst.msk [vmem:[#allocation2 + $0xd0] sm:$0xff] %vm91_vm0, %v9972_v32 }
  0x5a   :  { %352 = vrot.lane.b32.xlu1 %v190_v36, %s9516_s28  ;;  %350 = vrot.lane.b32.xlu0 %v189_v37, %s9516_s28  ;;  %v9981_v37 = vld [vmem:[%s17019_s0 + $0x128] sm:$0xff] }
  0x5b   :  { %354 = vrot.lane.b32.xlu2 %v191_v38, %s9516_s28  ;;  %117 = vst.msk [vmem:[#allocation2 + $0xc8] sm:$0xff] %vm91_vm0, %v9981_v37 }
  0x5d   :  { %v293_v42 = vpop.permute.xlu2 %292 }
  0x5e   :  { %481 = vst.msk [vmem:[#allocation2 + $0x20] sm:$0xff] %vm476_vm1, %v293_v42  ;;  %v214_v42 = vld [vmem:[%s17019_s0 + $0x2e9] sm:$0xff] }
  0x62   :  { %358 = vrot.lane.b32.xlu1 %v193_v43, %s9516_s28  ;;  %356 = vrot.lane.b32.xlu0 %v192_v44, %s9516_s28  ;;  %v213_v43 = vld [vmem:[%s17019_s0 + $0x2d9] sm:$0xff]  ;;  %v215_v44 = vld [vmem:[%s17019_s0 + $0x2f1] sm:$0xff] }
  0x63   :  { %360 = vrot.lane.b32.xlu2 %v194_v45, %s9516_s28  ;;  %v10008_v45 = vld [vmem:[%s17019_s0 + $0x158] sm:$0xff] }
  0x64   :  { %121 = vst.msk [vmem:[#allocation2 + $0xe8] sm:$0xff] %vm91_vm0, %v10008_v45 }
  0x65   :  { %v295_v49 = vpop.permute.xlu2 %294 }
  0x66   :  { %482 = vst.msk [vmem:[#allocation2 + $0x28] sm:$0xff] %vm476_vm1, %v295_v49 }
  0x6a   :  { %364 = vrot.lane.b32.xlu1 %v196_v50, %s9516_s28  ;;  %362 = vrot.lane.b32.xlu0 %v195_v51, %s9516_s28  ;;  %v10017_v51 = vld [vmem:[%s17019_s0 + $0x150] sm:$0xff] }
  0x6b   :  { %366 = vrot.lane.b32.xlu2 %v197_v52, %s9516_s28  ;;  %120 = vst.msk [vmem:[#allocation2 + $0xe0] sm:$0xff] %vm91_vm0, %v10017_v51 }
  0x6d   :  { %v301_v56 = vpop.permute.xlu2 %300 }
  0x6e   :  { %485 = vst.msk [vmem:[#allocation2 + $0x40] sm:$0xff] %vm476_vm1, %v301_v56  ;;  %v10023_v56 = vld [vmem:[%s17019_s0 + $0x140] sm:$0xff] }
  0x6f   :  { %119 = vst.msk [vmem:[#allocation2 + $0xd8] sm:$0xff] %vm91_vm0, %v10023_v56 }
  0x72   :  { %370 = vrot.lane.b32.xlu1 %v199_v57, %s9516_s28  ;;  %368 = vrot.lane.b32.xlu0 %v198_v58, %s9516_s28  ;;  %v217_v57 = vld [vmem:[%s17019_s0 + $0x309] sm:$0xff]  ;;  %v216_v58 = vld [vmem:[%s17019_s0 + $0x301] sm:$0xff] }
  0x73   :  { %372 = vrot.lane.b32.xlu2 %v200_v59, %s9516_s28  ;;  %v218_v59 = vld [vmem:[%s17019_s0 + $0x319] sm:$0xff] }
  0x74   :  { %v289_v61 = vpop.permute.xlu1 %288  ;;  %v285_v62 = vpop.permute.xlu0 %284 }
  0x75   :  { %479 = vst.msk [vmem:[#allocation2 + $0x10] sm:$0xff] %vm476_vm1, %v289_v61  ;;  %v307_v0 = vpop.permute.xlu2 %306  ;;  %v59_v61 = vld [vmem:[%s17019_s0 + $0x1b0] sm:$0xff] }
  0x76   :  { %477 = vst.msk [vmem:[#allocation2] sm:$0xff] %vm476_vm1, %v285_v62 }
  0x77   :  { %488 = vst.msk [vmem:[#allocation2 + $0x58] sm:$0xff] %vm476_vm1, %v307_v0 }
  0x78   :  { %124 = vst.msk [vmem:[#allocation2 + $0x100] sm:$0xff] %vm91_vm0, %v59_v61  ;;  %v10182_v61 = vld [vmem:[%s17019_s0 + $0x240] sm:$0xff] }
  0x79   :  { %136 = vst.msk [vmem:[#allocation2 + $0x160] sm:$0xff] %vm91_vm0, %v10182_v61 }
  0x7a   :  { %376 = vrot.lane.b32.xlu1 %v202_v2, %s9516_s28  ;;  %374 = vrot.lane.b32.xlu0 %v201_v3, %s9516_s28  ;;  %v10050_v2 = vld [vmem:[%s17019_s0 + $0x170] sm:$0xff] }
  0x7b   :  { %378 = vrot.lane.b32.xlu2 %v203_v4, %s9516_s28  ;;  %v10056_v4 = vld [vmem:[%s17019_s0 + $0x168] sm:$0xff]  ;;  %123 = vst.msk [vmem:[#allocation2 + $0xf8] sm:$0xff] %vm91_vm0, %v10050_v2 }
  0x7c   :  { %v291_v6 = vpop.permute.xlu1 %290  ;;  %v287_v7 = vpop.permute.xlu0 %286  ;;  %122 = vst.msk [vmem:[#allocation2 + $0xf0] sm:$0xff] %vm91_vm0, %v10056_v4 }
  0x7d   :  { %480 = vst.msk [vmem:[#allocation2 + $0x18] sm:$0xff] %vm476_vm1, %v291_v6  ;;  %v313_v9 = vpop.permute.xlu2 %312  ;;  %v541_v6 = vld [vmem:[%s17019_s0 + $0x2] sm:$0xff] }
  0x7e   :  { %478 = vst.msk [vmem:[#allocation2 + $0x8] sm:$0xff] %vm476_vm1, %v287_v7  ;;  %v219_v7 = vld [vmem:[%s17019_s0 + $0x321] sm:$0xff] }
  0x7f   :  { %491 = vst.msk [vmem:[#allocation2 + $0x70] sm:$0xff] %vm476_vm1, %v313_v9  ;;  %v542_v9 = vld [vmem:[%s17019_s0 + $0xa] sm:$0xff] }
  0x82   :  { %382 = vrot.lane.b32.xlu1 %v205_v11, %s9516_s28  ;;  %380 = vrot.lane.b32.xlu0 %v204_v12, %s9516_s28  ;;  %v10077_v11 = vld [vmem:[%s17019_s0 + $0x1d0] sm:$0xff] }
  0x83   :  { %384 = vrot.lane.b32.xlu2 %v206_v13, %s9516_s28  ;;  %127 = vst.msk [vmem:[#allocation2 + $0x118] sm:$0xff] %vm91_vm0, %v10077_v11 }
  0x84   :  { %v299_v15 = vpop.permute.xlu1 %298  ;;  %v297_v16 = vpop.permute.xlu0 %296 }
  0x85   :  { %484 = vst.msk [vmem:[#allocation2 + $0x38] sm:$0xff] %vm476_vm1, %v299_v15  ;;  %v319_v18 = vpop.permute.xlu2 %318  ;;  %v10086_v15 = vld [vmem:[%s17019_s0 + $0x1c8] sm:$0xff] }
  0x86   :  { %483 = vst.msk [vmem:[#allocation2 + $0x30] sm:$0xff] %vm476_vm1, %v297_v16 }
  0x87   :  { %494 = vst.msk [vmem:[#allocation2 + $0x88] sm:$0xff] %vm476_vm1, %v319_v18  ;;  %v60_v18 = vld [vmem:[%s17019_s0 + $0x1b8] sm:$0xff] }
  0x88   :  { %126 = vst.msk [vmem:[#allocation2 + $0x110] sm:$0xff] %vm91_vm0, %v10086_v15 }
  0x89   :  { %125 = vst.msk [vmem:[#allocation2 + $0x108] sm:$0xff] %vm91_vm0, %v60_v18 }
  0x8a   :  { %388 = vrot.lane.b32.xlu1 %v208_v20, %s9516_s28  ;;  %386 = vrot.lane.b32.xlu0 %v207_v21, %s9516_s28  ;;  %v544_v20 = vld [vmem:[%s17019_s0 + $0x22] sm:$0xff]  ;;  %v543_v21 = vld [vmem:[%s17019_s0 + $0x1a] sm:$0xff] }
  0x8b   :  { %390 = vrot.lane.b32.xlu2 %v209_v22, %s9516_s28  ;;  %v545_v22 = vld [vmem:[%s17019_s0 + $0x32] sm:$0xff] }
  0x8c   :  { %v305_v24 = vpop.permute.xlu1 %304  ;;  %v303_v25 = vpop.permute.xlu0 %302 }
  0x8d   :  { %487 = vst.msk [vmem:[#allocation2 + $0x50] sm:$0xff] %vm476_vm1, %v305_v24  ;;  %v325_v27 = vpop.permute.xlu2 %324  ;;  %v10110_v24 = vld [vmem:[%s17019_s0 + $0x1f8] sm:$0xff] }
  0x8e   :  { %486 = vst.msk [vmem:[#allocation2 + $0x48] sm:$0xff] %vm476_vm1, %v303_v25 }
  0x8f   :  { %497 = vst.msk [vmem:[#allocation2 + $0xa0] sm:$0xff] %vm476_vm1, %v325_v27 }
  0x90   :  { %130 = vst.msk [vmem:[#allocation2 + $0x130] sm:$0xff] %vm91_vm0, %v10110_v24 }
  0x92   :  { %394 = vrot.lane.b32.xlu1 %v211_v29, %s9516_s28  ;;  %392 = vrot.lane.b32.xlu0 %v210_v30, %s9516_s28  ;;  %v10119_v29 = vld [vmem:[%s17019_s0 + $0x1e8] sm:$0xff] }
  0x93   :  { %396 = vrot.lane.b32.xlu2 %v212_v31, %s9516_s28  ;;  %v10125_v31 = vld [vmem:[%s17019_s0 + $0x1e0] sm:$0xff]  ;;  %129 = vst.msk [vmem:[#allocation2 + $0x128] sm:$0xff] %vm91_vm0, %v10119_v29 }
  0x94   :  { %v311_v35 = vpop.permute.xlu1 %310  ;;  %v309_v36 = vpop.permute.xlu0 %308  ;;  %128 = vst.msk [vmem:[#allocation2 + $0x120] sm:$0xff] %vm91_vm0, %v10125_v31 }
  0x95   :  { %490 = vst.msk [vmem:[#allocation2 + $0x68] sm:$0xff] %vm476_vm1, %v311_v35  ;;  %v331_v38 = vpop.permute.xlu2 %330  ;;  %v547_v35 = vld [vmem:[%s17019_s0 + $0x4a] sm:$0xff] }
  0x96   :  { %489 = vst.msk [vmem:[#allocation2 + $0x60] sm:$0xff] %vm476_vm1, %v309_v36  ;;  %v546_v36 = vld [vmem:[%s17019_s0 + $0x3a] sm:$0xff] }
  0x97   :  { %500 = vst.msk [vmem:[#allocation2 + $0xb8] sm:$0xff] %vm476_vm1, %v331_v38  ;;  %v548_v38 = vld [vmem:[%s17019_s0 + $0x52] sm:$0xff] }
  0x9a   :  { %400 = vrot.lane.b32.xlu1 %v214_v42, %s9516_s28  ;;  %398 = vrot.lane.b32.xlu0 %v213_v43, %s9516_s28  ;;  %v10146_v42 = vld [vmem:[%s17019_s0 + $0x218] sm:$0xff] }
  0x9b   :  { %402 = vrot.lane.b32.xlu2 %v215_v44, %s9516_s28  ;;  %133 = vst.msk [vmem:[#allocation2 + $0x148] sm:$0xff] %vm91_vm0, %v10146_v42 }
  0x9c   :  { %v317_v49 = vpop.permute.xlu1 %316  ;;  %v315_v50 = vpop.permute.xlu0 %314 }
  0x9d   :  { %493 = vst.msk [vmem:[#allocation2 + $0x80] sm:$0xff] %vm476_vm1, %v317_v49  ;;  %v337_v52 = vpop.permute.xlu2 %336  ;;  %v10155_v49 = vld [vmem:[%s17019_s0 + $0x210] sm:$0xff] }
  0x9e   :  { %492 = vst.msk [vmem:[#allocation2 + $0x78] sm:$0xff] %vm476_vm1, %v315_v50 }
  0x9f   :  { %503 = vst.msk [vmem:[#allocation2 + $0xd0] sm:$0xff] %vm476_vm1, %v337_v52  ;;  %v10161_v52 = vld [vmem:[%s17019_s0 + $0x200] sm:$0xff] }
  0xa0   :  { %132 = vst.msk [vmem:[#allocation2 + $0x140] sm:$0xff] %vm91_vm0, %v10155_v49 }
  0xa1   :  { %131 = vst.msk [vmem:[#allocation2 + $0x138] sm:$0xff] %vm91_vm0, %v10161_v52 }
  0xa2   :  { %406 = vrot.lane.b32.xlu1 %v217_v57, %s9516_s28  ;;  %404 = vrot.lane.b32.xlu0 %v216_v58, %s9516_s28  ;;  %v550_v57 = vld [vmem:[%s17019_s0 + $0x6a] sm:$0xff]  ;;  %v549_v58 = vld [vmem:[%s17019_s0 + $0x62] sm:$0xff] }
  0xa3   :  { %408 = vrot.lane.b32.xlu2 %v218_v59, %s9516_s28  ;;  %v551_v59 = vld [vmem:[%s17019_s0 + $0x7a] sm:$0xff] }
  0xa4   :  { %v323_v62 = vpop.permute.xlu1 %322  ;;  %v321_v0 = vpop.permute.xlu0 %320 }
  0xa5   :  { %496 = vst.msk [vmem:[#allocation2 + $0x98] sm:$0xff] %vm476_vm1, %v323_v62  ;;  %v343_v3 = vpop.permute.xlu2 %342 }
  0xa6   :  { %495 = vst.msk [vmem:[#allocation2 + $0x90] sm:$0xff] %vm476_vm1, %v321_v0 }
  0xa7   :  { %506 = vst.msk [vmem:[#allocation2 + $0xe8] sm:$0xff] %vm476_vm1, %v343_v3  ;;  %v10191_v3 = vld [vmem:[%s17019_s0 + $0x230] sm:$0xff] }
  0xa8   :  { %135 = vst.msk [vmem:[#allocation2 + $0x158] sm:$0xff] %vm91_vm0, %v10191_v3 }
  0xaa   :  { %669 = vrot.lane.b32.xlu1 %v541_v6, %s9517_s24  ;;  %410 = vrot.lane.b32.xlu0 %v219_v7, %s9516_s28  ;;  %v10197_v7 = vld [vmem:[%s17019_s0 + $0x228] sm:$0xff] }
  0xab   :  { %671 = vrot.lane.b32.xlu2 %v542_v9, %s9517_s24  ;;  %v553_v9 = vld [vmem:[%s17019_s0 + $0x92] sm:$0xff]  ;;  %134 = vst.msk [vmem:[#allocation2 + $0x150] sm:$0xff] %vm91_vm0, %v10197_v7 }
  0xac   :  { %v329_v12 = vpop.permute.xlu1 %328  ;;  %v327_v13 = vpop.permute.xlu0 %326 }
  0xad   :  { %499 = vst.msk [vmem:[#allocation2 + $0xb0] sm:$0xff] %vm476_vm1, %v329_v12  ;;  %v349_v16 = vpop.permute.xlu2 %348  ;;  %v552_v12 = vld [vmem:[%s17019_s0 + $0x82] sm:$0xff] }
  0xae   :  { %498 = vst.msk [vmem:[#allocation2 + $0xa8] sm:$0xff] %vm476_vm1, %v327_v13  ;;  %v554_v13 = vld [vmem:[%s17019_s0 + $0x9a] sm:$0xff] }
  0xaf   :  { %509 = vst.msk [vmem:[#allocation2 + $0x100] sm:$0xff] %vm476_vm1, %v349_v16  ;;  %v10218_v16 = vld [vmem:[%s17019_s0 + $0x260] sm:$0xff] }
  0xb0   :  { %139 = vst.msk [vmem:[#allocation2 + $0x178] sm:$0xff] %vm91_vm0, %v10218_v16 }
  0xb2   :  { %675 = vrot.lane.b32.xlu1 %v544_v20, %s9517_s24  ;;  %673 = vrot.lane.b32.xlu0 %v543_v21, %s9517_s24  ;;  %v10227_v21 = vld [vmem:[%s17019_s0 + $0x258] sm:$0xff] }
  0xb3   :  { %677 = vrot.lane.b32.xlu2 %v545_v22, %s9517_s24  ;;  %138 = vst.msk [vmem:[#allocation2 + $0x170] sm:$0xff] %vm91_vm0, %v10227_v21 }
  0xb4   :  { %v335_v25 = vpop.permute.xlu1 %334  ;;  %v333_v27 = vpop.permute.xlu0 %332 }
  0xb5   :  { %502 = vst.msk [vmem:[#allocation2 + $0xc8] sm:$0xff] %vm476_vm1, %v335_v25  ;;  %v355_v30 = vpop.permute.xlu2 %354  ;;  %v10233_v25 = vld [vmem:[%s17019_s0 + $0x248] sm:$0xff] }
  0xb6   :  { %501 = vst.msk [vmem:[#allocation2 + $0xc0] sm:$0xff] %vm476_vm1, %v333_v27  ;;  %v556_v27 = vld [vmem:[%s17019_s0 + $0xb2] sm:$0xff] }
  0xb7   :  { %512 = vst.msk [vmem:[#allocation2 + $0x118] sm:$0xff] %vm476_vm1, %v355_v30  ;;  %v555_v30 = vld [vmem:[%s17019_s0 + $0xaa] sm:$0xff] }
  0xb8   :  { %137 = vst.msk [vmem:[#allocation2 + $0x168] sm:$0xff] %vm91_vm0, %v10233_v25 }
  0xba   :  { %681 = vrot.lane.b32.xlu1 %v547_v35, %s9517_s24  ;;  %679 = vrot.lane.b32.xlu0 %v546_v36, %s9517_s24  ;;  %v557_v35 = vld [vmem:[%s17019_s0 + $0xc2] sm:$0xff] }
  0xbb   :  { %683 = vrot.lane.b32.xlu2 %v548_v38, %s9517_s24  ;;  %v10254_v36 = vld [vmem:[%s17019_s0 + $0x288] sm:$0xff] }
  0xbc   :  { %v341_v43 = vpop.permute.xlu1 %340  ;;  %v339_v44 = vpop.permute.xlu0 %338  ;;  %142 = vst.msk [vmem:[#allocation2 + $0x190] sm:$0xff] %vm91_vm0, %v10254_v36 }
  0xbd   :  { %505 = vst.msk [vmem:[#allocation2 + $0xe0] sm:$0xff] %vm476_vm1, %v341_v43  ;;  %v361_v50 = vpop.permute.xlu2 %360 }
  0xbe   :  { %504 = vst.msk [vmem:[#allocation2 + $0xd8] sm:$0xff] %vm476_vm1, %v339_v44  ;;  %v10263_v44 = vld [vmem:[%s17019_s0 + $0x278] sm:$0xff] }
  0xbf   :  { %515 = vst.msk [vmem:[#allocation2 + $0x130] sm:$0xff] %vm476_vm1, %v361_v50 }
  0xc0   :  { %141 = vst.msk [vmem:[#allocation2 + $0x188] sm:$0xff] %vm91_vm0, %v10263_v44 }
  0xc2   :  { %687 = vrot.lane.b32.xlu1 %v550_v57, %s9517_s24  ;;  %685 = vrot.lane.b32.xlu0 %v549_v58, %s9517_s24  ;;  %v10269_v57 = vld [vmem:[%s17019_s0 + $0x270] sm:$0xff]  ;;  %v559_v58 = vld [vmem:[%s17019_s0 + $0xda] sm:$0xff] }
  0xc3   :  { %689 = vrot.lane.b32.xlu2 %v551_v59, %s9517_s24  ;;  %v558_v59 = vld [vmem:[%s17019_s0 + $0xca] sm:$0xff]  ;;  %140 = vst.msk [vmem:[#allocation2 + $0x180] sm:$0xff] %vm91_vm0, %v10269_v57 }
  0xc4   :  { %v347_v62 = vpop.permute.xlu1 %346  ;;  %v345_v0 = vpop.permute.xlu0 %344 }
  0xc5   :  { %508 = vst.msk [vmem:[#allocation2 + $0xf8] sm:$0xff] %vm476_vm1, %v347_v62  ;;  %v367_v6 = vpop.permute.xlu2 %366  ;;  %v560_v62 = vld [vmem:[%s17019_s0 + $0xe2] sm:$0xff] }
  0xc6   :  { %507 = vst.msk [vmem:[#allocation2 + $0xf0] sm:$0xff] %vm476_vm1, %v345_v0  ;;  %v10290_v0 = vld [vmem:[%s17019_s0 + $0x2a8] sm:$0xff] }
  0xc7   :  { %518 = vst.msk [vmem:[#allocation2 + $0x148] sm:$0xff] %vm476_vm1, %v367_v6 }
  0xc8   :  { %145 = vst.msk [vmem:[#allocation2 + $0x1a8] sm:$0xff] %vm91_vm0, %v10290_v0 }
  0xca   :  { %693 = vrot.lane.b32.xlu1 %v553_v9, %s9517_s24  ;;  %691 = vrot.lane.b32.xlu0 %v552_v12, %s9517_s24  ;;  %v10299_v12 = vld [vmem:[%s17019_s0 + $0x2a0] sm:$0xff] }
  0xcb   :  { %695 = vrot.lane.b32.xlu2 %v554_v13, %s9517_s24  ;;  %144 = vst.msk [vmem:[#allocation2 + $0x1a0] sm:$0xff] %vm91_vm0, %v10299_v12 }
  0xcc   :  { %v353_v18 = vpop.permute.xlu1 %352  ;;  %v351_v20 = vpop.permute.xlu0 %350 }
  0xcd   :  { %511 = vst.msk [vmem:[#allocation2 + $0x110] sm:$0xff] %vm476_vm1, %v353_v18  ;;  %v373_v22 = vpop.permute.xlu2 %372  ;;  %v10305_v18 = vld [vmem:[%s17019_s0 + $0x290] sm:$0xff] }
  0xce   :  { %510 = vst.msk [vmem:[#allocation2 + $0x108] sm:$0xff] %vm476_vm1, %v351_v20  ;;  %v562_v20 = vld [vmem:[%s17019_s0 + $0xfa] sm:$0xff] }
  0xcf   :  { %521 = vst.msk [vmem:[#allocation2 + $0x160] sm:$0xff] %vm476_vm1, %v373_v22  ;;  %v561_v22 = vld [vmem:[%s17019_s0 + $0xf2] sm:$0xff] }
  0xd0   :  { %143 = vst.msk [vmem:[#allocation2 + $0x198] sm:$0xff] %vm91_vm0, %v10305_v18 }
  0xd2   :  { %699 = vrot.lane.b32.xlu1 %v556_v27, %s9517_s24  ;;  %697 = vrot.lane.b32.xlu0 %v555_v30, %s9517_s24  ;;  %v563_v27 = vld [vmem:[%s17019_s0 + $0x10a] sm:$0xff] }
  0xd3   :  { %701 = vrot.lane.b32.xlu2 %v557_v35, %s9517_s24  ;;  %v10326_v30 = vld [vmem:[%s17019_s0 + $0x2d0] sm:$0xff] }
  0xd4   :  { %v359_v38 = vpop.permute.xlu1 %358  ;;  %v357_v43 = vpop.permute.xlu0 %356  ;;  %148 = vst.msk [vmem:[#allocation2 + $0x1c0] sm:$0xff] %vm91_vm0, %v10326_v30 }
  0xd5   :  { %514 = vst.msk [vmem:[#allocation2 + $0x128] sm:$0xff] %vm476_vm1, %v359_v38  ;;  %v379_v50 = vpop.permute.xlu2 %378 }
  0xd6   :  { %513 = vst.msk [vmem:[#allocation2 + $0x120] sm:$0xff] %vm476_vm1, %v357_v43  ;;  %v10335_v43 = vld [vmem:[%s17019_s0 + $0x2c0] sm:$0xff] }
  0xd7   :  { %524 = vst.msk [vmem:[#allocation2 + $0x178] sm:$0xff] %vm476_vm1, %v379_v50 }
  0xd8   :  { %147 = vst.msk [vmem:[#allocation2 + $0x1b8] sm:$0xff] %vm91_vm0, %v10335_v43 }
  0xda   :  { %705 = vrot.lane.b32.xlu1 %v559_v58, %s9517_s24  ;;  %703 = vrot.lane.b32.xlu0 %v558_v59, %s9517_s24  ;;  %v10341_v58 = vld [vmem:[%s17019_s0 + $0x2b8] sm:$0xff]  ;;  %v565_v59 = vld [vmem:[%s17019_s0 + $0x122] sm:$0xff] }
  0xdb   :  { %707 = vrot.lane.b32.xlu2 %v560_v62, %s9517_s24  ;;  %v564_v62 = vld [vmem:[%s17019_s0 + $0x112] sm:$0xff]  ;;  %146 = vst.msk [vmem:[#allocation2 + $0x1b0] sm:$0xff] %vm91_vm0, %v10341_v58 }
  0xdc   :  { %v365_v6 = vpop.permute.xlu1 %364  ;;  %v363_v9 = vpop.permute.xlu0 %362 }
  0xdd   :  { %517 = vst.msk [vmem:[#allocation2 + $0x140] sm:$0xff] %vm476_vm1, %v365_v6  ;;  %v385_v13 = vpop.permute.xlu2 %384  ;;  %v566_v6 = vld [vmem:[%s17019_s0 + $0x12a] sm:$0xff] }
  0xde   :  { %516 = vst.msk [vmem:[#allocation2 + $0x138] sm:$0xff] %vm476_vm1, %v363_v9  ;;  %v10362_v9 = vld [vmem:[%s17019_s0 + $0x2f0] sm:$0xff] }
  0xdf   :  { %527 = vst.msk [vmem:[#allocation2 + $0x190] sm:$0xff] %vm476_vm1, %v385_v13 }
  0xe0   :  { %151 = vst.msk [vmem:[#allocation2 + $0x1d8] sm:$0xff] %vm91_vm0, %v10362_v9 }
  0xe2   :  { %711 = vrot.lane.b32.xlu1 %v562_v20, %s9517_s24  ;;  %709 = vrot.lane.b32.xlu0 %v561_v22, %s9517_s24  ;;  %v10371_v22 = vld [vmem:[%s17019_s0 + $0x2e8] sm:$0xff] }
  0xe3   :  { %713 = vrot.lane.b32.xlu2 %v563_v27, %s9517_s24  ;;  %150 = vst.msk [vmem:[#allocation2 + $0x1d0] sm:$0xff] %vm91_vm0, %v10371_v22 }
  0xe4   :  { %v371_v35 = vpop.permute.xlu1 %370  ;;  %v369_v38 = vpop.permute.xlu0 %368 }
  0xe5   :  { %520 = vst.msk [vmem:[#allocation2 + $0x158] sm:$0xff] %vm476_vm1, %v371_v35  ;;  %v391_v50 = vpop.permute.xlu2 %390  ;;  %v10377_v35 = vld [vmem:[%s17019_s0 + $0x2d8] sm:$0xff] }
  0xe6   :  { %519 = vst.msk [vmem:[#allocation2 + $0x150] sm:$0xff] %vm476_vm1, %v369_v38  ;;  %v568_v38 = vld [vmem:[%s17019_s0 + $0x142] sm:$0xff] }
  0xe7   :  { %530 = vst.msk [vmem:[#allocation2 + $0x1a8] sm:$0xff] %vm476_vm1, %v391_v50  ;;  %v567_v50 = vld [vmem:[%s17019_s0 + $0x13a] sm:$0xff] }
  0xe8   :  { %149 = vst.msk [vmem:[#allocation2 + $0x1c8] sm:$0xff] %vm91_vm0, %v10377_v35 }
  0xea   :  { %717 = vrot.lane.b32.xlu1 %v565_v59, %s9517_s24  ;;  %715 = vrot.lane.b32.xlu0 %v564_v62, %s9517_s24  ;;  %v569_v59 = vld [vmem:[%s17019_s0 + $0x152] sm:$0xff] }
  0xeb   :  { %719 = vrot.lane.b32.xlu2 %v566_v6, %s9517_s24  ;;  %v10398_v62 = vld [vmem:[%s17019_s0 + $0x318] sm:$0xff] }
  0xec   :  { %v377_v13 = vpop.permute.xlu1 %376  ;;  %v375_v20 = vpop.permute.xlu0 %374  ;;  %17130 = vst [vmem:[#allocation4_spill] sm:$0xff] %v10398_v62 }
  0xed   :  { %523 = vst.msk [vmem:[#allocation2 + $0x170] sm:$0xff] %vm476_vm1, %v377_v13  ;;  %v397_v27 = vpop.permute.xlu2 %396 }
  0xee   :  { %522 = vst.msk [vmem:[#allocation2 + $0x168] sm:$0xff] %vm476_vm1, %v375_v20  ;;  %v10407_v20 = vld [vmem:[%s17019_s0 + $0x308] sm:$0xff] }
  0xef   :  { %533 = vst.msk [vmem:[#allocation2 + $0x1c0] sm:$0xff] %vm476_vm1, %v397_v27 }
  0xf0   :  { %154 = vst.msk [vmem:[#allocation2 + $0x1f0] sm:$0xff] %vm91_vm0, %v10398_v62 }
  0xf1   :  { %17131 = vst [vmem:[#allocation5_spill] sm:$0xff] %v10407_v20 }
  0xf2   :  { %723 = vrot.lane.b32.xlu1 %v568_v38, %s9517_s24  ;;  %721 = vrot.lane.b32.xlu0 %v567_v50, %s9517_s24  ;;  %v10413_v38 = vld [vmem:[%s17019_s0 + $0x300] sm:$0xff]  ;;  %v571_v50 = vld [vmem:[%s17019_s0 + $0x16a] sm:$0xff]  ;;  %153 = vst.msk [vmem:[#allocation2 + $0x1e8] sm:$0xff] %vm91_vm0, %v10407_v20 }
  0xf3   :  { %725 = vrot.lane.b32.xlu2 %v569_v59, %s9517_s24  ;;  %17132 = vst [vmem:[#allocation6_spill] sm:$0xff] %v10413_v38  ;;  %v570_v59 = vld [vmem:[%s17019_s0 + $0x15a] sm:$0xff] }
  0xf4   :  { %v383_v6 = vpop.permute.xlu1 %382  ;;  %v381_v13 = vpop.permute.xlu0 %380  ;;  %152 = vst.msk [vmem:[#allocation2 + $0x1e0] sm:$0xff] %vm91_vm0, %v10413_v38  ;;  %v579_v38 = vld [vmem:[%s17019_s0 + $0x1fa] sm:$0xff] }
  0xf5   :  { %526 = vst.msk [vmem:[#allocation2 + $0x188] sm:$0xff] %vm476_vm1, %v383_v6  ;;  %v403_v27 = vpop.permute.xlu2 %402  ;;  %v572_v6 = vld [vmem:[%s17019_s0 + $0x172] sm:$0xff] }
  0xf6   :  { %525 = vst.msk [vmem:[#allocation2 + $0x180] sm:$0xff] %vm476_vm1, %v381_v13 }
  0xf7   :  { %536 = vst.msk [vmem:[#allocation2 + $0x1d8] sm:$0xff] %vm476_vm1, %v403_v27  ;;  %v10436_v27 = vld [vmem:[%s17019_s0 + $0x320] sm:$0xff] }
  0xf8   :  { %17133 = vst [vmem:[#allocation7_spill] sm:$0xff] %v10436_v27 }
  0xf9   :  { %155 = vst.msk [vmem:[#allocation2 + $0x1f8] sm:$0xff] %vm91_vm0, %v10436_v27  ;;  %v577_v27 = vld [vmem:[%s17019_s0 + $0x1e2] sm:$0xff] }
  0xfa   :  { %729 = vrot.lane.b32.xlu1 %v571_v50, %s9517_s24  ;;  %727 = vrot.lane.b32.xlu0 %v570_v59, %s9517_s24  ;;  %v574_v50 = vld [vmem:[%s17019_s0 + $0x1ba] sm:$0xff]  ;;  %v573_v59 = vld [vmem:[%s17019_s0 + $0x1b2] sm:$0xff] }
  0xfb   :  { %731 = vrot.lane.b32.xlu2 %v572_v6, %s9517_s24  ;;  %v575_v6 = vld [vmem:[%s17019_s0 + $0x1ca] sm:$0xff] }
  0xfc   :  { %v389_v13 = vpop.permute.xlu1 %388  ;;  %v387_v62 = vpop.permute.xlu0 %386 }
  0xfd   :  { %529 = vst.msk [vmem:[#allocation2 + $0x1a0] sm:$0xff] %vm476_vm1, %v389_v13  ;;  %v409_v20 = vpop.permute.xlu2 %408 }
  0xfe   :  { %528 = vst.msk [vmem:[#allocation2 + $0x198] sm:$0xff] %vm476_vm1, %v387_v62 }
  0xff   :  { %539 = vst.msk [vmem:[#allocation2 + $0x1f0] sm:$0xff] %vm476_vm1, %v409_v20 }
 0x102   :  { %735 = vrot.lane.b32.xlu1 %v574_v50, %s9517_s24  ;;  %733 = vrot.lane.b32.xlu0 %v573_v59, %s9517_s24  ;;  %v576_v50 = vld [vmem:[%s17019_s0 + $0x1d2] sm:$0xff]  ;;  %v578_v59 = vld [vmem:[%s17019_s0 + $0x1ea] sm:$0xff] }
 0x103   :  { %737 = vrot.lane.b32.xlu2 %v575_v6, %s9517_s24 }
 0x104   :  { %v395_v62 = vpop.permute.xlu1 %394  ;;  %v393_v13 = vpop.permute.xlu0 %392 }
 0x105   :  { %532 = vst.msk [vmem:[#allocation2 + $0x1b8] sm:$0xff] %vm476_vm1, %v395_v62  ;;  %v672_v20 = vpop.permute.xlu2 %671 }
 0x106   :  { %531 = vst.msk [vmem:[#allocation2 + $0x1b0] sm:$0xff] %vm476_vm1, %v393_v13 }
 0x107   :  { %863 = vst.msk [vmem:[#allocation2 + $0x8] sm:$0xff] %vm861_vm2, %v672_v20  ;;  %v580_v20 = vld [vmem:[%s17019_s0 + $0x202] sm:$0xff] }
 0x10a   :  { %741 = vrot.lane.b32.xlu1 %v577_v27, %s9517_s24  ;;  %739 = vrot.lane.b32.xlu0 %v576_v50, %s9517_s24  ;;  %v581_v27 = vld [vmem:[%s17019_s0 + $0x212] sm:$0xff] }
 0x10b   :  { %743 = vrot.lane.b32.xlu2 %v578_v59, %s9517_s24 }
 0x10c   :  { %v401_v6 = vpop.permute.xlu1 %400  ;;  %v399_v62 = vpop.permute.xlu0 %398 }
 0x10d   :  { %535 = vst.msk [vmem:[#allocation2 + $0x1d0] sm:$0xff] %vm476_vm1, %v401_v6  ;;  %v678_v13 = vpop.permute.xlu2 %677 }
 0x10e   :  { %534 = vst.msk [vmem:[#allocation2 + $0x1c8] sm:$0xff] %vm476_vm1, %v399_v62  ;;  %v583_v62 = vld [vmem:[%s17019_s0 + $0x22a] sm:$0xff] }
 0x10f   :  { %866 = vst.msk [vmem:[#allocation2 + $0x20] sm:$0xff] %vm861_vm2, %v678_v13  ;;  %v582_v13 = vld [vmem:[%s17019_s0 + $0x21a] sm:$0xff] }
 0x112   :  { %747 = vrot.lane.b32.xlu1 %v580_v20, %s9517_s24  ;;  %745 = vrot.lane.b32.xlu0 %v579_v38, %s9517_s24  ;;  %v584_v38 = vld [vmem:[%s17019_s0 + $0x232] sm:$0xff] }
 0x113   :  { %749 = vrot.lane.b32.xlu2 %v581_v27, %s9517_s24 }
 0x114   :  { %v407_v50 = vpop.permute.xlu1 %406  ;;  %v405_v59 = vpop.permute.xlu0 %404 }
 0x115   :  { %538 = vst.msk [vmem:[#allocation2 + $0x1e8] sm:$0xff] %vm476_vm1, %v407_v50  ;;  %v684_v6 = vpop.permute.xlu2 %683 }
 0x116   :  { %537 = vst.msk [vmem:[#allocation2 + $0x1e0] sm:$0xff] %vm476_vm1, %v405_v59  ;;  %v586_v59 = vld [vmem:[%s17019_s0 + $0x24a] sm:$0xff] }
 0x117   :  { %869 = vst.msk [vmem:[#allocation2 + $0x38] sm:$0xff] %vm861_vm2, %v684_v6  ;;  %v585_v6 = vld [vmem:[%s17019_s0 + $0x242] sm:$0xff] }
 0x11a   :  { %753 = vrot.lane.b32.xlu1 %v583_v62, %s9517_s24  ;;  %751 = vrot.lane.b32.xlu0 %v582_v13, %s9517_s24  ;;  %v587_v62 = vld [vmem:[%s17019_s0 + $0x25a] sm:$0xff] }
 0x11b   :  { %755 = vrot.lane.b32.xlu2 %v584_v38, %s9517_s24 }
 0x11c   :  { %v670_v20 = vpop.permute.xlu1 %669  ;;  %v411_v27 = vpop.permute.xlu0 %410 }
 0x11d   :  { %862 = vst.msk [vmem:[#allocation2] sm:$0xff] %vm861_vm2, %v670_v20  ;;  %v690_v50 = vpop.permute.xlu2 %689 }
 0x11e   :  { %540 = vst.msk [vmem:[#allocation2 + $0x1f8] sm:$0xff] %vm476_vm1, %v411_v27  ;;  %v589_v27 = vld [vmem:[%s17019_s0 + $0x272] sm:$0xff] }
 0x11f   :  { %872 = vst.msk [vmem:[#allocation2 + $0x50] sm:$0xff] %vm861_vm2, %v690_v50  ;;  %v588_v50 = vld [vmem:[%s17019_s0 + $0x262] sm:$0xff] }
 0x122   :  { %759 = vrot.lane.b32.xlu1 %v586_v59, %s9517_s24  ;;  %757 = vrot.lane.b32.xlu0 %v585_v6, %s9517_s24  ;;  %v590_v59 = vld [vmem:[%s17019_s0 + $0x27a] sm:$0xff] }
 0x123   :  { %761 = vrot.lane.b32.xlu2 %v587_v62, %s9517_s24 }
 0x124   :  { %v676_v13 = vpop.permute.xlu1 %675  ;;  %v674_v38 = vpop.permute.xlu0 %673 }
 0x125   :  { %865 = vst.msk [vmem:[#allocation2 + $0x18] sm:$0xff] %vm861_vm2, %v676_v13  ;;  %v696_v20 = vpop.permute.xlu2 %695 }
 0x126   :  { %864 = vst.msk [vmem:[#allocation2 + $0x10] sm:$0xff] %vm861_vm2, %v674_v38  ;;  %v592_v38 = vld [vmem:[%s17019_s0 + $0x292] sm:$0xff] }
 0x127   :  { %875 = vst.msk [vmem:[#allocation2 + $0x68] sm:$0xff] %vm861_vm2, %v696_v20  ;;  %v591_v20 = vld [vmem:[%s17019_s0 + $0x28a] sm:$0xff] }
 0x12a   :  { %765 = vrot.lane.b32.xlu1 %v589_v27, %s9517_s24  ;;  %763 = vrot.lane.b32.xlu0 %v588_v50, %s9517_s24  ;;  %v593_v27 = vld [vmem:[%s17019_s0 + $0x2a2] sm:$0xff] }
 0x12b   :  { %767 = vrot.lane.b32.xlu2 %v590_v59, %s9517_s24 }
 0x12c   :  { %v682_v6 = vpop.permute.xlu1 %681  ;;  %v680_v62 = vpop.permute.xlu0 %679 }
 0x12d   :  { %868 = vst.msk [vmem:[#allocation2 + $0x30] sm:$0xff] %vm861_vm2, %v682_v6  ;;  %v702_v13 = vpop.permute.xlu2 %701 }
 0x12e   :  { %867 = vst.msk [vmem:[#allocation2 + $0x28] sm:$0xff] %vm861_vm2, %v680_v62  ;;  %v595_v62 = vld [vmem:[%s17019_s0 + $0x2ba] sm:$0xff] }
 0x12f   :  { %878 = vst.msk [vmem:[#allocation2 + $0x80] sm:$0xff] %vm861_vm2, %v702_v13  ;;  %v594_v13 = vld [vmem:[%s17019_s0 + $0x2aa] sm:$0xff] }
 0x132   :  { %771 = vrot.lane.b32.xlu1 %v592_v38, %s9517_s24  ;;  %769 = vrot.lane.b32.xlu0 %v591_v20, %s9517_s24  ;;  %v596_v38 = vld [vmem:[%s17019_s0 + $0x2c2] sm:$0xff] }
 0x133   :  { %773 = vrot.lane.b32.xlu2 %v593_v27, %s9517_s24 }
 0x134   :  { %v688_v50 = vpop.permute.xlu1 %687  ;;  %v686_v59 = vpop.permute.xlu0 %685 }
 0x135   :  { %871 = vst.msk [vmem:[#allocation2 + $0x48] sm:$0xff] %vm861_vm2, %v688_v50  ;;  %v708_v6 = vpop.permute.xlu2 %707 }
 0x136   :  { %870 = vst.msk [vmem:[#allocation2 + $0x40] sm:$0xff] %vm861_vm2, %v686_v59  ;;  %v598_v59 = vld [vmem:[%s17019_s0 + $0x2da] sm:$0xff] }
 0x137   :  { %881 = vst.msk [vmem:[#allocation2 + $0x98] sm:$0xff] %vm861_vm2, %v708_v6  ;;  %v597_v6 = vld [vmem:[%s17019_s0 + $0x2d2] sm:$0xff] }
 0x13a   :  { %777 = vrot.lane.b32.xlu1 %v595_v62, %s9517_s24  ;;  %775 = vrot.lane.b32.xlu0 %v594_v13, %s9517_s24  ;;  %v599_v62 = vld [vmem:[%s17019_s0 + $0x2ea] sm:$0xff] }
 0x13b   :  { %779 = vrot.lane.b32.xlu2 %v596_v38, %s9517_s24 }
 0x13c   :  { %v694_v20 = vpop.permute.xlu1 %693  ;;  %v692_v27 = vpop.permute.xlu0 %691 }
 0x13d   :  { %874 = vst.msk [vmem:[#allocation2 + $0x60] sm:$0xff] %vm861_vm2, %v694_v20  ;;  %v714_v50 = vpop.permute.xlu2 %713 }
 0x13e   :  { %873 = vst.msk [vmem:[#allocation2 + $0x58] sm:$0xff] %vm861_vm2, %v692_v27  ;;  %v601_v27 = vld [vmem:[%s17019_s0 + $0x302] sm:$0xff] }
 0x13f   :  { %884 = vst.msk [vmem:[#allocation2 + $0xb0] sm:$0xff] %vm861_vm2, %v714_v50  ;;  %v600_v50 = vld [vmem:[%s17019_s0 + $0x2f2] sm:$0xff] }
 0x142   :  { %783 = vrot.lane.b32.xlu1 %v598_v59, %s9517_s24  ;;  %781 = vrot.lane.b32.xlu0 %v597_v6, %s9517_s24  ;;  %v602_v59 = vld [vmem:[%s17019_s0 + $0x30a] sm:$0xff] }
 0x143   :  { %785 = vrot.lane.b32.xlu2 %v599_v62, %s9517_s24 }
 0x144   :  { %v700_v13 = vpop.permute.xlu1 %699  ;;  %v698_v38 = vpop.permute.xlu0 %697 }
 0x145   :  { %877 = vst.msk [vmem:[#allocation2 + $0x78] sm:$0xff] %vm861_vm2, %v700_v13  ;;  %v720_v20 = vpop.permute.xlu2 %719 }
 0x146   :  { %876 = vst.msk [vmem:[#allocation2 + $0x70] sm:$0xff] %vm861_vm2, %v698_v38  ;;  %v604_v38 = vld [vmem:[%s17019_s0 + $0x322] sm:$0xff] }
 0x147   :  { %887 = vst.msk [vmem:[#allocation2 + $0xc8] sm:$0xff] %vm861_vm2, %v720_v20  ;;  %v603_v20 = vld [vmem:[%s17019_s0 + $0x31a] sm:$0xff] }
 0x14a   :  { %789 = vrot.lane.b32.xlu1 %v601_v27, %s9517_s24  ;;  %787 = vrot.lane.b32.xlu0 %v600_v50, %s9517_s24 }
 0x14b   :  { %791 = vrot.lane.b32.xlu2 %v602_v59, %s9517_s24 }
 0x14c   :  { %v706_v6 = vpop.permute.xlu1 %705  ;;  %v704_v62 = vpop.permute.xlu0 %703 }
 0x14d   :  { %880 = vst.msk [vmem:[#allocation2 + $0x90] sm:$0xff] %vm861_vm2, %v706_v6  ;;  %v726_v13 = vpop.permute.xlu2 %725 }
 0x14e   :  { %879 = vst.msk [vmem:[#allocation2 + $0x88] sm:$0xff] %vm861_vm2, %v704_v62 }
 0x14f   :  { %890 = vst.msk [vmem:[#allocation2 + $0xe0] sm:$0xff] %vm861_vm2, %v726_v13  ;;  %v8967_v13 = vld [vmem:[%s17019_s0 + $0x180] sm:$0xff] }
 0x152   :  { %795 = vrot.lane.b32.xlu1 %v604_v38, %s9517_s24  ;;  %793 = vrot.lane.b32.xlu0 %v603_v20, %s9517_s24  ;;  %v8968_v38 = vld [vmem:[%s17019_s0 + $0x188] sm:$0xff] }
 0x153   :  { %1055 = vrot.lane.b32.xlu2 %v9706_v34, %s9518_s21 }
 0x154   :  { %v712_v27 = vpop.permute.xlu1 %711  ;;  %v710_v50 = vpop.permute.xlu0 %709 }
 0x155   :  { %883 = vst.msk [vmem:[#allocation2 + $0xa8] sm:$0xff] %vm861_vm2, %v712_v27  ;;  %v732_v59 = vpop.permute.xlu2 %731 }
 0x156   :  { %882 = vst.msk [vmem:[#allocation2 + $0xa0] sm:$0xff] %vm861_vm2, %v710_v50  ;;  %v17134_v50 = vld [vmem:[#allocation5_spill] sm:$0xff] }
 0x157   :  { %893 = vst.msk [vmem:[#allocation2 + $0xf8] sm:$0xff] %vm861_vm2, %v732_v59 }
 0x15a   :  { %1059 = vrot.lane.b32.xlu1 %v9699_v33, %s9518_s21  ;;  %1057 = vrot.lane.b32.xlu0 %v9737_v40, %s9518_s21 }
 0x15b   :  { %1061 = vrot.lane.b32.xlu2 %v9729_v39, %s9518_s21 }
 0x15c   :  { %v718_v6 = vpop.permute.xlu1 %717  ;;  %v716_v62 = vpop.permute.xlu0 %715 }
 0x15d   :  { %886 = vst.msk [vmem:[#allocation2 + $0xc0] sm:$0xff] %vm861_vm2, %v718_v6  ;;  %v738_v34 = vpop.permute.xlu2 %737  ;;  %v17136_v6 = vld [vmem:[#allocation4_spill] sm:$0xff] }
 0x15e   :  { %885 = vst.msk [vmem:[#allocation2 + $0xb8] sm:$0xff] %vm861_vm2, %v716_v62  ;;  %v8999_v62 = vld [vmem:[%s17019_s0 + $0x330] sm:$0xff] }
 0x15f   :  { %896 = vst.msk [vmem:[#allocation2 + $0x110] sm:$0xff] %vm861_vm2, %v738_v34  ;;  %v9000_v34 = vld [vmem:[%s17019_s0 + $0x338] sm:$0xff] }
 0x162   :  { %1065 = vrot.lane.b32.xlu1 %v9768_v47, %s9518_s21  ;;  %1063 = vrot.lane.b32.xlu0 %v9773_v48, %s9518_s21 }
 0x163   :  { %1067 = vrot.lane.b32.xlu2 %v9760_v46, %s9518_s21 }
 0x164   :  { %v724_v33 = vpop.permute.xlu1 %723  ;;  %v722_v40 = vpop.permute.xlu0 %721 }
 0x165   :  { %889 = vst.msk [vmem:[#allocation2 + $0xd8] sm:$0xff] %vm861_vm2, %v724_v33  ;;  %v744_v39 = vpop.permute.xlu2 %743  ;;  %v17137_v33 = vld [vmem:[#allocation7_spill] sm:$0xff] }
 0x166   :  { %888 = vst.msk [vmem:[#allocation2 + $0xd0] sm:$0xff] %vm861_vm2, %v722_v40 }
 0x167   :  { %899 = vst.msk [vmem:[#allocation2 + $0x128] sm:$0xff] %vm861_vm2, %v744_v39 }
 0x16a   :  { %1071 = vrot.lane.b32.xlu1 %v9802_v54, %s9518_s21  ;;  %1069 = vrot.lane.b32.xlu0 %v9807_v55, %s9518_s21 }
 0x16b   :  { %1073 = vrot.lane.b32.xlu2 %v9794_v53, %s9518_s21 }
 0x16c   :  { %v730_v47 = vpop.permute.xlu1 %729  ;;  %v728_v48 = vpop.permute.xlu0 %727 }
 0x16d   :  { %892 = vst.msk [vmem:[#allocation2 + $0xf0] sm:$0xff] %vm861_vm2, %v730_v47  ;;  %v750_v46 = vpop.permute.xlu2 %749 }
 0x16e   :  { %891 = vst.msk [vmem:[#allocation2 + $0xe8] sm:$0xff] %vm861_vm2, %v728_v48  ;;  %v9002_v48 = vld [vmem:[%s17019_s0 + $0x21] sm:$0xff] }
 0x16f   :  { %902 = vst.msk [vmem:[#allocation2 + $0x140] sm:$0xff] %vm861_vm2, %v750_v46  ;;  %v9001_v46 = vld [vmem:[%s17019_s0 + $0x19] sm:$0xff] }
 0x172   :  { %1077 = vrot.lane.b32.xlu1 %v9837_v63, %s9518_s21  ;;  %1075 = vrot.lane.b32.xlu0 %v9843_v1, %s9518_s21 }
 0x173   :  { %1079 = vrot.lane.b32.xlu2 %v9828_v60, %s9518_s21 }
 0x174   :  { %v736_v54 = vpop.permute.xlu1 %735  ;;  %v734_v55 = vpop.permute.xlu0 %733 }
 0x175   :  { %895 = vst.msk [vmem:[#allocation2 + $0x108] sm:$0xff] %vm861_vm2, %v736_v54  ;;  %v756_v53 = vpop.permute.xlu2 %755  ;;  %v9003_v54 = vld [vmem:[%s17019_s0 + $0x31] sm:$0xff] }
 0x176   :  { %894 = vst.msk [vmem:[#allocation2 + $0x100] sm:$0xff] %vm861_vm2, %v734_v55 }
 0x177   :  { %905 = vst.msk [vmem:[#allocation2 + $0x158] sm:$0xff] %vm861_vm2, %v756_v53 }
 0x17a   :  { %1083 = vrot.lane.b32.xlu1 %v9873_v8, %s9518_s21  ;;  %1081 = vrot.lane.b32.xlu0 %v9879_v10, %s9518_s21 }
 0x17b   :  { %1085 = vrot.lane.b32.xlu2 %v9864_v5, %s9518_s21 }
 0x17c   :  { %v742_v63 = vpop.permute.xlu1 %741  ;;  %v740_v1 = vpop.permute.xlu0 %739 }
 0x17d   :  { %898 = vst.msk [vmem:[#allocation2 + $0x120] sm:$0xff] %vm861_vm2, %v742_v63  ;;  %v762_v60 = vpop.permute.xlu2 %761 }
 0x17e   :  { %897 = vst.msk [vmem:[#allocation2 + $0x118] sm:$0xff] %vm861_vm2, %v740_v1  ;;  %v9005_v1 = vld [vmem:[%s17019_s0 + $0x49] sm:$0xff] }
 0x17f   :  { %908 = vst.msk [vmem:[#allocation2 + $0x170] sm:$0xff] %vm861_vm2, %v762_v60  ;;  %v9004_v60 = vld [vmem:[%s17019_s0 + $0x39] sm:$0xff] }
 0x182   :  { %1089 = vrot.lane.b32.xlu1 %v9909_v17, %s9518_s21  ;;  %1087 = vrot.lane.b32.xlu0 %v9915_v19, %s9518_s21 }
 0x183   :  { %1091 = vrot.lane.b32.xlu2 %v9900_v14, %s9518_s21 }
 0x184   :  { %v748_v8 = vpop.permute.xlu1 %747  ;;  %v746_v10 = vpop.permute.xlu0 %745 }
 0x185   :  { %901 = vst.msk [vmem:[#allocation2 + $0x138] sm:$0xff] %vm861_vm2, %v748_v8  ;;  %v768_v5 = vpop.permute.xlu2 %767  ;;  %v9006_v8 = vld [vmem:[%s17019_s0 + $0x51] sm:$0xff] }
 0x186   :  { %900 = vst.msk [vmem:[#allocation2 + $0x130] sm:$0xff] %vm861_vm2, %v746_v10 }
 0x187   :  { %911 = vst.msk [vmem:[#allocation2 + $0x188] sm:$0xff] %vm861_vm2, %v768_v5 }
 0x18a   :  { %1095 = vrot.lane.b32.xlu1 %v9945_v26, %s9518_s21  ;;  %1093 = vrot.lane.b32.xlu0 %v9951_v28, %s9518_s21 }
 0x18b   :  { %1097 = vrot.lane.b32.xlu2 %v9936_v23, %s9518_s21 }
 0x18c   :  { %v754_v17 = vpop.permute.xlu1 %753  ;;  %v752_v19 = vpop.permute.xlu0 %751 }
 0x18d   :  { %904 = vst.msk [vmem:[#allocation2 + $0x150] sm:$0xff] %vm861_vm2, %v754_v17  ;;  %v774_v14 = vpop.permute.xlu2 %773 }
 0x18e   :  { %903 = vst.msk [vmem:[#allocation2 + $0x148] sm:$0xff] %vm861_vm2, %v752_v19  ;;  %v9008_v19 = vld [vmem:[%s17019_s0 + $0x69] sm:$0xff] }
 0x18f   :  { %914 = vst.msk [vmem:[#allocation2 + $0x1a0] sm:$0xff] %vm861_vm2, %v774_v14  ;;  %v9007_v14 = vld [vmem:[%s17019_s0 + $0x61] sm:$0xff] }
 0x192   :  { %1101 = vrot.lane.b32.xlu1 %v9981_v37, %s9518_s21  ;;  %1099 = vrot.lane.b32.xlu0 %v9987_v41, %s9518_s21 }
 0x193   :  { %1103 = vrot.lane.b32.xlu2 %v9972_v32, %s9518_s21 }
 0x194   :  { %v760_v26 = vpop.permute.xlu1 %759  ;;  %v758_v28 = vpop.permute.xlu0 %757 }
 0x195   :  { %907 = vst.msk [vmem:[#allocation2 + $0x168] sm:$0xff] %vm861_vm2, %v760_v26  ;;  %v780_v23 = vpop.permute.xlu2 %779  ;;  %v9009_v26 = vld [vmem:[%s17019_s0 + $0x79] sm:$0xff] }
 0x196   :  { %906 = vst.msk [vmem:[#allocation2 + $0x160] sm:$0xff] %vm861_vm2, %v758_v28 }
 0x197   :  { %917 = vst.msk [vmem:[#allocation2 + $0x1b8] sm:$0xff] %vm861_vm2, %v780_v23 }
 0x19a   :  { %1107 = vrot.lane.b32.xlu1 %v10017_v51, %s9518_s21  ;;  %1105 = vrot.lane.b32.xlu0 %v10023_v56, %s9518_s21 }
 0x19b   :  { %1109 = vrot.lane.b32.xlu2 %v10008_v45, %s9518_s21 }
 0x19c   :  { %v766_v37 = vpop.permute.xlu1 %765  ;;  %v764_v41 = vpop.permute.xlu0 %763 }
 0x19d   :  { %910 = vst.msk [vmem:[#allocation2 + $0x180] sm:$0xff] %vm861_vm2, %v766_v37  ;;  %v786_v32 = vpop.permute.xlu2 %785 }
 0x19e   :  { %909 = vst.msk [vmem:[#allocation2 + $0x178] sm:$0xff] %vm861_vm2, %v764_v41  ;;  %v9011_v41 = vld [vmem:[%s17019_s0 + $0x91] sm:$0xff] }
 0x19f   :  { %920 = vst.msk [vmem:[#allocation2 + $0x1d0] sm:$0xff] %vm861_vm2, %v786_v32  ;;  %v9010_v32 = vld [vmem:[%s17019_s0 + $0x81] sm:$0xff] }
 0x1a2   :  { %1113 = vrot.lane.b32.xlu1 %v10050_v2, %s9518_s21  ;;  %1111 = vrot.lane.b32.xlu0 %v10056_v4, %s9518_s21 }
 0x1a3   :  { %1115 = vrot.lane.b32.xlu2 %v8967_v13, %s9518_s21  ;;  %v9012_v13 = vld [vmem:[%s17019_s0 + $0x99] sm:$0xff] }
 0x1a4   :  { %v772_v51 = vpop.permute.xlu1 %771  ;;  %v770_v56 = vpop.permute.xlu0 %769 }
 0x1a5   :  { %913 = vst.msk [vmem:[#allocation2 + $0x198] sm:$0xff] %vm861_vm2, %v772_v51  ;;  %v792_v45 = vpop.permute.xlu2 %791 }
 0x1a6   :  { %912 = vst.msk [vmem:[#allocation2 + $0x190] sm:$0xff] %vm861_vm2, %v770_v56 }
 0x1a7   :  { %923 = vst.msk [vmem:[#allocation2 + $0x1e8] sm:$0xff] %vm861_vm2, %v792_v45 }
 0x1aa   :  { %1119 = vrot.lane.b32.xlu1 %v10086_v15, %s9518_s21  ;;  %1117 = vrot.lane.b32.xlu0 %v8968_v38, %s9518_s21  ;;  %v9014_v38 = vld [vmem:[%s17019_s0 + $0xb1] sm:$0xff] }
 0x1ab   :  { %1121 = vrot.lane.b32.xlu2 %v10077_v11, %s9518_s21 }
 0x1ac   :  { %v778_v2 = vpop.permute.xlu1 %777  ;;  %v776_v4 = vpop.permute.xlu0 %775 }
 0x1ad   :  { %916 = vst.msk [vmem:[#allocation2 + $0x1b0] sm:$0xff] %vm861_vm2, %v778_v2  ;;  %v1056_v20 = vpop.permute.xlu2 %1055  ;;  %v9013_v2 = vld [vmem:[%s17019_s0 + $0xa9] sm:$0xff] }
 0x1ae   :  { %915 = vst.msk [vmem:[#allocation2 + $0x1a8] sm:$0xff] %vm861_vm2, %v776_v4  ;;  %v9015_v4 = vld [vmem:[%s17019_s0 + $0xc1] sm:$0xff] }
 0x1af   :  { %1248 = vst.msk [vmem:[#allocation2] sm:$0xff] %vm1247_vm3, %v1056_v20 }
 0x1b2   :  { %1125 = vrot.lane.b32.xlu1 %v10119_v29, %s9518_s21  ;;  %1123 = vrot.lane.b32.xlu0 %v10125_v31, %s9518_s21 }
 0x1b3   :  { %1127 = vrot.lane.b32.xlu2 %v10110_v24, %s9518_s21 }
 0x1b4   :  { %v784_v15 = vpop.permute.xlu1 %783  ;;  %v782_v27 = vpop.permute.xlu0 %781 }
 0x1b5   :  { %919 = vst.msk [vmem:[#allocation2 + $0x1c8] sm:$0xff] %vm861_vm2, %v784_v15  ;;  %v1062_v11 = vpop.permute.xlu2 %1061 }
 0x1b6   :  { %918 = vst.msk [vmem:[#allocation2 + $0x1c0] sm:$0xff] %vm861_vm2, %v782_v27 }
 0x1b7   :  { %1251 = vst.msk [vmem:[#allocation2 + $0x18] sm:$0xff] %vm1247_vm3, %v1062_v11  ;;  %v9017_v11 = vld [vmem:[%s17019_s0 + $0xd9] sm:$0xff] }
 0x1ba   :  { %1131 = vrot.lane.b32.xlu1 %v10155_v49, %s9518_s21  ;;  %1129 = vrot.lane.b32.xlu0 %v10161_v52, %s9518_s21 }
 0x1bb   :  { %1133 = vrot.lane.b32.xlu2 %v10146_v42, %s9518_s21 }
 0x1bc   :  { %v790_v29 = vpop.permute.xlu1 %789  ;;  %v788_v31 = vpop.permute.xlu0 %787 }
 0x1bd   :  { %922 = vst.msk [vmem:[#allocation2 + $0x1e0] sm:$0xff] %vm861_vm2, %v790_v29  ;;  %v1068_v24 = vpop.permute.xlu2 %1067  ;;  %v9016_v29 = vld [vmem:[%s17019_s0 + $0xc9] sm:$0xff] }
 0x1be   :  { %921 = vst.msk [vmem:[#allocation2 + $0x1d8] sm:$0xff] %vm861_vm2, %v788_v31  ;;  %v9018_v31 = vld [vmem:[%s17019_s0 + $0xe1] sm:$0xff] }
 0x1bf   :  { %1254 = vst.msk [vmem:[#allocation2 + $0x30] sm:$0xff] %vm1247_vm3, %v1068_v24 }
 0x1c2   :  { %1137 = vrot.lane.b32.xlu1 %v10191_v3, %s9518_s21  ;;  %1135 = vrot.lane.b32.xlu0 %v10197_v7, %s9518_s21 }
 0x1c3   :  { %1139 = vrot.lane.b32.xlu2 %v10182_v61, %s9518_s21 }
 0x1c4   :  { %v796_v49 = vpop.permute.xlu1 %795  ;;  %v794_v52 = vpop.permute.xlu0 %793 }
 0x1c5   :  { %925 = vst.msk [vmem:[#allocation2 + $0x1f8] sm:$0xff] %vm861_vm2, %v796_v49  ;;  %v1074_v42 = vpop.permute.xlu2 %1073 }
 0x1c6   :  { %924 = vst.msk [vmem:[#allocation2 + $0x1f0] sm:$0xff] %vm861_vm2, %v794_v52 }
 0x1c7   :  { %1257 = vst.msk [vmem:[#allocation2 + $0x48] sm:$0xff] %vm1247_vm3, %v1074_v42  ;;  %v9020_v42 = vld [vmem:[%s17019_s0 + $0xf9] sm:$0xff] }
 0x1ca   :  { %1143 = vrot.lane.b32.xlu1 %v10227_v21, %s9518_s21  ;;  %1141 = vrot.lane.b32.xlu0 %v10233_v25, %s9518_s21 }
 0x1cb   :  { %1145 = vrot.lane.b32.xlu2 %v10218_v16, %s9518_s21 }
 0x1cc   :  { %v1060_v3 = vpop.permute.xlu1 %1059  ;;  %v1058_v7 = vpop.permute.xlu0 %1057 }
 0x1cd   :  { %1250 = vst.msk [vmem:[#allocation2 + $0x10] sm:$0xff] %vm1247_vm3, %v1060_v3  ;;  %v1080_v61 = vpop.permute.xlu2 %1079  ;;  %v9019_v3 = vld [vmem:[%s17019_s0 + $0xf1] sm:$0xff] }
 0x1ce   :  { %1249 = vst.msk [vmem:[#allocation2 + $0x8] sm:$0xff] %vm1247_vm3, %v1058_v7  ;;  %v9021_v7 = vld [vmem:[%s17019_s0 + $0x109] sm:$0xff] }
 0x1cf   :  { %1260 = vst.msk [vmem:[#allocation2 + $0x60] sm:$0xff] %vm1247_vm3, %v1080_v61 }
 0x1d2   :  { %1149 = vrot.lane.b32.xlu1 %v10263_v44, %s9518_s21  ;;  %1147 = vrot.lane.b32.xlu0 %v10269_v57, %s9518_s21 }
 0x1d3   :  { %1151 = vrot.lane.b32.xlu2 %v10254_v36, %s9518_s21 }
 0x1d4   :  { %v1066_v21 = vpop.permute.xlu1 %1065  ;;  %v1064_v25 = vpop.permute.xlu0 %1063 }
 0x1d5   :  { %1253 = vst.msk [vmem:[#allocation2 + $0x28] sm:$0xff] %vm1247_vm3, %v1066_v21  ;;  %v1086_v16 = vpop.permute.xlu2 %1085 }
 0x1d6   :  { %1252 = vst.msk [vmem:[#allocation2 + $0x20] sm:$0xff] %vm1247_vm3, %v1064_v25 }
 0x1d7   :  { %1263 = vst.msk [vmem:[#allocation2 + $0x78] sm:$0xff] %vm1247_vm3, %v1086_v16  ;;  %v9023_v16 = vld [vmem:[%s17019_s0 + $0x121] sm:$0xff] }
 0x1da   :  { %1155 = vrot.lane.b32.xlu1 %v10299_v12, %s9518_s21  ;;  %1153 = vrot.lane.b32.xlu0 %v10305_v18, %s9518_s21 }
 0x1db   :  { %1157 = vrot.lane.b32.xlu2 %v10290_v0, %s9518_s21 }
 0x1dc   :  { %v1072_v44 = vpop.permute.xlu1 %1071  ;;  %v1070_v57 = vpop.permute.xlu0 %1069 }
 0x1dd   :  { %1256 = vst.msk [vmem:[#allocation2 + $0x40] sm:$0xff] %vm1247_vm3, %v1072_v44  ;;  %v1092_v36 = vpop.permute.xlu2 %1091  ;;  %v9022_v44 = vld [vmem:[%s17019_s0 + $0x111] sm:$0xff] }
 0x1de   :  { %1255 = vst.msk [vmem:[#allocation2 + $0x38] sm:$0xff] %vm1247_vm3, %v1070_v57  ;;  %v9024_v57 = vld [vmem:[%s17019_s0 + $0x129] sm:$0xff] }
 0x1df   :  { %1266 = vst.msk [vmem:[#allocation2 + $0x90] sm:$0xff] %vm1247_vm3, %v1092_v36 }
 0x1e2   :  { %1161 = vrot.lane.b32.xlu1 %v10335_v43, %s9518_s21  ;;  %1159 = vrot.lane.b32.xlu0 %v10341_v58, %s9518_s21 }
 0x1e3   :  { %1163 = vrot.lane.b32.xlu2 %v10326_v30, %s9518_s21 }
 0x1e4   :  { %v1078_v12 = vpop.permute.xlu1 %1077  ;;  %v1076_v18 = vpop.permute.xlu0 %1075 }
 0x1e5   :  { %1259 = vst.msk [vmem:[#allocation2 + $0x58] sm:$0xff] %vm1247_vm3, %v1078_v12  ;;  %v1098_v0 = vpop.permute.xlu2 %1097 }
 0x1e6   :  { %1258 = vst.msk [vmem:[#allocation2 + $0x50] sm:$0xff] %vm1247_vm3, %v1076_v18 }
 0x1e7   :  { %1269 = vst.msk [vmem:[#allocation2 + $0xa8] sm:$0xff] %vm1247_vm3, %v1098_v0  ;;  %v9026_v0 = vld [vmem:[%s17019_s0 + $0x141] sm:$0xff] }
 0x1ea   :  { %1167 = vrot.lane.b32.xlu1 %v10371_v22, %s9518_s21  ;;  %1165 = vrot.lane.b32.xlu0 %v10377_v35, %s9518_s21  ;;  %v17135_v22 = vld [vmem:[#allocation6_spill] sm:$0xff] }
 0x1eb   :  { %1169 = vrot.lane.b32.xlu2 %v10362_v9, %s9518_s21 }
 0x1ec   :  { %v1084_v43 = vpop.permute.xlu1 %1083  ;;  %v1082_v58 = vpop.permute.xlu0 %1081 }
 0x1ed   :  { %1262 = vst.msk [vmem:[#allocation2 + $0x70] sm:$0xff] %vm1247_vm3, %v1084_v43  ;;  %v1104_v30 = vpop.permute.xlu2 %1103  ;;  %v9025_v43 = vld [vmem:[%s17019_s0 + $0x139] sm:$0xff] }
 0x1ee   :  { %1261 = vst.msk [vmem:[#allocation2 + $0x68] sm:$0xff] %vm1247_vm3, %v1082_v58  ;;  %v9027_v58 = vld [vmem:[%s17019_s0 + $0x151] sm:$0xff] }
 0x1ef   :  { %1272 = vst.msk [vmem:[#allocation2 + $0xc0] sm:$0xff] %vm1247_vm3, %v1104_v30 }
 0x1f2   :  { %1173 = vrot.lane.b32.xlu1 %v17134_v50, %s9518_s21  ;;  %1171 = vrot.lane.b32.xlu0 %v17135_v22, %s9518_s21 }
 0x1f3   :  { %1175 = vrot.lane.b32.xlu2 %v17136_v6, %s9518_s21  ;;  %v9030_v6 = vld [vmem:[%s17019_s0 + $0x171] sm:$0xff] }
 0x1f4   :  { %v1090_v59 = vpop.permute.xlu1 %1089  ;;  %v1088_v35 = vpop.permute.xlu0 %1087 }
 0x1f5   :  { %1265 = vst.msk [vmem:[#allocation2 + $0x88] sm:$0xff] %vm1247_vm3, %v1090_v59  ;;  %v1110_v9 = vpop.permute.xlu2 %1109  ;;  %v9029_v59 = vld [vmem:[%s17019_s0 + $0x169] sm:$0xff] }
 0x1f6   :  { %1264 = vst.msk [vmem:[#allocation2 + $0x80] sm:$0xff] %vm1247_vm3, %v1088_v35  ;;  %v9028_v35 = vld [vmem:[%s17019_s0 + $0x159] sm:$0xff] }
 0x1f7   :  { %1275 = vst.msk [vmem:[#allocation2 + $0xd8] sm:$0xff] %vm1247_vm3, %v1110_v9 }
 0x1fa   :  { %1179 = vrot.lane.b32.xlu1 %v8999_v62, %s9518_s21  ;;  %1177 = vrot.lane.b32.xlu0 %v17137_v33, %s9518_s21  ;;  %v9032_v33 = vld [vmem:[%s17019_s0 + $0x189] sm:$0xff] }
 0x1fb   :  { %1181 = vrot.lane.b32.xlu2 %v9000_v34, %s9518_s21 }
 0x1fc   :  { %v1096_v40 = vpop.permute.xlu1 %1095  ;;  %v1094_v39 = vpop.permute.xlu0 %1093 }
 0x1fd   :  { %1268 = vst.msk [vmem:[#allocation2 + $0xa0] sm:$0xff] %vm1247_vm3, %v1096_v40  ;;  %v1116_v47 = vpop.permute.xlu2 %1115  ;;  %v9031_v40 = vld [vmem:[%s17019_s0 + $0x181] sm:$0xff] }
 0x1fe   :  { %1267 = vst.msk [vmem:[#allocation2 + $0x98] sm:$0xff] %vm1247_vm3, %v1094_v39  ;;  %v9033_v39 = vld [vmem:[%s17019_s0 + $0x1c9] sm:$0xff] }
 0x1ff   :  { %1278 = vst.msk [vmem:[#allocation2 + $0xf0] sm:$0xff] %vm1247_vm3, %v1116_v47 }
 0x202   :  { %1442 = vrot.lane.b32.xlu1 %v9002_v48, %s9519_s15  ;;  %1440 = vrot.lane.b32.xlu0 %v9001_v46, %s9519_s15 }
 0x203   :  { %1444 = vrot.lane.b32.xlu2 %v9003_v54, %s9519_s15  ;;  %v9035_v54 = vld [vmem:[%s17019_s0 + $0x1e1] sm:$0xff] }
 0x204   :  { %v1102_v55 = vpop.permute.xlu1 %1101  ;;  %v1100_v53 = vpop.permute.xlu0 %1099 }
 0x205   :  { %1271 = vst.msk [vmem:[#allocation2 + $0xb8] sm:$0xff] %vm1247_vm3, %v1102_v55  ;;  %v1122_v63 = vpop.permute.xlu2 %1121  ;;  %v9034_v55 = vld [vmem:[%s17019_s0 + $0x1d1] sm:$0xff] }
 0x206   :  { %1270 = vst.msk [vmem:[#allocation2 + $0xb0] sm:$0xff] %vm1247_vm3, %v1100_v53  ;;  %v9036_v53 = vld [vmem:[%s17019_s0 + $0x1e9] sm:$0xff] }
 0x207   :  { %1281 = vst.msk [vmem:[#allocation2 + $0x108] sm:$0xff] %vm1247_vm3, %v1122_v63 }
 0x20a   :  { %1448 = vrot.lane.b32.xlu1 %v9005_v1, %s9519_s15  ;;  %1446 = vrot.lane.b32.xlu0 %v9004_v60, %s9519_s15 }
 0x20b   :  { %1450 = vrot.lane.b32.xlu2 %v9006_v8, %s9519_s15  ;;  %v9038_v8 = vld [vmem:[%s17019_s0 + $0x201] sm:$0xff] }
 0x20c   :  { %v1108_v10 = vpop.permute.xlu1 %1107  ;;  %v1106_v5 = vpop.permute.xlu0 %1105 }
 0x20d   :  { %1274 = vst.msk [vmem:[#allocation2 + $0xd0] sm:$0xff] %vm1247_vm3, %v1108_v10  ;;  %v1128_v17 = vpop.permute.xlu2 %1127  ;;  %v9037_v10 = vld [vmem:[%s17019_s0 + $0x1f9] sm:$0xff] }
 0x20e   :  { %1273 = vst.msk [vmem:[#allocation2 + $0xc8] sm:$0xff] %vm1247_vm3, %v1106_v5  ;;  %v9039_v5 = vld [vmem:[%s17019_s0 + $0x211] sm:$0xff] }
 0x20f   :  { %1284 = vst.msk [vmem:[#allocation2 + $0x120] sm:$0xff] %vm1247_vm3, %v1128_v17 }
 0x212   :  { %1454 = vrot.lane.b32.xlu1 %v9008_v19, %s9519_s15  ;;  %1452 = vrot.lane.b32.xlu0 %v9007_v14, %s9519_s15 }
 0x213   :  { %1456 = vrot.lane.b32.xlu2 %v9009_v26, %s9519_s15  ;;  %v9041_v26 = vld [vmem:[%s17019_s0 + $0x229] sm:$0xff] }
 0x214   :  { %v1114_v28 = vpop.permute.xlu1 %1113  ;;  %v1112_v23 = vpop.permute.xlu0 %1111 }
 0x215   :  { %1277 = vst.msk [vmem:[#allocation2 + $0xe8] sm:$0xff] %vm1247_vm3, %v1114_v28  ;;  %v1134_v37 = vpop.permute.xlu2 %1133  ;;  %v9040_v28 = vld [vmem:[%s17019_s0 + $0x219] sm:$0xff] }
 0x216   :  { %1276 = vst.msk [vmem:[#allocation2 + $0xe0] sm:$0xff] %vm1247_vm3, %v1112_v23  ;;  %v9042_v23 = vld [vmem:[%s17019_s0 + $0x231] sm:$0xff] }
 0x217   :  { %1287 = vst.msk [vmem:[#allocation2 + $0x138] sm:$0xff] %vm1247_vm3, %v1134_v37 }
 0x21a   :  { %1460 = vrot.lane.b32.xlu1 %v9011_v41, %s9519_s15  ;;  %1458 = vrot.lane.b32.xlu0 %v9010_v32, %s9519_s15 }
 0x21b   :  { %1462 = vrot.lane.b32.xlu2 %v9012_v13, %s9519_s15  ;;  %v9044_v13 = vld [vmem:[%s17019_s0 + $0x249] sm:$0xff] }
 0x21c   :  { %v1120_v51 = vpop.permute.xlu1 %1119  ;;  %v1118_v56 = vpop.permute.xlu0 %1117 }
 0x21d   :  { %1280 = vst.msk [vmem:[#allocation2 + $0x100] sm:$0xff] %vm1247_vm3, %v1120_v51  ;;  %v1140_v45 = vpop.permute.xlu2 %1139  ;;  %v9043_v51 = vld [vmem:[%s17019_s0 + $0x241] sm:$0xff] }
 0x21e   :  { %1279 = vst.msk [vmem:[#allocation2 + $0xf8] sm:$0xff] %vm1247_vm3, %v1118_v56  ;;  %v9045_v56 = vld [vmem:[%s17019_s0 + $0x259] sm:$0xff] }
 0x21f   :  { %1290 = vst.msk [vmem:[#allocation2 + $0x150] sm:$0xff] %vm1247_vm3, %v1140_v45 }
 0x222   :  { %1466 = vrot.lane.b32.xlu1 %v9014_v38, %s9519_s15  ;;  %1464 = vrot.lane.b32.xlu0 %v9013_v2, %s9519_s15 }
 0x223   :  { %1468 = vrot.lane.b32.xlu2 %v9015_v4, %s9519_s15  ;;  %v9047_v4 = vld [vmem:[%s17019_s0 + $0x271] sm:$0xff] }
 0x224   :  { %v1126_v20 = vpop.permute.xlu1 %1125  ;;  %v1124_v15 = vpop.permute.xlu0 %1123 }
 0x225   :  { %1283 = vst.msk [vmem:[#allocation2 + $0x118] sm:$0xff] %vm1247_vm3, %v1126_v20  ;;  %v1146_v27 = vpop.permute.xlu2 %1145  ;;  %v9046_v20 = vld [vmem:[%s17019_s0 + $0x261] sm:$0xff] }
 0x226   :  { %1282 = vst.msk [vmem:[#allocation2 + $0x110] sm:$0xff] %vm1247_vm3, %v1124_v15  ;;  %v9048_v15 = vld [vmem:[%s17019_s0 + $0x279] sm:$0xff] }
 0x227   :  { %1293 = vst.msk [vmem:[#allocation2 + $0x168] sm:$0xff] %vm1247_vm3, %v1146_v27 }
 0x22a   :  { %1472 = vrot.lane.b32.xlu1 %v9017_v11, %s9519_s15  ;;  %1470 = vrot.lane.b32.xlu0 %v9016_v29, %s9519_s15 }
 0x22b   :  { %1474 = vrot.lane.b32.xlu2 %v9018_v31, %s9519_s15  ;;  %v9050_v31 = vld [vmem:[%s17019_s0 + $0x291] sm:$0xff] }
 0x22c   :  { %v1132_v24 = vpop.permute.xlu1 %1131  ;;  %v1130_v49 = vpop.permute.xlu0 %1129 }
 0x22d   :  { %1286 = vst.msk [vmem:[#allocation2 + $0x130] sm:$0xff] %vm1247_vm3, %v1132_v24  ;;  %v1152_v52 = vpop.permute.xlu2 %1151  ;;  %v9049_v24 = vld [vmem:[%s17019_s0 + $0x289] sm:$0xff] }
 0x22e   :  { %1285 = vst.msk [vmem:[#allocation2 + $0x128] sm:$0xff] %vm1247_vm3, %v1130_v49  ;;  %v9051_v49 = vld [vmem:[%s17019_s0 + $0x2a1] sm:$0xff] }
 0x22f   :  { %1296 = vst.msk [vmem:[#allocation2 + $0x180] sm:$0xff] %vm1247_vm3, %v1152_v52 }
 0x232   :  { %1478 = vrot.lane.b32.xlu1 %v9020_v42, %s9519_s15  ;;  %1476 = vrot.lane.b32.xlu0 %v9019_v3, %s9519_s15 }
 0x233   :  { %1480 = vrot.lane.b32.xlu2 %v9021_v7, %s9519_s15  ;;  %v9053_v7 = vld [vmem:[%s17019_s0 + $0x2b9] sm:$0xff] }
 0x234   :  { %v1138_v61 = vpop.permute.xlu1 %1137  ;;  %v1136_v21 = vpop.permute.xlu0 %1135 }
 0x235   :  { %1289 = vst.msk [vmem:[#allocation2 + $0x148] sm:$0xff] %vm1247_vm3, %v1138_v61  ;;  %v1158_v25 = vpop.permute.xlu2 %1157  ;;  %v9052_v61 = vld [vmem:[%s17019_s0 + $0x2a9] sm:$0xff] }
 0x236   :  { %1288 = vst.msk [vmem:[#allocation2 + $0x140] sm:$0xff] %vm1247_vm3, %v1136_v21  ;;  %v9054_v21 = vld [vmem:[%s17019_s0 + $0x2c1] sm:$0xff] }
 0x237   :  { %1299 = vst.msk [vmem:[#allocation2 + $0x198] sm:$0xff] %vm1247_vm3, %v1158_v25 }
 0x23a   :  { %1484 = vrot.lane.b32.xlu1 %v9023_v16, %s9519_s15  ;;  %1482 = vrot.lane.b32.xlu0 %v9022_v44, %s9519_s15 }
 0x23b   :  { %1486 = vrot.lane.b32.xlu2 %v9024_v57, %s9519_s15  ;;  %v9056_v57 = vld [vmem:[%s17019_s0 + $0x2d9] sm:$0xff] }
 0x23c   :  { %v1144_v36 = vpop.permute.xlu1 %1143  ;;  %v1142_v12 = vpop.permute.xlu0 %1141 }
 0x23d   :  { %1292 = vst.msk [vmem:[#allocation2 + $0x160] sm:$0xff] %vm1247_vm3, %v1144_v36  ;;  %v1164_v18 = vpop.permute.xlu2 %1163  ;;  %v9055_v36 = vld [vmem:[%s17019_s0 + $0x2d1] sm:$0xff] }
 0x23e   :  { %1291 = vst.msk [vmem:[#allocation2 + $0x158] sm:$0xff] %vm1247_vm3, %v1142_v12  ;;  %v9057_v12 = vld [vmem:[%s17019_s0 + $0x2e9] sm:$0xff] }
 0x23f   :  { %1302 = vst.msk [vmem:[#allocation2 + $0x1b0] sm:$0xff] %vm1247_vm3, %v1164_v18 }
 0x242   :  { %1490 = vrot.lane.b32.xlu1 %v9026_v0, %s9519_s15  ;;  %1488 = vrot.lane.b32.xlu0 %v9025_v43, %s9519_s15 }
 0x243   :  { %1492 = vrot.lane.b32.xlu2 %v9027_v58, %s9519_s15  ;;  %v9059_v58 = vld [vmem:[%s17019_s0 + $0x301] sm:$0xff] }
 0x244   :  { %v1150_v30 = vpop.permute.xlu1 %1149  ;;  %v1148_v50 = vpop.permute.xlu0 %1147 }
 0x245   :  { %1295 = vst.msk [vmem:[#allocation2 + $0x178] sm:$0xff] %vm1247_vm3, %v1150_v30  ;;  %v1170_v22 = vpop.permute.xlu2 %1169  ;;  %v9058_v30 = vld [vmem:[%s17019_s0 + $0x2f1] sm:$0xff] }
 0x246   :  { %1294 = vst.msk [vmem:[#allocation2 + $0x170] sm:$0xff] %vm1247_vm3, %v1148_v50  ;;  %v9060_v50 = vld [vmem:[%s17019_s0 + $0x309] sm:$0xff] }
 0x247   :  { %1305 = vst.msk [vmem:[#allocation2 + $0x1c8] sm:$0xff] %vm1247_vm3, %v1170_v22 }
 0x24a   :  { %1496 = vrot.lane.b32.xlu1 %v9029_v59, %s9519_s15  ;;  %1494 = vrot.lane.b32.xlu0 %v9028_v35, %s9519_s15 }
 0x24b   :  { %1498 = vrot.lane.b32.xlu2 %v9030_v6, %s9519_s15  ;;  %v9062_v6 = vld [vmem:[%s17019_s0 + $0x321] sm:$0xff] }
 0x24c   :  { %v1156_v9 = vpop.permute.xlu1 %1155  ;;  %v1154_v62 = vpop.permute.xlu0 %1153 }
 0x24d   :  { %1298 = vst.msk [vmem:[#allocation2 + $0x190] sm:$0xff] %vm1247_vm3, %v1156_v9  ;;  %v1176_v34 = vpop.permute.xlu2 %1175  ;;  %v9061_v9 = vld [vmem:[%s17019_s0 + $0x319] sm:$0xff] }
 0x24e   :  { %1297 = vst.msk [vmem:[#allocation2 + $0x188] sm:$0xff] %vm1247_vm3, %v1154_v62  ;;  %v9063_v62 = vld [vmem:[%s17019_s0 + $0x331] sm:$0xff] }
 0x24f   :  { %1308 = vst.msk [vmem:[#allocation2 + $0x1e0] sm:$0xff] %vm1247_vm3, %v1176_v34 }
 0x252   :  { %1502 = vrot.lane.b32.xlu1 %v9032_v33, %s9519_s15  ;;  %1500 = vrot.lane.b32.xlu0 %v9031_v40, %s9519_s15 }
 0x253   :  { %1504 = vrot.lane.b32.xlu2 %v9033_v39, %s9519_s15  ;;  %v9065_v39 = vld [vmem:[%s17019_s0 + $0x1a] sm:$0xff] }
 0x254   :  { %v1162_v47 = vpop.permute.xlu1 %1161  ;;  %v1160_v48 = vpop.permute.xlu0 %1159 }
 0x255   :  { %1301 = vst.msk [vmem:[#allocation2 + $0x1a8] sm:$0xff] %vm1247_vm3, %v1162_v47  ;;  %v1182_v46 = vpop.permute.xlu2 %1181  ;;  %v9064_v47 = vld [vmem:[%s17019_s0 + $0x339] sm:$0xff] }
 0x256   :  { %1300 = vst.msk [vmem:[#allocation2 + $0x1a0] sm:$0xff] %vm1247_vm3, %v1160_v48  ;;  %v9066_v48 = vld [vmem:[%s17019_s0 + $0x22] sm:$0xff] }
 0x257   :  { %1311 = vst.msk [vmem:[#allocation2 + $0x1f8] sm:$0xff] %vm1247_vm3, %v1182_v46 }
 0x25a   :  { %1508 = vrot.lane.b32.xlu1 %v9035_v54, %s9519_s15  ;;  %1506 = vrot.lane.b32.xlu0 %v9034_v55, %s9519_s15 }
 0x25b   :  { %1510 = vrot.lane.b32.xlu2 %v9036_v53, %s9519_s15  ;;  %v9068_v53 = vld [vmem:[%s17019_s0 + $0x3a] sm:$0xff] }
 0x25c   :  { %v1168_v63 = vpop.permute.xlu1 %1167  ;;  %v1166_v1 = vpop.permute.xlu0 %1165 }
 0x25d   :  { %1304 = vst.msk [vmem:[#allocation2 + $0x1c0] sm:$0xff] %vm1247_vm3, %v1168_v63  ;;  %v1445_v60 = vpop.permute.xlu2 %1444  ;;  %v9067_v63 = vld [vmem:[%s17019_s0 + $0x32] sm:$0xff] }
 0x25e   :  { %1303 = vst.msk [vmem:[#allocation2 + $0x1b8] sm:$0xff] %vm1247_vm3, %v1166_v1  ;;  %v9069_v1 = vld [vmem:[%s17019_s0 + $0x4a] sm:$0xff] }
 0x25f   :  { %1635 = vst.msk [vmem:[#allocation2 + $0x10] sm:$0xff] %vm1632_vm4, %v1445_v60 }
 0x262   :  { %1514 = vrot.lane.b32.xlu1 %v9038_v8, %s9519_s15  ;;  %1512 = vrot.lane.b32.xlu0 %v9037_v10, %s9519_s15 }
 0x263   :  { %1516 = vrot.lane.b32.xlu2 %v9039_v5, %s9519_s15  ;;  %v9071_v5 = vld [vmem:[%s17019_s0 + $0x62] sm:$0xff] }
 0x264   :  { %v1174_v17 = vpop.permute.xlu1 %1173  ;;  %v1172_v19 = vpop.permute.xlu0 %1171 }
 0x265   :  { %1307 = vst.msk [vmem:[#allocation2 + $0x1d8] sm:$0xff] %vm1247_vm3, %v1174_v17  ;;  %v1451_v14 = vpop.permute.xlu2 %1450  ;;  %v9070_v17 = vld [vmem:[%s17019_s0 + $0x52] sm:$0xff] }
 0x266   :  { %1306 = vst.msk [vmem:[#allocation2 + $0x1d0] sm:$0xff] %vm1247_vm3, %v1172_v19  ;;  %v9072_v19 = vld [vmem:[%s17019_s0 + $0x6a] sm:$0xff] }
 0x267   :  { %1638 = vst.msk [vmem:[#allocation2 + $0x28] sm:$0xff] %vm1632_vm4, %v1451_v14 }
 0x26a   :  { %1520 = vrot.lane.b32.xlu1 %v9041_v26, %s9519_s15  ;;  %1518 = vrot.lane.b32.xlu0 %v9040_v28, %s9519_s15 }
 0x26b   :  { %1522 = vrot.lane.b32.xlu2 %v9042_v23, %s9519_s15  ;;  %v9074_v23 = vld [vmem:[%s17019_s0 + $0x82] sm:$0xff] }
 0x26c   :  { %v1180_v37 = vpop.permute.xlu1 %1179  ;;  %v1178_v41 = vpop.permute.xlu0 %1177 }
 0x26d   :  { %1310 = vst.msk [vmem:[#allocation2 + $0x1f0] sm:$0xff] %vm1247_vm3, %v1180_v37  ;;  %v1457_v32 = vpop.permute.xlu2 %1456  ;;  %v9073_v37 = vld [vmem:[%s17019_s0 + $0x7a] sm:$0xff] }
 0x26e   :  { %1309 = vst.msk [vmem:[#allocation2 + $0x1e8] sm:$0xff] %vm1247_vm3, %v1178_v41  ;;  %v9075_v41 = vld [vmem:[%s17019_s0 + $0x92] sm:$0xff] }
 0x26f   :  { %1641 = vst.msk [vmem:[#allocation2 + $0x40] sm:$0xff] %vm1632_vm4, %v1457_v32 }
 0x272   :  { %1526 = vrot.lane.b32.xlu1 %v9044_v13, %s9519_s15  ;;  %1524 = vrot.lane.b32.xlu0 %v9043_v51, %s9519_s15 }
 0x273   :  { %1528 = vrot.lane.b32.xlu2 %v9045_v56, %s9519_s15  ;;  %v9077_v56 = vld [vmem:[%s17019_s0 + $0xaa] sm:$0xff] }
 0x274   :  { %v1443_v45 = vpop.permute.xlu1 %1442  ;;  %v1441_v38 = vpop.permute.xlu0 %1440 }
 0x275   :  { %1634 = vst.msk [vmem:[#allocation2 + $0x8] sm:$0xff] %vm1632_vm4, %v1443_v45  ;;  %v1463_v2 = vpop.permute.xlu2 %1462  ;;  %v9076_v45 = vld [vmem:[%s17019_s0 + $0x9a] sm:$0xff] }
 0x276   :  { %1633 = vst.msk [vmem:[#allocation2] sm:$0xff] %vm1632_vm4, %v1441_v38  ;;  %v9078_v38 = vld [vmem:[%s17019_s0 + $0xb2] sm:$0xff] }
 0x277   :  { %1644 = vst.msk [vmem:[#allocation2 + $0x58] sm:$0xff] %vm1632_vm4, %v1463_v2 }
 0x27a   :  { %1532 = vrot.lane.b32.xlu1 %v9047_v4, %s9519_s15  ;;  %1530 = vrot.lane.b32.xlu0 %v9046_v20, %s9519_s15 }
 0x27b   :  { %1534 = vrot.lane.b32.xlu2 %v9048_v15, %s9519_s15  ;;  %v9080_v15 = vld [vmem:[%s17019_s0 + $0xca] sm:$0xff] }
 0x27c   :  { %v1449_v27 = vpop.permute.xlu1 %1448  ;;  %v1447_v11 = vpop.permute.xlu0 %1446 }
 0x27d   :  { %1637 = vst.msk [vmem:[#allocation2 + $0x20] sm:$0xff] %vm1632_vm4, %v1449_v27  ;;  %v1469_v29 = vpop.permute.xlu2 %1468  ;;  %v9079_v27 = vld [vmem:[%s17019_s0 + $0xc2] sm:$0xff] }
 0x27e   :  { %1636 = vst.msk [vmem:[#allocation2 + $0x18] sm:$0xff] %vm1632_vm4, %v1447_v11  ;;  %v9081_v11 = vld [vmem:[%s17019_s0 + $0xda] sm:$0xff] }
 0x27f   :  { %1647 = vst.msk [vmem:[#allocation2 + $0x70] sm:$0xff] %vm1632_vm4, %v1469_v29 }
 0x282   :  { %1538 = vrot.lane.b32.xlu1 %v9050_v31, %s9519_s15  ;;  %1536 = vrot.lane.b32.xlu0 %v9049_v24, %s9519_s15 }
 0x283   :  { %1540 = vrot.lane.b32.xlu2 %v9051_v49, %s9519_s15  ;;  %v9083_v49 = vld [vmem:[%s17019_s0 + $0xf2] sm:$0xff] }
 0x284   :  { %v1455_v52 = vpop.permute.xlu1 %1454  ;;  %v1453_v42 = vpop.permute.xlu0 %1452 }
 0x285   :  { %1640 = vst.msk [vmem:[#allocation2 + $0x38] sm:$0xff] %vm1632_vm4, %v1455_v52  ;;  %v1475_v3 = vpop.permute.xlu2 %1474  ;;  %v9082_v52 = vld [vmem:[%s17019_s0 + $0xe2] sm:$0xff] }
 0x286   :  { %1639 = vst.msk [vmem:[#allocation2 + $0x30] sm:$0xff] %vm1632_vm4, %v1453_v42  ;;  %v9084_v42 = vld [vmem:[%s17019_s0 + $0xfa] sm:$0xff] }
 0x287   :  { %1650 = vst.msk [vmem:[#allocation2 + $0x88] sm:$0xff] %vm1632_vm4, %v1475_v3 }
 0x28a   :  { %1544 = vrot.lane.b32.xlu1 %v9053_v7, %s9519_s15  ;;  %1542 = vrot.lane.b32.xlu0 %v9052_v61, %s9519_s15 }
 0x28b   :  { %1546 = vrot.lane.b32.xlu2 %v9054_v21, %s9519_s15  ;;  %v9086_v21 = vld [vmem:[%s17019_s0 + $0x112] sm:$0xff] }
 0x28c   :  { %v1461_v25 = vpop.permute.xlu1 %1460  ;;  %v1459_v16 = vpop.permute.xlu0 %1458 }
 0x28d   :  { %1643 = vst.msk [vmem:[#allocation2 + $0x50] sm:$0xff] %vm1632_vm4, %v1461_v25  ;;  %v1481_v44 = vpop.permute.xlu2 %1480  ;;  %v9085_v25 = vld [vmem:[%s17019_s0 + $0x10a] sm:$0xff] }
 0x28e   :  { %1642 = vst.msk [vmem:[#allocation2 + $0x48] sm:$0xff] %vm1632_vm4, %v1459_v16  ;;  %v9087_v16 = vld [vmem:[%s17019_s0 + $0x122] sm:$0xff] }
 0x28f   :  { %1653 = vst.msk [vmem:[#allocation2 + $0xa0] sm:$0xff] %vm1632_vm4, %v1481_v44 }
 0x292   :  { %1550 = vrot.lane.b32.xlu1 %v9056_v57, %s9519_s15  ;;  %1548 = vrot.lane.b32.xlu0 %v9055_v36, %s9519_s15 }
 0x293   :  { %1552 = vrot.lane.b32.xlu2 %v9057_v12, %s9519_s15  ;;  %v9089_v12 = vld [vmem:[%s17019_s0 + $0x13a] sm:$0xff] }
 0x294   :  { %v1467_v18 = vpop.permute.xlu1 %1466  ;;  %v1465_v0 = vpop.permute.xlu0 %1464 }
 0x295   :  { %1646 = vst.msk [vmem:[#allocation2 + $0x68] sm:$0xff] %vm1632_vm4, %v1467_v18  ;;  %v1487_v43 = vpop.permute.xlu2 %1486  ;;  %v9088_v18 = vld [vmem:[%s17019_s0 + $0x12a] sm:$0xff] }
 0x296   :  { %1645 = vst.msk [vmem:[#allocation2 + $0x60] sm:$0xff] %vm1632_vm4, %v1465_v0  ;;  %v9090_v0 = vld [vmem:[%s17019_s0 + $0x142] sm:$0xff] }
 0x297   :  { %1656 = vst.msk [vmem:[#allocation2 + $0xb8] sm:$0xff] %vm1632_vm4, %v1487_v43 }
 0x29a   :  { %1556 = vrot.lane.b32.xlu1 %v9059_v58, %s9519_s15  ;;  %1554 = vrot.lane.b32.xlu0 %v9058_v30, %s9519_s15 }
 0x29b   :  { %1558 = vrot.lane.b32.xlu2 %v9060_v50, %s9519_s15  ;;  %v9092_v50 = vld [vmem:[%s17019_s0 + $0x15a] sm:$0xff] }
 0x29c   :  { %v1473_v22 = vpop.permute.xlu1 %1472  ;;  %v1471_v59 = vpop.permute.xlu0 %1470 }
 0x29d   :  { %1649 = vst.msk [vmem:[#allocation2 + $0x80] sm:$0xff] %vm1632_vm4, %v1473_v22  ;;  %v1493_v35 = vpop.permute.xlu2 %1492  ;;  %v9091_v22 = vld [vmem:[%s17019_s0 + $0x152] sm:$0xff] }
 0x29e   :  { %1648 = vst.msk [vmem:[#allocation2 + $0x78] sm:$0xff] %vm1632_vm4, %v1471_v59  ;;  %v9093_v59 = vld [vmem:[%s17019_s0 + $0x16a] sm:$0xff] }
 0x29f   :  { %1659 = vst.msk [vmem:[#allocation2 + $0xd0] sm:$0xff] %vm1632_vm4, %v1493_v35 }
 0x2a2   :  { %1562 = vrot.lane.b32.xlu1 %v9062_v6, %s9519_s15  ;;  %1560 = vrot.lane.b32.xlu0 %v9061_v9, %s9519_s15 }
 0x2a3   :  { %1564 = vrot.lane.b32.xlu2 %v9063_v62, %s9519_s15  ;;  %v9095_v62 = vld [vmem:[%s17019_s0 + $0x182] sm:$0xff] }
 0x2a4   :  { %v1479_v34 = vpop.permute.xlu1 %1478  ;;  %v1477_v33 = vpop.permute.xlu0 %1476 }
 0x2a5   :  { %1652 = vst.msk [vmem:[#allocation2 + $0x98] sm:$0xff] %vm1632_vm4, %v1479_v34  ;;  %v1499_v40 = vpop.permute.xlu2 %1498  ;;  %v9094_v34 = vld [vmem:[%s17019_s0 + $0x172] sm:$0xff] }
 0x2a6   :  { %1651 = vst.msk [vmem:[#allocation2 + $0x90] sm:$0xff] %vm1632_vm4, %v1477_v33  ;;  %v9096_v33 = vld [vmem:[%s17019_s0 + $0x18a] sm:$0xff] }
 0x2a7   :  { %1662 = vst.msk [vmem:[#allocation2 + $0xe8] sm:$0xff] %vm1632_vm4, %v1499_v40 }
 0x2aa   :  { %1825 = vrot.lane.b32.xlu1 %v9065_v39, %s9520_s8  ;;  %1566 = vrot.lane.b32.xlu0 %v9064_v47, %s9519_s15 }
 0x2ab   :  { %1827 = vrot.lane.b32.xlu2 %v9066_v48, %s9520_s8  ;;  %v9098_v48 = vld [vmem:[%s17019_s0 + $0x1d2] sm:$0xff] }
 0x2ac   :  { %v1485_v46 = vpop.permute.xlu1 %1484  ;;  %v1483_v54 = vpop.permute.xlu0 %1482 }
 0x2ad   :  { %1655 = vst.msk [vmem:[#allocation2 + $0xb0] sm:$0xff] %vm1632_vm4, %v1485_v46  ;;  %v1505_v55 = vpop.permute.xlu2 %1504  ;;  %v9097_v46 = vld [vmem:[%s17019_s0 + $0x1ca] sm:$0xff] }
 0x2ae   :  { %1654 = vst.msk [vmem:[#allocation2 + $0xa8] sm:$0xff] %vm1632_vm4, %v1483_v54  ;;  %v9099_v54 = vld [vmem:[%s17019_s0 + $0x1e2] sm:$0xff] }
 0x2af   :  { %1665 = vst.msk [vmem:[#allocation2 + $0x100] sm:$0xff] %vm1632_vm4, %v1505_v55 }
 0x2b2   :  { %1831 = vrot.lane.b32.xlu1 %v9068_v53, %s9520_s8  ;;  %1829 = vrot.lane.b32.xlu0 %v9067_v63, %s9520_s8 }
 0x2b3   :  { %1833 = vrot.lane.b32.xlu2 %v9069_v1, %s9520_s8  ;;  %v9101_v1 = vld [vmem:[%s17019_s0 + $0x1fa] sm:$0xff] }
 0x2b4   :  { %v1491_v60 = vpop.permute.xlu1 %1490  ;;  %v1489_v8 = vpop.permute.xlu0 %1488 }
 0x2b5   :  { %1658 = vst.msk [vmem:[#allocation2 + $0xc8] sm:$0xff] %vm1632_vm4, %v1491_v60  ;;  %v1511_v10 = vpop.permute.xlu2 %1510  ;;  %v9100_v60 = vld [vmem:[%s17019_s0 + $0x1ea] sm:$0xff] }
 0x2b6   :  { %1657 = vst.msk [vmem:[#allocation2 + $0xc0] sm:$0xff] %vm1632_vm4, %v1489_v8  ;;  %v9102_v8 = vld [vmem:[%s17019_s0 + $0x202] sm:$0xff] }
 0x2b7   :  { %1668 = vst.msk [vmem:[#allocation2 + $0x118] sm:$0xff] %vm1632_vm4, %v1511_v10 }
 0x2ba   :  { %1837 = vrot.lane.b32.xlu1 %v9071_v5, %s9520_s8  ;;  %1835 = vrot.lane.b32.xlu0 %v9070_v17, %s9520_s8 }
 0x2bb   :  { %1839 = vrot.lane.b32.xlu2 %v9072_v19, %s9520_s8  ;;  %v9104_v19 = vld [vmem:[%s17019_s0 + $0x21a] sm:$0xff] }
 0x2bc   :  { %v1497_v14 = vpop.permute.xlu1 %1496  ;;  %v1495_v26 = vpop.permute.xlu0 %1494 }
 0x2bd   :  { %1661 = vst.msk [vmem:[#allocation2 + $0xe0] sm:$0xff] %vm1632_vm4, %v1497_v14  ;;  %v1517_v28 = vpop.permute.xlu2 %1516  ;;  %v9103_v14 = vld [vmem:[%s17019_s0 + $0x212] sm:$0xff] }
 0x2be   :  { %1660 = vst.msk [vmem:[#allocation2 + $0xd8] sm:$0xff] %vm1632_vm4, %v1495_v26  ;;  %v9105_v26 = vld [vmem:[%s17019_s0 + $0x22a] sm:$0xff] }
 0x2bf   :  { %1671 = vst.msk [vmem:[#allocation2 + $0x130] sm:$0xff] %vm1632_vm4, %v1517_v28 }
 0x2c2   :  { %1843 = vrot.lane.b32.xlu1 %v9074_v23, %s9520_s8  ;;  %1841 = vrot.lane.b32.xlu0 %v9073_v37, %s9520_s8 }
 0x2c3   :  { %1845 = vrot.lane.b32.xlu2 %v9075_v41, %s9520_s8  ;;  %v9107_v41 = vld [vmem:[%s17019_s0 + $0x242] sm:$0xff] }
 0x2c4   :  { %v1503_v32 = vpop.permute.xlu1 %1502  ;;  %v1501_v13 = vpop.permute.xlu0 %1500 }
 0x2c5   :  { %1664 = vst.msk [vmem:[#allocation2 + $0xf8] sm:$0xff] %vm1632_vm4, %v1503_v32  ;;  %v1523_v51 = vpop.permute.xlu2 %1522  ;;  %v9106_v32 = vld [vmem:[%s17019_s0 + $0x232] sm:$0xff] }
 0x2c6   :  { %1663 = vst.msk [vmem:[#allocation2 + $0xf0] sm:$0xff] %vm1632_vm4, %v1501_v13  ;;  %v9108_v13 = vld [vmem:[%s17019_s0 + $0x24a] sm:$0xff] }
 0x2c7   :  { %1674 = vst.msk [vmem:[#allocation2 + $0x148] sm:$0xff] %vm1632_vm4, %v1523_v51 }
 0x2ca   :  { %1849 = vrot.lane.b32.xlu1 %v9077_v56, %s9520_s8  ;;  %1847 = vrot.lane.b32.xlu0 %v9076_v45, %s9520_s8 }
 0x2cb   :  { %1851 = vrot.lane.b32.xlu2 %v9078_v38, %s9520_s8  ;;  %v9110_v38 = vld [vmem:[%s17019_s0 + $0x262] sm:$0xff] }
 0x2cc   :  { %v1509_v2 = vpop.permute.xlu1 %1508  ;;  %v1507_v4 = vpop.permute.xlu0 %1506 }
 0x2cd   :  { %1667 = vst.msk [vmem:[#allocation2 + $0x110] sm:$0xff] %vm1632_vm4, %v1509_v2  ;;  %v1529_v20 = vpop.permute.xlu2 %1528  ;;  %v9109_v2 = vld [vmem:[%s17019_s0 + $0x25a] sm:$0xff] }
 0x2ce   :  { %1666 = vst.msk [vmem:[#allocation2 + $0x108] sm:$0xff] %vm1632_vm4, %v1507_v4  ;;  %v9111_v4 = vld [vmem:[%s17019_s0 + $0x272] sm:$0xff] }
 0x2cf   :  { %1677 = vst.msk [vmem:[#allocation2 + $0x160] sm:$0xff] %vm1632_vm4, %v1529_v20 }
 0x2d2   :  { %1855 = vrot.lane.b32.xlu1 %v9080_v15, %s9520_s8  ;;  %1853 = vrot.lane.b32.xlu0 %v9079_v27, %s9520_s8 }
 0x2d3   :  { %1857 = vrot.lane.b32.xlu2 %v9081_v11, %s9520_s8  ;;  %v9113_v11 = vld [vmem:[%s17019_s0 + $0x28a] sm:$0xff] }
 0x2d4   :  { %v1515_v29 = vpop.permute.xlu1 %1514  ;;  %v1513_v31 = vpop.permute.xlu0 %1512 }
 0x2d5   :  { %1670 = vst.msk [vmem:[#allocation2 + $0x128] sm:$0xff] %vm1632_vm4, %v1515_v29  ;;  %v1535_v24 = vpop.permute.xlu2 %1534  ;;  %v9112_v29 = vld [vmem:[%s17019_s0 + $0x27a] sm:$0xff] }
 0x2d6   :  { %1669 = vst.msk [vmem:[#allocation2 + $0x120] sm:$0xff] %vm1632_vm4, %v1513_v31  ;;  %v9114_v31 = vld [vmem:[%s17019_s0 + $0x292] sm:$0xff] }
 0x2d7   :  { %1680 = vst.msk [vmem:[#allocation2 + $0x178] sm:$0xff] %vm1632_vm4, %v1535_v24 }
 0x2da   :  { %1861 = vrot.lane.b32.xlu1 %v9083_v49, %s9520_s8  ;;  %1859 = vrot.lane.b32.xlu0 %v9082_v52, %s9520_s8 }
 0x2db   :  { %1863 = vrot.lane.b32.xlu2 %v9084_v42, %s9520_s8  ;;  %v9116_v42 = vld [vmem:[%s17019_s0 + $0x2aa] sm:$0xff] }
 0x2dc   :  { %v1521_v3 = vpop.permute.xlu1 %1520  ;;  %v1519_v7 = vpop.permute.xlu0 %1518 }
 0x2dd   :  { %1673 = vst.msk [vmem:[#allocation2 + $0x140] sm:$0xff] %vm1632_vm4, %v1521_v3  ;;  %v1541_v61 = vpop.permute.xlu2 %1540  ;;  %v9115_v3 = vld [vmem:[%s17019_s0 + $0x2a2] sm:$0xff] }
 0x2de   :  { %1672 = vst.msk [vmem:[#allocation2 + $0x138] sm:$0xff] %vm1632_vm4, %v1519_v7  ;;  %v9117_v7 = vld [vmem:[%s17019_s0 + $0x2ba] sm:$0xff] }
 0x2df   :  { %1683 = vst.msk [vmem:[#allocation2 + $0x190] sm:$0xff] %vm1632_vm4, %v1541_v61 }
 0x2e2   :  { %1867 = vrot.lane.b32.xlu1 %v9086_v21, %s9520_s8  ;;  %1865 = vrot.lane.b32.xlu0 %v9085_v25, %s9520_s8 }
 0x2e3   :  { %1869 = vrot.lane.b32.xlu2 %v9087_v16, %s9520_s8  ;;  %v9119_v16 = vld [vmem:[%s17019_s0 + $0x2d2] sm:$0xff] }
 0x2e4   :  { %v1527_v44 = vpop.permute.xlu1 %1526  ;;  %v1525_v57 = vpop.permute.xlu0 %1524 }
 0x2e5   :  { %1676 = vst.msk [vmem:[#allocation2 + $0x158] sm:$0xff] %vm1632_vm4, %v1527_v44  ;;  %v1547_v36 = vpop.permute.xlu2 %1546  ;;  %v9118_v44 = vld [vmem:[%s17019_s0 + $0x2c2] sm:$0xff] }
 0x2e6   :  { %1675 = vst.msk [vmem:[#allocation2 + $0x150] sm:$0xff] %vm1632_vm4, %v1525_v57  ;;  %v9120_v57 = vld [vmem:[%s17019_s0 + $0x2da] sm:$0xff] }
 0x2e7   :  { %1686 = vst.msk [vmem:[#allocation2 + $0x1a8] sm:$0xff] %vm1632_vm4, %v1547_v36 }
 0x2ea   :  { %1873 = vrot.lane.b32.xlu1 %v9089_v12, %s9520_s8  ;;  %1871 = vrot.lane.b32.xlu0 %v9088_v18, %s9520_s8 }
 0x2eb   :  { %1875 = vrot.lane.b32.xlu2 %v9090_v0, %s9520_s8  ;;  %v9122_v0 = vld [vmem:[%s17019_s0 + $0x2f2] sm:$0xff] }
 0x2ec   :  { %v1533_v43 = vpop.permute.xlu1 %1532  ;;  %v1531_v58 = vpop.permute.xlu0 %1530 }
 0x2ed   :  { %1679 = vst.msk [vmem:[#allocation2 + $0x170] sm:$0xff] %vm1632_vm4, %v1533_v43  ;;  %v1553_v30 = vpop.permute.xlu2 %1552  ;;  %v9121_v43 = vld [vmem:[%s17019_s0 + $0x2ea] sm:$0xff] }
 0x2ee   :  { %1678 = vst.msk [vmem:[#allocation2 + $0x168] sm:$0xff] %vm1632_vm4, %v1531_v58  ;;  %v9123_v58 = vld [vmem:[%s17019_s0 + $0x302] sm:$0xff] }
 0x2ef   :  { %1689 = vst.msk [vmem:[#allocation2 + $0x1c0] sm:$0xff] %vm1632_vm4, %v1553_v30 }
 0x2f2   :  { %1879 = vrot.lane.b32.xlu1 %v9092_v50, %s9520_s8  ;;  %1877 = vrot.lane.b32.xlu0 %v9091_v22, %s9520_s8 }
 0x2f3   :  { %1881 = vrot.lane.b32.xlu2 %v9093_v59, %s9520_s8  ;;  %v9125_v59 = vld [vmem:[%s17019_s0 + $0x31a] sm:$0xff] }
 0x2f4   :  { %v1539_v35 = vpop.permute.xlu1 %1538  ;;  %v1537_v6 = vpop.permute.xlu0 %1536 }
 0x2f5   :  { %1682 = vst.msk [vmem:[#allocation2 + $0x188] sm:$0xff] %vm1632_vm4, %v1539_v35  ;;  %v1559_v9 = vpop.permute.xlu2 %1558  ;;  %v9124_v35 = vld [vmem:[%s17019_s0 + $0x30a] sm:$0xff] }
 0x2f6   :  { %1681 = vst.msk [vmem:[#allocation2 + $0x180] sm:$0xff] %vm1632_vm4, %v1537_v6  ;;  %v9126_v6 = vld [vmem:[%s17019_s0 + $0x322] sm:$0xff] }
 0x2f7   :  { %1692 = vst.msk [vmem:[#allocation2 + $0x1d8] sm:$0xff] %vm1632_vm4, %v1559_v9 }
 0x2fa   :  { %1885 = vrot.lane.b32.xlu1 %v9095_v62, %s9520_s8  ;;  %1883 = vrot.lane.b32.xlu0 %v9094_v34, %s9520_s8 }
 0x2fb   :  { %1887 = vrot.lane.b32.xlu2 %v9096_v33, %s9520_s8  ;;  %v9128_v33 = vld [vmem:[%s17019_s0 + $0x33a] sm:$0xff] }
 0x2fc   :  { %v1545_v40 = vpop.permute.xlu1 %1544  ;;  %v1543_v39 = vpop.permute.xlu0 %1542 }
 0x2fd   :  { %1685 = vst.msk [vmem:[#allocation2 + $0x1a0] sm:$0xff] %vm1632_vm4, %v1545_v40  ;;  %v1565_v47 = vpop.permute.xlu2 %1564  ;;  %v9127_v40 = vld [vmem:[%s17019_s0 + $0x332] sm:$0xff] }
 0x2fe   :  { %1684 = vst.msk [vmem:[#allocation2 + $0x198] sm:$0xff] %vm1632_vm4, %v1543_v39  ;;  %v9129_v39 = vld [vmem:[%s17019_s0 + $0x30] sm:$0xff] }
 0x2ff   :  { %1695 = vst.msk [vmem:[#allocation2 + $0x1f0] sm:$0xff] %vm1632_vm4, %v1565_v47 }
 0x302   :  { %1891 = vrot.lane.b32.xlu1 %v9098_v48, %s9520_s8  ;;  %1889 = vrot.lane.b32.xlu0 %v9097_v46, %s9520_s8 }
 0x303   :  { %1893 = vrot.lane.b32.xlu2 %v9099_v54, %s9520_s8  ;;  %v9131_v54 = vld [vmem:[%s17019_s0 + $0x48] sm:$0xff] }
 0x304   :  { %v1551_v55 = vpop.permute.xlu1 %1550  ;;  %v1549_v53 = vpop.permute.xlu0 %1548 }
 0x305   :  { %1688 = vst.msk [vmem:[#allocation2 + $0x1b8] sm:$0xff] %vm1632_vm4, %v1551_v55  ;;  %v1828_v63 = vpop.permute.xlu2 %1827  ;;  %v9130_v55 = vld [vmem:[%s17019_s0 + $0x38] sm:$0xff] }
 0x306   :  { %1687 = vst.msk [vmem:[#allocation2 + $0x1b0] sm:$0xff] %vm1632_vm4, %v1549_v53  ;;  %v9132_v53 = vld [vmem:[%s17019_s0 + $0x50] sm:$0xff] }
 0x307   :  { %2019 = vst.msk [vmem:[#allocation2 + $0x8] sm:$0xff] %vm2017_vm5, %v1828_v63 }
 0x30a   :  { %1897 = vrot.lane.b32.xlu1 %v9101_v1, %s9520_s8  ;;  %1895 = vrot.lane.b32.xlu0 %v9100_v60, %s9520_s8 }
 0x30b   :  { %1899 = vrot.lane.b32.xlu2 %v9102_v8, %s9520_s8  ;;  %v9134_v8 = vld [vmem:[%s17019_s0 + $0x68] sm:$0xff] }
 0x30c   :  { %v1557_v10 = vpop.permute.xlu1 %1556  ;;  %v1555_v5 = vpop.permute.xlu0 %1554 }
 0x30d   :  { %1691 = vst.msk [vmem:[#allocation2 + $0x1d0] sm:$0xff] %vm1632_vm4, %v1557_v10  ;;  %v1834_v17 = vpop.permute.xlu2 %1833  ;;  %v9133_v10 = vld [vmem:[%s17019_s0 + $0x60] sm:$0xff] }
 0x30e   :  { %1690 = vst.msk [vmem:[#allocation2 + $0x1c8] sm:$0xff] %vm1632_vm4, %v1555_v5  ;;  %v9135_v5 = vld [vmem:[%s17019_s0 + $0x78] sm:$0xff] }
 0x30f   :  { %2022 = vst.msk [vmem:[#allocation2 + $0x20] sm:$0xff] %vm2017_vm5, %v1834_v17 }
 0x312   :  { %1903 = vrot.lane.b32.xlu1 %v9104_v19, %s9520_s8  ;;  %1901 = vrot.lane.b32.xlu0 %v9103_v14, %s9520_s8 }
 0x313   :  { %1905 = vrot.lane.b32.xlu2 %v9105_v26, %s9520_s8  ;;  %v9137_v26 = vld [vmem:[%s17019_s0 + $0x90] sm:$0xff] }
 0x314   :  { %v1563_v28 = vpop.permute.xlu1 %1562  ;;  %v1561_v23 = vpop.permute.xlu0 %1560 }
 0x315   :  { %1694 = vst.msk [vmem:[#allocation2 + $0x1e8] sm:$0xff] %vm1632_vm4, %v1563_v28  ;;  %v1840_v37 = vpop.permute.xlu2 %1839  ;;  %v9136_v28 = vld [vmem:[%s17019_s0 + $0x80] sm:$0xff] }
 0x316   :  { %1693 = vst.msk [vmem:[#allocation2 + $0x1e0] sm:$0xff] %vm1632_vm4, %v1561_v23  ;;  %v9138_v23 = vld [vmem:[%s17019_s0 + $0x98] sm:$0xff] }
 0x317   :  { %2025 = vst.msk [vmem:[#allocation2 + $0x38] sm:$0xff] %vm2017_vm5, %v1840_v37 }
 0x31a   :  { %1909 = vrot.lane.b32.xlu1 %v9107_v41, %s9520_s8  ;;  %1907 = vrot.lane.b32.xlu0 %v9106_v32, %s9520_s8 }
 0x31b   :  { %1911 = vrot.lane.b32.xlu2 %v9108_v13, %s9520_s8  ;;  %v9140_v13 = vld [vmem:[%s17019_s0 + $0xb0] sm:$0xff] }
 0x31c   :  { %v1826_v51 = vpop.permute.xlu1 %1825  ;;  %v1567_v56 = vpop.permute.xlu0 %1566 }
 0x31d   :  { %2018 = vst.msk [vmem:[#allocation2] sm:$0xff] %vm2017_vm5, %v1826_v51  ;;  %v1846_v45 = vpop.permute.xlu2 %1845  ;;  %v9139_v51 = vld [vmem:[%s17019_s0 + $0xa8] sm:$0xff] }
 0x31e   :  { %1696 = vst.msk [vmem:[#allocation2 + $0x1f8] sm:$0xff] %vm1632_vm4, %v1567_v56  ;;  %v9141_v56 = vld [vmem:[%s17019_s0 + $0xc0] sm:$0xff] }
 0x31f   :  { %2028 = vst.msk [vmem:[#allocation2 + $0x50] sm:$0xff] %vm2017_vm5, %v1846_v45 }
 0x322   :  { %1915 = vrot.lane.b32.xlu1 %v9110_v38, %s9520_s8  ;;  %1913 = vrot.lane.b32.xlu0 %v9109_v2, %s9520_s8 }
 0x323   :  { %1917 = vrot.lane.b32.xlu2 %v9111_v4, %s9520_s8  ;;  %v9143_v4 = vld [vmem:[%s17019_s0 + $0xd8] sm:$0xff] }
 0x324   :  { %v1832_v20 = vpop.permute.xlu1 %1831  ;;  %v1830_v15 = vpop.permute.xlu0 %1829 }
 0x325   :  { %2021 = vst.msk [vmem:[#allocation2 + $0x18] sm:$0xff] %vm2017_vm5, %v1832_v20  ;;  %v1852_v27 = vpop.permute.xlu2 %1851  ;;  %v9142_v20 = vld [vmem:[%s17019_s0 + $0xc8] sm:$0xff] }
 0x326   :  { %2020 = vst.msk [vmem:[#allocation2 + $0x10] sm:$0xff] %vm2017_vm5, %v1830_v15  ;;  %v9144_v15 = vld [vmem:[%s17019_s0 + $0xe0] sm:$0xff] }
 0x327   :  { %2031 = vst.msk [vmem:[#allocation2 + $0x68] sm:$0xff] %vm2017_vm5, %v1852_v27 }
 0x32a   :  { %1921 = vrot.lane.b32.xlu1 %v9113_v11, %s9520_s8  ;;  %1919 = vrot.lane.b32.xlu0 %v9112_v29, %s9520_s8 }
 0x32b   :  { %1923 = vrot.lane.b32.xlu2 %v9114_v31, %s9520_s8  ;;  %v9146_v31 = vld [vmem:[%s17019_s0 + $0xf8] sm:$0xff] }
 0x32c   :  { %v1838_v24 = vpop.permute.xlu1 %1837  ;;  %v1836_v49 = vpop.permute.xlu0 %1835 }
 0x32d   :  { %2024 = vst.msk [vmem:[#allocation2 + $0x30] sm:$0xff] %vm2017_vm5, %v1838_v24  ;;  %v1858_v52 = vpop.permute.xlu2 %1857  ;;  %v9145_v24 = vld [vmem:[%s17019_s0 + $0xf0] sm:$0xff] }
 0x32e   :  { %2023 = vst.msk [vmem:[#allocation2 + $0x28] sm:$0xff] %vm2017_vm5, %v1836_v49  ;;  %v9147_v49 = vld [vmem:[%s17019_s0 + $0x108] sm:$0xff] }
 0x32f   :  { %2034 = vst.msk [vmem:[#allocation2 + $0x80] sm:$0xff] %vm2017_vm5, %v1858_v52 }
 0x332   :  { %1927 = vrot.lane.b32.xlu1 %v9116_v42, %s9520_s8  ;;  %1925 = vrot.lane.b32.xlu0 %v9115_v3, %s9520_s8 }
 0x333   :  { %1929 = vrot.lane.b32.xlu2 %v9117_v7, %s9520_s8  ;;  %v9149_v7 = vld [vmem:[%s17019_s0 + $0x120] sm:$0xff] }
 0x334   :  { %v1844_v61 = vpop.permute.xlu1 %1843  ;;  %v1842_v21 = vpop.permute.xlu0 %1841 }
 0x335   :  { %2027 = vst.msk [vmem:[#allocation2 + $0x48] sm:$0xff] %vm2017_vm5, %v1844_v61  ;;  %v1864_v25 = vpop.permute.xlu2 %1863  ;;  %v9148_v61 = vld [vmem:[%s17019_s0 + $0x110] sm:$0xff] }
 0x336   :  { %2026 = vst.msk [vmem:[#allocation2 + $0x40] sm:$0xff] %vm2017_vm5, %v1842_v21  ;;  %v9150_v21 = vld [vmem:[%s17019_s0 + $0x128] sm:$0xff] }
 0x337   :  { %2037 = vst.msk [vmem:[#allocation2 + $0x98] sm:$0xff] %vm2017_vm5, %v1864_v25 }
 0x33a   :  { %1933 = vrot.lane.b32.xlu1 %v9119_v16, %s9520_s8  ;;  %1931 = vrot.lane.b32.xlu0 %v9118_v44, %s9520_s8 }
 0x33b   :  { %1935 = vrot.lane.b32.xlu2 %v9120_v57, %s9520_s8  ;;  %v9152_v57 = vld [vmem:[%s17019_s0 + $0x140] sm:$0xff] }
 0x33c   :  { %v1850_v36 = vpop.permute.xlu1 %1849  ;;  %v1848_v12 = vpop.permute.xlu0 %1847 }
 0x33d   :  { %2030 = vst.msk [vmem:[#allocation2 + $0x60] sm:$0xff] %vm2017_vm5, %v1850_v36  ;;  %v1870_v18 = vpop.permute.xlu2 %1869  ;;  %v9151_v36 = vld [vmem:[%s17019_s0 + $0x138] sm:$0xff] }
 0x33e   :  { %2029 = vst.msk [vmem:[#allocation2 + $0x58] sm:$0xff] %vm2017_vm5, %v1848_v12  ;;  %v9153_v12 = vld [vmem:[%s17019_s0 + $0x150] sm:$0xff] }
 0x33f   :  { %2040 = vst.msk [vmem:[#allocation2 + $0xb0] sm:$0xff] %vm2017_vm5, %v1870_v18 }
 0x342   :  { %1939 = vrot.lane.b32.xlu1 %v9122_v0, %s9520_s8  ;;  %1937 = vrot.lane.b32.xlu0 %v9121_v43, %s9520_s8 }
 0x343   :  { %1941 = vrot.lane.b32.xlu2 %v9123_v58, %s9520_s8  ;;  %v9155_v58 = vld [vmem:[%s17019_s0 + $0x168] sm:$0xff] }
 0x344   :  { %v1856_v30 = vpop.permute.xlu1 %1855  ;;  %v1854_v50 = vpop.permute.xlu0 %1853 }
 0x345   :  { %2033 = vst.msk [vmem:[#allocation2 + $0x78] sm:$0xff] %vm2017_vm5, %v1856_v30  ;;  %v1876_v22 = vpop.permute.xlu2 %1875  ;;  %v9154_v30 = vld [vmem:[%s17019_s0 + $0x158] sm:$0xff] }
 0x346   :  { %2032 = vst.msk [vmem:[#allocation2 + $0x70] sm:$0xff] %vm2017_vm5, %v1854_v50  ;;  %v9156_v50 = vld [vmem:[%s17019_s0 + $0x170] sm:$0xff] }
 0x347   :  { %2043 = vst.msk [vmem:[#allocation2 + $0xc8] sm:$0xff] %vm2017_vm5, %v1876_v22 }
 0x34a   :  { %1945 = vrot.lane.b32.xlu1 %v9125_v59, %s9520_s8  ;;  %1943 = vrot.lane.b32.xlu0 %v9124_v35, %s9520_s8 }
 0x34b   :  { %1947 = vrot.lane.b32.xlu2 %v9126_v6, %s9520_s8  ;;  %v9158_v6 = vld [vmem:[%s17019_s0 + $0x188] sm:$0xff] }
 0x34c   :  { %v1862_v9 = vpop.permute.xlu1 %1861  ;;  %v1860_v62 = vpop.permute.xlu0 %1859 }
 0x34d   :  { %2036 = vst.msk [vmem:[#allocation2 + $0x90] sm:$0xff] %vm2017_vm5, %v1862_v9  ;;  %v1882_v34 = vpop.permute.xlu2 %1881  ;;  %v9157_v9 = vld [vmem:[%s17019_s0 + $0x180] sm:$0xff] }
 0x34e   :  { %2035 = vst.msk [vmem:[#allocation2 + $0x88] sm:$0xff] %vm2017_vm5, %v1860_v62  ;;  %v9159_v62 = vld [vmem:[%s17019_s0 + $0x198] sm:$0xff] }
 0x34f   :  { %2046 = vst.msk [vmem:[#allocation2 + $0xe0] sm:$0xff] %vm2017_vm5, %v1882_v34 }
 0x352   :  { %1951 = vrot.lane.b32.xlu1 %v9128_v33, %s9520_s8  ;;  %1949 = vrot.lane.b32.xlu0 %v9127_v40, %s9520_s8 }
 0x353   :  { %2211 = vrot.lane.b32.xlu2 %v9129_v39, %s9521_s9  ;;  %v9161_v39 = vld [vmem:[%s17019_s0 + $0x1e0] sm:$0xff] }
 0x354   :  { %v1868_v47 = vpop.permute.xlu1 %1867  ;;  %v1866_v48 = vpop.permute.xlu0 %1865 }
 0x355   :  { %2039 = vst.msk [vmem:[#allocation2 + $0xa8] sm:$0xff] %vm2017_vm5, %v1868_v47  ;;  %v1888_v46 = vpop.permute.xlu2 %1887  ;;  %v9160_v47 = vld [vmem:[%s17019_s0 + $0x1a0] sm:$0xff] }
 0x356   :  { %2038 = vst.msk [vmem:[#allocation2 + $0xa0] sm:$0xff] %vm2017_vm5, %v1866_v48  ;;  %v9162_v48 = vld [vmem:[%s17019_s0 + $0x1e8] sm:$0xff] }
 0x357   :  { %2049 = vst.msk [vmem:[#allocation2 + $0xf8] sm:$0xff] %vm2017_vm5, %v1888_v46 }
 0x35a   :  { %2215 = vrot.lane.b32.xlu1 %v9131_v54, %s9521_s9  ;;  %2213 = vrot.lane.b32.xlu0 %v9130_v55, %s9521_s9 }
 0x35b   :  { %2217 = vrot.lane.b32.xlu2 %v9132_v53, %s9521_s9  ;;  %v9164_v53 = vld [vmem:[%s17019_s0 + $0x200] sm:$0xff] }
 0x35c   :  { %v1874_v63 = vpop.permute.xlu1 %1873  ;;  %v1872_v1 = vpop.permute.xlu0 %1871 }
 0x35d   :  { %2042 = vst.msk [vmem:[#allocation2 + $0xc0] sm:$0xff] %vm2017_vm5, %v1874_v63  ;;  %v1894_v60 = vpop.permute.xlu2 %1893  ;;  %v9163_v63 = vld [vmem:[%s17019_s0 + $0x1f8] sm:$0xff] }
 0x35e   :  { %2041 = vst.msk [vmem:[#allocation2 + $0xb8] sm:$0xff] %vm2017_vm5, %v1872_v1  ;;  %v9165_v1 = vld [vmem:[%s17019_s0 + $0x210] sm:$0xff] }
 0x35f   :  { %2052 = vst.msk [vmem:[#allocation2 + $0x110] sm:$0xff] %vm2017_vm5, %v1894_v60 }
 0x362   :  { %2221 = vrot.lane.b32.xlu1 %v9134_v8, %s9521_s9  ;;  %2219 = vrot.lane.b32.xlu0 %v9133_v10, %s9521_s9 }
 0x363   :  { %2223 = vrot.lane.b32.xlu2 %v9135_v5, %s9521_s9  ;;  %v9167_v5 = vld [vmem:[%s17019_s0 + $0x228] sm:$0xff] }
 0x364   :  { %v1880_v17 = vpop.permute.xlu1 %1879  ;;  %v1878_v19 = vpop.permute.xlu0 %1877 }
 0x365   :  { %2045 = vst.msk [vmem:[#allocation2 + $0xd8] sm:$0xff] %vm2017_vm5, %v1880_v17  ;;  %v1900_v14 = vpop.permute.xlu2 %1899  ;;  %v9166_v17 = vld [vmem:[%s17019_s0 + $0x218] sm:$0xff] }
 0x366   :  { %2044 = vst.msk [vmem:[#allocation2 + $0xd0] sm:$0xff] %vm2017_vm5, %v1878_v19  ;;  %v9168_v19 = vld [vmem:[%s17019_s0 + $0x230] sm:$0xff] }
 0x367   :  { %2055 = vst.msk [vmem:[#allocation2 + $0x128] sm:$0xff] %vm2017_vm5, %v1900_v14 }
 0x36a   :  { %2227 = vrot.lane.b32.xlu1 %v9137_v26, %s9521_s9  ;;  %2225 = vrot.lane.b32.xlu0 %v9136_v28, %s9521_s9 }
 0x36b   :  { %2229 = vrot.lane.b32.xlu2 %v9138_v23, %s9521_s9  ;;  %v9170_v23 = vld [vmem:[%s17019_s0 + $0x248] sm:$0xff] }
 0x36c   :  { %v1886_v37 = vpop.permute.xlu1 %1885  ;;  %v1884_v41 = vpop.permute.xlu0 %1883 }
 0x36d   :  { %2048 = vst.msk [vmem:[#allocation2 + $0xf0] sm:$0xff] %vm2017_vm5, %v1886_v37  ;;  %v1906_v32 = vpop.permute.xlu2 %1905  ;;  %v9169_v37 = vld [vmem:[%s17019_s0 + $0x240] sm:$0xff] }
 0x36e   :  { %2047 = vst.msk [vmem:[#allocation2 + $0xe8] sm:$0xff] %vm2017_vm5, %v1884_v41  ;;  %v9171_v41 = vld [vmem:[%s17019_s0 + $0x258] sm:$0xff] }
 0x36f   :  { %2058 = vst.msk [vmem:[#allocation2 + $0x140] sm:$0xff] %vm2017_vm5, %v1906_v32 }
 0x372   :  { %2233 = vrot.lane.b32.xlu1 %v9140_v13, %s9521_s9  ;;  %2231 = vrot.lane.b32.xlu0 %v9139_v51, %s9521_s9 }
 0x373   :  { %2235 = vrot.lane.b32.xlu2 %v9141_v56, %s9521_s9  ;;  %v9173_v56 = vld [vmem:[%s17019_s0 + $0x270] sm:$0xff] }
 0x374   :  { %v1892_v45 = vpop.permute.xlu1 %1891  ;;  %v1890_v38 = vpop.permute.xlu0 %1889 }
 0x375   :  { %2051 = vst.msk [vmem:[#allocation2 + $0x108] sm:$0xff] %vm2017_vm5, %v1892_v45  ;;  %v1912_v2 = vpop.permute.xlu2 %1911  ;;  %v9172_v45 = vld [vmem:[%s17019_s0 + $0x260] sm:$0xff] }
 0x376   :  { %2050 = vst.msk [vmem:[#allocation2 + $0x100] sm:$0xff] %vm2017_vm5, %v1890_v38  ;;  %v9174_v38 = vld [vmem:[%s17019_s0 + $0x278] sm:$0xff] }
 0x377   :  { %2061 = vst.msk [vmem:[#allocation2 + $0x158] sm:$0xff] %vm2017_vm5, %v1912_v2 }
 0x37a   :  { %2239 = vrot.lane.b32.xlu1 %v9143_v4, %s9521_s9  ;;  %2237 = vrot.lane.b32.xlu0 %v9142_v20, %s9521_s9 }
 0x37b   :  { %2241 = vrot.lane.b32.xlu2 %v9144_v15, %s9521_s9  ;;  %v9176_v15 = vld [vmem:[%s17019_s0 + $0x290] sm:$0xff] }
 0x37c   :  { %v1898_v27 = vpop.permute.xlu1 %1897  ;;  %v1896_v11 = vpop.permute.xlu0 %1895 }
 0x37d   :  { %2054 = vst.msk [vmem:[#allocation2 + $0x120] sm:$0xff] %vm2017_vm5, %v1898_v27  ;;  %v1918_v29 = vpop.permute.xlu2 %1917  ;;  %v9175_v27 = vld [vmem:[%s17019_s0 + $0x288] sm:$0xff] }
 0x37e   :  { %2053 = vst.msk [vmem:[#allocation2 + $0x118] sm:$0xff] %vm2017_vm5, %v1896_v11  ;;  %v9177_v11 = vld [vmem:[%s17019_s0 + $0x2a0] sm:$0xff] }
 0x37f   :  { %2064 = vst.msk [vmem:[#allocation2 + $0x170] sm:$0xff] %vm2017_vm5, %v1918_v29 }
 0x382   :  { %2245 = vrot.lane.b32.xlu1 %v9146_v31, %s9521_s9  ;;  %2243 = vrot.lane.b32.xlu0 %v9145_v24, %s9521_s9 }
 0x383   :  { %2247 = vrot.lane.b32.xlu2 %v9147_v49, %s9521_s9  ;;  %v9179_v49 = vld [vmem:[%s17019_s0 + $0x2b8] sm:$0xff] }
 0x384   :  { %v1904_v52 = vpop.permute.xlu1 %1903  ;;  %v1902_v42 = vpop.permute.xlu0 %1901 }
 0x385   :  { %2057 = vst.msk [vmem:[#allocation2 + $0x138] sm:$0xff] %vm2017_vm5, %v1904_v52  ;;  %v1924_v3 = vpop.permute.xlu2 %1923  ;;  %v9178_v52 = vld [vmem:[%s17019_s0 + $0x2a8] sm:$0xff] }
 0x386   :  { %2056 = vst.msk [vmem:[#allocation2 + $0x130] sm:$0xff] %vm2017_vm5, %v1902_v42  ;;  %v9180_v42 = vld [vmem:[%s17019_s0 + $0x2c0] sm:$0xff] }
 0x387   :  { %2067 = vst.msk [vmem:[#allocation2 + $0x188] sm:$0xff] %vm2017_vm5, %v1924_v3 }
 0x38a   :  { %2251 = vrot.lane.b32.xlu1 %v9149_v7, %s9521_s9  ;;  %2249 = vrot.lane.b32.xlu0 %v9148_v61, %s9521_s9 }
 0x38b   :  { %2253 = vrot.lane.b32.xlu2 %v9150_v21, %s9521_s9  ;;  %v9182_v21 = vld [vmem:[%s17019_s0 + $0x2d8] sm:$0xff] }
 0x38c   :  { %v1910_v25 = vpop.permute.xlu1 %1909  ;;  %v1908_v16 = vpop.permute.xlu0 %1907 }
 0x38d   :  { %2060 = vst.msk [vmem:[#allocation2 + $0x150] sm:$0xff] %vm2017_vm5, %v1910_v25  ;;  %v1930_v44 = vpop.permute.xlu2 %1929  ;;  %v9181_v25 = vld [vmem:[%s17019_s0 + $0x2d0] sm:$0xff] }
 0x38e   :  { %2059 = vst.msk [vmem:[#allocation2 + $0x148] sm:$0xff] %vm2017_vm5, %v1908_v16  ;;  %v9183_v16 = vld [vmem:[%s17019_s0 + $0x2e8] sm:$0xff] }
 0x38f   :  { %2070 = vst.msk [vmem:[#allocation2 + $0x1a0] sm:$0xff] %vm2017_vm5, %v1930_v44 }
 0x392   :  { %2257 = vrot.lane.b32.xlu1 %v9152_v57, %s9521_s9  ;;  %2255 = vrot.lane.b32.xlu0 %v9151_v36, %s9521_s9 }
 0x393   :  { %2259 = vrot.lane.b32.xlu2 %v9153_v12, %s9521_s9  ;;  %v9185_v12 = vld [vmem:[%s17019_s0 + $0x300] sm:$0xff] }
 0x394   :  { %v1916_v18 = vpop.permute.xlu1 %1915  ;;  %v1914_v0 = vpop.permute.xlu0 %1913 }
 0x395   :  { %2063 = vst.msk [vmem:[#allocation2 + $0x168] sm:$0xff] %vm2017_vm5, %v1916_v18  ;;  %v1936_v43 = vpop.permute.xlu2 %1935  ;;  %v9184_v18 = vld [vmem:[%s17019_s0 + $0x2f0] sm:$0xff] }
 0x396   :  { %2062 = vst.msk [vmem:[#allocation2 + $0x160] sm:$0xff] %vm2017_vm5, %v1914_v0  ;;  %v9186_v0 = vld [vmem:[%s17019_s0 + $0x308] sm:$0xff] }
 0x397   :  { %2073 = vst.msk [vmem:[#allocation2 + $0x1b8] sm:$0xff] %vm2017_vm5, %v1936_v43 }
 0x39a   :  { %2263 = vrot.lane.b32.xlu1 %v9155_v58, %s9521_s9  ;;  %2261 = vrot.lane.b32.xlu0 %v9154_v30, %s9521_s9 }
 0x39b   :  { %2265 = vrot.lane.b32.xlu2 %v9156_v50, %s9521_s9  ;;  %v9188_v50 = vld [vmem:[%s17019_s0 + $0x320] sm:$0xff] }
 0x39c   :  { %v1922_v22 = vpop.permute.xlu1 %1921  ;;  %v1920_v59 = vpop.permute.xlu0 %1919 }
 0x39d   :  { %2066 = vst.msk [vmem:[#allocation2 + $0x180] sm:$0xff] %vm2017_vm5, %v1922_v22  ;;  %v1942_v35 = vpop.permute.xlu2 %1941  ;;  %v9187_v22 = vld [vmem:[%s17019_s0 + $0x318] sm:$0xff] }
 0x39e   :  { %2065 = vst.msk [vmem:[#allocation2 + $0x178] sm:$0xff] %vm2017_vm5, %v1920_v59  ;;  %v9189_v59 = vld [vmem:[%s17019_s0 + $0x330] sm:$0xff] }
 0x39f   :  { %2076 = vst.msk [vmem:[#allocation2 + $0x1d0] sm:$0xff] %vm2017_vm5, %v1942_v35 }
 0x3a2   :  { %2269 = vrot.lane.b32.xlu1 %v9158_v6, %s9521_s9  ;;  %2267 = vrot.lane.b32.xlu0 %v9157_v9, %s9521_s9 }
 0x3a3   :  { %2271 = vrot.lane.b32.xlu2 %v9159_v62, %s9521_s9  ;;  %v9191_v62 = vld [vmem:[%s17019_s0 + $0x348] sm:$0xff] }
 0x3a4   :  { %v1928_v34 = vpop.permute.xlu1 %1927  ;;  %v1926_v33 = vpop.permute.xlu0 %1925 }
 0x3a5   :  { %2069 = vst.msk [vmem:[#allocation2 + $0x198] sm:$0xff] %vm2017_vm5, %v1928_v34  ;;  %v1948_v40 = vpop.permute.xlu2 %1947  ;;  %v9190_v34 = vld [vmem:[%s17019_s0 + $0x338] sm:$0xff] }
 0x3a6   :  { %2068 = vst.msk [vmem:[#allocation2 + $0x190] sm:$0xff] %vm2017_vm5, %v1926_v33  ;;  %v9192_v33 = vld [vmem:[%s17019_s0 + $0x350] sm:$0xff] }
 0x3a7   :  { %2079 = vst.msk [vmem:[#allocation2 + $0x1e8] sm:$0xff] %vm2017_vm5, %v1948_v40 }
 0x3aa   :  { %2275 = vrot.lane.b32.xlu1 %v9161_v39, %s9521_s9  ;;  %2273 = vrot.lane.b32.xlu0 %v9160_v47, %s9521_s9 }
 0x3ab   :  { %2277 = vrot.lane.b32.xlu2 %v9162_v48, %s9521_s9  ;;  %v9194_v48 = vld [vmem:[%s17019_s0 + $0x39] sm:$0xff] }
 0x3ac   :  { %v1934_v46 = vpop.permute.xlu1 %1933  ;;  %v1932_v54 = vpop.permute.xlu0 %1931 }
 0x3ad   :  { %2072 = vst.msk [vmem:[#allocation2 + $0x1b0] sm:$0xff] %vm2017_vm5, %v1934_v46  ;;  %v2212_v55 = vpop.permute.xlu2 %2211  ;;  %v9193_v46 = vld [vmem:[%s17019_s0 + $0x31] sm:$0xff] }
 0x3ae   :  { %2071 = vst.msk [vmem:[#allocation2 + $0x1a8] sm:$0xff] %vm2017_vm5, %v1932_v54  ;;  %v9195_v54 = vld [vmem:[%s17019_s0 + $0x49] sm:$0xff] }
 0x3af   :  { %2404 = vst.msk [vmem:[#allocation2] sm:$0xff] %vm2403_vm6, %v2212_v55 }
 0x3b2   :  { %2281 = vrot.lane.b32.xlu1 %v9164_v53, %s9521_s9  ;;  %2279 = vrot.lane.b32.xlu0 %v9163_v63, %s9521_s9 }
 0x3b3   :  { %2283 = vrot.lane.b32.xlu2 %v9165_v1, %s9521_s9  ;;  %v9197_v1 = vld [vmem:[%s17019_s0 + $0x61] sm:$0xff] }
 0x3b4   :  { %v1940_v60 = vpop.permute.xlu1 %1939  ;;  %v1938_v8 = vpop.permute.xlu0 %1937 }
 0x3b5   :  { %2075 = vst.msk [vmem:[#allocation2 + $0x1c8] sm:$0xff] %vm2017_vm5, %v1940_v60  ;;  %v2218_v10 = vpop.permute.xlu2 %2217  ;;  %v9196_v60 = vld [vmem:[%s17019_s0 + $0x51] sm:$0xff] }
 0x3b6   :  { %2074 = vst.msk [vmem:[#allocation2 + $0x1c0] sm:$0xff] %vm2017_vm5, %v1938_v8  ;;  %v9198_v8 = vld [vmem:[%s17019_s0 + $0x69] sm:$0xff] }
 0x3b7   :  { %2407 = vst.msk [vmem:[#allocation2 + $0x18] sm:$0xff] %vm2403_vm6, %v2218_v10 }
 0x3ba   :  { %2287 = vrot.lane.b32.xlu1 %v9167_v5, %s9521_s9  ;;  %2285 = vrot.lane.b32.xlu0 %v9166_v17, %s9521_s9 }
 0x3bb   :  { %2289 = vrot.lane.b32.xlu2 %v9168_v19, %s9521_s9  ;;  %v9200_v19 = vld [vmem:[%s17019_s0 + $0x81] sm:$0xff] }
 0x3bc   :  { %v1946_v14 = vpop.permute.xlu1 %1945  ;;  %v1944_v26 = vpop.permute.xlu0 %1943 }
 0x3bd   :  { %2078 = vst.msk [vmem:[#allocation2 + $0x1e0] sm:$0xff] %vm2017_vm5, %v1946_v14  ;;  %v2224_v28 = vpop.permute.xlu2 %2223  ;;  %v9199_v14 = vld [vmem:[%s17019_s0 + $0x79] sm:$0xff] }
 0x3be   :  { %2077 = vst.msk [vmem:[#allocation2 + $0x1d8] sm:$0xff] %vm2017_vm5, %v1944_v26  ;;  %v9201_v26 = vld [vmem:[%s17019_s0 + $0x91] sm:$0xff] }
 0x3bf   :  { %2410 = vst.msk [vmem:[#allocation2 + $0x30] sm:$0xff] %vm2403_vm6, %v2224_v28 }
 0x3c2   :  { %2293 = vrot.lane.b32.xlu1 %v9170_v23, %s9521_s9  ;;  %2291 = vrot.lane.b32.xlu0 %v9169_v37, %s9521_s9 }
 0x3c3   :  { %2295 = vrot.lane.b32.xlu2 %v9171_v41, %s9521_s9  ;;  %v9203_v41 = vld [vmem:[%s17019_s0 + $0xa9] sm:$0xff] }
 0x3c4   :  { %v1952_v32 = vpop.permute.xlu1 %1951  ;;  %v1950_v13 = vpop.permute.xlu0 %1949 }
 0x3c5   :  { %2081 = vst.msk [vmem:[#allocation2 + $0x1f8] sm:$0xff] %vm2017_vm5, %v1952_v32  ;;  %v2230_v51 = vpop.permute.xlu2 %2229  ;;  %v9202_v32 = vld [vmem:[%s17019_s0 + $0x99] sm:$0xff] }
 0x3c6   :  { %2080 = vst.msk [vmem:[#allocation2 + $0x1f0] sm:$0xff] %vm2017_vm5, %v1950_v13  ;;  %v9204_v13 = vld [vmem:[%s17019_s0 + $0xb1] sm:$0xff] }
 0x3c7   :  { %2413 = vst.msk [vmem:[#allocation2 + $0x48] sm:$0xff] %vm2403_vm6, %v2230_v51 }
 0x3ca   :  { %2299 = vrot.lane.b32.xlu1 %v9173_v56, %s9521_s9  ;;  %2297 = vrot.lane.b32.xlu0 %v9172_v45, %s9521_s9 }
 0x3cb   :  { %2301 = vrot.lane.b32.xlu2 %v9174_v38, %s9521_s9  ;;  %v9206_v38 = vld [vmem:[%s17019_s0 + $0xc9] sm:$0xff] }
 0x3cc   :  { %v2216_v2 = vpop.permute.xlu1 %2215  ;;  %v2214_v4 = vpop.permute.xlu0 %2213 }
 0x3cd   :  { %2406 = vst.msk [vmem:[#allocation2 + $0x10] sm:$0xff] %vm2403_vm6, %v2216_v2  ;;  %v2236_v20 = vpop.permute.xlu2 %2235  ;;  %v9205_v2 = vld [vmem:[%s17019_s0 + $0xc1] sm:$0xff] }
 0x3ce   :  { %2405 = vst.msk [vmem:[#allocation2 + $0x8] sm:$0xff] %vm2403_vm6, %v2214_v4  ;;  %v9207_v4 = vld [vmem:[%s17019_s0 + $0xd9] sm:$0xff] }
 0x3cf   :  { %2416 = vst.msk [vmem:[#allocation2 + $0x60] sm:$0xff] %vm2403_vm6, %v2236_v20 }
 0x3d2   :  { %2305 = vrot.lane.b32.xlu1 %v9176_v15, %s9521_s9  ;;  %2303 = vrot.lane.b32.xlu0 %v9175_v27, %s9521_s9 }
 0x3d3   :  { %2307 = vrot.lane.b32.xlu2 %v9177_v11, %s9521_s9  ;;  %v9209_v11 = vld [vmem:[%s17019_s0 + $0xf1] sm:$0xff] }
 0x3d4   :  { %v2222_v29 = vpop.permute.xlu1 %2221  ;;  %v2220_v31 = vpop.permute.xlu0 %2219 }
 0x3d5   :  { %2409 = vst.msk [vmem:[#allocation2 + $0x28] sm:$0xff] %vm2403_vm6, %v2222_v29  ;;  %v2242_v24 = vpop.permute.xlu2 %2241  ;;  %v9208_v29 = vld [vmem:[%s17019_s0 + $0xe1] sm:$0xff] }
 0x3d6   :  { %2408 = vst.msk [vmem:[#allocation2 + $0x20] sm:$0xff] %vm2403_vm6, %v2220_v31  ;;  %v9210_v31 = vld [vmem:[%s17019_s0 + $0xf9] sm:$0xff] }
 0x3d7   :  { %2419 = vst.msk [vmem:[#allocation2 + $0x78] sm:$0xff] %vm2403_vm6, %v2242_v24 }
 0x3da   :  { %2311 = vrot.lane.b32.xlu1 %v9179_v49, %s9521_s9  ;;  %2309 = vrot.lane.b32.xlu0 %v9178_v52, %s9521_s9 }
 0x3db   :  { %2313 = vrot.lane.b32.xlu2 %v9180_v42, %s9521_s9  ;;  %v9212_v42 = vld [vmem:[%s17019_s0 + $0x111] sm:$0xff] }
 0x3dc   :  { %v2228_v3 = vpop.permute.xlu1 %2227  ;;  %v2226_v7 = vpop.permute.xlu0 %2225 }
 0x3dd   :  { %2412 = vst.msk [vmem:[#allocation2 + $0x40] sm:$0xff] %vm2403_vm6, %v2228_v3  ;;  %v2248_v61 = vpop.permute.xlu2 %2247  ;;  %v9211_v3 = vld [vmem:[%s17019_s0 + $0x109] sm:$0xff] }
 0x3de   :  { %2411 = vst.msk [vmem:[#allocation2 + $0x38] sm:$0xff] %vm2403_vm6, %v2226_v7  ;;  %v9213_v7 = vld [vmem:[%s17019_s0 + $0x121] sm:$0xff] }
 0x3df   :  { %2422 = vst.msk [vmem:[#allocation2 + $0x90] sm:$0xff] %vm2403_vm6, %v2248_v61 }
 0x3e2   :  { %2317 = vrot.lane.b32.xlu1 %v9182_v21, %s9521_s9  ;;  %2315 = vrot.lane.b32.xlu0 %v9181_v25, %s9521_s9 }
 0x3e3   :  { %2319 = vrot.lane.b32.xlu2 %v9183_v16, %s9521_s9  ;;  %v9215_v16 = vld [vmem:[%s17019_s0 + $0x139] sm:$0xff] }
 0x3e4   :  { %v2234_v44 = vpop.permute.xlu1 %2233  ;;  %v2232_v57 = vpop.permute.xlu0 %2231 }
 0x3e5   :  { %2415 = vst.msk [vmem:[#allocation2 + $0x58] sm:$0xff] %vm2403_vm6, %v2234_v44  ;;  %v2254_v36 = vpop.permute.xlu2 %2253  ;;  %v9214_v44 = vld [vmem:[%s17019_s0 + $0x129] sm:$0xff] }
 0x3e6   :  { %2414 = vst.msk [vmem:[#allocation2 + $0x50] sm:$0xff] %vm2403_vm6, %v2232_v57  ;;  %v9216_v57 = vld [vmem:[%s17019_s0 + $0x141] sm:$0xff] }
 0x3e7   :  { %2425 = vst.msk [vmem:[#allocation2 + $0xa8] sm:$0xff] %vm2403_vm6, %v2254_v36 }
 0x3ea   :  { %2323 = vrot.lane.b32.xlu1 %v9185_v12, %s9521_s9  ;;  %2321 = vrot.lane.b32.xlu0 %v9184_v18, %s9521_s9 }
 0x3eb   :  { %2325 = vrot.lane.b32.xlu2 %v9186_v0, %s9521_s9  ;;  %v9218_v0 = vld [vmem:[%s17019_s0 + $0x159] sm:$0xff] }
 0x3ec   :  { %v2240_v43 = vpop.permute.xlu1 %2239  ;;  %v2238_v58 = vpop.permute.xlu0 %2237 }
 0x3ed   :  { %2418 = vst.msk [vmem:[#allocation2 + $0x70] sm:$0xff] %vm2403_vm6, %v2240_v43  ;;  %v2260_v30 = vpop.permute.xlu2 %2259  ;;  %v9217_v43 = vld [vmem:[%s17019_s0 + $0x151] sm:$0xff] }
 0x3ee   :  { %2417 = vst.msk [vmem:[#allocation2 + $0x68] sm:$0xff] %vm2403_vm6, %v2238_v58  ;;  %v9219_v58 = vld [vmem:[%s17019_s0 + $0x169] sm:$0xff] }
 0x3ef   :  { %2428 = vst.msk [vmem:[#allocation2 + $0xc0] sm:$0xff] %vm2403_vm6, %v2260_v30 }
 0x3f2   :  { %2329 = vrot.lane.b32.xlu1 %v9188_v50, %s9521_s9  ;;  %2327 = vrot.lane.b32.xlu0 %v9187_v22, %s9521_s9 }
 0x3f3   :  { %2331 = vrot.lane.b32.xlu2 %v9189_v59, %s9521_s9  ;;  %v9221_v59 = vld [vmem:[%s17019_s0 + $0x181] sm:$0xff] }
 0x3f4   :  { %v2246_v35 = vpop.permute.xlu1 %2245  ;;  %v2244_v6 = vpop.permute.xlu0 %2243 }
 0x3f5   :  { %2421 = vst.msk [vmem:[#allocation2 + $0x88] sm:$0xff] %vm2403_vm6, %v2246_v35  ;;  %v2266_v9 = vpop.permute.xlu2 %2265  ;;  %v9220_v35 = vld [vmem:[%s17019_s0 + $0x171] sm:$0xff] }
 0x3f6   :  { %2420 = vst.msk [vmem:[#allocation2 + $0x80] sm:$0xff] %vm2403_vm6, %v2244_v6  ;;  %v9222_v6 = vld [vmem:[%s17019_s0 + $0x189] sm:$0xff] }
 0x3f7   :  { %2431 = vst.msk [vmem:[#allocation2 + $0xd8] sm:$0xff] %vm2403_vm6, %v2266_v9 }
 0x3fa   :  { %2335 = vrot.lane.b32.xlu1 %v9191_v62, %s9521_s9  ;;  %2333 = vrot.lane.b32.xlu0 %v9190_v34, %s9521_s9 }
 0x3fb   :  { %2337 = vrot.lane.b32.xlu2 %v9192_v33, %s9521_s9  ;;  %v9224_v33 = vld [vmem:[%s17019_s0 + $0x1a1] sm:$0xff] }
 0x3fc   :  { %v2252_v40 = vpop.permute.xlu1 %2251  ;;  %v2250_v39 = vpop.permute.xlu0 %2249 }
 0x3fd   :  { %2424 = vst.msk [vmem:[#allocation2 + $0xa0] sm:$0xff] %vm2403_vm6, %v2252_v40  ;;  %v2272_v47 = vpop.permute.xlu2 %2271  ;;  %v9223_v40 = vld [vmem:[%s17019_s0 + $0x199] sm:$0xff] }
 0x3fe   :  { %2423 = vst.msk [vmem:[#allocation2 + $0x98] sm:$0xff] %vm2403_vm6, %v2250_v39  ;;  %v9225_v39 = vld [vmem:[%s17019_s0 + $0x1e1] sm:$0xff] }
 0x3ff   :  { %2434 = vst.msk [vmem:[#allocation2 + $0xf0] sm:$0xff] %vm2403_vm6, %v2272_v47 }
 0x402   :  { %2598 = vrot.lane.b32.xlu1 %v9194_v48, %s9522_s26  ;;  %2596 = vrot.lane.b32.xlu0 %v9193_v46, %s9522_s26 }
 0x403   :  { %2600 = vrot.lane.b32.xlu2 %v9195_v54, %s9522_s26  ;;  %v9227_v54 = vld [vmem:[%s17019_s0 + $0x1f9] sm:$0xff] }
 0x404   :  { %v2258_v55 = vpop.permute.xlu1 %2257  ;;  %v2256_v53 = vpop.permute.xlu0 %2255 }
 0x405   :  { %2427 = vst.msk [vmem:[#allocation2 + $0xb8] sm:$0xff] %vm2403_vm6, %v2258_v55  ;;  %v2278_v63 = vpop.permute.xlu2 %2277  ;;  %v9226_v55 = vld [vmem:[%s17019_s0 + $0x1e9] sm:$0xff] }
 0x406   :  { %2426 = vst.msk [vmem:[#allocation2 + $0xb0] sm:$0xff] %vm2403_vm6, %v2256_v53  ;;  %v9228_v53 = vld [vmem:[%s17019_s0 + $0x201] sm:$0xff] }
 0x407   :  { %2437 = vst.msk [vmem:[#allocation2 + $0x108] sm:$0xff] %vm2403_vm6, %v2278_v63 }
 0x40a   :  { %2604 = vrot.lane.b32.xlu1 %v9197_v1, %s9522_s26  ;;  %2602 = vrot.lane.b32.xlu0 %v9196_v60, %s9522_s26 }
 0x40b   :  { %2606 = vrot.lane.b32.xlu2 %v9198_v8, %s9522_s26  ;;  %v9230_v8 = vld [vmem:[%s17019_s0 + $0x219] sm:$0xff] }
 0x40c   :  { %v2264_v10 = vpop.permute.xlu1 %2263  ;;  %v2262_v5 = vpop.permute.xlu0 %2261 }
 0x40d   :  { %2430 = vst.msk [vmem:[#allocation2 + $0xd0] sm:$0xff] %vm2403_vm6, %v2264_v10  ;;  %v2284_v17 = vpop.permute.xlu2 %2283  ;;  %v9229_v10 = vld [vmem:[%s17019_s0 + $0x211] sm:$0xff] }
 0x40e   :  { %2429 = vst.msk [vmem:[#allocation2 + $0xc8] sm:$0xff] %vm2403_vm6, %v2262_v5  ;;  %v9231_v5 = vld [vmem:[%s17019_s0 + $0x229] sm:$0xff] }
 0x40f   :  { %2440 = vst.msk [vmem:[#allocation2 + $0x120] sm:$0xff] %vm2403_vm6, %v2284_v17 }
 0x412   :  { %2610 = vrot.lane.b32.xlu1 %v9200_v19, %s9522_s26  ;;  %2608 = vrot.lane.b32.xlu0 %v9199_v14, %s9522_s26 }
 0x413   :  { %2612 = vrot.lane.b32.xlu2 %v9201_v26, %s9522_s26  ;;  %v9233_v26 = vld [vmem:[%s17019_s0 + $0x241] sm:$0xff] }
 0x414   :  { %v2270_v28 = vpop.permute.xlu1 %2269  ;;  %v2268_v23 = vpop.permute.xlu0 %2267 }
 0x415   :  { %2433 = vst.msk [vmem:[#allocation2 + $0xe8] sm:$0xff] %vm2403_vm6, %v2270_v28  ;;  %v2290_v37 = vpop.permute.xlu2 %2289  ;;  %v9232_v28 = vld [vmem:[%s17019_s0 + $0x231] sm:$0xff] }
 0x416   :  { %2432 = vst.msk [vmem:[#allocation2 + $0xe0] sm:$0xff] %vm2403_vm6, %v2268_v23  ;;  %v9234_v23 = vld [vmem:[%s17019_s0 + $0x249] sm:$0xff] }
 0x417   :  { %2443 = vst.msk [vmem:[#allocation2 + $0x138] sm:$0xff] %vm2403_vm6, %v2290_v37 }
 0x41a   :  { %2616 = vrot.lane.b32.xlu1 %v9203_v41, %s9522_s26  ;;  %2614 = vrot.lane.b32.xlu0 %v9202_v32, %s9522_s26 }
 0x41b   :  { %2618 = vrot.lane.b32.xlu2 %v9204_v13, %s9522_s26  ;;  %v9236_v13 = vld [vmem:[%s17019_s0 + $0x261] sm:$0xff] }
 0x41c   :  { %v2276_v51 = vpop.permute.xlu1 %2275  ;;  %v2274_v56 = vpop.permute.xlu0 %2273 }
 0x41d   :  { %2436 = vst.msk [vmem:[#allocation2 + $0x100] sm:$0xff] %vm2403_vm6, %v2276_v51  ;;  %v2296_v45 = vpop.permute.xlu2 %2295  ;;  %v9235_v51 = vld [vmem:[%s17019_s0 + $0x259] sm:$0xff] }
 0x41e   :  { %2435 = vst.msk [vmem:[#allocation2 + $0xf8] sm:$0xff] %vm2403_vm6, %v2274_v56  ;;  %v9237_v56 = vld [vmem:[%s17019_s0 + $0x271] sm:$0xff] }
 0x41f   :  { %2446 = vst.msk [vmem:[#allocation2 + $0x150] sm:$0xff] %vm2403_vm6, %v2296_v45 }
 0x422   :  { %2622 = vrot.lane.b32.xlu1 %v9206_v38, %s9522_s26  ;;  %2620 = vrot.lane.b32.xlu0 %v9205_v2, %s9522_s26 }
 0x423   :  { %2624 = vrot.lane.b32.xlu2 %v9207_v4, %s9522_s26  ;;  %v9239_v4 = vld [vmem:[%s17019_s0 + $0x289] sm:$0xff] }
 0x424   :  { %v2282_v20 = vpop.permute.xlu1 %2281  ;;  %v2280_v15 = vpop.permute.xlu0 %2279 }
 0x425   :  { %2439 = vst.msk [vmem:[#allocation2 + $0x118] sm:$0xff] %vm2403_vm6, %v2282_v20  ;;  %v2302_v27 = vpop.permute.xlu2 %2301  ;;  %v9238_v20 = vld [vmem:[%s17019_s0 + $0x279] sm:$0xff] }
 0x426   :  { %2438 = vst.msk [vmem:[#allocation2 + $0x110] sm:$0xff] %vm2403_vm6, %v2280_v15  ;;  %v9240_v15 = vld [vmem:[%s17019_s0 + $0x291] sm:$0xff] }
 0x427   :  { %2449 = vst.msk [vmem:[#allocation2 + $0x168] sm:$0xff] %vm2403_vm6, %v2302_v27 }
 0x42a   :  { %2628 = vrot.lane.b32.xlu1 %v9209_v11, %s9522_s26  ;;  %2626 = vrot.lane.b32.xlu0 %v9208_v29, %s9522_s26 }
 0x42b   :  { %2630 = vrot.lane.b32.xlu2 %v9210_v31, %s9522_s26  ;;  %v9242_v31 = vld [vmem:[%s17019_s0 + $0x2a9] sm:$0xff] }
 0x42c   :  { %v2288_v24 = vpop.permute.xlu1 %2287  ;;  %v2286_v49 = vpop.permute.xlu0 %2285 }
 0x42d   :  { %2442 = vst.msk [vmem:[#allocation2 + $0x130] sm:$0xff] %vm2403_vm6, %v2288_v24  ;;  %v2308_v52 = vpop.permute.xlu2 %2307  ;;  %v9241_v24 = vld [vmem:[%s17019_s0 + $0x2a1] sm:$0xff] }
 0x42e   :  { %2441 = vst.msk [vmem:[#allocation2 + $0x128] sm:$0xff] %vm2403_vm6, %v2286_v49  ;;  %v9243_v49 = vld [vmem:[%s17019_s0 + $0x2b9] sm:$0xff] }
 0x42f   :  { %2452 = vst.msk [vmem:[#allocation2 + $0x180] sm:$0xff] %vm2403_vm6, %v2308_v52 }
 0x432   :  { %2634 = vrot.lane.b32.xlu1 %v9212_v42, %s9522_s26  ;;  %2632 = vrot.lane.b32.xlu0 %v9211_v3, %s9522_s26 }
 0x433   :  { %2636 = vrot.lane.b32.xlu2 %v9213_v7, %s9522_s26  ;;  %v9245_v7 = vld [vmem:[%s17019_s0 + $0x2d1] sm:$0xff] }
 0x434   :  { %v2294_v61 = vpop.permute.xlu1 %2293  ;;  %v2292_v21 = vpop.permute.xlu0 %2291 }
 0x435   :  { %2445 = vst.msk [vmem:[#allocation2 + $0x148] sm:$0xff] %vm2403_vm6, %v2294_v61  ;;  %v2314_v25 = vpop.permute.xlu2 %2313  ;;  %v9244_v61 = vld [vmem:[%s17019_s0 + $0x2c1] sm:$0xff] }
 0x436   :  { %2444 = vst.msk [vmem:[#allocation2 + $0x140] sm:$0xff] %vm2403_vm6, %v2292_v21  ;;  %v9246_v21 = vld [vmem:[%s17019_s0 + $0x2d9] sm:$0xff] }
 0x437   :  { %2455 = vst.msk [vmem:[#allocation2 + $0x198] sm:$0xff] %vm2403_vm6, %v2314_v25 }
 0x43a   :  { %2640 = vrot.lane.b32.xlu1 %v9215_v16, %s9522_s26  ;;  %2638 = vrot.lane.b32.xlu0 %v9214_v44, %s9522_s26 }
 0x43b   :  { %2642 = vrot.lane.b32.xlu2 %v9216_v57, %s9522_s26  ;;  %v9248_v57 = vld [vmem:[%s17019_s0 + $0x2f1] sm:$0xff] }
 0x43c   :  { %v2300_v36 = vpop.permute.xlu1 %2299  ;;  %v2298_v12 = vpop.permute.xlu0 %2297 }
 0x43d   :  { %2448 = vst.msk [vmem:[#allocation2 + $0x160] sm:$0xff] %vm2403_vm6, %v2300_v36  ;;  %v2320_v18 = vpop.permute.xlu2 %2319  ;;  %v9247_v36 = vld [vmem:[%s17019_s0 + $0x2e9] sm:$0xff] }
 0x43e   :  { %2447 = vst.msk [vmem:[#allocation2 + $0x158] sm:$0xff] %vm2403_vm6, %v2298_v12  ;;  %v9249_v12 = vld [vmem:[%s17019_s0 + $0x301] sm:$0xff] }
 0x43f   :  { %2458 = vst.msk [vmem:[#allocation2 + $0x1b0] sm:$0xff] %vm2403_vm6, %v2320_v18 }
 0x442   :  { %2646 = vrot.lane.b32.xlu1 %v9218_v0, %s9522_s26  ;;  %2644 = vrot.lane.b32.xlu0 %v9217_v43, %s9522_s26 }
 0x443   :  { %2648 = vrot.lane.b32.xlu2 %v9219_v58, %s9522_s26  ;;  %v9251_v58 = vld [vmem:[%s17019_s0 + $0x319] sm:$0xff] }
 0x444   :  { %v2306_v30 = vpop.permute.xlu1 %2305  ;;  %v2304_v50 = vpop.permute.xlu0 %2303 }
 0x445   :  { %2451 = vst.msk [vmem:[#allocation2 + $0x178] sm:$0xff] %vm2403_vm6, %v2306_v30  ;;  %v2326_v22 = vpop.permute.xlu2 %2325  ;;  %v9250_v30 = vld [vmem:[%s17019_s0 + $0x309] sm:$0xff] }
 0x446   :  { %2450 = vst.msk [vmem:[#allocation2 + $0x170] sm:$0xff] %vm2403_vm6, %v2304_v50  ;;  %v9252_v50 = vld [vmem:[%s17019_s0 + $0x321] sm:$0xff] }
 0x447   :  { %2461 = vst.msk [vmem:[#allocation2 + $0x1c8] sm:$0xff] %vm2403_vm6, %v2326_v22 }
 0x44a   :  { %2652 = vrot.lane.b32.xlu1 %v9221_v59, %s9522_s26  ;;  %2650 = vrot.lane.b32.xlu0 %v9220_v35, %s9522_s26 }
 0x44b   :  { %2654 = vrot.lane.b32.xlu2 %v9222_v6, %s9522_s26  ;;  %v9254_v6 = vld [vmem:[%s17019_s0 + $0x339] sm:$0xff] }
 0x44c   :  { %v2312_v9 = vpop.permute.xlu1 %2311  ;;  %v2310_v62 = vpop.permute.xlu0 %2309 }
 0x44d   :  { %2454 = vst.msk [vmem:[#allocation2 + $0x190] sm:$0xff] %vm2403_vm6, %v2312_v9  ;;  %v2332_v34 = vpop.permute.xlu2 %2331  ;;  %v9253_v9 = vld [vmem:[%s17019_s0 + $0x331] sm:$0xff] }
 0x44e   :  { %2453 = vst.msk [vmem:[#allocation2 + $0x188] sm:$0xff] %vm2403_vm6, %v2310_v62  ;;  %v9255_v62 = vld [vmem:[%s17019_s0 + $0x349] sm:$0xff] }
 0x44f   :  { %2464 = vst.msk [vmem:[#allocation2 + $0x1e0] sm:$0xff] %vm2403_vm6, %v2332_v34 }
 0x452   :  { %2658 = vrot.lane.b32.xlu1 %v9224_v33, %s9522_s26  ;;  %2656 = vrot.lane.b32.xlu0 %v9223_v40, %s9522_s26 }
 0x453   :  { %2660 = vrot.lane.b32.xlu2 %v9225_v39, %s9522_s26  ;;  %v9257_v39 = vld [vmem:[%s17019_s0 + $0x32] sm:$0xff] }
 0x454   :  { %v2318_v47 = vpop.permute.xlu1 %2317  ;;  %v2316_v48 = vpop.permute.xlu0 %2315 }
 0x455   :  { %2457 = vst.msk [vmem:[#allocation2 + $0x1a8] sm:$0xff] %vm2403_vm6, %v2318_v47  ;;  %v2338_v46 = vpop.permute.xlu2 %2337  ;;  %v9256_v47 = vld [vmem:[%s17019_s0 + $0x351] sm:$0xff] }
 0x456   :  { %2456 = vst.msk [vmem:[#allocation2 + $0x1a0] sm:$0xff] %vm2403_vm6, %v2316_v48  ;;  %v9258_v48 = vld [vmem:[%s17019_s0 + $0x3a] sm:$0xff] }
 0x457   :  { %2467 = vst.msk [vmem:[#allocation2 + $0x1f8] sm:$0xff] %vm2403_vm6, %v2338_v46 }
 0x45a   :  { %2664 = vrot.lane.b32.xlu1 %v9227_v54, %s9522_s26  ;;  %2662 = vrot.lane.b32.xlu0 %v9226_v55, %s9522_s26 }
 0x45b   :  { %2666 = vrot.lane.b32.xlu2 %v9228_v53, %s9522_s26  ;;  %v9260_v53 = vld [vmem:[%s17019_s0 + $0x52] sm:$0xff] }
 0x45c   :  { %v2324_v63 = vpop.permute.xlu1 %2323  ;;  %v2322_v1 = vpop.permute.xlu0 %2321 }
 0x45d   :  { %2460 = vst.msk [vmem:[#allocation2 + $0x1c0] sm:$0xff] %vm2403_vm6, %v2324_v63  ;;  %v2601_v60 = vpop.permute.xlu2 %2600  ;;  %v9259_v63 = vld [vmem:[%s17019_s0 + $0x4a] sm:$0xff] }
 0x45e   :  { %2459 = vst.msk [vmem:[#allocation2 + $0x1b8] sm:$0xff] %vm2403_vm6, %v2322_v1  ;;  %v9261_v1 = vld [vmem:[%s17019_s0 + $0x62] sm:$0xff] }
 0x45f   :  { %2791 = vst.msk [vmem:[#allocation2 + $0x10] sm:$0xff] %vm2788_vm7, %v2601_v60 }
 0x462   :  { %2670 = vrot.lane.b32.xlu1 %v9230_v8, %s9522_s26  ;;  %2668 = vrot.lane.b32.xlu0 %v9229_v10, %s9522_s26 }
 0x463   :  { %2672 = vrot.lane.b32.xlu2 %v9231_v5, %s9522_s26  ;;  %v9263_v5 = vld [vmem:[%s17019_s0 + $0x7a] sm:$0xff] }
 0x464   :  { %v2330_v17 = vpop.permute.xlu1 %2329  ;;  %v2328_v19 = vpop.permute.xlu0 %2327 }
 0x465   :  { %2463 = vst.msk [vmem:[#allocation2 + $0x1d8] sm:$0xff] %vm2403_vm6, %v2330_v17  ;;  %v2607_v14 = vpop.permute.xlu2 %2606  ;;  %v9262_v17 = vld [vmem:[%s17019_s0 + $0x6a] sm:$0xff] }
 0x466   :  { %2462 = vst.msk [vmem:[#allocation2 + $0x1d0] sm:$0xff] %vm2403_vm6, %v2328_v19  ;;  %v9264_v19 = vld [vmem:[%s17019_s0 + $0x82] sm:$0xff] }
 0x467   :  { %2794 = vst.msk [vmem:[#allocation2 + $0x28] sm:$0xff] %vm2788_vm7, %v2607_v14 }
 0x46a   :  { %2676 = vrot.lane.b32.xlu1 %v9233_v26, %s9522_s26  ;;  %2674 = vrot.lane.b32.xlu0 %v9232_v28, %s9522_s26 }
 0x46b   :  { %2678 = vrot.lane.b32.xlu2 %v9234_v23, %s9522_s26  ;;  %v9266_v23 = vld [vmem:[%s17019_s0 + $0x9a] sm:$0xff] }
 0x46c   :  { %v2336_v37 = vpop.permute.xlu1 %2335  ;;  %v2334_v41 = vpop.permute.xlu0 %2333 }
 0x46d   :  { %2466 = vst.msk [vmem:[#allocation2 + $0x1f0] sm:$0xff] %vm2403_vm6, %v2336_v37  ;;  %v2613_v32 = vpop.permute.xlu2 %2612  ;;  %v9265_v37 = vld [vmem:[%s17019_s0 + $0x92] sm:$0xff] }
 0x46e   :  { %2465 = vst.msk [vmem:[#allocation2 + $0x1e8] sm:$0xff] %vm2403_vm6, %v2334_v41  ;;  %v9267_v41 = vld [vmem:[%s17019_s0 + $0xaa] sm:$0xff] }
 0x46f   :  { %2797 = vst.msk [vmem:[#allocation2 + $0x40] sm:$0xff] %vm2788_vm7, %v2613_v32 }
 0x472   :  { %2682 = vrot.lane.b32.xlu1 %v9236_v13, %s9522_s26  ;;  %2680 = vrot.lane.b32.xlu0 %v9235_v51, %s9522_s26 }
 0x473   :  { %2684 = vrot.lane.b32.xlu2 %v9237_v56, %s9522_s26  ;;  %v9269_v56 = vld [vmem:[%s17019_s0 + $0xc2] sm:$0xff] }
 0x474   :  { %v2599_v45 = vpop.permute.xlu1 %2598  ;;  %v2597_v38 = vpop.permute.xlu0 %2596 }
 0x475   :  { %2790 = vst.msk [vmem:[#allocation2 + $0x8] sm:$0xff] %vm2788_vm7, %v2599_v45  ;;  %v2619_v2 = vpop.permute.xlu2 %2618  ;;  %v9268_v45 = vld [vmem:[%s17019_s0 + $0xb2] sm:$0xff] }
 0x476   :  { %2789 = vst.msk [vmem:[#allocation2] sm:$0xff] %vm2788_vm7, %v2597_v38  ;;  %v9270_v38 = vld [vmem:[%s17019_s0 + $0xca] sm:$0xff] }
 0x477   :  { %2800 = vst.msk [vmem:[#allocation2 + $0x58] sm:$0xff] %vm2788_vm7, %v2619_v2 }
 0x47a   :  { %2688 = vrot.lane.b32.xlu1 %v9239_v4, %s9522_s26  ;;  %2686 = vrot.lane.b32.xlu0 %v9238_v20, %s9522_s26 }
 0x47b   :  { %2690 = vrot.lane.b32.xlu2 %v9240_v15, %s9522_s26  ;;  %v9272_v15 = vld [vmem:[%s17019_s0 + $0xe2] sm:$0xff] }
 0x47c   :  { %v2605_v27 = vpop.permute.xlu1 %2604  ;;  %v2603_v11 = vpop.permute.xlu0 %2602 }
 0x47d   :  { %2793 = vst.msk [vmem:[#allocation2 + $0x20] sm:$0xff] %vm2788_vm7, %v2605_v27  ;;  %v2625_v29 = vpop.permute.xlu2 %2624  ;;  %v9271_v27 = vld [vmem:[%s17019_s0 + $0xda] sm:$0xff] }
 0x47e   :  { %2792 = vst.msk [vmem:[#allocation2 + $0x18] sm:$0xff] %vm2788_vm7, %v2603_v11  ;;  %v9273_v11 = vld [vmem:[%s17019_s0 + $0xf2] sm:$0xff] }
 0x47f   :  { %2803 = vst.msk [vmem:[#allocation2 + $0x70] sm:$0xff] %vm2788_vm7, %v2625_v29 }
 0x482   :  { %2694 = vrot.lane.b32.xlu1 %v9242_v31, %s9522_s26  ;;  %2692 = vrot.lane.b32.xlu0 %v9241_v24, %s9522_s26 }
 0x483   :  { %2696 = vrot.lane.b32.xlu2 %v9243_v49, %s9522_s26  ;;  %v9275_v49 = vld [vmem:[%s17019_s0 + $0x10a] sm:$0xff] }
 0x484   :  { %v2611_v52 = vpop.permute.xlu1 %2610  ;;  %v2609_v42 = vpop.permute.xlu0 %2608 }
 0x485   :  { %2796 = vst.msk [vmem:[#allocation2 + $0x38] sm:$0xff] %vm2788_vm7, %v2611_v52  ;;  %v2631_v3 = vpop.permute.xlu2 %2630  ;;  %v9274_v52 = vld [vmem:[%s17019_s0 + $0xfa] sm:$0xff] }
 0x486   :  { %2795 = vst.msk [vmem:[#allocation2 + $0x30] sm:$0xff] %vm2788_vm7, %v2609_v42  ;;  %v9276_v42 = vld [vmem:[%s17019_s0 + $0x112] sm:$0xff] }
 0x487   :  { %2806 = vst.msk [vmem:[#allocation2 + $0x88] sm:$0xff] %vm2788_vm7, %v2631_v3 }
 0x48a   :  { %2700 = vrot.lane.b32.xlu1 %v9245_v7, %s9522_s26  ;;  %2698 = vrot.lane.b32.xlu0 %v9244_v61, %s9522_s26 }
 0x48b   :  { %2702 = vrot.lane.b32.xlu2 %v9246_v21, %s9522_s26  ;;  %v9278_v21 = vld [vmem:[%s17019_s0 + $0x12a] sm:$0xff] }
 0x48c   :  { %v2617_v25 = vpop.permute.xlu1 %2616  ;;  %v2615_v16 = vpop.permute.xlu0 %2614 }
 0x48d   :  { %2799 = vst.msk [vmem:[#allocation2 + $0x50] sm:$0xff] %vm2788_vm7, %v2617_v25  ;;  %v2637_v44 = vpop.permute.xlu2 %2636  ;;  %v9277_v25 = vld [vmem:[%s17019_s0 + $0x122] sm:$0xff] }
 0x48e   :  { %2798 = vst.msk [vmem:[#allocation2 + $0x48] sm:$0xff] %vm2788_vm7, %v2615_v16  ;;  %v9279_v16 = vld [vmem:[%s17019_s0 + $0x13a] sm:$0xff] }
 0x48f   :  { %2809 = vst.msk [vmem:[#allocation2 + $0xa0] sm:$0xff] %vm2788_vm7, %v2637_v44 }
 0x492   :  { %2706 = vrot.lane.b32.xlu1 %v9248_v57, %s9522_s26  ;;  %2704 = vrot.lane.b32.xlu0 %v9247_v36, %s9522_s26 }
 0x493   :  { %2708 = vrot.lane.b32.xlu2 %v9249_v12, %s9522_s26  ;;  %v9281_v12 = vld [vmem:[%s17019_s0 + $0x152] sm:$0xff] }
 0x494   :  { %v2623_v18 = vpop.permute.xlu1 %2622  ;;  %v2621_v0 = vpop.permute.xlu0 %2620 }
 0x495   :  { %2802 = vst.msk [vmem:[#allocation2 + $0x68] sm:$0xff] %vm2788_vm7, %v2623_v18  ;;  %v2643_v43 = vpop.permute.xlu2 %2642  ;;  %v9280_v18 = vld [vmem:[%s17019_s0 + $0x142] sm:$0xff] }
 0x496   :  { %2801 = vst.msk [vmem:[#allocation2 + $0x60] sm:$0xff] %vm2788_vm7, %v2621_v0  ;;  %v9282_v0 = vld [vmem:[%s17019_s0 + $0x15a] sm:$0xff] }
 0x497   :  { %2812 = vst.msk [vmem:[#allocation2 + $0xb8] sm:$0xff] %vm2788_vm7, %v2643_v43 }
 0x49a   :  { %2712 = vrot.lane.b32.xlu1 %v9251_v58, %s9522_s26  ;;  %2710 = vrot.lane.b32.xlu0 %v9250_v30, %s9522_s26 }
 0x49b   :  { %2714 = vrot.lane.b32.xlu2 %v9252_v50, %s9522_s26  ;;  %v3342_v50 = vld [vmem:[%s17020_s1 + $0x20] sm:$0xf] }
 0x49c   :  { %v2629_v22 = vpop.permute.xlu1 %2628  ;;  %v2627_v59 = vpop.permute.xlu0 %2626 }
 0x49d   :  { %2805 = vst.msk [vmem:[#allocation2 + $0x80] sm:$0xff] %vm2788_vm7, %v2629_v22  ;;  %v2649_v35 = vpop.permute.xlu2 %2648  ;;  %v9284_v22 = vld [vmem:[%s17019_s0 + $0x172] sm:$0xff] }
 0x49e   :  { %2804 = vst.msk [vmem:[#allocation2 + $0x78] sm:$0xff] %vm2788_vm7, %v2627_v59  ;;  %v9283_v59 = vld [vmem:[%s17019_s0 + $0x16a] sm:$0xff] }
 0x49f   :  { %2815 = vst.msk [vmem:[#allocation2 + $0xd0] sm:$0xff] %vm2788_vm7, %v2649_v35  ;;  %v3360_v35 = vunpack.c.l.b16 %v3342_v50 }
 0x4a2   :  { %2718 = vrot.lane.b32.xlu1 %v9254_v6, %s9522_s26  ;;  %2716 = vrot.lane.b32.xlu0 %v9253_v9, %s9522_s26  ;;  %v9285_v6 = vld [vmem:[%s17019_s0 + $0x182] sm:$0xff]  ;;  %v3365_v9 = vpack.c.b16 %v3360_v35, %v3360_v35 }
 0x4a3   :  { %2720 = vrot.lane.b32.xlu2 %v9255_v62, %s9522_s26 }
 0x4a4   :  { %v2635_v34 = vpop.permute.xlu1 %2634  ;;  %v2633_v33 = vpop.permute.xlu0 %2632  ;;  %v3469_v62 = vsel %vm3467_vm8, %v3365_v9, 0  ;;  %v9300_v9 = vld [vmem:[%s17019_s0 + $0x262] sm:$0xff] }
 0x4a5   :  { %2808 = vst.msk [vmem:[#allocation2 + $0x98] sm:$0xff] %vm2788_vm7, %v2635_v34  ;;  %v2655_v40 = vpop.permute.xlu2 %2654  ;;  %3474 = vmatpush.bf16.msra.mxu0 %v3469_v62  ;;  %9489 = vmatpush.bf16.msra.mxu2 %v3469_v62 }
 0x4a6   :  { %2807 = vst.msk [vmem:[#allocation2 + $0x90] sm:$0xff] %vm2788_vm7, %v2633_v33 }
 0x4a7   :  { %2818 = vst.msk [vmem:[#allocation2 + $0xe8] sm:$0xff] %vm2788_vm7, %v2655_v40 }
 0x4aa   :  { %2981 = vrot.lane.b32.xlu1 %v9257_v39, %s9523_s23  ;;  %2722 = vrot.lane.b32.xlu0 %v9256_v47, %s9522_s26  ;;  %v9484_v39 = vld [vmem:[%s17020_s1 + $0x18] sm:$0xff] }
 0x4ab   :  { %2983 = vrot.lane.b32.xlu2 %v9258_v48, %s9523_s23  ;;  %v9287_v47 = vld [vmem:[%s17019_s0 + $0x19a] sm:$0xff]  ;;  %v9286_v48 = vld [vmem:[%s17019_s0 + $0x18a] sm:$0xff]  ;;  %3475 = vmatpush.bf16.msra.mxu0 %v9484_v39 }
 0x4ac   :  { %v2641_v46 = vpop.permute.xlu1 %2640  ;;  %v2639_v54 = vpop.permute.xlu0 %2638  ;;  %9490 = vmatpush.bf16.msra.mxu2 %v9484_v39 }
 0x4ad   :  { %2811 = vst.msk [vmem:[#allocation2 + $0xb0] sm:$0xff] %vm2788_vm7, %v2641_v46  ;;  %v2661_v55 = vpop.permute.xlu2 %2660  ;;  %v9483_v46 = vld [vmem:[%s17020_s1 + $0x10] sm:$0xff] }
 0x4ae   :  { %2810 = vst.msk [vmem:[#allocation2 + $0xa8] sm:$0xff] %vm2788_vm7, %v2639_v54  ;;  %v9288_v54 = vld [vmem:[%s17019_s0 + $0x1a2] sm:$0xff] }
 0x4af   :  { %2821 = vst.msk [vmem:[#allocation2 + $0x100] sm:$0xff] %vm2788_vm7, %v2661_v55  ;;  %3476 = vmatpush.bf16.msra.mxu0 %v9483_v46 }
 0x4b0   :  { %9491 = vmatpush.bf16.msra.mxu2 %v9483_v46 }
 0x4b2   :  { %2987 = vrot.lane.b32.xlu1 %v9260_v53, %s9523_s23  ;;  %2985 = vrot.lane.b32.xlu0 %v9259_v63, %s9523_s23 }
 0x4b3   :  { %2989 = vrot.lane.b32.xlu2 %v9261_v1, %s9523_s23  ;;  %v9482_v1 = vld [vmem:[%s17020_s1 + $0x8] sm:$0xff] }
 0x4b4   :  { %v2647_v60 = vpop.permute.xlu1 %2646  ;;  %v2645_v8 = vpop.permute.xlu0 %2644  ;;  %3477 = vmatpush.bf16.msra.mxu0 %v9482_v1  ;;  %9492 = vmatpush.bf16.msra.mxu2 %v9482_v1  ;;  %v9305_v1 = vld [vmem:[%s17019_s0 + $0x2a2] sm:$0xff] }
 0x4b5   :  { %2814 = vst.msk [vmem:[#allocation2 + $0xc8] sm:$0xff] %vm2788_vm7, %v2647_v60  ;;  %v2667_v10 = vpop.permute.xlu2 %2666  ;;  %v9290_v60 = vld [vmem:[%s17019_s0 + $0x1ea] sm:$0xff] }
 0x4b6   :  { %2813 = vst.msk [vmem:[#allocation2 + $0xc0] sm:$0xff] %vm2788_vm7, %v2645_v8  ;;  %v9289_v8 = vld [vmem:[%s17019_s0 + $0x1e2] sm:$0xff] }
 0x4b7   :  { %2824 = vst.msk [vmem:[#allocation2 + $0x118] sm:$0xff] %vm2788_vm7, %v2667_v10  ;;  %v9481_v10 = vld [vmem:[%s17020_s1] sm:$0xff] }
 0x4b8   :  { %3478 = vmatpush.bf16.msra.mxu0 %v9481_v10  ;;  %9493 = vmatpush.bf16.msra.mxu2 %v9481_v10 }
 0x4ba   :  { %2993 = vrot.lane.b32.xlu1 %v9263_v5, %s9523_s23  ;;  %2991 = vrot.lane.b32.xlu0 %v9262_v17, %s9523_s23 }
 0x4bb   :  { %2995 = vrot.lane.b32.xlu2 %v9264_v19, %s9523_s23 }
 0x4bc   :  { %v2653_v14 = vpop.permute.xlu1 %2652  ;;  %v2651_v26 = vpop.permute.xlu0 %2650 }
 0x4bd   :  { %2817 = vst.msk [vmem:[#allocation2 + $0xe0] sm:$0xff] %vm2788_vm7, %v2653_v14  ;;  %v2673_v28 = vpop.permute.xlu2 %2672  ;;  %v9292_v14 = vld [vmem:[%s17019_s0 + $0x202] sm:$0xff] }
 0x4be   :  { %2816 = vst.msk [vmem:[#allocation2 + $0xd8] sm:$0xff] %vm2788_vm7, %v2651_v26  ;;  %v9293_v26 = vld [vmem:[%s17019_s0 + $0x212] sm:$0xff] }
 0x4bf   :  { %2827 = vst.msk [vmem:[#allocation2 + $0x130] sm:$0xff] %vm2788_vm7, %v2673_v28  ;;  %v9291_v28 = vld [vmem:[%s17019_s0 + $0x1fa] sm:$0xff] }
 0x4c2   :  { %2999 = vrot.lane.b32.xlu1 %v9266_v23, %s9523_s23  ;;  %2997 = vrot.lane.b32.xlu0 %v9265_v37, %s9523_s23 }
 0x4c3   :  { %3001 = vrot.lane.b32.xlu2 %v9267_v41, %s9523_s23 }
 0x4c4   :  { %v2659_v32 = vpop.permute.xlu1 %2658  ;;  %v2657_v13 = vpop.permute.xlu0 %2656 }
 0x4c5   :  { %2820 = vst.msk [vmem:[#allocation2 + $0xf8] sm:$0xff] %vm2788_vm7, %v2659_v32  ;;  %v2679_v51 = vpop.permute.xlu2 %2678  ;;  %v9296_v32 = vld [vmem:[%s17019_s0 + $0x232] sm:$0xff] }
 0x4c6   :  { %2819 = vst.msk [vmem:[#allocation2 + $0xf0] sm:$0xff] %vm2788_vm7, %v2657_v13  ;;  %v9295_v13 = vld [vmem:[%s17019_s0 + $0x22a] sm:$0xff] }
 0x4c7   :  { %2830 = vst.msk [vmem:[#allocation2 + $0x148] sm:$0xff] %vm2788_vm7, %v2679_v51 }
 0x4ca   :  { %3005 = vrot.lane.b32.xlu1 %v9269_v56, %s9523_s23  ;;  %3003 = vrot.lane.b32.xlu0 %v9268_v45, %s9523_s23 }
 0x4cb   :  { %3007 = vrot.lane.b32.xlu2 %v9270_v38, %s9523_s23  ;;  %v9294_v38 = vld [vmem:[%s17019_s0 + $0x21a] sm:$0xff] }
 0x4cc   :  { %v2665_v2 = vpop.permute.xlu1 %2664  ;;  %v2663_v4 = vpop.permute.xlu0 %2662 }
 0x4cd   :  { %2823 = vst.msk [vmem:[#allocation2 + $0x110] sm:$0xff] %vm2788_vm7, %v2665_v2  ;;  %v2685_v20 = vpop.permute.xlu2 %2684 }
 0x4ce   :  { %2822 = vst.msk [vmem:[#allocation2 + $0x108] sm:$0xff] %vm2788_vm7, %v2663_v4 }
 0x4cf   :  { %2833 = vst.msk [vmem:[#allocation2 + $0x160] sm:$0xff] %vm2788_vm7, %v2685_v20 }
 0x4d2   :  { %3011 = vrot.lane.b32.xlu1 %v9272_v15, %s9523_s23  ;;  %3009 = vrot.lane.b32.xlu0 %v9271_v27, %s9523_s23  ;;  %v9298_v15 = vld [vmem:[%s17019_s0 + $0x24a] sm:$0xff] }
 0x4d3   :  { %3013 = vrot.lane.b32.xlu2 %v9273_v11, %s9523_s23 }
 0x4d4   :  { %v2671_v29 = vpop.permute.xlu1 %2670  ;;  %v2669_v31 = vpop.permute.xlu0 %2668 }
 0x4d5   :  { %2826 = vst.msk [vmem:[#allocation2 + $0x128] sm:$0xff] %vm2788_vm7, %v2671_v29  ;;  %v2691_v24 = vpop.permute.xlu2 %2690 }
 0x4d6   :  { %2825 = vst.msk [vmem:[#allocation2 + $0x120] sm:$0xff] %vm2788_vm7, %v2669_v31 }
 0x4d7   :  { %2836 = vst.msk [vmem:[#allocation2 + $0x178] sm:$0xff] %vm2788_vm7, %v2691_v24 }
 0x4da   :  { %3017 = vrot.lane.b32.xlu1 %v9275_v49, %s9523_s23  ;;  %3015 = vrot.lane.b32.xlu0 %v9274_v52, %s9523_s23 }
 0x4db   :  { %3019 = vrot.lane.b32.xlu2 %v9276_v42, %s9523_s23 }
 0x4dc   :  { %v2677_v3 = vpop.permute.xlu1 %2676  ;;  %v2675_v7 = vpop.permute.xlu0 %2674 }
 0x4dd   :  { %2829 = vst.msk [vmem:[#allocation2 + $0x140] sm:$0xff] %vm2788_vm7, %v2677_v3  ;;  %v2697_v61 = vpop.permute.xlu2 %2696 }
 0x4de   :  { %2828 = vst.msk [vmem:[#allocation2 + $0x138] sm:$0xff] %vm2788_vm7, %v2675_v7  ;;  %v9299_v7 = vld [vmem:[%s17019_s0 + $0x25a] sm:$0xff] }
 0x4df   :  { %2839 = vst.msk [vmem:[#allocation2 + $0x190] sm:$0xff] %vm2788_vm7, %v2697_v61 }
 0x4e2   :  { %3023 = vrot.lane.b32.xlu1 %v9278_v21, %s9523_s23  ;;  %3021 = vrot.lane.b32.xlu0 %v9277_v25, %s9523_s23 }
 0x4e3   :  { %3025 = vrot.lane.b32.xlu2 %v9279_v16, %s9523_s23 }
 0x4e4   :  { %v2683_v44 = vpop.permute.xlu1 %2682  ;;  %v2681_v57 = vpop.permute.xlu0 %2680 }
 0x4e5   :  { %2832 = vst.msk [vmem:[#allocation2 + $0x158] sm:$0xff] %vm2788_vm7, %v2683_v44  ;;  %v2703_v36 = vpop.permute.xlu2 %2702 }
 0x4e6   :  { %2831 = vst.msk [vmem:[#allocation2 + $0x150] sm:$0xff] %vm2788_vm7, %v2681_v57 }
 0x4e7   :  { %2842 = vst.msk [vmem:[#allocation2 + $0x1a8] sm:$0xff] %vm2788_vm7, %v2703_v36  ;;  %v9297_v36 = vld [vmem:[%s17019_s0 + $0x242] sm:$0xff] }
 0x4ea   :  { %3029 = vrot.lane.b32.xlu1 %v9281_v12, %s9523_s23  ;;  %3027 = vrot.lane.b32.xlu0 %v9280_v18, %s9523_s23 }
 0x4eb   :  { %3031 = vrot.lane.b32.xlu2 %v9282_v0, %s9523_s23 }
 0x4ec   :  { %v2689_v43 = vpop.permute.xlu1 %2688  ;;  %v2687_v58 = vpop.permute.xlu0 %2686 }
 0x4ed   :  { %2835 = vst.msk [vmem:[#allocation2 + $0x170] sm:$0xff] %vm2788_vm7, %v2689_v43  ;;  %v2709_v30 = vpop.permute.xlu2 %2708  ;;  %v9302_v43 = vld [vmem:[%s17019_s0 + $0x27a] sm:$0xff] }
 0x4ee   :  { %2834 = vst.msk [vmem:[#allocation2 + $0x168] sm:$0xff] %vm2788_vm7, %v2687_v58  ;;  %v9301_v58 = vld [vmem:[%s17019_s0 + $0x272] sm:$0xff] }
 0x4ef   :  { %2845 = vst.msk [vmem:[#allocation2 + $0x1c0] sm:$0xff] %vm2788_vm7, %v2709_v30 }
 0x4f2   :  { %3035 = vrot.lane.b32.xlu1 %v9284_v22, %s9523_s23  ;;  %3033 = vrot.lane.b32.xlu0 %v9283_v59, %s9523_s23 }
 0x4f3   :  { %3037 = vrot.lane.b32.xlu2 %v9285_v6, %s9523_s23 }
 0x4f4   :  { %v2695_v34 = vpop.permute.xlu1 %2694  ;;  %v2693_v33 = vpop.permute.xlu0 %2692 }
 0x4f5   :  { %2838 = vst.msk [vmem:[#allocation2 + $0x188] sm:$0xff] %vm2788_vm7, %v2695_v34  ;;  %v2715_v40 = vpop.permute.xlu2 %2714 }
 0x4f6   :  { %2837 = vst.msk [vmem:[#allocation2 + $0x180] sm:$0xff] %vm2788_vm7, %v2693_v33 }
 0x4f7   :  { %2848 = vst.msk [vmem:[#allocation2 + $0x1d8] sm:$0xff] %vm2788_vm7, %v2715_v40  ;;  %v9304_v40 = vld [vmem:[%s17019_s0 + $0x292] sm:$0xff] }
 0x4fa   :  { %3041 = vrot.lane.b32.xlu1 %v9287_v47, %s9523_s23  ;;  %3039 = vrot.lane.b32.xlu0 %v9286_v48, %s9523_s23 }
 0x4fb   :  { %3043 = vrot.lane.b32.xlu2 %v9288_v54, %s9523_s23 }
 0x4fc   :  { %v2701_v55 = vpop.permute.xlu1 %2700  ;;  %v2699_v53 = vpop.permute.xlu0 %2698 }
 0x4fd   :  { %2841 = vst.msk [vmem:[#allocation2 + $0x1a0] sm:$0xff] %vm2788_vm7, %v2701_v55  ;;  %v2721_v63 = vpop.permute.xlu2 %2720 }
 0x4fe   :  { %2840 = vst.msk [vmem:[#allocation2 + $0x198] sm:$0xff] %vm2788_vm7, %v2699_v53 }
 0x4ff   :  { %2851 = vst.msk [vmem:[#allocation2 + $0x1f0] sm:$0xff] %vm2788_vm7, %v2721_v63 }
 0x502   :  { %3047 = vrot.lane.b32.xlu1 %v9290_v60, %s9523_s23  ;;  %3045 = vrot.lane.b32.xlu0 %v9289_v8, %s9523_s23 }
 0x503   :  { %3049 = vrot.lane.b32.xlu2 %v9291_v28, %s9523_s23 }
 0x504   :  { %v2707_v5 = vpop.permute.xlu1 %2706  ;;  %v2705_v17 = vpop.permute.xlu0 %2704 }
 0x505   :  { %2844 = vst.msk [vmem:[#allocation2 + $0x1b8] sm:$0xff] %vm2788_vm7, %v2707_v5  ;;  %v2984_v19 = vpop.permute.xlu2 %2983 }
 0x506   :  { %2843 = vst.msk [vmem:[#allocation2 + $0x1b0] sm:$0xff] %vm2788_vm7, %v2705_v17 }
 0x507   :  { %3175 = vst.msk [vmem:[#allocation2 + $0x8] sm:$0xff] %vm3173_vm9, %v2984_v19 }
 0x50a   :  { %3051 = vrot.lane.b32.xlu0 %v9292_v14, %s9523_s23  ;;  %3053 = vrot.lane.b32.xlu1 %v9293_v26, %s9523_s23  ;;  %v9303_v14 = vld [vmem:[%s17019_s0 + $0x28a] sm:$0xff] }
 0x50b   :  { %3055 = vrot.lane.b32.xlu2 %v9294_v38, %s9523_s23  ;;  %v9306_v38 = vld [vmem:[%s17019_s0 + $0x2aa] sm:$0xff] }
 0x50c   :  { %v2713_v23 = vpop.permute.xlu1 %2712  ;;  %v2711_v37 = vpop.permute.xlu0 %2710 }
 0x50d   :  { %2847 = vst.msk [vmem:[#allocation2 + $0x1d0] sm:$0xff] %vm2788_vm7, %v2713_v23  ;;  %v2990_v41 = vpop.permute.xlu2 %2989  ;;  %v9308_v23 = vld [vmem:[%s17019_s0 + $0x2c2] sm:$0xff] }
 0x50e   :  { %2846 = vst.msk [vmem:[#allocation2 + $0x1c8] sm:$0xff] %vm2788_vm7, %v2711_v37  ;;  %v3239_v27 = vld [vmem:[#allocation2 + $0x8] sm:$0xff]  ;;  %v9307_v37 = vld [vmem:[%s17019_s0 + $0x2ba] sm:$0xff] }
 0x50f   :  { %3178 = vst.msk [vmem:[#allocation2 + $0x20] sm:$0xff] %vm3173_vm9, %v2990_v41 }
 0x512   :  { %3059 = vrot.lane.b32.xlu1 %v9296_v32, %s9523_s23  ;;  %3057 = vrot.lane.b32.xlu0 %v9295_v13, %s9523_s23 }
 0x513   :  { %3061 = vrot.lane.b32.xlu2 %v9297_v36, %s9523_s23  ;;  %v9309_v36 = vld [vmem:[%s17019_s0 + $0x2d2] sm:$0xff] }
 0x514   :  { %v2719_v51 = vpop.permute.xlu1 %2718  ;;  %v2717_v56 = vpop.permute.xlu0 %2716 }
 0x515   :  { %2850 = vst.msk [vmem:[#allocation2 + $0x1e8] sm:$0xff] %vm2788_vm7, %v2719_v51  ;;  %v2996_v45 = vpop.permute.xlu2 %2995 }
 0x516   :  { %2849 = vst.msk [vmem:[#allocation2 + $0x1e0] sm:$0xff] %vm2788_vm7, %v2717_v56  ;;  %v3242_v30 = vld [vmem:[#allocation2 + $0x20] sm:$0xff] }
 0x517   :  { %3181 = vst.msk [vmem:[#allocation2 + $0x38] sm:$0xff] %vm3173_vm9, %v2996_v45 }
 0x51a   :  { %3063 = vrot.lane.b32.xlu0 %v9298_v15, %s9523_s23  ;;  %3065 = vrot.lane.b32.xlu1 %v9299_v7, %s9523_s23 }
 0x51b   :  { %3067 = vrot.lane.b32.xlu2 %v9300_v9, %s9523_s23  ;;  %v9312_v9 = vld [vmem:[%s17019_s0 + $0x2f2] sm:$0xff] }
 0x51c   :  { %v2982_v2 = vpop.permute.xlu1 %2981  ;;  %v2723_v4 = vpop.permute.xlu0 %2722 }
 0x51d   :  { %3174 = vst.msk [vmem:[#allocation2] sm:$0xff] %vm3173_vm9, %v2982_v2  ;;  %v3002_v20 = vpop.permute.xlu2 %3001 }
 0x51e   :  { %2852 = vst.msk [vmem:[#allocation2 + $0x1f8] sm:$0xff] %vm2788_vm7, %v2723_v4  ;;  %v3245_v47 = vld [vmem:[#allocation2 + $0x38] sm:$0xff] }
 0x51f   :  { %3184 = vst.msk [vmem:[#allocation2 + $0x50] sm:$0xff] %vm3173_vm9, %v3002_v20 }
 0x522   :  { %3071 = vrot.lane.b32.xlu1 %v9302_v43, %s9523_s23  ;;  %3069 = vrot.lane.b32.xlu0 %v9301_v58, %s9523_s23  ;;  %v9314_v43 = vld [vmem:[%s17019_s0 + $0x30a] sm:$0xff]  ;;  %v9313_v58 = vld [vmem:[%s17019_s0 + $0x302] sm:$0xff] }
 0x523   :  { %3073 = vrot.lane.b32.xlu2 %v9303_v14, %s9523_s23 }
 0x524   :  { %v2988_v11 = vpop.permute.xlu1 %2987  ;;  %v2986_v29 = vpop.permute.xlu0 %2985  ;;  %v3238_v31 = vld [vmem:[#allocation2] sm:$0xff] }
 0x525   :  { %3177 = vst.msk [vmem:[#allocation2 + $0x18] sm:$0xff] %vm3173_vm9, %v2988_v11  ;;  %v3302_v24 = vpack.c.bf16 %v3239_v27, %v3238_v31  ;;  %v3008_v49 = vpop.permute.xlu2 %3007  ;;  %v9310_v11 = vld [vmem:[%s17019_s0 + $0x2da] sm:$0xff] }
 0x526   :  { %3176 = vst.msk [vmem:[#allocation2 + $0x10] sm:$0xff] %vm3173_vm9, %v2986_v29  ;;  %v3248_v41 = vld [vmem:[#allocation2 + $0x50] sm:$0xff] }
 0x527   :  { %9337 = vmatmul.msk.bf16.vlgmr.msra.gmra.mxu0 %vm3370_vm10, %v3302_v24  ;;  %3187 = vst.msk [vmem:[#allocation2 + $0x68] sm:$0xff] %vm3173_vm9, %v3008_v49 }
 0x52a   :  { %3075 = vrot.lane.b32.xlu0 %v9304_v40, %s9523_s23  ;;  %3077 = vrot.lane.b32.xlu1 %v9305_v1, %s9523_s23 }
 0x52b   :  { %3079 = vrot.lane.b32.xlu2 %v9306_v38, %s9523_s23 }
 0x52c   :  { %v2994_v52 = vpop.permute.xlu1 %2993  ;;  %v2992_v42 = vpop.permute.xlu0 %2991  ;;  %v3241_v21 = vld [vmem:[#allocation2 + $0x18] sm:$0xff] }
 0x52d   :  { %3180 = vst.msk [vmem:[#allocation2 + $0x30] sm:$0xff] %vm3173_vm9, %v2994_v52  ;;  %v3014_v3 = vpop.permute.xlu2 %3013  ;;  %v3240_v61 = vld [vmem:[#allocation2 + $0x10] sm:$0xff] }
 0x52e   :  { %3179 = vst.msk [vmem:[#allocation2 + $0x28] sm:$0xff] %vm3173_vm9, %v2992_v42  ;;  %v3303_v44 = vpack.c.bf16 %v3241_v21, %v3240_v61  ;;  %v3251_v31 = vld [vmem:[#allocation2 + $0x68] sm:$0xff] }
 0x52f   :  { %3190 = vst.msk [vmem:[#allocation2 + $0x80] sm:$0xff] %vm3173_vm9, %v3014_v3  ;;  %v9311_v61 = vld [vmem:[%s17019_s0 + $0x2ea] sm:$0xff] }
 0x532   :  { %3083 = vrot.lane.b32.xlu1 %v9308_v23, %s9523_s23  ;;  %3081 = vrot.lane.b32.xlu0 %v9307_v37, %s9523_s23  ;;  %v9315_v23 = vld [vmem:[%s17019_s0 + $0x31a] sm:$0xff] }
 0x533   :  { %3085 = vrot.lane.b32.xlu2 %v9309_v36, %s9523_s23 }
 0x534   :  { %v3000_v25 = vpop.permute.xlu1 %2999  ;;  %v2998_v16 = vpop.permute.xlu0 %2997  ;;  %v3244_v39 = vld [vmem:[#allocation2 + $0x30] sm:$0xff] }
 0x535   :  { %3183 = vst.msk [vmem:[#allocation2 + $0x48] sm:$0xff] %vm3173_vm9, %v3000_v25  ;;  %v3020_v57 = vpop.permute.xlu2 %3019  ;;  %v3243_v50 = vld [vmem:[#allocation2 + $0x28] sm:$0xff]  ;;  %v3305_v54 = vpack.c.bf16 %v3245_v47, %v3244_v39 }
 0x536   :  { %3182 = vst.msk [vmem:[#allocation2 + $0x40] sm:$0xff] %vm3173_vm9, %v2998_v16  ;;  %v3304_v35 = vpack.c.bf16 %v3243_v50, %v3242_v30  ;;  %v3254_v50 = vld [vmem:[#allocation2 + $0x80] sm:$0xff] }
 0x537   :  { %9338 = vmatmul.msk.bf16.gmra.mxu0 %vm3370_vm10, %v3303_v44  ;;  %3193 = vst.msk [vmem:[#allocation2 + $0x98] sm:$0xff] %vm3173_vm9, %v3020_v57  ;;  %v9316_v39 = vld [vmem:[%s17019_s0 + $0x322] sm:$0xff] }
 0x53a   :  { %3087 = vrot.lane.b32.xlu0 %v9310_v11, %s9523_s23  ;;  %3089 = vrot.lane.b32.xlu1 %v9311_v61, %s9523_s23 }
 0x53b   :  { %3091 = vrot.lane.b32.xlu2 %v9312_v9, %s9523_s23 }
 0x53c   :  { %v3006_v12 = vpop.permute.xlu1 %3005  ;;  %v3004_v18 = vpop.permute.xlu0 %3003  ;;  %v3247_v8 = vld [vmem:[#allocation2 + $0x48] sm:$0xff] }
 0x53d   :  { %3186 = vst.msk [vmem:[#allocation2 + $0x60] sm:$0xff] %vm3173_vm9, %v3006_v12  ;;  %v3026_v0 = vpop.permute.xlu2 %3025  ;;  %v3246_v60 = vld [vmem:[#allocation2 + $0x40] sm:$0xff] }
 0x53e   :  { %3185 = vst.msk [vmem:[#allocation2 + $0x58] sm:$0xff] %vm3173_vm9, %v3004_v18  ;;  %v3306_v19 = vpack.c.bf16 %v3247_v8, %v3246_v60 }
 0x53f   :  { %3196 = vst.msk [vmem:[#allocation2 + $0xb0] sm:$0xff] %vm3173_vm9, %v3026_v0 }
 0x542   :  { %3095 = vrot.lane.b32.xlu1 %v9314_v43, %s9523_s23  ;;  %3093 = vrot.lane.b32.xlu0 %v9313_v58, %s9523_s23 }
 0x543   :  { %3097 = vrot.lane.b32.xlu2 %v9315_v23, %s9523_s23 }
 0x544   :  { %v3012_v22 = vpop.permute.xlu1 %3011  ;;  %v3010_v59 = vpop.permute.xlu0 %3009  ;;  %v3250_v29 = vld [vmem:[#allocation2 + $0x60] sm:$0xff] }
 0x545   :  { %3189 = vst.msk [vmem:[#allocation2 + $0x78] sm:$0xff] %vm3173_vm9, %v3012_v22  ;;  %v3032_v6 = vpop.permute.xlu2 %3031  ;;  %v3249_v32 = vld [vmem:[#allocation2 + $0x58] sm:$0xff]  ;;  %v3308_v52 = vpack.c.bf16 %v3251_v31, %v3250_v29 }
 0x546   :  { %3188 = vst.msk [vmem:[#allocation2 + $0x70] sm:$0xff] %vm3173_vm9, %v3010_v59  ;;  %v3307_v45 = vpack.c.bf16 %v3249_v32, %v3248_v41 }
 0x547   :  { %9339 = vmatmul.msk.bf16.gmra.mxu0 %vm3370_vm10, %v3304_v35  ;;  %3199 = vst.msk [vmem:[#allocation2 + $0xc8] sm:$0xff] %vm3173_vm9, %v3032_v6 }
 0x54a   :  { %3099 = vrot.lane.b32.xlu0 %v9316_v39, %s9523_s23 }
 0x54c   :  { %v3018_v62 = vpop.permute.xlu1 %3017  ;;  %v3016_v34 = vpop.permute.xlu0 %3015  ;;  %v3253_v16 = vld [vmem:[#allocation2 + $0x78] sm:$0xff] }
 0x54d   :  { %3192 = vst.msk [vmem:[#allocation2 + $0x90] sm:$0xff] %vm3173_vm9, %v3018_v62  ;;  %v3038_v33 = vpop.permute.xlu2 %3037  ;;  %v3252_v25 = vld [vmem:[#allocation2 + $0x70] sm:$0xff] }
 0x54e   :  { %3191 = vst.msk [vmem:[#allocation2 + $0x88] sm:$0xff] %vm3173_vm9, %v3016_v34  ;;  %v3309_v57 = vpack.c.bf16 %v3253_v16, %v3252_v25 }
 0x54f   :  { %3202 = vst.msk [vmem:[#allocation2 + $0xe0] sm:$0xff] %vm3173_vm9, %v3038_v33 }
 0x554   :  { %v3024_v48 = vpop.permute.xlu1 %3023  ;;  %v3022_v46 = vpop.permute.xlu0 %3021 }
 0x555   :  { %3195 = vst.msk [vmem:[#allocation2 + $0xa8] sm:$0xff] %vm3173_vm9, %v3024_v48  ;;  %v3044_v55 = vpop.permute.xlu2 %3043  ;;  %v3255_v22 = vld [vmem:[#allocation2 + $0x88] sm:$0xff] }
 0x556   :  { %3194 = vst.msk [vmem:[#allocation2 + $0xa0] sm:$0xff] %vm3173_vm9, %v3022_v46  ;;  %v3310_v6 = vpack.c.bf16 %v3255_v22, %v3254_v50  ;;  %v3256_v46 = vld [vmem:[#allocation2 + $0x90] sm:$0xff] }
 0x557   :  { %9340 = vmatmul.msk.bf16.gmra.mxu0 %vm3370_vm10, %v3305_v54  ;;  %3205 = vst.msk [vmem:[#allocation2 + $0xf8] sm:$0xff] %vm3173_vm9, %v3044_v55  ;;  %v3257_v54 = vld [vmem:[#allocation2 + $0x98] sm:$0xff] }
 0x55c   :  { %v3030_v53 = vpop.permute.xlu1 %3029  ;;  %v3028_v63 = vpop.permute.xlu0 %3027 }
 0x55d   :  { %3198 = vst.msk [vmem:[#allocation2 + $0xc0] sm:$0xff] %vm3173_vm9, %v3030_v53  ;;  %v3050_v10 = vpop.permute.xlu2 %3049  ;;  %v3311_v53 = vpack.c.bf16 %v3257_v54, %v3256_v46 }
 0x55e   :  { %3197 = vst.msk [vmem:[#allocation2 + $0xb8] sm:$0xff] %vm3173_vm9, %v3028_v63 }
 0x55f   :  { %3208 = vst.msk [vmem:[#allocation2 + $0x110] sm:$0xff] %vm3173_vm9, %v3050_v10  ;;  %v9317_v10 = vld [vmem:[%s17019_s0 + $0x332] sm:$0xff] }
 0x560   :  { %3101 = vrot.lane.b32.xlu1 %v9317_v10, %s9523_s23 }
 0x564   :  { %v3036_v5 = vpop.permute.xlu1 %3035  ;;  %v3034_v17 = vpop.permute.xlu0 %3033 }
 0x565   :  { %3201 = vst.msk [vmem:[#allocation2 + $0xd8] sm:$0xff] %vm3173_vm9, %v3036_v5  ;;  %v3056_v13 = vpop.permute.xlu2 %3055  ;;  %v3261_v38 = vld [vmem:[#allocation2 + $0xb8] sm:$0xff] }
 0x566   :  { %3200 = vst.msk [vmem:[#allocation2 + $0xd0] sm:$0xff] %vm3173_vm9, %v3034_v17  ;;  %v3272_v42 = vld [vmem:[#allocation2 + $0x110] sm:$0xff]  ;;  %v3258_v17 = vld [vmem:[#allocation2 + $0xa0] sm:$0xff] }
 0x567   :  { %9341 = vmatmul.msk.bf16.gmra.mxu0 %vm3370_vm10, %v3306_v19  ;;  %3211 = vst.msk [vmem:[#allocation2 + $0x128] sm:$0xff] %vm3173_vm9, %v3056_v13  ;;  %v3259_v19 = vld [vmem:[#allocation2 + $0xa8] sm:$0xff] }
 0x56c   :  { %v3042_v26 = vpop.permute.xlu1 %3041  ;;  %v3040_v28 = vpop.permute.xlu0 %3039  ;;  %v3265_v36 = vld [vmem:[#allocation2 + $0xd8] sm:$0xff] }
 0x56d   :  { %3204 = vst.msk [vmem:[#allocation2 + $0xf0] sm:$0xff] %vm3173_vm9, %v3042_v26  ;;  %v3062_v44 = vpop.permute.xlu2 %3061 }
 0x56e   :  { %3203 = vst.msk [vmem:[#allocation2 + $0xe8] sm:$0xff] %vm3173_vm9, %v3040_v28  ;;  %v3275_v18 = vld [vmem:[#allocation2 + $0x128] sm:$0xff]  ;;  %v3312_v28 = vpack.c.bf16 %v3259_v19, %v3258_v17 }
 0x56f   :  { %3214 = vst.msk [vmem:[#allocation2 + $0x140] sm:$0xff] %vm3173_vm9, %v3062_v44 }
 0x574   :  { %v3048_v51 = vpop.permute.xlu1 %3047  ;;  %v3046_v56 = vpop.permute.xlu0 %3045 }
 0x575   :  { %3207 = vst.msk [vmem:[#allocation2 + $0x108] sm:$0xff] %vm3173_vm9, %v3048_v51  ;;  %v3068_v59 = vpop.permute.xlu2 %3067  ;;  %v9320_v51 = vld [vmem:[%s17019_s0 + $0x352] sm:$0xff] }
 0x576   :  { %3206 = vst.msk [vmem:[#allocation2 + $0x100] sm:$0xff] %vm3173_vm9, %v3046_v56  ;;  %v3278_v63 = vld [vmem:[#allocation2 + $0x140] sm:$0xff]  ;;  %v9319_v56 = vld [vmem:[%s17019_s0 + $0x34a] sm:$0xff]  ;;  %3107 = vrot.lane.b32.xlu1 %v9320_v51, %s9523_s23 }
 0x577   :  { %9342 = vmatmul.msk.bf16.gmra.mxu0 %vm3370_vm10, %v3307_v45  ;;  %3217 = vst.msk [vmem:[#allocation2 + $0x158] sm:$0xff] %vm3173_vm9, %v3068_v59  ;;  %3105 = vrot.lane.b32.xlu0 %v9319_v56, %s9523_s23  ;;  %v3260_v45 = vld [vmem:[#allocation2 + $0xb0] sm:$0xff]  ;;  %v3266_v59 = vld [vmem:[#allocation2 + $0xe0] sm:$0xff] }
 0x57c   :  { %v3271_v2 = vld [vmem:[#allocation2 + $0x108] sm:$0xff]  ;;  %v3052_v4 = vpop.permute.xlu0 %3051  ;;  %v3054_v20 = vpop.permute.xlu1 %3053 }
 0x57d   :  { %v3270_v15 = vld [vmem:[#allocation2 + $0x100] sm:$0xff]  ;;  %3209 = vst.msk [vmem:[#allocation2 + $0x118] sm:$0xff] %vm3173_vm9, %v3052_v4  ;;  %v3074_v14 = vpop.permute.xlu2 %3073 }
 0x57e   :  { %v3318_v27 = vpack.c.bf16 %v3271_v2, %v3270_v15  ;;  %3210 = vst.msk [vmem:[#allocation2 + $0x120] sm:$0xff] %vm3173_vm9, %v3054_v20  ;;  %v3281_v41 = vld [vmem:[#allocation2 + $0x158] sm:$0xff]  ;;  %v3313_v15 = vpack.c.bf16 %v3261_v38, %v3260_v45 }
 0x57f   :  { %3220 = vst.msk [vmem:[#allocation2 + $0x170] sm:$0xff] %vm3173_vm9, %v3074_v14 }
 0x580   :  { %9353 = vmatmul.msk.bf16.vlgmr.msra.gmra.mxu2 %vm3370_vm10, %v3318_v27  ;;  %v9318_v27 = vld [vmem:[%s17019_s0 + $0x33a] sm:$0xff] }
 0x581   :  { %3103 = vrot.lane.b32.xlu2 %v9318_v27, %s9523_s23 }
 0x584   :  { %v3060_v24 = vpop.permute.xlu1 %3059  ;;  %v3058_v49 = vpop.permute.xlu0 %3057  ;;  %v3273_v3 = vld [vmem:[#allocation2 + $0x118] sm:$0xff] }
 0x585   :  { %3213 = vst.msk [vmem:[#allocation2 + $0x138] sm:$0xff] %vm3173_vm9, %v3060_v24  ;;  %v3319_v7 = vpack.c.bf16 %v3273_v3, %v3272_v42  ;;  %v3274_v12 = vld [vmem:[#allocation2 + $0x120] sm:$0xff]  ;;  %v3080_v2 = vpop.permute.xlu2 %3079 }
 0x586   :  { %3212 = vst.msk [vmem:[#allocation2 + $0x130] sm:$0xff] %vm3173_vm9, %v3058_v49  ;;  %v3320_v0 = vpack.c.bf16 %v3275_v18, %v3274_v12  ;;  %v3262_v49 = vld [vmem:[#allocation2 + $0xc0] sm:$0xff] }
 0x587   :  { %9343 = vmatmul.msk.bf16.gmra.mxu0 %vm3370_vm10, %v3308_v52  ;;  %3223 = vst.msk [vmem:[#allocation2 + $0x188] sm:$0xff] %vm3173_vm9, %v3080_v2  ;;  %v3263_v52 = vld [vmem:[#allocation2 + $0xc8] sm:$0xff] }
 0x588   :  { %v3314_v3 = vpack.c.bf16 %v3263_v52, %v3262_v49 }
 0x58c   :  { %v3064_v21 = vpop.permute.xlu0 %3063  ;;  %v3066_v30 = vpop.permute.xlu1 %3065  ;;  %v3277_v34 = vld [vmem:[#allocation2 + $0x138] sm:$0xff] }
 0x58d   :  { %3215 = vst.msk [vmem:[#allocation2 + $0x148] sm:$0xff] %vm3173_vm9, %v3064_v21  ;;  %v3276_v62 = vld [vmem:[#allocation2 + $0x130] sm:$0xff] }
 0x58e   :  { %3216 = vst.msk [vmem:[#allocation2 + $0x150] sm:$0xff] %vm3173_vm9, %v3066_v30  ;;  %v3321_v40 = vpack.c.bf16 %v3277_v34, %v3276_v62  ;;  %v3284_v21 = vld [vmem:[#allocation2 + $0x170] sm:$0xff]  ;;  %v3287_v30 = vld [vmem:[#allocation2 + $0x188] sm:$0xff] }
 0x590   :  { %9354 = vmatmul.msk.bf16.gmra.mxu2 %vm3370_vm10, %v3319_v7 }
 0x594   :  { %v3072_v47 = vpop.permute.xlu1 %3071  ;;  %v3070_v48 = vpop.permute.xlu0 %3069  ;;  %v3279_v1 = vld [vmem:[#allocation2 + $0x148] sm:$0xff] }
 0x595   :  { %3219 = vst.msk [vmem:[#allocation2 + $0x168] sm:$0xff] %vm3173_vm9, %v3072_v47  ;;  %v3322_v8 = vpack.c.bf16 %v3279_v1, %v3278_v63  ;;  %v3280_v37 = vld [vmem:[#allocation2 + $0x150] sm:$0xff]  ;;  %v3269_v1 = vld [vmem:[#allocation2 + $0xf8] sm:$0xff] }
 0x596   :  { %3218 = vst.msk [vmem:[#allocation2 + $0x160] sm:$0xff] %vm3173_vm9, %v3070_v48  ;;  %v3323_v13 = vpack.c.bf16 %v3281_v41, %v3280_v37  ;;  %v3268_v63 = vld [vmem:[#allocation2 + $0xf0] sm:$0xff] }
 0x597   :  { %9344 = vmatmul.msk.bf16.gmra.mxu0 %vm3370_vm10, %v3309_v57  ;;  %v3264_v57 = vld [vmem:[#allocation2 + $0xd0] sm:$0xff] }
 0x598   :  { %v3315_v18 = vpack.c.bf16 %v3265_v36, %v3264_v57 }
 0x59c   :  { %v3076_v5 = vpop.permute.xlu0 %3075  ;;  %v3078_v4 = vpop.permute.xlu1 %3077  ;;  %v3283_v29 = vld [vmem:[#allocation2 + $0x168] sm:$0xff] }
 0x59d   :  { %3221 = vst.msk [vmem:[#allocation2 + $0x178] sm:$0xff] %vm3173_vm9, %v3076_v5  ;;  %v3282_v11 = vld [vmem:[#allocation2 + $0x160] sm:$0xff]  ;;  %v3317_v5 = vpack.c.bf16 %v3269_v1, %v3268_v63 }
 0x59e   :  { %3222 = vst.msk [vmem:[#allocation2 + $0x180] sm:$0xff] %vm3173_vm9, %v3078_v4  ;;  %v3324_v24 = vpack.c.bf16 %v3283_v29, %v3282_v11 }
 0x5a0   :  { %9355 = vmatmul.msk.bf16.gmra.mxu2 %vm3370_vm10, %v3320_v0  ;;  %v3086_v0 = vpop.permute.xlu2 %3085 }
 0x5a1   :  { %3226 = vst.msk [vmem:[#allocation2 + $0x1a0] sm:$0xff] %vm3173_vm9, %v3086_v0 }
 0x5a4   :  { %v12420_v35 = vpop.f32.mrf.mxu0  ;;  %v3084_v7 = vpop.permute.xlu1 %3083  ;;  %v3285_v25 = vld [vmem:[#allocation2 + $0x178] sm:$0xff] }
 0x5a5   :  { %v3082_v61 = vpop.permute.xlu0 %3081  ;;  %3225 = vst.msk [vmem:[#allocation2 + $0x198] sm:$0xff] %vm3173_vm9, %v3084_v7  ;;  %v3325_v44 = vpack.c.bf16 %v3285_v25, %v3284_v21  ;;  %v3286_v58 = vld [vmem:[#allocation2 + $0x180] sm:$0xff] }
 0x5a6   :  { %3224 = vst.msk [vmem:[#allocation2 + $0x190] sm:$0xff] %vm3173_vm9, %v3082_v61  ;;  %v3326_v22 = vpack.c.bf16 %v3287_v30, %v3286_v58 }
 0x5a7   :  { %9345 = vmatmul.msk.bf16.gmra.mxu0 %vm3370_vm10, %v3310_v6  ;;  %v3267_v6 = vld [vmem:[#allocation2 + $0xe8] sm:$0xff] }
 0x5a8   :  { %v3316_v34 = vpack.c.bf16 %v3267_v6, %v3266_v59  ;;  %v3290_v14 = vld [vmem:[#allocation2 + $0x1a0] sm:$0xff] }
 0x5ac   :  { %v12427_v33 = vpop.f32.mrf.mxu0  ;;  %v3090_v39 = vpop.permute.xlu1 %3089  ;;  %v3289_v48 = vld [vmem:[#allocation2 + $0x198] sm:$0xff] }
 0x5ad   :  { %v3088_v43 = vpop.permute.xlu0 %3087  ;;  %3228 = vst.msk [vmem:[#allocation2 + $0x1b0] sm:$0xff] %vm3173_vm9, %v3090_v39  ;;  %v3288_v47 = vld [vmem:[#allocation2 + $0x190] sm:$0xff]  ;;  %v3641_v63 = vsel %vm91_vm0, %v12427_v33, 0.0 }
 0x5ae   :  { %3227 = vst.msk [vmem:[#allocation2 + $0x1a8] sm:$0xff] %vm3173_vm9, %v3088_v43 }
 0x5b0   :  { %9356 = vmatmul.msk.bf16.gmra.mxu2 %vm3370_vm10, %v3321_v40  ;;  %v3092_v40 = vpop.permute.xlu2 %3091 }
 0x5b1   :  { %3229 = vst.msk [vmem:[#allocation2 + $0x1b8] sm:$0xff] %vm3173_vm9, %v3092_v40 }
 0x5b4   :  { %v12436_v55 = vpop.f32.mrf.mxu0  ;;  %v3096_v17 = vpop.permute.xlu1 %3095  ;;  %v3292_v38 = vld [vmem:[#allocation2 + $0x1b0] sm:$0xff] }
 0x5b5   :  { %v3094_v19 = vpop.permute.xlu0 %3093  ;;  %3231 = vst.msk [vmem:[#allocation2 + $0x1c8] sm:$0xff] %vm3173_vm9, %v3096_v17  ;;  %v3775_v1 = vmul.f32 %v12436_v55, %v12436_v55 }
 0x5b6   :  { %3230 = vst.msk [vmem:[#allocation2 + $0x1c0] sm:$0xff] %vm3173_vm9, %v3094_v19  ;;  %v3643_v19 = vsel %vm91_vm0, %v12436_v55, 0.0 }
 0x5b7   :  { %9346 = vmatmul.msk.bf16.gmra.mxu0 %vm3370_vm10, %v3311_v53  ;;  %v3327_v53 = vpack.c.bf16 %v3289_v48, %v3288_v47  ;;  %v3774_v48 = vmul.f32 %v12427_v33, %v12427_v33 }
 0x5b8   :  { %v3098_v56 = vpop.permute.xlu2 %3097  ;;  %v3293_v2 = vld [vmem:[#allocation2 + $0x1b8] sm:$0xff] }
 0x5b9   :  { %3232 = vst.msk [vmem:[#allocation2 + $0x1d0] sm:$0xff] %vm3173_vm9, %v3098_v56  ;;  %v3329_v27 = vpack.c.bf16 %v3293_v2, %v3292_v38  ;;  %v3838_v17 = vsel %vm91_vm0, %v3774_v48, 0.0  ;;  %v3840_v56 = vsel %vm91_vm0, %v3775_v1, 0.0 }
 0x5bc   :  { %v12439_v60 = vpop.f32.mrf.mxu0 }
 0x5bd   :  { %v3100_v45 = vpop.permute.xlu0 %3099  ;;  %v3294_v52 = vld [vmem:[#allocation2 + $0x1c0] sm:$0xff] }
 0x5be   :  { %3233 = vst.msk [vmem:[#allocation2 + $0x1d8] sm:$0xff] %vm3173_vm9, %v3100_v45  ;;  %v3645_v45 = vsel %vm91_vm0, %v12439_v60, 0.0 }
 0x5c0   :  { %9357 = vmatmul.msk.bf16.gmra.mxu2 %vm3370_vm10, %v3322_v8 }
 0x5c4   :  { %v12448_v26 = vpop.f32.mrf.mxu0 }
 0x5c5   :  { %v3297_v0 = vld [vmem:[#allocation2 + $0x1d8] sm:$0xff]  ;;  %v3777_v38 = vmul.f32 %v12448_v26, %v12448_v26 }
 0x5c7   :  { %9347 = vmatmul.msk.bf16.gmra.mxu0 %vm3370_vm10, %v3312_v28  ;;  %v3291_v28 = vld [vmem:[#allocation2 + $0x1a8] sm:$0xff] }
 0x5c8   :  { %v3328_v41 = vpack.c.bf16 %v3291_v28, %v3290_v14  ;;  %v3776_v14 = vmul.f32 %v12439_v60, %v12439_v60 }
 0x5cc   :  { %v12455_v32 = vpop.f32.mrf.mxu0 }
 0x5d0   :  { %9358 = vmatmul.msk.bf16.gmra.mxu2 %vm3370_vm10, %v3323_v13 }
 0x5d2   :  { %v3102_v49 = vpop.permute.xlu1 %3101 }
 0x5d3   :  { %3234 = vst.msk [vmem:[#allocation2 + $0x1e0] sm:$0xff] %vm3173_vm9, %v3102_v49 }
 0x5d4   :  { %v12467_v20 = vpop.f32.mrf.mxu0 }
 0x5d5   :  { %v3651_v48 = vsel %vm91_vm0, %v12467_v20, 0.0 }
 0x5d7   :  { %9348 = vmatmul.msk.bf16.gmra.mxu0 %vm3370_vm10, %v3313_v15 }
 0x5da   :  { %v3298_v6 = vld [vmem:[#allocation2 + $0x1e0] sm:$0xff] }
 0x5dc   :  { %v12475_v31 = vpop.f32.mrf.mxu0 }
 0x5e0   :  { %9359 = vmatmul.msk.bf16.gmra.mxu2 %vm3370_vm10, %v3324_v24  ;;  %v3104_v24 = vpop.permute.xlu2 %3103 }
 0x5e1   :  { %3235 = vst.msk [vmem:[#allocation2 + $0x1e8] sm:$0xff] %vm3173_vm9, %v3104_v24 }
 0x5e4   :  { %v12478_v42 = vpop.f32.mrf.mxu0 }
 0x5e7   :  { %9349 = vmatmul.msk.bf16.gmra.mxu0 %vm3370_vm10, %v3314_v3  ;;  %v3295_v3 = vld [vmem:[#allocation2 + $0x1c8] sm:$0xff] }
 0x5e8   :  { %v3330_v21 = vpack.c.bf16 %v3295_v3, %v3294_v52  ;;  %v3108_v57 = vpop.permute.xlu1 %3107  ;;  %v3842_v52 = vsel %vm91_vm0, %v3776_v14, 0.0  ;;  %v3647_v3 = vsel %vm91_vm0, %v12448_v26, 0.0  ;;  %v3653_v14 = vsel %vm91_vm0, %v12475_v31, 0.0 }
 0x5e9   :  { %v3106_v36 = vpop.permute.xlu0 %3105  ;;  %3237 = vst.msk [vmem:[#allocation2 + $0x1f8] sm:$0xff] %vm3173_vm9, %v3108_v57 }
 0x5ea   :  { %3236 = vst.msk [vmem:[#allocation2 + $0x1f0] sm:$0xff] %vm3173_vm9, %v3106_v36 }
 0x5ec   :  { %v12483_v16 = vpop.f32.mrf.mxu0 }
 0x5f0   :  { %9360 = vmatmul.msk.bf16.gmra.mxu2 %vm3370_vm10, %v3325_v44  ;;  %v3301_v1 = vld [vmem:[#allocation2 + $0x1f8] sm:$0xff] }
 0x5f4   :  { %v12486_v12 = vpop.f32.mrf.mxu0 }
 0x5f7   :  { %9350 = vmatmul.msk.bf16.gmra.mxu0 %vm3370_vm10, %v3315_v18  ;;  %v3296_v18 = vld [vmem:[#allocation2 + $0x1d0] sm:$0xff] }
 0x5f8   :  { %v3331_v30 = vpack.c.bf16 %v3297_v0, %v3296_v18  ;;  %v3844_v18 = vsel %vm91_vm0, %v3777_v38, 0.0  ;;  %v3649_v0 = vsel %vm91_vm0, %v12455_v32, 0.0 }
 0x5fc   :  { %v12491_v50 = vpop.f32.mrf.mxu0 }
 0x600   :  { %9361 = vmatmul.msk.bf16.gmra.mxu2 %vm3370_vm10, %v3326_v22 }
 0x603   :  { %v12494_v9 = vpop.f32.mrf.mxu2 }
 0x604   :  { %v12496_v62 = vpop.f32.mrf.mxu0 }
 0x607   :  { %9351 = vmatmul.msk.bf16.gmra.mxu0 %vm3370_vm10, %v3316_v34  ;;  %v3299_v34 = vld [vmem:[#allocation2 + $0x1e8] sm:$0xff] }
 0x608   :  { %v3332_v47 = vpack.c.bf16 %v3299_v34, %v3298_v6 }
 0x60b   :  { %v12501_v46 = vpop.f32.mrf.mxu2 }
 0x60c   :  { %v12503_v54 = vpop.f32.mrf.mxu0 }
 0x610   :  { %9362 = vmatmul.msk.bf16.gmra.mxu2 %vm3370_vm10, %v3327_v53  ;;  %v3773_v53 = vmul.f32 %v12420_v35, %v12420_v35 }
 0x613   :  { %v12506_v8 = vpop.f32.mrf.mxu2 }
 0x614   :  { %v12508_v10 = vpop.f32.mrf.mxu0 }
 0x617   :  { %9352 = vmatmul.msk.bf16.gmra.mxu0 %vm3370_vm10, %v3317_v5  ;;  %v3640_v5 = vsel %vm91_vm0, %v12420_v35, 0.0 }
 0x618   :  { %v3642_v28 = vadd.f32 %v3641_v63, %v3640_v5  ;;  %v3300_v63 = vld [vmem:[#allocation2 + $0x1f0] sm:$0xff] }
 0x61b   :  { %v12513_v23 = vpop.f32.mrf.mxu2 }
 0x61c   :  { %v12515_v37 = vpop.f32.mrf.mxu0 }
 0x620   :  { %9363 = vmatmul.msk.bf16.gmra.mxu2 %vm3370_vm10, %v3328_v41  ;;  %v3837_v41 = vsel %vm91_vm0, %v3773_v53, 0.0  ;;  %v3780_v53 = vmul.f32 %v12475_v31, %v12475_v31 }
 0x621   :  { %v3839_v24 = vadd.f32 %v3838_v17, %v3837_v41 }
 0x623   :  { %v12518_v13 = vpop.f32.mrf.mxu2  ;;  %v3841_v57 = vadd.f32 %v3840_v56, %v3839_v24  ;;  %v3850_v24 = vsel %vm91_vm0, %v3780_v53, 0.0 }
 0x624   :  { %v12520_v51 = vpop.f32.mrf.mxu0 }
 0x625   :  { %v3843_v34 = vadd.f32 %v3842_v52, %v3841_v57  ;;  %v3655_v52 = vsel %vm91_vm0, %v12478_v42, 0.0 }
 0x627   :  { %v3845_v5 = vadd.f32 %v3844_v18, %v3843_v34  ;;  %v3657_v18 = vsel %vm91_vm0, %v12483_v16, 0.0 }
 0x62b   :  { %v12524_v4 = vpop.f32.mrf.mxu2 }
 0x62c   :  { %v12526_v15 = vpop.f32.mrf.mxu0 }
 0x630   :  { %9364 = vmatmul.msk.bf16.gmra.mxu2 %vm3370_vm10, %v3329_v27  ;;  %v3644_v27 = vadd.f32 %v3643_v19, %v3642_v28  ;;  %v3781_v28 = vmul.f32 %v12478_v42, %v12478_v42 }
 0x632   :  { %v3646_v36 = vadd.f32 %v3645_v45, %v3644_v27  ;;  %v3333_v27 = vpack.c.bf16 %v3301_v1, %v3300_v63 }
 0x633   :  { %v12529_v11 = vpop.f32.mrf.mxu2 }
 0x634   :  { %v12531_v29 = vpop.f32.mrf.mxu0  ;;  %v3648_v6 = vadd.f32 %v3647_v3, %v3646_v36  ;;  %v3782_v3 = vmul.f32 %v12483_v16, %v12483_v16  ;;  %v3852_v36 = vsel %vm91_vm0, %v3781_v28, 0.0 }
 0x636   :  { %v3650_v17 = vadd.f32 %v3649_v0, %v3648_v6  ;;  %v3783_v0 = vmul.f32 %v12486_v12, %v12486_v12  ;;  %v3854_v34 = vsel %vm91_vm0, %v3782_v3, 0.0 }
 0x638   :  { %v3652_v56 = vadd.f32 %v3651_v48, %v3650_v17  ;;  %v3784_v48 = vmul.f32 %v12491_v50, %v12491_v50  ;;  %v3856_v1 = vsel %vm91_vm0, %v3783_v0, 0.0  ;;  %v3785_v17 = vmul.f32 %v12496_v62, %v12496_v62 }
 0x63a   :  { %v3654_v57 = vadd.f32 %v3653_v14, %v3652_v56 }
 0x63b   :  { %v12535_v7 = vpop.f32.mrf.mxu2 }
 0x63c   :  { %v12537_v61 = vpop.f32.mrf.mxu0 }
 0x640   :  { %9365 = vmatmul.msk.bf16.gmra.mxu2 %vm3370_vm10, %v3330_v21  ;;  %v3778_v21 = vmul.f32 %v12455_v32, %v12455_v32 }
 0x643   :  { %v12540_v25 = vpop.f32.mrf.mxu2 }
 0x644   :  { %17138 = vst [vmem:[#allocation5_spill] sm:$0xff] %v12540_v25  ;;  %v12542_v44 = vpop.f32.mrf.mxu0 }
 0x64b   :  { %v12546_v43 = vpop.f32.mrf.mxu2 }
 0x64c   :  { %17139 = vst [vmem:[#allocation6_spill] sm:$0xff] %v12546_v43  ;;  %v12548_v58 = vpop.f32.mrf.mxu0 }
 0x650   :  { %9366 = vmatmul.msk.bf16.gmra.mxu2 %vm3370_vm10, %v3331_v30  ;;  %v3779_v30 = vmul.f32 %v12467_v20, %v12467_v20 }
 0x652   :  { %v3848_v19 = vsel %vm91_vm0, %v3779_v30, 0.0  ;;  %v3656_v30 = vadd.f32 %v3655_v52, %v3654_v57  ;;  %v3665_v57 = vsel %vm91_vm0, %v12503_v54, 0.0 }
 0x653   :  { %v12551_v22 = vpop.f32.mrf.mxu2 }
 0x654   :  { %17140 = vst [vmem:[#allocation4_spill] sm:$0xff] %v12551_v22  ;;  %v12553_v59 = vpop.f32.mrf.mxu0  ;;  %v3658_v63 = vadd.f32 %v3657_v18, %v3656_v30 }
 0x65b   :  { %v12555_v40 = vpop.f32.mrf.mxu2 }
 0x65c   :  { %v12557_v39 = vpop.f32.mrf.mxu0 }
 0x65d   :  { %17141 = vst [vmem:[#allocation7_spill] sm:$0xff] %v12557_v39 }
 0x660   :  { %9367 = vmatmul.msk.bf16.gmra.mxu2 %vm3370_vm10, %v3332_v47  ;;  %v3846_v47 = vsel %vm91_vm0, %v3778_v21, 0.0 }
 0x661   :  { %v3847_v45 = vadd.f32 %v3846_v47, %v3845_v5  ;;  %v3659_v47 = vsel %vm91_vm0, %v12486_v12, 0.0  ;;  %v3661_v5 = vsel %vm91_vm0, %v12491_v50, 0.0 }
 0x662   :  { %v3660_v28 = vadd.f32 %v3659_v47, %v3658_v63  ;;  %v3669_v63 = vsel %vm91_vm0, %v12515_v37, 0.0 }
 0x663   :  { %v12581_v2 = vpop.f32.mrf.mxu2  ;;  %v3849_v21 = vadd.f32 %v3848_v19, %v3847_v45  ;;  %v3858_v45 = vsel %vm91_vm0, %v3784_v48, 0.0 }
 0x664   :  { %v12583_v49 = vpop.f32.mrf.mxu0  ;;  %v3662_v3 = vadd.f32 %v3661_v5, %v3660_v28 }
 0x665   :  { %17142 = vst [vmem:[#allocation8_spill] sm:$0xff] %v12583_v49  ;;  %v3851_v6 = vadd.f32 %v3850_v24, %v3849_v21  ;;  %v3786_v24 = vmul.f32 %v12503_v54, %v12503_v54  ;;  %v3860_v21 = vsel %vm91_vm0, %v3785_v17, 0.0 }
 0x667   :  { %v3853_v53 = vadd.f32 %v3852_v36, %v3851_v6  ;;  %v3787_v36 = vmul.f32 %v12508_v10, %v12508_v10  ;;  %v3862_v30 = vsel %vm91_vm0, %v3786_v24, 0.0  ;;  %v3667_v6 = vsel %vm91_vm0, %v12508_v10, 0.0 }
 0x668   :  { %v3790_v24 = vmul.f32 %v12526_v15, %v12526_v15 }
 0x669   :  { %v3855_v14 = vadd.f32 %v3854_v34, %v3853_v53  ;;  %v3788_v34 = vmul.f32 %v12515_v37, %v12515_v37  ;;  %v3864_v53 = vsel %vm91_vm0, %v3787_v36, 0.0  ;;  %v3791_v36 = vmul.f32 %v12531_v29, %v12531_v29 }
 0x66b   :  { %v12605_v41 = vpop.f32.mrf.mxu2  ;;  %v3857_v52 = vadd.f32 %v3856_v1, %v3855_v14  ;;  %v3789_v1 = vmul.f32 %v12520_v51, %v12520_v51 }
 0x66c   :  { %17143 = vst [vmem:[#allocation9_spill] sm:$0xff] %v12605_v41  ;;  %v12607_v38 = vpop.f32.mrf.mxu0 }
 0x66d   :  { %v3859_v18 = vadd.f32 %v3858_v45, %v3857_v52  ;;  %v3866_v45 = vsel %vm91_vm0, %v3788_v34, 0.0  ;;  %v3792_v34 = vmul.f32 %v12537_v61, %v12537_v61 }
 0x66f   :  { %v3861_v47 = vadd.f32 %v3860_v21, %v3859_v18  ;;  %v3868_v21 = vsel %vm91_vm0, %v3789_v1, 0.0  ;;  %v3793_v1 = vmul.f32 %v12542_v44, %v12542_v44 }
 0x670   :  { %9368 = vmatmul.msk.bf16.gmra.mxu2 %vm3370_vm10, %v3333_v27  ;;  %v3663_v27 = vsel %vm91_vm0, %v12496_v62, 0.0 }
 0x671   :  { %v3664_v0 = vadd.f32 %v3663_v27, %v3662_v3  ;;  %v3863_v17 = vadd.f32 %v3862_v30, %v3861_v47  ;;  %v3671_v27 = vsel %vm91_vm0, %v12520_v51, 0.0  ;;  %v3870_v30 = vsel %vm91_vm0, %v3790_v24, 0.0 }
 0x672   :  { %v3874_v24 = vsel %vm91_vm0, %v3792_v34, 0.0 }
 0x673   :  { %v12630_v19 = vpop.f32.mrf.mxu2  ;;  %v3666_v48 = vadd.f32 %v3665_v57, %v3664_v0  ;;  %v3865_v52 = vadd.f32 %v3864_v53, %v3863_v17  ;;  %v3673_v57 = vsel %vm91_vm0, %v12526_v15, 0.0  ;;  %v3872_v53 = vsel %vm91_vm0, %v3791_v36, 0.0 }
 0x674   :  { %17144 = vst [vmem:[#allocation10_spill] sm:$0xff] %v12630_v19  ;;  %v12632_v56 = vpop.f32.mrf.mxu0  ;;  %v3876_v36 = vsel %vm91_vm0, %v3793_v1, 0.0 }
 0x675   :  { %17145 = vst [vmem:[#allocation11_spill] sm:$0xff] %v12632_v56  ;;  %v3668_v14 = vadd.f32 %v3667_v6, %v3666_v48  ;;  %v3867_v18 = vadd.f32 %v3866_v45, %v3865_v52  ;;  %v3675_v6 = vsel %vm91_vm0, %v12531_v29, 0.0  ;;  %v3679_v52 = vsel %vm91_vm0, %v12542_v44, 0.0 }
 0x677   :  { %v3670_v3 = vadd.f32 %v3669_v63, %v3668_v14  ;;  %v3869_v47 = vadd.f32 %v3868_v21, %v3867_v18  ;;  %v3677_v63 = vsel %vm91_vm0, %v12537_v61, 0.0  ;;  %v3681_v18 = vsel %vm91_vm0, %v12548_v58, 0.0 }
 0x679   :  { %v3672_v0 = vadd.f32 %v3671_v27, %v3670_v3  ;;  %v3871_v14 = vadd.f32 %v3870_v30, %v3869_v47  ;;  %v3794_v3 = vmul.f32 %v12548_v58, %v12548_v58  ;;  %v3683_v47 = vsel %vm91_vm0, %v12553_v59, 0.0 }
 0x67b   :  { %v12654_v5 = vpop.f32.mrf.mxu2  ;;  %v3674_v48 = vadd.f32 %v3673_v57, %v3672_v0  ;;  %v3873_v21 = vadd.f32 %v3872_v53, %v3871_v14  ;;  %v3795_v0 = vmul.f32 %v12553_v59, %v12553_v59  ;;  %v3878_v34 = vsel %vm91_vm0, %v3794_v3, 0.0 }
 0x67c   :  { %17146 = vst [vmem:[#allocation12_spill] sm:$0xff] %v12654_v5  ;;  %v12656_v28 = vpop.f32.mrf.mxu0  ;;  %v3685_v14 = vsel %vm91_vm0, %v12557_v39, 0.0 }
 0x67d   :  { %17147 = vst [vmem:[#allocation13_spill] sm:$0xff] %v12656_v28  ;;  %v3676_v45 = vadd.f32 %v3675_v6, %v3674_v48  ;;  %v3875_v30 = vadd.f32 %v3874_v24, %v3873_v21  ;;  %v3796_v48 = vmul.f32 %v12557_v39, %v12557_v39  ;;  %v3880_v1 = vsel %vm91_vm0, %v3795_v0, 0.0 }
 0x67e   :  { %v3689_v39 = vsel %vm91_vm0, %v12607_v38, 0.0 }
 0x67f   :  { %v3678_v57 = vadd.f32 %v3677_v63, %v3676_v45  ;;  %v3877_v53 = vadd.f32 %v3876_v36, %v3875_v30  ;;  %v3797_v45 = vmul.f32 %v12583_v49, %v12583_v49  ;;  %v3687_v36 = vsel %vm91_vm0, %v12583_v49, 0.0 }
 0x680   :  { %v3800_v49 = vmul.f32 %v12656_v28, %v12656_v28 }
 0x681   :  { %v3680_v6 = vadd.f32 %v3679_v52, %v3678_v57  ;;  %v3879_v52 = vadd.f32 %v3878_v34, %v3877_v53  ;;  %v3882_v57 = vsel %vm91_vm0, %v3796_v48, 0.0  ;;  %v3799_v34 = vmul.f32 %v12632_v56, %v12632_v56 }
 0x683   :  { %v12678_v17 = vpop.f32.mrf.mxu2  ;;  %v3682_v63 = vadd.f32 %v3681_v18, %v3680_v6  ;;  %v3798_v18 = vmul.f32 %v12607_v38, %v12607_v38  ;;  %v3881_v0 = vadd.f32 %v3880_v1, %v3879_v52  ;;  %v3884_v6 = vsel %vm91_vm0, %v3797_v45, 0.0 }
 0x684   :  { %17148 = vst [vmem:[#allocation14_spill] sm:$0xff] %v12678_v17  ;;  %v12680_v27 = vpop.f32.mrf.mxu0  ;;  %v3888_v45 = vsel %vm91_vm0, %v3799_v34, 0.0  ;;  %v3693_v52 = vsel %vm91_vm0, %v12656_v28, 0.0 }
 0x685   :  { %17149 = vst [vmem:[#allocation15_spill] sm:$0xff] %v12680_v27  ;;  %v3684_v3 = vadd.f32 %v3683_v47, %v3682_v63  ;;  %v3883_v47 = vadd.f32 %v3882_v57, %v3881_v0  ;;  %v3886_v48 = vsel %vm91_vm0, %v3798_v18, 0.0  ;;  %v3691_v63 = vsel %vm91_vm0, %v12632_v56, 0.0 }
 0x687   :  { %v3686_v30 = vadd.f32 %v3685_v14, %v3684_v3  ;;  %v3885_v1 = vadd.f32 %v3884_v6, %v3883_v47  ;;  %v3801_v3 = vmul.f32 %v12680_v27, %v12680_v27  ;;  %v3695_v6 = vsel %vm91_vm0, %v12680_v27, 0.0 }
 0x689   :  { %v3688_v53 = vadd.f32 %v3687_v36, %v3686_v30  ;;  %v3887_v36 = vadd.f32 %v3886_v48, %v3885_v1  ;;  %v3890_v30 = vsel %vm91_vm0, %v3800_v49, 0.0 }
 0x68b   :  { %v12702_v24 = vpop.f32.mrf.mxu2  ;;  %v3690_v14 = vadd.f32 %v3689_v39, %v3688_v53  ;;  %v3889_v34 = vadd.f32 %v3888_v45, %v3887_v36  ;;  %v3892_v53 = vsel %vm91_vm0, %v3801_v3, 0.0 }
 0x68c   :  { %17150 = vst [vmem:[#allocation16_spill] sm:$0xff] %v12702_v24  ;;  %v12704_v21 = vpop.f32.mrf.mxu0 }
 0x68d   :  { %17151 = vst [vmem:[#allocation17_spill] sm:$0xff] %v12704_v21  ;;  %v3692_v18 = vadd.f32 %v3691_v63, %v3690_v14  ;;  %v3802_v39 = vmul.f32 %v12704_v21, %v12704_v21  ;;  %v3697_v28 = vsel %vm91_vm0, %v12704_v21, 0.0  ;;  %v3891_v63 = vadd.f32 %v3890_v30, %v3889_v34 }
 0x68e   :  { %v3805_v21 = vmul.f32 %v12494_v9, %v12494_v9 }
 0x68f   :  { %v3694_v47 = vadd.f32 %v3693_v52, %v3692_v18  ;;  %v3894_v49 = vsel %vm91_vm0, %v3802_v39, 0.0  ;;  %v3893_v27 = vadd.f32 %v3892_v53, %v3891_v63  ;;  %v3705_v63 = vsel %vm91_vm0, %v12501_v46, 0.0 }
 0x691   :  { %v3696_v1 = vadd.f32 %v3695_v6, %v3694_v47  ;;  %v3895_v3 = vadd.f32 %v3894_v49, %v3893_v27  ;;  %v3806_v27 = vmul.f32 %v12501_v46, %v12501_v46 }
 0x693   :  { %v12726_v57 = vpop.f32.mrf.mxu2  ;;  %v3698_v56 = vadd.f32 %v3697_v28, %v3696_v1  ;;  %v3703_v28 = vsel %vm91_vm0, %v12494_v9, 0.0  ;;  %v3807_v1 = vmul.f32 %v12506_v8, %v12506_v8 }
 0x694   :  { %17152 = vst [vmem:[#allocation18_spill] sm:$0xff] %v12726_v57  ;;  %v12728_v0 = vpop.f32.mrf.mxu0 }
 0x695   :  { %v3803_v48 = vmul.f32 %v12728_v0, %v12728_v0  ;;  %v3699_v14 = vsel %vm91_vm0, %v12728_v0, 0.0 }
 0x696   :  { %v3700_v36 = vadd.f32 %v3699_v14, %v3698_v56 }
 0x697   :  { %v3896_v45 = vsel %vm91_vm0, %v3803_v48, 0.0  ;;  %v3900_v48 = vsel %vm91_vm0, %v3805_v21, 0.0 }
 0x698   :  { %v3897_v39 = vadd.f32 %v3896_v45, %v3895_v3  ;;  %v3902_v45 = vsel %vm91_vm0, %v3806_v27, 0.0  ;;  %v3707_v3 = vsel %vm91_vm0, %v12506_v8, 0.0 }
 0x69b   :  { %v12744_v52 = vpop.f32.mrf.mxu2 }
 0x69c   :  { %17153 = vst [vmem:[#allocation19_spill] sm:$0xff] %v12744_v52  ;;  %v12746_v18 = vpop.f32.mrf.mxu0 }
 0x69d   :  { %v3701_v30 = vsel %vm91_vm0, %v12746_v18, 0.0  ;;  %v3804_v6 = vmul.f32 %v12746_v18, %v12746_v18 }
 0x69e   :  { %v3702_v34 = vadd.f32 %v3701_v30, %v3700_v36  ;;  %v3808_v36 = vmul.f32 %v12513_v23, %v12513_v23 }
 0x69f   :  { %v3898_v56 = vsel %vm91_vm0, %v3804_v6, 0.0 }
 0x6a0   :  { %v3704_v47 = vadd.f32 %v3703_v28, %v3702_v34  ;;  %v3899_v53 = vadd.f32 %v3898_v56, %v3897_v39  ;;  %v3904_v39 = vsel %vm91_vm0, %v3807_v1, 0.0  ;;  %v3709_v34 = vsel %vm91_vm0, %v12513_v23, 0.0 }
 0x6a1   :  { %v3809_v28 = vmul.f32 %v12518_v13, %v12518_v13 }
 0x6a2   :  { %v3706_v49 = vadd.f32 %v3705_v63, %v3704_v47  ;;  %v3901_v14 = vadd.f32 %v3900_v48, %v3899_v53  ;;  %v3906_v47 = vsel %vm91_vm0, %v3808_v36, 0.0  ;;  %v3711_v53 = vsel %vm91_vm0, %v12518_v13, 0.0 }
 0x6a3   :  { %v12769_v30 = vpop.f32.mrf.mxu2  ;;  %v3810_v48 = vmul.f32 %v12524_v4, %v12524_v4  ;;  %v3908_v1 = vsel %vm91_vm0, %v3809_v28, 0.0 }
 0x6a4   :  { %17154 = vst [vmem:[#allocation20_spill] sm:$0xff] %v12769_v30  ;;  %v3708_v6 = vadd.f32 %v3707_v3, %v3706_v49  ;;  %v3903_v21 = vadd.f32 %v3902_v45, %v3901_v14  ;;  %v3713_v14 = vsel %vm91_vm0, %v12524_v4, 0.0  ;;  %v3811_v45 = vmul.f32 %v12529_v11, %v12529_v11 }
 0x6a5   :  { %v3910_v36 = vsel %vm91_vm0, %v3810_v48, 0.0 }
 0x6a6   :  { %v3710_v56 = vadd.f32 %v3709_v34, %v3708_v6  ;;  %v3905_v27 = vadd.f32 %v3904_v39, %v3903_v21  ;;  %v3715_v21 = vsel %vm91_vm0, %v12529_v11, 0.0  ;;  %v3812_v39 = vmul.f32 %v12535_v7, %v12535_v7 }
 0x6a8   :  { %v3712_v63 = vadd.f32 %v3711_v53, %v3710_v56  ;;  %v3907_v49 = vadd.f32 %v3906_v47, %v3905_v27  ;;  %v3912_v27 = vsel %vm91_vm0, %v3811_v45, 0.0  ;;  %v3717_v47 = vsel %vm91_vm0, %v12535_v7, 0.0 }
 0x6a9   :  { %v3813_v53 = vmul.f32 %v12540_v25, %v12540_v25 }
 0x6aa   :  { %v3714_v3 = vadd.f32 %v3713_v14, %v3712_v63  ;;  %v3909_v6 = vadd.f32 %v3908_v1, %v3907_v49  ;;  %v3914_v49 = vsel %vm91_vm0, %v3812_v39, 0.0  ;;  %v3719_v1 = vsel %vm91_vm0, %v12540_v25, 0.0 }
 0x6ab   :  { %v12791_v34 = vpop.f32.mrf.mxu2  ;;  %v3814_v14 = vmul.f32 %v12546_v43, %v12546_v43  ;;  %v3916_v45 = vsel %vm91_vm0, %v3813_v53, 0.0 }
 0x6ac   :  { %17155 = vst [vmem:[#allocation21_spill] sm:$0xff] %v12791_v34  ;;  %v3716_v56 = vadd.f32 %v3715_v21, %v3714_v3  ;;  %v3911_v28 = vadd.f32 %v3910_v36, %v3909_v6  ;;  %v3721_v36 = vsel %vm91_vm0, %v12546_v43, 0.0  ;;  %v3815_v21 = vmul.f32 %v12551_v22, %v12551_v22 }
 0x6ad   :  { %v3918_v39 = vsel %vm91_vm0, %v3814_v14, 0.0  ;;  %v3817_v14 = vmul.f32 %v12581_v2, %v12581_v2 }
 0x6ae   :  { %v3718_v63 = vadd.f32 %v3717_v47, %v3716_v56  ;;  %v3913_v48 = vadd.f32 %v3912_v27, %v3911_v28  ;;  %v3723_v27 = vsel %vm91_vm0, %v12551_v22, 0.0 }
 0x6b0   :  { %v3720_v3 = vadd.f32 %v3719_v1, %v3718_v63  ;;  %v3915_v6 = vadd.f32 %v3914_v49, %v3913_v48  ;;  %v3816_v63 = vmul.f32 %v12555_v40, %v12555_v40  ;;  %v3920_v49 = vsel %vm91_vm0, %v3815_v21, 0.0 }
 0x6b1   :  { %v3725_v1 = vsel %vm91_vm0, %v12555_v40, 0.0  ;;  %v3818_v21 = vmul.f32 %v12605_v41, %v12605_v41 }
 0x6b2   :  { %v3722_v56 = vadd.f32 %v3721_v36, %v3720_v3  ;;  %v3917_v28 = vadd.f32 %v3916_v45, %v3915_v6  ;;  %v3922_v6 = vsel %vm91_vm0, %v3816_v63, 0.0  ;;  %v3727_v36 = vsel %vm91_vm0, %v12581_v2, 0.0 }
 0x6b3   :  { %v12811_v47 = vpop.f32.mrf.mxu2  ;;  %v3926_v63 = vsel %vm91_vm0, %v3818_v21, 0.0 }
 0x6b4   :  { %17156 = vst [vmem:[#allocation22_spill] sm:$0xff] %v12811_v47  ;;  %v3919_v48 = vadd.f32 %v3918_v39, %v3917_v28  ;;  %v3724_v53 = vadd.f32 %v3723_v27, %v3722_v56  ;;  %v3924_v56 = vsel %vm91_vm0, %v3817_v14, 0.0  ;;  %v3729_v39 = vsel %vm91_vm0, %v12605_v41, 0.0 }
 0x6b6   :  { %v3921_v43 = vadd.f32 %v3920_v49, %v3919_v48  ;;  %v3726_v3 = vadd.f32 %v3725_v1, %v3724_v53  ;;  %v3731_v53 = vsel %vm91_vm0, %v12630_v19, 0.0 }
 0x6b8   :  { %v3923_v45 = vadd.f32 %v3922_v6, %v3921_v43  ;;  %v3728_v22 = vadd.f32 %v3727_v36, %v3726_v3  ;;  %v3819_v43 = vmul.f32 %v12630_v19, %v12630_v19  ;;  %v3820_v6 = vmul.f32 %v12654_v5, %v12654_v5 }
 0x6ba   :  { %v3925_v28 = vadd.f32 %v3924_v56, %v3923_v45  ;;  %v3730_v27 = vadd.f32 %v3729_v39, %v3728_v22  ;;  %v3928_v3 = vsel %vm91_vm0, %v3819_v43, 0.0  ;;  %v3733_v22 = vsel %vm91_vm0, %v12654_v5, 0.0 }
 0x6bb   :  { %v12823_v25 = vpop.f32.mrf.mxu2  ;;  %v3930_v36 = vsel %vm91_vm0, %v3820_v6, 0.0  ;;  %v3821_v56 = vmul.f32 %v12678_v17, %v12678_v17  ;;  %v3822_v43 = vmul.f32 %v12702_v24, %v12702_v24  ;;  %v3823_v6 = vmul.f32 %v12726_v57, %v12726_v57  ;;  %v17182_v41 = vld [vmem:[#allocation22_spill] sm:$0xff] }
 0x6bc   :  { %17157 = vst [vmem:[#allocation23_spill] sm:$0xff] %v12823_v25  ;;  %v3927_v48 = vadd.f32 %v3926_v63, %v3925_v28  ;;  %v3732_v49 = vadd.f32 %v3731_v53, %v3730_v27  ;;  %v3735_v28 = vsel %vm91_vm0, %v12678_v17, 0.0  ;;  %v3737_v53 = vsel %vm91_vm0, %v12702_v24, 0.0 }
 0x6bd   :  { %v3932_v63 = vsel %vm91_vm0, %v3821_v56, 0.0  ;;  %v3936_v56 = vsel %vm91_vm0, %v3823_v6, 0.0 }
 0x6be   :  { %v3929_v14 = vadd.f32 %v3928_v3, %v3927_v48  ;;  %v3734_v45 = vadd.f32 %v3733_v22, %v3732_v49  ;;  %v3934_v3 = vsel %vm91_vm0, %v3822_v43, 0.0  ;;  %v3739_v22 = vsel %vm91_vm0, %v12726_v57, 0.0 }
 0x6c0   :  { %v3931_v21 = vadd.f32 %v3930_v36, %v3929_v14  ;;  %v3736_v39 = vadd.f32 %v3735_v28, %v3734_v45 }
 0x6c2   :  { %v3933_v48 = vadd.f32 %v3932_v63, %v3931_v21  ;;  %v3738_v49 = vadd.f32 %v3737_v53, %v3736_v39  ;;  %v3824_v21 = vmul.f32 %v12744_v52, %v12744_v52  ;;  %v3741_v39 = vsel %vm91_vm0, %v12744_v52, 0.0 }
 0x6c3   :  { %v12835_v1 = vpop.f32.mrf.mxu2 }
 0x6c4   :  { %17158 = vst [vmem:[#allocation24_spill] sm:$0xff] %v12835_v1  ;;  %v3935_v14 = vadd.f32 %v3934_v3, %v3933_v48  ;;  %v3740_v45 = vadd.f32 %v3739_v22, %v3738_v49  ;;  %v3938_v43 = vsel %vm91_vm0, %v3824_v21, 0.0  ;;  %v3825_v48 = vmul.f32 %v12769_v30, %v12769_v30 }
 0x6c5   :  { %v3743_v49 = vsel %vm91_vm0, %v12769_v30, 0.0 }
 0x6c6   :  { %v3937_v28 = vadd.f32 %v3936_v56, %v3935_v14  ;;  %v3742_v63 = vadd.f32 %v3741_v39, %v3740_v45  ;;  %v3940_v6 = vsel %vm91_vm0, %v3825_v48, 0.0  ;;  %v3826_v14 = vmul.f32 %v12791_v34, %v12791_v34 }
 0x6c7   :  { %v3745_v45 = vsel %vm91_vm0, %v12791_v34, 0.0 }
 0x6c8   :  { %v3939_v53 = vadd.f32 %v3938_v43, %v3937_v28  ;;  %v3744_v3 = vadd.f32 %v3743_v49, %v3742_v63  ;;  %v3942_v39 = vsel %vm91_vm0, %v3826_v14, 0.0  ;;  %v3827_v28 = vmul.f32 %v12811_v47, %v12811_v47 }
 0x6c9   :  { %v3747_v63 = vsel %vm91_vm0, %v12811_v47, 0.0 }
 0x6ca   :  { %v3941_v56 = vadd.f32 %v3940_v6, %v3939_v53  ;;  %v3746_v21 = vadd.f32 %v3745_v45, %v3744_v3  ;;  %v3944_v48 = vsel %vm91_vm0, %v3827_v28, 0.0  ;;  %v3828_v53 = vmul.f32 %v12823_v25, %v12823_v25 }
 0x6cb   :  { %v12847_v27 = vpop.f32.mrf.mxu2  ;;  %v3749_v3 = vsel %vm91_vm0, %v12823_v25, 0.0 }
 0x6cc   :  { %17159 = vst [vmem:[#allocation25_spill] sm:$0xff] %v12847_v27  ;;  %v3943_v43 = vadd.f32 %v3942_v39, %v3941_v56  ;;  %v3748_v49 = vadd.f32 %v3747_v63, %v3746_v21  ;;  %v3946_v45 = vsel %vm91_vm0, %v3828_v53, 0.0  ;;  %v3829_v56 = vmul.f32 %v12835_v1, %v12835_v1 }
 0x6cd   :  { %v3751_v21 = vsel %vm91_vm0, %v12835_v1, 0.0 }
 0x6ce   :  { %v3945_v6 = vadd.f32 %v3944_v48, %v3943_v43  ;;  %v3750_v14 = vadd.f32 %v3749_v3, %v3748_v49  ;;  %v3948_v28 = vsel %vm91_vm0, %v3829_v56, 0.0  ;;  %v3830_v43 = vmul.f32 %v12847_v27, %v12847_v27 }
 0x6cf   :  { %v3753_v49 = vsel %vm91_vm0, %v12847_v27, 0.0 }
 0x6d0   :  { %v3947_v39 = vadd.f32 %v3946_v45, %v3945_v6  ;;  %v3752_v63 = vadd.f32 %v3751_v21, %v3750_v14  ;;  %v3950_v6 = vsel %vm91_vm0, %v3830_v43, 0.0 }
 0x6d2   :  { %v3949_v48 = vadd.f32 %v3948_v28, %v3947_v39  ;;  %v3754_v3 = vadd.f32 %v3753_v49, %v3752_v63 }
 0x6d3   :  { %v12859_v36 = vpop.f32.mrf.mxu2 }
 0x6d4   :  { %17160 = vst [vmem:[#allocation26_spill] sm:$0xff] %v12859_v36  ;;  %v3831_v53 = vmul.f32 %v12859_v36, %v12859_v36  ;;  %v3755_v14 = vsel %vm91_vm0, %v12859_v36, 0.0  ;;  %v3951_v56 = vadd.f32 %v3950_v6, %v3949_v48 }
 0x6d5   :  { %v3756_v27 = vadd.f32 %v3755_v14, %v3754_v3 }
 0x6d6   :  { %v3952_v21 = vsel %vm91_vm0, %v3831_v53, 0.0 }
 0x6d7   :  { %v3953_v48 = vadd.f32 %v3952_v21, %v3951_v56 }
 0x6db   :  { %v12871_v22 = vpop.f32.mrf.mxu2 }
 0x6dc   :  { %17161 = vst [vmem:[#allocation27_spill] sm:$0xff] %v12871_v22  ;;  %v3832_v45 = vmul.f32 %v12871_v22, %v12871_v22  ;;  %v3757_v39 = vsel %vm91_vm0, %v12871_v22, 0.0 }
 0x6dd   :  { %v3758_v6 = vadd.f32 %v3757_v39, %v3756_v27 }
 0x6de   :  { %v3954_v63 = vsel %vm91_vm0, %v3832_v45, 0.0 }
 0x6df   :  { %v3955_v14 = vadd.f32 %v3954_v63, %v3953_v48 }
 0x6e3   :  { %v12883_v30 = vpop.f32.mrf.mxu2 }
 0x6e4   :  { %17162 = vst [vmem:[#allocation28_spill] sm:$0xff] %v12883_v30  ;;  %v3833_v28 = vmul.f32 %v12883_v30, %v12883_v30  ;;  %v3759_v43 = vsel %vm91_vm0, %v12883_v30, 0.0  ;;  %v17185_v30 = vmov 0.0  }
 0x6e5   :  { %v3760_v36 = vadd.f32 %v3759_v43, %v3758_v6  ;;  %4322 = vst.msk [vmem:[#allocation3 + $0x198] sm:$0xff] %vm91_vm0, %v17185_v30 }
 0x6e6   :  { %v3956_v53 = vsel %vm91_vm0, %v3833_v28, 0.0  ;;  %4323 = vst.msk [vmem:[#allocation3 + $0x1a0] sm:$0xff] %vm91_vm0, %v17185_v30 }
 0x6e7   :  { %v3957_v34 = vadd.f32 %v3956_v53, %v3955_v14  ;;  %4325 = vst.msk [vmem:[#allocation3 + $0x348] sm:$0xff] %vm91_vm0, %v17185_v30 }
 0x6e8   :  { %4326 = vst.msk [vmem:[#allocation3 + $0x350] sm:$0xff] %vm91_vm0, %v17185_v30 }
 0x6e9   :  { %4330 = vst.msk [vmem:[#allocation3 + $0x18] sm:$0x1] %vm4328_vm12, %v17185_v30 }
 0x6ea   :  { %4331 = vst.msk [vmem:[#allocation3 + $0x30] sm:$0x1] %vm4328_vm12, %v17185_v30 }
 0x6eb   :  { %v12895_v47 = vpop.f32.mrf.mxu2  ;;  %4332 = vst.msk [vmem:[#allocation3 + $0x48] sm:$0x1] %vm4328_vm12, %v17185_v30 }
 0x6ec   :  { %17163 = vst [vmem:[#allocation29_spill] sm:$0xff] %v12895_v47  ;;  %v3834_v49 = vmul.f32 %v12895_v47, %v12895_v47  ;;  %v3761_v22 = vsel %vm91_vm0, %v12895_v47, 0.0 }
 0x6ed   :  { %v3762_v52 = vadd.f32 %v3761_v22, %v3760_v36  ;;  %4333 = vst.msk [vmem:[#allocation3 + $0x60] sm:$0x1] %vm4328_vm12, %v17185_v30 }
 0x6ee   :  { %v3958_v45 = vsel %vm91_vm0, %v3834_v49, 0.0  ;;  %4334 = vst.msk [vmem:[#allocation3 + $0x78] sm:$0x1] %vm4328_vm12, %v17185_v30 }
 0x6ef   :  { %v3959_v27 = vadd.f32 %v3958_v45, %v3957_v34  ;;  %4335 = vst.msk [vmem:[#allocation3 + $0x90] sm:$0x1] %vm4328_vm12, %v17185_v30 }
 0x6f0   :  { %4336 = vst.msk [vmem:[#allocation3 + $0xa8] sm:$0x1] %vm4328_vm12, %v17185_v30 }
 0x6f1   :  { %4337 = vst.msk [vmem:[#allocation3 + $0xc0] sm:$0x1] %vm4328_vm12, %v17185_v30 }
 0x6f2   :  { %4338 = vst.msk [vmem:[#allocation3 + $0xd8] sm:$0x1] %vm4328_vm12, %v17185_v30 }
 0x6f3   :  { %v12914_v1 = vpop.f32.mrf.mxu2  ;;  %4339 = vst.msk [vmem:[#allocation3 + $0xf0] sm:$0x1] %vm4328_vm12, %v17185_v30 }
 0x6f4   :  { %17164 = vst [vmem:[#allocation30_spill] sm:$0xff] %v12914_v1  ;;  %v3835_v3 = vmul.f32 %v12914_v1, %v12914_v1  ;;  %v3763_v25 = vsel %vm91_vm0, %v12914_v1, 0.0  ;;  %v13073_v1 = vld [vmem:[%s17021_s2] ss:$0 sm:$0xff] }
 0x6f5   :  { %v3764_v21 = vadd.f32 %v3763_v25, %v3762_v52  ;;  %4340 = vst.msk [vmem:[#allocation3 + $0x108] sm:$0x1] %vm4328_vm12, %v17185_v30 }
 0x6f6   :  { %v3960_v56 = vsel %vm91_vm0, %v3835_v3, 0.0  ;;  %4341 = vst.msk [vmem:[#allocation3 + $0x120] sm:$0x1] %vm4328_vm12, %v17185_v30 }
 0x6f7   :  { %v3961_v43 = vadd.f32 %v3960_v56, %v3959_v27  ;;  %4342 = vst.msk [vmem:[#allocation3 + $0x138] sm:$0x1] %vm4328_vm12, %v17185_v30 }
 0x6f8   :  { %4343 = vst.msk [vmem:[#allocation3 + $0x150] sm:$0x1] %vm4328_vm12, %v17185_v30 }
 0x6f9   :  { %4344 = vst.msk [vmem:[#allocation3 + $0x168] sm:$0x1] %vm4328_vm12, %v17185_v30 }
 0x6fa   :  { %4345 = vst.msk [vmem:[#allocation3 + $0x180] sm:$0x1] %vm4328_vm12, %v17185_v30 }
 0x6fb   :  { %v12930_v39 = vpop.f32.mrf.mxu2  ;;  %4348 = vst.msk [vmem:[#allocation3 + $0x1c8] sm:$0x1] %vm4328_vm12, %v17185_v30 }
 0x6fc   :  { %v3765_v28 = vsel %vm91_vm0, %v12930_v39, 0.0  ;;  %v3836_v63 = vmul.f32 %v12930_v39, %v12930_v39  ;;  %4349 = vst.msk [vmem:[#allocation3 + $0x1e0] sm:$0x1] %vm4328_vm12, %v17185_v30 }
 0x6fd   :  { %v3766_v48 = vadd.f32 %v3765_v28, %v3764_v21  ;;  %4350 = vst.msk [vmem:[#allocation3 + $0x1f8] sm:$0x1] %vm4328_vm12, %v17185_v30 }
 0x6fe   :  { %v3962_v49 = vsel %vm91_vm0, %v3836_v63, 0.0  ;;  %4351 = vst.msk [vmem:[#allocation3 + $0x210] sm:$0x1] %vm4328_vm12, %v17185_v30 }
 0x6ff   :  { %v3767_v6 = vrot.slane %v3766_v48, 4  ;;  %v3963_v57 = vadd.f32 %v3962_v49, %v3961_v43  ;;  %v17171_v49 = vld [vmem:[#allocation5_spill] sm:$0xff]  ;;  %4352 = vst.msk [vmem:[#allocation3 + $0x228] sm:$0x1] %vm4328_vm12, %v17185_v30 }
 0x700   :  { %4353 = vst.msk [vmem:[#allocation3 + $0x240] sm:$0x1] %vm4328_vm12, %v17185_v30 }
 0x701   :  { %v3768_v53 = vadd.f32 %v3767_v6, %v3766_v48  ;;  %v3964_v36 = vrot.slane %v3963_v57, 4  ;;  %v17170_v6 = vld [vmem:[#allocation17_spill] sm:$0xff]  ;;  %4354 = vst.msk [vmem:[#allocation3 + $0x258] sm:$0x1] %vm4328_vm12, %v17185_v30 }
 0x702   :  { %4355 = vst.msk [vmem:[#allocation3 + $0x270] sm:$0x1] %vm4328_vm12, %v17185_v30 }
 0x703   :  { %v3769_v22 = vrot.slane %v3768_v53, 2  ;;  %v3965_v3 = vadd.f32 %v3964_v36, %v3963_v57  ;;  %v13101_v36 = vld [vmem:[%s17022_s3] ss:$0 sm:$0xff]  ;;  %4356 = vst.msk [vmem:[#allocation3 + $0x288] sm:$0x1] %vm4328_vm12, %v17185_v30 }
 0x704   :  { %4357 = vst.msk [vmem:[#allocation3 + $0x2a0] sm:$0x1] %vm4328_vm12, %v17185_v30 }
 0x705   :  { %v3770_v34 = vadd.f32 %v3769_v22, %v3768_v53  ;;  %v3966_v25 = vrot.slane %v3965_v3, 2  ;;  %v17081_v22 = vmov 0.0   ;;  %v17183_v53 = vld [vmem:[#allocation23_spill] sm:$0xff]  ;;  %4358 = vst.msk [vmem:[#allocation3 + $0x2b8] sm:$0x1] %vm4328_vm12, %v17185_v30 }
 0x706   :  { %4314 = vst.msk [vmem:[#allocation3] sm:$0xff] %vm91_vm0, %v17081_v22 }
 0x707   :  { %v3771_v52 = vrot.slane %v3770_v34, 1  ;;  %v3967_v14 = vadd.f32 %v3966_v25, %v3965_v3  ;;  %v17168_v25 = vld [vmem:[#allocation13_spill] sm:$0xff]  ;;  %4315 = vst.msk [vmem:[#allocation3 + $0x8] sm:$0xff] %vm91_vm0, %v17081_v22 }
 0x708   :  { %4329 = vst.msk [vmem:[#allocation3] sm:$0x1] %vm4328_vm12, %v17081_v22 }
 0x709   :  { %v3772_v45 = vadd.f32 %v3771_v52, %v3770_v34  ;;  %v3968_v24 = vrot.slane %v3967_v14, 1  ;;  %4318 = vst.msk [vmem:[#allocation3 + $0x1b0] sm:$0xff] %vm91_vm0, %v17081_v22 }
 0x70a   :  { %4319 = vst.msk [vmem:[#allocation3 + $0x1b8] sm:$0xff] %vm91_vm0, %v17081_v22  ;;  %v17184_v22 = vld [vmem:[#allocation24_spill] sm:$0xff] }
 0x70b   :  { %v3969_v17 = vadd.f32 %v3968_v24, %v3967_v14  ;;  %v12937_v5 = vmul.f32 0.001953125, %v3772_v45  ;;  %v17165_v45 = vld [vmem:[#allocation7_spill] sm:$0xff]  ;;  %4359 = vst.msk [vmem:[#allocation3 + $0x2d0] sm:$0x1] %vm4328_vm12, %v17185_v30 }
 0x70c   :  { %v17169_v14 = vld [vmem:[#allocation15_spill] sm:$0xff]  ;;  %17189 = vst [vmem:[#allocation7_spill] sm:$0xff] %v13101_v36 }
 0x70d   :  { %v3971_v19 = vmul.f32 0.001953125, %v3969_v17  ;;  %v3972_v56 = vmul.f32 %v12937_v5, %v12937_v5  ;;  %v17173_v17 = vld [vmem:[#allocation4_spill] sm:$0xff]  ;;  %v17192_v57 = vsub.f32 %v12427_v33, %v12937_v5  ;;  %v17195_v33 = vsub.f32 %v12448_v26, %v12937_v5  ;;  %4360 = vst.msk [vmem:[#allocation3 + $0x2e8] sm:$0x1] %vm4328_vm12, %v17185_v30 }
 0x70e   :  { %4361 = vst.msk [vmem:[#allocation3 + $0x300] sm:$0x1] %vm4328_vm12, %v17185_v30 }
 0x70f   :  { %v3973_v27 = vsub.f32 %v3971_v19, %v3972_v56  ;;  %v17166_v56 = vld [vmem:[#allocation8_spill] sm:$0xff]  ;;  %4362 = vst.msk [vmem:[#allocation3 + $0x318] sm:$0x1] %vm4328_vm12, %v17185_v30 }
 0x710   :  { %4363 = vst.msk [vmem:[#allocation3 + $0x330] sm:$0x1] %vm4328_vm12, %v17185_v30 }
 0x711   :  { %v3974_v21 = vmax.f32 %v3973_v27, 0.0  ;;  %v17172_v27 = vld [vmem:[#allocation6_spill] sm:$0xff]  ;;  %4366 = vst.msk [vmem:[#allocation3 + $0x29] sm:$0x1] %vm4328_vm12, %v17185_v30 }
 0x712   :  { %4367 = vst.msk [vmem:[#allocation3 + $0x41] sm:$0x1] %vm4328_vm12, %v17185_v30 }
 0x713   :  { %v12941_v28 = vadd.f32 1e-05, %v3974_v21  ;;  %v17167_v21 = vld [vmem:[#allocation11_spill] sm:$0xff]  ;;  %4368 = vst.msk [vmem:[#allocation3 + $0x59] sm:$0x1] %vm4328_vm12, %v17185_v30 }
 0x714   :  { %4369 = vst.msk [vmem:[#allocation3 + $0x71] sm:$0x1] %vm4328_vm12, %v17185_v30 }
 0x715   :  { %9512 = vrsqrt.f32 %v12941_v28  ;;  %vm4046_vm11 = vweird.f32 %v12941_v28  ;;  %4370 = vst.msk [vmem:[#allocation3 + $0x89] sm:$0x1] %vm4328_vm12, %v17185_v30 }
 0x716   :  { %4371 = vst.msk [vmem:[#allocation3 + $0xa1] sm:$0x1] %vm4328_vm12, %v17185_v30 }
 0x717   :  { %4372 = vst.msk [vmem:[#allocation3 + $0xb9] sm:$0x1] %vm4328_vm12, %v17185_v30 }
 0x718   :  { %4373 = vst.msk [vmem:[#allocation3 + $0xd1] sm:$0x1] %vm4328_vm12, %v17185_v30 }
 0x719   :  { %4374 = vst.msk [vmem:[#allocation3 + $0xe9] sm:$0x1] %vm4328_vm12, %v17185_v30 }
 0x71a   :  { %4375 = vst.msk [vmem:[#allocation3 + $0x101] sm:$0x1] %vm4328_vm12, %v17185_v30 }
 0x71b   :  { %v9513_v3 = vpop.eup %9512  ;;  %4376 = vst.msk [vmem:[#allocation3 + $0x119] sm:$0x1] %vm4328_vm12, %v17185_v30 }
 0x71c   :  { %v4041_v52 = vmul.f32 %v9513_v3, %v12941_v28  ;;  %vm4047_vm13 = vweird.f32 %v9513_v3  ;;  %v17186_v28 = vld [vmem:[#allocation25_spill] sm:$0xff]  ;;  %4377 = vst.msk [vmem:[#allocation3 + $0x131] sm:$0x1] %vm4328_vm12, %v17185_v30 }
 0x71d   :  { %vm4048_vm14 = vmor %vm4046_vm11, %vm4047_vm13  ;;  %4378 = vst.msk [vmem:[#allocation3 + $0x149] sm:$0x1] %vm4328_vm12, %v17185_v30 }
 0x71e   :  { %v4042_v43 = vmul.f32 %v9513_v3, %v4041_v52  ;;  %4379 = vst.msk [vmem:[#allocation3 + $0x161] sm:$0x1] %vm4328_vm12, %v17185_v30 }
 0x71f   :  { %4380 = vst.msk [vmem:[#allocation3 + $0x179] sm:$0x1] %vm4328_vm12, %v17185_v30 }
 0x720   :  { %v4043_v48 = vmul.f32 0.5, %v4042_v43  ;;  %v17175_v43 = vld [vmem:[#allocation12_spill] sm:$0xff]  ;;  %4381 = vst.msk [vmem:[#allocation3 + $0x191] sm:$0x1] %vm4328_vm12, %v17185_v30 }
 0x721   :  { %4384 = vst.msk [vmem:[#allocation3 + $0x1d9] sm:$0x1] %vm4328_vm12, %v17185_v30 }
 0x722   :  { %v4044_v34 = vsub.f32 1.5, %v4043_v48  ;;  %v17191_v48 = vsub.f32 %v12420_v35, %v12937_v5  ;;  %v17194_v35 = vsub.f32 %v12439_v60, %v12937_v5  ;;  %4385 = vst.msk [vmem:[#allocation3 + $0x1f1] sm:$0x1] %vm4328_vm12, %v17185_v30 }
 0x723   :  { %4386 = vst.msk [vmem:[#allocation3 + $0x209] sm:$0x1] %vm4328_vm12, %v17185_v30 }
 0x724   :  { %v4045_v19 = vmul.f32 %v9513_v3, %v4044_v34  ;;  %v17193_v34 = vsub.f32 %v12436_v55, %v12937_v5  ;;  %v17196_v55 = vsub.f32 %v12455_v32, %v12937_v5  ;;  %4387 = vst.msk [vmem:[#allocation3 + $0x221] sm:$0x1] %vm4328_vm12, %v17185_v30 }
 0x725   :  { %4388 = vst.msk [vmem:[#allocation3 + $0x239] sm:$0x1] %vm4328_vm12, %v17185_v30 }
 0x726   :  { %v13088_v52 = vsel %vm4048_vm14, %v9513_v3, %v4045_v19  ;;  %v17190_v19 = vsub.f32 %v12930_v39, %v12937_v5  ;;  %v4594_v39 = vld [vmem:[#allocation3 + $0x1] sm:$0xff]  ;;  %4389 = vst.msk [vmem:[#allocation3 + $0x251] sm:$0x1] %vm4328_vm12, %v17185_v30 }
 0x727   :  { %v13111_v47 = vmul.f32 %v13088_v52, %v17191_v48  ;;  %v13117_v24 = vmul.f32 %v13088_v52, %v17192_v57  ;;  %v13123_v63 = vmul.f32 %v13088_v52, %v17193_v34  ;;  %v13131_v48 = vmul.f32 %v13088_v52, %v17194_v35  ;;  %4722 = vrot.lane.b32.xlu2 %v4594_v39, %s9516_s28 }
 0x728   :  { %v4113_v3 = vmul.f32 %v13088_v52, %v17190_v19  ;;  %v13137_v57 = vmul.f32 %v13088_v52, %v17195_v33  ;;  %v13143_v34 = vmul.f32 %v13088_v52, %v17196_v55  ;;  %v17197_v19 = vsub.f32 %v12467_v20, %v12937_v5  ;;  %4390 = vst.msk [vmem:[#allocation3 + $0x269] sm:$0x1] %vm4328_vm12, %v17185_v30 }
 0x729   :  { %v17198_v35 = vsub.f32 %v12475_v31, %v12937_v5  ;;  %v17199_v33 = vsub.f32 %v12478_v42, %v12937_v5  ;;  %v17200_v55 = vsub.f32 %v12483_v16, %v12937_v5  ;;  %v17202_v39 = vsub.f32 %v12491_v50, %v12937_v5  ;;  %4391 = vst.msk [vmem:[#allocation3 + $0x281] sm:$0x1] %vm4328_vm12, %v17185_v30 }
 0x72a   :  { %v13149_v60 = vmul.f32 %v13088_v52, %v17197_v19  ;;  %v4181_v26 = vmul.f32 %v13073_v1, %v4113_v3  ;;  %v17201_v3 = vsub.f32 %v12486_v12, %v12937_v5  ;;  %4392 = vst.msk [vmem:[#allocation3 + $0x299] sm:$0x1] %vm4328_vm12, %v17185_v30 }
 0x72b   :  { %v13159_v32 = vmul.f32 %v13088_v52, %v17198_v35  ;;  %v13165_v20 = vmul.f32 %v13088_v52, %v17199_v33  ;;  %v13171_v19 = vmul.f32 %v13088_v52, %v17200_v55  ;;  %v13183_v42 = vmul.f32 %v13088_v52, %v17202_v39  ;;  %4393 = vst.msk [vmem:[#allocation3 + $0x2b1] sm:$0x1] %vm4328_vm12, %v17185_v30 }
 0x72c   :  { %v13177_v31 = vmul.f32 %v13088_v52, %v17201_v3  ;;  %v17203_v35 = vsub.f32 %v12496_v62, %v12937_v5  ;;  %v17204_v33 = vsub.f32 %v12503_v54, %v12937_v5  ;;  %v4249_v50 = vadd.f32 %v13101_v36, %v4181_v26  ;;  %v17246_v36 = vld [vmem:[#allocation16_spill] sm:$0xff]  ;;  %4394 = vst.msk [vmem:[#allocation3 + $0x2c9] sm:$0x1] %vm4328_vm12, %v17185_v30 }
 0x72d   :  { %v17205_v55 = vsub.f32 %v12508_v10, %v12937_v5  ;;  %v17206_v62 = vsub.f32 %v12515_v37, %v12937_v5  ;;  %v17207_v54 = vsub.f32 %v12520_v51, %v12937_v5  ;;  %v17208_v10 = vsub.f32 %v12526_v15, %v12937_v5  ;;  %4395 = vst.msk [vmem:[#allocation3 + $0x2e1] sm:$0x1] %vm4328_vm12, %v17185_v30 }
 0x72e   :  { %v13189_v16 = vmul.f32 %v13088_v52, %v17203_v35  ;;  %v13195_v12 = vmul.f32 %v13088_v52, %v17204_v33  ;;  %v17209_v37 = vsub.f32 %v12531_v29, %v12937_v5  ;;  %v17210_v51 = vsub.f32 %v12537_v61, %v12937_v5  ;;  %4396 = vst.msk [vmem:[#allocation3 + $0x2f9] sm:$0x1] %vm4328_vm12, %v17185_v30 }
 0x72f   :  { %v13204_v3 = vmul.f32 %v13088_v52, %v17205_v55  ;;  %v13210_v39 = vmul.f32 %v13088_v52, %v17206_v62  ;;  %v13216_v35 = vmul.f32 %v13088_v52, %v17207_v54  ;;  %v13224_v26 = vmul.f32 %v13088_v52, %v17208_v10  ;;  %4397 = vst.msk [vmem:[#allocation3 + $0x311] sm:$0x1] %vm4328_vm12, %v17185_v30 }
 0x730   :  { %v13230_v33 = vmul.f32 %v13088_v52, %v17209_v37  ;;  %v13236_v55 = vmul.f32 %v13088_v52, %v17210_v51  ;;  %v17211_v62 = vsub.f32 %v12542_v44, %v12937_v5  ;;  %v4313_v54 = vmax.f32 %v4249_v50, 0.0  ;;  %4398 = vst.msk [vmem:[#allocation3 + $0x329] sm:$0x1] %vm4328_vm12, %v17185_v30 }
 0x731   :  { %v17212_v29 = vsub.f32 %v12548_v58, %v12937_v5  ;;  %v17213_v61 = vsub.f32 %v12553_v59, %v12937_v5  ;;  %v17214_v44 = vsub.f32 %v17165_v45, %v12937_v5  ;;  %v17215_v58 = vsub.f32 %v17166_v56, %v12937_v5  ;;  %4399 = vst.msk [vmem:[#allocation3 + $0x341] sm:$0x1] %vm4328_vm12, %v17185_v30 }
 0x732   :  { %v13242_v15 = vmul.f32 %v13088_v52, %v17211_v62  ;;  %v17216_v59 = vsub.f32 %v12607_v38, %v12937_v5  ;;  %v17217_v45 = vsub.f32 %v17167_v21, %v12937_v5  ;;  %4465 = vst.msk [vmem:[#allocation3 + $0x339] sm:$0xff] %vm91_vm0, %v4313_v54  ;;  %v17219_v38 = vsub.f32 %v17169_v14, %v12937_v5 }
 0x733   :  { %v13250_v10 = vmul.f32 %v13088_v52, %v17212_v29  ;;  %v13256_v37 = vmul.f32 %v13088_v52, %v17213_v61  ;;  %v13262_v51 = vmul.f32 %v13088_v52, %v17214_v44  ;;  %v13270_v50 = vmul.f32 %v13088_v52, %v17215_v58  ;;  %4317 = vst.msk [vmem:[#allocation3 + $0x10] sm:$0x3] %vm4316_vm15, %v17185_v30 }
 0x734   :  { %v13276_v62 = vmul.f32 %v13088_v52, %v17216_v59  ;;  %v13282_v29 = vmul.f32 %v13088_v52, %v17217_v45  ;;  %v17218_v61 = vsub.f32 %v17168_v25, %v12937_v5  ;;  %v13297_v44 = vmul.f32 %v13088_v52, %v17219_v38  ;;  %4320 = vst.msk [vmem:[#allocation3 + $0x1c0] sm:$0x3] %vm4316_vm15, %v17185_v30 }
 0x735   :  { %v17220_v21 = vsub.f32 %v17170_v6, %v12937_v5  ;;  %v17221_v25 = vsub.f32 %v12728_v0, %v12937_v5  ;;  %v17222_v54 = vsub.f32 %v12746_v18, %v12937_v5  ;;  %v17223_v45 = vsub.f32 %v12494_v9, %v12937_v5  ;;  %4324 = vst.msk [vmem:[#allocation3 + $0x1a8] sm:$0x3] %vm4316_vm15, %v17185_v30 }
 0x736   :  { %v13288_v56 = vmul.f32 %v13088_v52, %v17218_v61  ;;  %v17224_v61 = vsub.f32 %v12501_v46, %v12937_v5  ;;  %v17225_v38 = vsub.f32 %v12506_v8, %v12937_v5  ;;  %v17227_v46 = vsub.f32 %v12518_v13, %v12937_v5  ;;  %4327 = vst.msk [vmem:[#allocation3 + $0x358] sm:$0x3] %vm4316_vm15, %v17185_v30 }
 0x737   :  { %v13303_v58 = vmul.f32 %v13088_v52, %v17220_v21  ;;  %v13309_v59 = vmul.f32 %v13088_v52, %v17221_v25  ;;  %v13315_v14 = vmul.f32 %v13088_v52, %v17222_v54  ;;  %v13321_v6 = vmul.f32 %v13088_v52, %v17223_v45  ;;  %4346 = vst.msk [vmem:[#allocation3 + $0x198] sm:$0x1] %vm4328_vm12, %v17185_v30 }
 0x738   :  { %v13327_v0 = vmul.f32 %v13088_v52, %v17224_v61  ;;  %v13333_v18 = vmul.f32 %v13088_v52, %v17225_v38  ;;  %v17226_v21 = vsub.f32 %v12513_v23, %v12937_v5  ;;  %v13347_v25 = vmul.f32 %v13088_v52, %v17227_v46  ;;  %4347 = vst.msk [vmem:[#allocation3 + $0x1b0] sm:$0x1] %vm4328_vm12, %v17185_v30 }
 0x739   :  { %v17228_v8 = vsub.f32 %v12524_v4, %v12937_v5  ;;  %v17229_v23 = vsub.f32 %v12529_v11, %v12937_v5  ;;  %v17230_v61 = vsub.f32 %v12535_v7, %v12937_v5  ;;  %v17231_v4 = vsub.f32 %v17171_v49, %v12937_v5  ;;  %4364 = vst.msk [vmem:[#allocation3 + $0x348] sm:$0x1] %vm4328_vm12, %v17185_v30 }
 0x73a   :  { %v13339_v9 = vmul.f32 %v13088_v52, %v17226_v21  ;;  %v17232_v11 = vsub.f32 %v17172_v27, %v12937_v5  ;;  %v17233_v7 = vsub.f32 %v17173_v17, %v12937_v5  ;;  %v17235_v27 = vsub.f32 %v12581_v2, %v12937_v5  ;;  %4365 = vst.msk [vmem:[#allocation3 + $0x11] sm:$0x1] %vm4328_vm12, %v17185_v30 }
 0x73b   :  { %v13353_v54 = vmul.f32 %v13088_v52, %v17228_v8  ;;  %v13359_v45 = vmul.f32 %v13088_v52, %v17229_v23  ;;  %v13365_v13 = vmul.f32 %v13088_v52, %v17230_v61  ;;  %v13373_v38 = vmul.f32 %v13088_v52, %v17231_v4  ;;  %v17236_v61 = vld [vmem:[#allocation9_spill] sm:$0xff]  ;;  %4382 = vst.msk [vmem:[#allocation3 + $0x1a9] sm:$0x1] %vm4328_vm12, %v17185_v30 }
 0x73c   :  { %v13379_v21 = vmul.f32 %v13088_v52, %v17232_v11  ;;  %v13385_v46 = vmul.f32 %v13088_v52, %v17233_v7  ;;  %v17234_v8 = vsub.f32 %v12555_v40, %v12937_v5  ;;  %v13399_v23 = vmul.f32 %v13088_v52, %v17235_v27  ;;  %v17239_v11 = vld [vmem:[#allocation10_spill] sm:$0xff]  ;;  %4383 = vst.msk [vmem:[#allocation3 + $0x1c1] sm:$0x1] %vm4328_vm12, %v17185_v30 }
 0x73d   :  { %v17237_v17 = vsub.f32 %v17236_v61, %v12937_v5  ;;  %v17240_v40 = vsub.f32 %v17239_v11, %v12937_v5  ;;  %v17244_v27 = vld [vmem:[#allocation14_spill] sm:$0xff]  ;;  %v17247_v11 = vsub.f32 %v17246_v36, %v12937_v5  ;;  %4400 = vst.msk [vmem:[#allocation3 + $0x359] sm:$0x1] %vm4328_vm12, %v17185_v30 }
 0x73e   :  { %v13391_v49 = vmul.f32 %v13088_v52, %v17234_v8  ;;  %v17242_v8 = vsub.f32 %v17175_v43, %v12937_v5  ;;  %v17245_v61 = vsub.f32 %v17244_v27, %v12937_v5 }
 0x73f   :  { %v13405_v4 = vmul.f32 %v13088_v52, %v17237_v17  ;;  %v13411_v7 = vmul.f32 %v13088_v52, %v17240_v40  ;;  %v13431_v40 = vmul.f32 %v13088_v52, %v17247_v11 }
 0x740   :  { %v13417_v2 = vmul.f32 %v13088_v52, %v17242_v8  ;;  %v13425_v17 = vmul.f32 %v13088_v52, %v17245_v61  ;;  %v17254_v61 = vld [vmem:[#allocation20_spill] sm:$0xff] }
 0x741   :  { %17238 = vst [vmem:[#allocation8_spill] sm:$0xff] %v13405_v4  ;;  %v17255_v36 = vsub.f32 %v17254_v61, %v12937_v5 }
 0x742   :  { %17241 = vst [vmem:[#allocation11_spill] sm:$0xff] %v13411_v7  ;;  %v17249_v7 = vld [vmem:[#allocation18_spill] sm:$0xff] }
 0x743   :  { %17243 = vst [vmem:[#allocation13_spill] sm:$0xff] %v13417_v2  ;;  %v17250_v43 = vsub.f32 %v17249_v7, %v12937_v5  ;;  %v17251_v2 = vld [vmem:[#allocation19_spill] sm:$0xff]  ;;  %v13451_v11 = vmul.f32 %v13088_v52, %v17255_v36 }
 0x744   :  { %17248 = vst [vmem:[#allocation15_spill] sm:$0xff] %v13431_v40  ;;  %v17252_v4 = vsub.f32 %v17251_v2, %v12937_v5  ;;  %v17256_v40 = vld [vmem:[#allocation21_spill] sm:$0xff]  ;;  %v17258_v2 = vsub.f32 %v17182_v41, %v12937_v5  ;;  %v17263_v41 = vsub.f32 %v17186_v28, %v12937_v5 }
 0x745   :  { %v13437_v8 = vmul.f32 %v13088_v52, %v17250_v43  ;;  %v17257_v7 = vsub.f32 %v17256_v40, %v12937_v5  ;;  %v17262_v40 = vsub.f32 %v17184_v22, %v12937_v5 }
 0x746   :  { %v13443_v27 = vmul.f32 %v13088_v52, %v17252_v4  ;;  %v13463_v4 = vmul.f32 %v13088_v52, %v17258_v2  ;;  %v17265_v2 = vld [vmem:[#allocation26_spill] sm:$0xff] }
 0x747   :  { %v13457_v43 = vmul.f32 %v13088_v52, %v17257_v7  ;;  %v13477_v36 = vmul.f32 %v13088_v52, %v17262_v40  ;;  %v13483_v7 = vmul.f32 %v13088_v52, %v17263_v41  ;;  %v17270_v40 = vld [vmem:[#allocation28_spill] sm:$0xff] }
 0x748   :  { %17253 = vst [vmem:[#allocation17_spill] sm:$0xff] %v13443_v27  ;;  %v17260_v27 = vsub.f32 %v17183_v53, %v12937_v5  ;;  %v17266_v53 = vsub.f32 %v17265_v2, %v12937_v5  ;;  %v17271_v28 = vsub.f32 %v17270_v40, %v12937_v5  ;;  %v13583_v40 = vmul.f32 %v13073_v1, %v13137_v57 }
 0x749   :  { %17259 = vst [vmem:[#allocation5_spill] sm:$0xff] %v13463_v4  ;;  %v13605_v57 = vmul.f32 %v13073_v1, %v13171_v19  ;;  %v13627_v19 = vmul.f32 %v13073_v1, %v13204_v3  ;;  %v13649_v3 = vmul.f32 %v13073_v1, %v13236_v55  ;;  %v13673_v55 = vmul.f32 %v13073_v1, %v13270_v50 }
 0x74a   :  { %v13469_v61 = vmul.f32 %v13088_v52, %v17260_v27  ;;  %17264 = vst [vmem:[#allocation4_spill] sm:$0xff] %v13483_v7  ;;  %v13489_v27 = vmul.f32 %v13088_v52, %v17266_v53  ;;  %v13503_v41 = vmul.f32 %v13088_v52, %v17271_v28  ;;  %v17272_v7 = vld [vmem:[#allocation29_spill] sm:$0xff]  ;;  %v13695_v50 = vmul.f32 %v13073_v1, %v13303_v58 }
 0x74b   :  { %v17273_v2 = vsub.f32 %v17272_v7, %v12937_v5  ;;  %v13573_v7 = vmul.f32 %v13073_v1, %v13123_v63  ;;  %v13595_v63 = vmul.f32 %v13073_v1, %v13159_v32  ;;  %v13619_v32 = vmul.f32 %v13073_v1, %v13189_v16 }
 0x74c   :  { %17261 = vst [vmem:[#allocation6_spill] sm:$0xff] %v13469_v61  ;;  %v17268_v61 = vld [vmem:[#allocation27_spill] sm:$0xff]  ;;  %v13641_v16 = vmul.f32 %v13073_v1, %v13224_v26  ;;  %v13663_v26 = vmul.f32 %v13073_v1, %v13256_v37  ;;  %v13685_v37 = vmul.f32 %v13073_v1, %v13288_v56  ;;  %v13709_v56 = vmul.f32 %v13073_v1, %v13321_v6 }
 0x74d   :  { %17267 = vst [vmem:[#allocation12_spill] sm:$0xff] %v13489_v27  ;;  %v17269_v4 = vsub.f32 %v17268_v61, %v12937_v5  ;;  %v13509_v53 = vmul.f32 %v13088_v52, %v17273_v2  ;;  %v17274_v27 = vld [vmem:[#allocation30_spill] sm:$0xff]  ;;  %v13717_v58 = vmul.f32 %v13073_v1, %v13333_v18  ;;  %v13731_v6 = vmul.f32 %v13073_v1, %v13353_v54 }
 0x74e   :  { %v17275_v61 = vsub.f32 %v17274_v27, %v12937_v5  ;;  %v13565_v5 = vmul.f32 %v13073_v1, %v13111_v47  ;;  %v13577_v27 = vmul.f32 %v13073_v1, %v13131_v48  ;;  %v13587_v47 = vmul.f32 %v13073_v1, %v13143_v34 }
 0x74f   :  { %v13495_v22 = vmul.f32 %v13088_v52, %v17269_v4  ;;  %v13601_v48 = vmul.f32 %v13073_v1, %v13165_v20  ;;  %v13609_v34 = vmul.f32 %v13073_v1, %v13177_v31  ;;  %v13623_v20 = vmul.f32 %v13073_v1, %v13195_v12 }
 0x750   :  { %v13515_v4 = vmul.f32 %v13088_v52, %v17275_v61  ;;  %v13569_v52 = vmul.f32 %v13073_v1, %v13117_v24  ;;  %v13591_v24 = vmul.f32 %v13073_v1, %v13149_v60  ;;  %v13613_v60 = vmul.f32 %v13073_v1, %v13183_v42 }
 0x751   :  { %v13631_v31 = vmul.f32 %v13073_v1, %v13210_v39  ;;  %v13637_v42 = vmul.f32 %v13073_v1, %v13216_v35  ;;  %v13645_v12 = vmul.f32 %v13073_v1, %v13230_v33  ;;  %v13655_v39 = vmul.f32 %v13073_v1, %v13242_v15 }
 0x752   :  { %v13659_v35 = vmul.f32 %v13073_v1, %v13250_v10  ;;  %v13667_v33 = vmul.f32 %v13073_v1, %v13262_v51  ;;  %v13677_v15 = vmul.f32 %v13073_v1, %v13276_v62  ;;  %v13681_v10 = vmul.f32 %v13073_v1, %v13282_v29 }
 0x753   :  { %v13691_v51 = vmul.f32 %v13073_v1, %v13297_v44  ;;  %v13699_v62 = vmul.f32 %v13073_v1, %v13309_v59  ;;  %v13703_v29 = vmul.f32 %v13073_v1, %v13315_v14  ;;  %v13713_v44 = vmul.f32 %v13073_v1, %v13327_v0 }
 0x754   :  { %v13721_v59 = vmul.f32 %v13073_v1, %v13339_v9  ;;  %v13727_v14 = vmul.f32 %v13073_v1, %v13347_v25  ;;  %v13735_v0 = vmul.f32 %v13073_v1, %v13359_v45  ;;  %v13739_v18 = vmul.f32 %v13073_v1, %v13365_v13 }
 0x755   :  { %v13745_v9 = vmul.f32 %v13073_v1, %v13373_v38  ;;  %v13749_v25 = vmul.f32 %v13073_v1, %v13379_v21  ;;  %v13753_v54 = vmul.f32 %v13073_v1, %v13385_v46  ;;  %v13757_v45 = vmul.f32 %v13073_v1, %v13391_v49  ;;  %v17277_v38 = vld [vmem:[#allocation8_spill] sm:$0xff]  ;;  %v17278_v21 = vld [vmem:[#allocation11_spill] sm:$0xff]  ;;  %v17280_v46 = vld [vmem:[#allocation13_spill] sm:$0xff] }
 0x756   :  { %v13763_v13 = vmul.f32 %v13073_v1, %v13399_v23  ;;  %v13767_v28 = vmul.f32 %v13073_v1, %v17277_v38  ;;  %v13771_v2 = vmul.f32 %v13073_v1, %v17278_v21  ;;  %v13775_v61 = vmul.f32 %v13073_v1, %v17280_v46  ;;  %v17281_v23 = vld [vmem:[#allocation15_spill] sm:$0xff]  ;;  %v17284_v21 = vld [vmem:[#allocation17_spill] sm:$0xff] }
 0x757   :  { %v13781_v49 = vmul.f32 %v13073_v1, %v13425_v17  ;;  %v13789_v38 = vmul.f32 %v13073_v1, %v13437_v8  ;;  %v13799_v46 = vmul.f32 %v13073_v1, %v13451_v11  ;;  %v13803_v17 = vmul.f32 %v13073_v1, %v13457_v43  ;;  %v17288_v8 = vld [vmem:[#allocation6_spill] sm:$0xff]  ;;  %v17289_v11 = vld [vmem:[#allocation4_spill] sm:$0xff] }
 0x758   :  { %17276 = vst [vmem:[#allocation22_spill] sm:$0xff] %v13763_v13  ;;  %v13785_v13 = vmul.f32 %v13073_v1, %v17281_v23  ;;  %v17287_v23 = vld [vmem:[#allocation5_spill] sm:$0xff]  ;;  %v17290_v43 = vld [vmem:[#allocation12_spill] sm:$0xff] }
 0x759   :  { %17279 = vst [vmem:[#allocation23_spill] sm:$0xff] %v13771_v2  ;;  %v13793_v2 = vmul.f32 %v13073_v1, %v17284_v21  ;;  %v13817_v21 = vmul.f32 %v13073_v1, %v13477_v36  ;;  %v13839_v36 = vmul.f32 %v13073_v1, %v13509_v53 }
 0x75a   :  { %17282 = vst [vmem:[#allocation24_spill] sm:$0xff] %v13785_v13  ;;  %v13807_v13 = vmul.f32 %v13073_v1, %v17287_v23  ;;  %v13829_v23 = vmul.f32 %v13073_v1, %v13495_v22 }
 0x75b   :  { %17283 = vst [vmem:[#allocation25_spill] sm:$0xff] %v13789_v38  ;;  %v13811_v38 = vmul.f32 %v13073_v1, %v17288_v8  ;;  %v13835_v8 = vmul.f32 %v13073_v1, %v13503_v41 }
 0x75c   :  { %17285 = vst [vmem:[#allocation9_spill] sm:$0xff] %v13799_v46  ;;  %v13821_v46 = vmul.f32 %v13073_v1, %v17289_v11  ;;  %v13843_v11 = vmul.f32 %v13073_v1, %v13515_v4 }
 0x75d   :  { %17286 = vst [vmem:[#allocation10_spill] sm:$0xff] %v13803_v17  ;;  %v13825_v17 = vmul.f32 %v13073_v1, %v17290_v43  ;;  %v17293_v1 = vld [vmem:[#allocation7_spill] sm:$0xff]  ;;  %v4595_v43 = vld [vmem:[#allocation3 + $0x9] sm:$0xff] }
 0x75e   :  { %17291 = vst [vmem:[#allocation14_spill] sm:$0xff] %v13839_v36  ;;  %v4188_v22 = vadd.f32 %v17293_v1, %v13573_v7  ;;  %v4187_v53 = vadd.f32 %v17293_v1, %v13569_v52  ;;  %v4186_v4 = vadd.f32 %v17293_v1, %v13565_v5  ;;  %v4189_v7 = vadd.f32 %v17293_v1, %v13577_v27 }
 0x75f   :  { %17292 = vst [vmem:[#allocation16_spill] sm:$0xff] %v13843_v11  ;;  %4724 = vrot.lane.b32.xlu0 %v4595_v43, %s9516_s28  ;;  %v4191_v5 = vadd.f32 %v17293_v1, %v13587_v47  ;;  %v4192_v11 = vadd.f32 %v17293_v1, %v13591_v24  ;;  %v4193_v36 = vadd.f32 %v17293_v1, %v13595_v63 }
 0x760   :  { %v4252_v41 = vmax.f32 %v4188_v22, 0.0  ;;  %v4190_v22 = vadd.f32 %v17293_v1, %v13583_v40  ;;  %v4251_v52 = vmax.f32 %v4187_v53, 0.0  ;;  %v4250_v27 = vmax.f32 %v4186_v4, 0.0 }
 0x761   :  { %v4253_v40 = vmax.f32 %v4189_v7, 0.0  ;;  %v4195_v24 = vadd.f32 %v17293_v1, %v13605_v57  ;;  %v4255_v53 = vmax.f32 %v4191_v5, 0.0  ;;  %v4196_v63 = vadd.f32 %v17293_v1, %v13609_v34 }
 0x762   :  { %4404 = vst.msk [vmem:[#allocation3 + $0x31] sm:$0xff] %vm91_vm0, %v4252_v41  ;;  %v4194_v41 = vadd.f32 %v17293_v1, %v13601_v48  ;;  %v4254_v47 = vmax.f32 %v4190_v22, 0.0  ;;  %v4256_v4 = vmax.f32 %v4192_v11, 0.0  ;;  %v4197_v7 = vadd.f32 %v17293_v1, %v13613_v60 }
 0x763   :  { %4403 = vst.msk [vmem:[#allocation3 + $0x21] sm:$0xff] %vm91_vm0, %v4251_v52  ;;  %v4257_v48 = vmax.f32 %v4193_v36, 0.0  ;;  %v4198_v43 = vadd.f32 %v17293_v1, %v13619_v32  ;;  %v4199_v34 = vadd.f32 %v17293_v1, %v13623_v20  ;;  %v4259_v11 = vmax.f32 %v4195_v24, 0.0 }
 0x764   :  { %4402 = vst.msk [vmem:[#allocation3 + $0x19] sm:$0xff] %vm91_vm0, %v4250_v27  ;;  %v4258_v57 = vmax.f32 %v4194_v41, 0.0  ;;  %v4200_v60 = vadd.f32 %v17293_v1, %v13627_v19  ;;  %v4260_v36 = vmax.f32 %v4196_v63, 0.0  ;;  %v4201_v32 = vadd.f32 %v17293_v1, %v13631_v31 }
 0x765   :  { %4405 = vst.msk [vmem:[#allocation3 + $0x39] sm:$0xff] %vm91_vm0, %v4253_v40  ;;  %v4261_v22 = vmax.f32 %v4197_v7, 0.0  ;;  %v4202_v5 = vadd.f32 %v17293_v1, %v13637_v42  ;;  %v4262_v20 = vmax.f32 %v4198_v43, 0.0  ;;  %v4203_v27 = vadd.f32 %v17293_v1, %v13641_v16 }
 0x766   :  { %4406 = vst.msk [vmem:[#allocation3 + $0x49] sm:$0xff] %vm91_vm0, %v4254_v47  ;;  %v4263_v19 = vmax.f32 %v4199_v34, 0.0  ;;  %v4204_v31 = vadd.f32 %v17293_v1, %v13645_v12  ;;  %v4264_v41 = vmax.f32 %v4200_v60, 0.0  ;;  %v4205_v42 = vadd.f32 %v17293_v1, %v13649_v3 }
 0x767   :  { %4407 = vst.msk [vmem:[#allocation3 + $0x51] sm:$0xff] %vm91_vm0, %v4255_v53  ;;  %v4265_v47 = vmax.f32 %v4201_v32, 0.0  ;;  %v4206_v16 = vadd.f32 %v17293_v1, %v13655_v39  ;;  %v4266_v24 = vmax.f32 %v4202_v5, 0.0  ;;  %v4207_v12 = vadd.f32 %v17293_v1, %v13659_v35 }
 0x768   :  { %4408 = vst.msk [vmem:[#allocation3 + $0x61] sm:$0xff] %vm91_vm0, %v4256_v4  ;;  %v4267_v53 = vmax.f32 %v4203_v27, 0.0  ;;  %v4208_v63 = vadd.f32 %v17293_v1, %v13663_v26  ;;  %v4268_v4 = vmax.f32 %v4204_v31, 0.0  ;;  %v4209_v3 = vadd.f32 %v17293_v1, %v13667_v33 }
 0x769   :  { %v4598_v30 = vld [vmem:[#allocation3 + $0x31] sm:$0xff]  ;;  %4409 = vst.msk [vmem:[#allocation3 + $0x69] sm:$0xff] %vm91_vm0, %v4257_v48  ;;  %v4269_v7 = vmax.f32 %v4205_v42, 0.0  ;;  %v4210_v39 = vadd.f32 %v17293_v1, %v13673_v55  ;;  %v4270_v48 = vmax.f32 %v4206_v16, 0.0  ;;  %v4211_v35 = vadd.f32 %v17293_v1, %v13677_v15 }
 0x76a   :  { %4730 = vrot.lane.b32.xlu0 %v4598_v30, %s9516_s28  ;;  %v4597_v52 = vld [vmem:[#allocation3 + $0x21] sm:$0xff]  ;;  %4410 = vst.msk [vmem:[#allocation3 + $0x79] sm:$0xff] %vm91_vm0, %v4258_v57  ;;  %v4271_v30 = vmax.f32 %v4207_v12, 0.0  ;;  %v4212_v26 = vadd.f32 %v17293_v1, %v13681_v10  ;;  %v4272_v43 = vmax.f32 %v4208_v63, 0.0  ;;  %v4213_v33 = vadd.f32 %v17293_v1, %v13685_v37  ;;  %v17294_v12 = vld [vmem:[#allocation22_spill] sm:$0xff] }
 0x76b   :  { %4728 = vrot.lane.b32.xlu2 %v4597_v52, %s9516_s28  ;;  %v4596_v40 = vld [vmem:[#allocation3 + $0x19] sm:$0xff]  ;;  %4411 = vst.msk [vmem:[#allocation3 + $0x81] sm:$0xff] %vm91_vm0, %v4259_v11  ;;  %v4273_v57 = vmax.f32 %v4209_v3, 0.0  ;;  %v4214_v55 = vadd.f32 %v17293_v1, %v13691_v51  ;;  %v4274_v34 = vmax.f32 %v4210_v39, 0.0  ;;  %v4215_v15 = vadd.f32 %v17293_v1, %v13695_v50 }
 0x76c   :  { %4726 = vrot.lane.b32.xlu1 %v4596_v40, %s9516_s28  ;;  %4412 = vst.msk [vmem:[#allocation3 + $0x91] sm:$0xff] %vm91_vm0, %v4260_v36  ;;  %v4275_v11 = vmax.f32 %v4211_v35, 0.0  ;;  %v4216_v10 = vadd.f32 %v17293_v1, %v13699_v62  ;;  %v4276_v60 = vmax.f32 %v4212_v26, 0.0  ;;  %v4217_v37 = vadd.f32 %v17293_v1, %v13703_v29 }
 0x76d   :  { %4413 = vst.msk [vmem:[#allocation3 + $0x99] sm:$0xff] %vm91_vm0, %v4261_v22  ;;  %v4277_v36 = vmax.f32 %v4213_v33, 0.0  ;;  %v4218_v51 = vadd.f32 %v17293_v1, %v13709_v56  ;;  %v4278_v32 = vmax.f32 %v4214_v55, 0.0  ;;  %v4219_v50 = vadd.f32 %v17293_v1, %v13713_v44  ;;  %v4600_v40 = vld [vmem:[#allocation3 + $0x49] sm:$0xff] }
 0x76e   :  { %4414 = vst.msk [vmem:[#allocation3 + $0xa9] sm:$0xff] %vm91_vm0, %v4262_v20  ;;  %v4279_v22 = vmax.f32 %v4215_v15, 0.0  ;;  %v4220_v62 = vadd.f32 %v17293_v1, %v13717_v58  ;;  %v4280_v5 = vmax.f32 %v4216_v10, 0.0  ;;  %v4221_v29 = vadd.f32 %v17293_v1, %v13721_v59  ;;  %v4601_v59 = vld [vmem:[#allocation3 + $0x51] sm:$0xff] }
 0x76f   :  { %4415 = vst.msk [vmem:[#allocation3 + $0xb1] sm:$0xff] %vm91_vm0, %v4263_v19  ;;  %v4281_v52 = vmax.f32 %v4217_v37, 0.0  ;;  %v4222_v56 = vadd.f32 %v17293_v1, %v13727_v14  ;;  %v4282_v20 = vmax.f32 %v4218_v51, 0.0  ;;  %v4223_v44 = vadd.f32 %v17293_v1, %v13731_v6  ;;  %v4599_v6 = vld [vmem:[#allocation3 + $0x39] sm:$0xff]  ;;  %v17299_v37 = vld [vmem:[#allocation10_spill] sm:$0xff] }
 0x770   :  { %4416 = vst.msk [vmem:[#allocation3 + $0xc1] sm:$0xff] %vm91_vm0, %v4264_v41  ;;  %v4283_v27 = vmax.f32 %v4219_v50, 0.0  ;;  %v4224_v58 = vadd.f32 %v17293_v1, %v13735_v0  ;;  %v4284_v19 = vmax.f32 %v4220_v62, 0.0  ;;  %v4225_v14 = vadd.f32 %v17293_v1, %v13739_v18  ;;  %v4603_v39 = vld [vmem:[#allocation3 + $0x69] sm:$0xff] }
 0x771   :  { %4417 = vst.msk [vmem:[#allocation3 + $0xc9] sm:$0xff] %vm91_vm0, %v4265_v47  ;;  %v4285_v31 = vmax.f32 %v4221_v29, 0.0  ;;  %v4226_v41 = vadd.f32 %v17293_v1, %v13745_v9  ;;  %v4286_v0 = vmax.f32 %v4222_v56, 0.0  ;;  %v4227_v42 = vadd.f32 %v17293_v1, %v13749_v25 }
 0x772   :  { %4418 = vst.msk [vmem:[#allocation3 + $0xd9] sm:$0xff] %vm91_vm0, %v4266_v24  ;;  %4736 = vrot.lane.b32.xlu0 %v4601_v59, %s9516_s28  ;;  %v4287_v18 = vmax.f32 %v4223_v44, 0.0  ;;  %v4228_v47 = vadd.f32 %v17293_v1, %v13753_v54  ;;  %v4288_v16 = vmax.f32 %v4224_v58, 0.0  ;;  %v4229_v9 = vadd.f32 %v17293_v1, %v13757_v45  ;;  %v17295_v54 = vld [vmem:[#allocation23_spill] sm:$0xff]  ;;  %v4605_v29 = vld [vmem:[#allocation3 + $0x81] sm:$0xff] }
 0x773   :  { %4419 = vst.msk [vmem:[#allocation3 + $0xe1] sm:$0xff] %vm91_vm0, %v4267_v53  ;;  %4734 = vrot.lane.b32.xlu2 %v4600_v40, %s9516_s28  ;;  %v4289_v24 = vmax.f32 %v4225_v14, 0.0  ;;  %v4230_v53 = vadd.f32 %v17293_v1, %v17294_v12  ;;  %v4290_v63 = vmax.f32 %v4226_v41, 0.0  ;;  %v4231_v25 = vadd.f32 %v17293_v1, %v13767_v28  ;;  %v4604_v45 = vld [vmem:[#allocation3 + $0x79] sm:$0xff]  ;;  %v4602_v28 = vld [vmem:[#allocation3 + $0x61] sm:$0xff] }
 0x774   :  { %4420 = vst.msk [vmem:[#allocation3 + $0xf1] sm:$0xff] %vm91_vm0, %v4268_v4  ;;  %4732 = vrot.lane.b32.xlu1 %v4599_v6, %s9516_s28  ;;  %v4291_v4 = vmax.f32 %v4227_v42, 0.0  ;;  %v4232_v3 = vadd.f32 %v17293_v1, %v17295_v54  ;;  %v4293_v35 = vmax.f32 %v4229_v9, 0.0  ;;  %v4241_v62 = vadd.f32 %v17293_v1, %v13811_v38 }
 0x775   :  { %4421 = vst.msk [vmem:[#allocation3 + $0xf9] sm:$0xff] %vm91_vm0, %v4269_v7  ;;  %v4292_v7 = vmax.f32 %v4228_v47, 0.0  ;;  %v4294_v26 = vmax.f32 %v4230_v53, 0.0  ;;  %v4243_v56 = vadd.f32 %v17293_v1, %v13821_v46  ;;  %v4246_v58 = vadd.f32 %v17293_v1, %v13835_v8  ;;  %v17300_v46 = vld [vmem:[#allocation14_spill] sm:$0xff]  ;;  %v14097_v47 = vld [vmem:[#allocation3 + $0x48] sm:$0xff] }
 0x776   :  { %4422 = vst.msk [vmem:[#allocation3 + $0x109] sm:$0xff] %vm91_vm0, %v4270_v48  ;;  %v4233_v48 = vadd.f32 %v17293_v1, %v13775_v61  ;;  %v4295_v61 = vmax.f32 %v4231_v25, 0.0  ;;  %v4247_v59 = vadd.f32 %v17293_v1, %v17300_v46  ;;  %v4609_v6 = vld [vmem:[#allocation3 + $0xb1] sm:$0xff]  ;;  %v4608_v8 = vld [vmem:[#allocation3 + $0xa9] sm:$0xff] }
 0x777   :  { %4423 = vst.msk [vmem:[#allocation3 + $0x111] sm:$0xff] %vm91_vm0, %v4271_v30  ;;  %v4234_v30 = vadd.f32 %v17293_v1, %v13781_v49  ;;  %v4237_v49 = vadd.f32 %v17293_v1, %v13793_v2  ;;  %v4607_v2 = vld [vmem:[#allocation3 + $0x99] sm:$0xff]  ;;  %v4307_v40 = vmax.f32 %v4243_v56, 0.0  ;;  %v14106_v53 = vld [vmem:[#allocation3 + $0x30] sm:$0xff] }
 0x778   :  { %4424 = vst.msk [vmem:[#allocation3 + $0x121] sm:$0xff] %vm91_vm0, %v4272_v43  ;;  %v17296_v43 = vld [vmem:[#allocation24_spill] sm:$0xff]  ;;  %v4297_v15 = vmax.f32 %v4233_v48, 0.0  ;;  %v4311_v42 = vmax.f32 %v4247_v59, 0.0  ;;  %v4611_v12 = vld [vmem:[#allocation3 + $0xc9] sm:$0xff]  ;;  %v14115_v25 = vld [vmem:[#allocation3 + $0x18] sm:$0xff] }
 0x779   :  { %4425 = vst.msk [vmem:[#allocation3 + $0x129] sm:$0xff] %vm91_vm0, %v4273_v57  ;;  %v4235_v33 = vadd.f32 %v17293_v1, %v17296_v43  ;;  %v17297_v57 = vld [vmem:[#allocation25_spill] sm:$0xff]  ;;  %v4612_v9 = vld [vmem:[#allocation3 + $0xd9] sm:$0xff]  ;;  %v14123_v54 = vld [vmem:[#allocation3 + $0xb0] sm:$0xff] }
 0x77a   :  { %4426 = vst.msk [vmem:[#allocation3 + $0x139] sm:$0xff] %vm91_vm0, %v4274_v34  ;;  %4742 = vrot.lane.b32.xlu0 %v4604_v45, %s9516_s28  ;;  %v4236_v55 = vadd.f32 %v17293_v1, %v17297_v57  ;;  %v4296_v34 = vmax.f32 %v4232_v3, 0.0  ;;  %v14127_v3 = vld [vmem:[#allocation3 + $0x38] sm:$0xff]  ;;  %v14160_v57 = vld [vmem:[#allocation3 + $0xc0] sm:$0xff] }
 0x77b   :  { %4427 = vst.msk [vmem:[#allocation3 + $0x141] sm:$0xff] %vm91_vm0, %v4275_v11  ;;  %4740 = vrot.lane.b32.xlu2 %v4603_v39, %s9516_s28  ;;  %v17298_v11 = vld [vmem:[#allocation9_spill] sm:$0xff]  ;;  %v4299_v51 = vmax.f32 %v4235_v33, 0.0  ;;  %v4614_v48 = vld [vmem:[#allocation3 + $0xf1] sm:$0xff] }
 0x77c   :  { %4428 = vst.msk [vmem:[#allocation3 + $0x151] sm:$0xff] %vm91_vm0, %v4276_v60  ;;  %4738 = vrot.lane.b32.xlu1 %v4602_v28, %s9516_s28  ;;  %v4238_v10 = vadd.f32 %v17293_v1, %v17298_v11  ;;  %v4298_v60 = vmax.f32 %v4234_v30, 0.0  ;;  %v4300_v50 = vmax.f32 %v4236_v55, 0.0  ;;  %v4615_v39 = vld [vmem:[#allocation3 + $0xf9] sm:$0xff]  ;;  %v14170_v11 = vld [vmem:[#allocation3 + $0xa8] sm:$0xff] }
 0x77d   :  { %4429 = vst.msk [vmem:[#allocation3 + $0x159] sm:$0xff] %vm91_vm0, %v4277_v36  ;;  %v4239_v36 = vadd.f32 %v17293_v1, %v17299_v37  ;;  %v4616_v45 = vld [vmem:[#allocation3 + $0x109] sm:$0xff]  ;;  %v14142_v28 = vld [vmem:[#allocation3 + $0xd8] sm:$0xff] }
 0x77e   :  { %4430 = vst.msk [vmem:[#allocation3 + $0x169] sm:$0xff] %vm91_vm0, %v4278_v32  ;;  %v4240_v32 = vadd.f32 %v17293_v1, %v13807_v13  ;;  %v4302_v13 = vmax.f32 %v4238_v10, 0.0  ;;  %v14148_v43 = vld [vmem:[#allocation3 + $0x98] sm:$0xff]  ;;  %v14175_v10 = vld [vmem:[#allocation3 + $0xe0] sm:$0xff]  ;;  %v14183_v37 = vld [vmem:[#allocation3 + $0xc8] sm:$0xff] }
 0x77f   :  { %4431 = vst.msk [vmem:[#allocation3 + $0x171] sm:$0xff] %vm91_vm0, %v4279_v22  ;;  %v4606_v22 = vld [vmem:[#allocation3 + $0x91] sm:$0xff]  ;;  %v4303_v38 = vmax.f32 %v4239_v36, 0.0  ;;  %v14187_v36 = vld [vmem:[#allocation3 + $0x108] sm:$0xff] }
 0x780   :  { %4432 = vst.msk [vmem:[#allocation3 + $0x181] sm:$0xff] %vm91_vm0, %v4280_v5  ;;  %v4301_v5 = vmax.f32 %v4237_v49, 0.0  ;;  %v4304_v44 = vmax.f32 %v4240_v32, 0.0  ;;  %v14152_v33 = vld [vmem:[#allocation3 + $0xf8] sm:$0xff]  ;;  %v4619_v55 = vld [vmem:[#allocation3 + $0x129] sm:$0xff]  ;;  %v14164_v49 = vld [vmem:[#allocation3 + $0x120] sm:$0xff] }
 0x781   :  { %4433 = vst.msk [vmem:[#allocation3 + $0x189] sm:$0xff] %vm91_vm0, %v4281_v52  ;;  %v4242_v52 = vadd.f32 %v17293_v1, %v13817_v21  ;;  %v4245_v21 = vadd.f32 %v17293_v1, %v13829_v23  ;;  %v4610_v23 = vld [vmem:[#allocation3 + $0xc1] sm:$0xff]  ;;  %v4723_v30 = vpop.permute.xlu2 %4722  ;;  %v14195_v32 = vld [vmem:[#allocation3 + $0xf0] sm:$0xff] }
 0x782   :  { %4434 = vst.msk [vmem:[#allocation3 + $0x1c9] sm:$0xff] %vm91_vm0, %v4282_v20  ;;  %4748 = vrot.lane.b32.xlu0 %v4607_v2, %s9516_s28  ;;  %v4244_v20 = vadd.f32 %v17293_v1, %v13825_v17  ;;  %v17301_v17 = vld [vmem:[#allocation16_spill] sm:$0xff] }
 0x783   :  { %4435 = vst.msk [vmem:[#allocation3 + $0x1d1] sm:$0xff] %vm91_vm0, %v4283_v27  ;;  %4746 = vrot.lane.b32.xlu2 %v4606_v22, %s9516_s28  ;;  %v4305_v27 = vmax.f32 %v4241_v62, 0.0  ;;  %v4248_v14 = vadd.f32 %v17293_v1, %v17301_v17  ;;  %v4309_v41 = vmax.f32 %v4245_v21, 0.0  ;;  %v4621_v2 = vld [vmem:[#allocation3 + $0x141] sm:$0xff]  ;;  %v4620_v62 = vld [vmem:[#allocation3 + $0x139] sm:$0xff] }
 0x784   :  { %4436 = vst.msk [vmem:[#allocation3 + $0x1e1] sm:$0xff] %vm91_vm0, %v4284_v19  ;;  %4744 = vrot.lane.b32.xlu1 %v4605_v29, %s9516_s28  ;;  %v4306_v19 = vmax.f32 %v4242_v52, 0.0  ;;  %v14199_v22 = vld [vmem:[#allocation3 + $0x128] sm:$0xff]  ;;  %v14210_v29 = vld [vmem:[#allocation3 + $0x150] sm:$0xff] }
 0x785   :  { %4437 = vst.msk [vmem:[#allocation3 + $0x1e9] sm:$0xff] %vm91_vm0, %v4285_v31  ;;  %v4308_v31 = vmax.f32 %v4244_v20, 0.0  ;;  %v4312_v1 = vmax.f32 %v4248_v14, 0.0  ;;  %v14230_v20 = vld [vmem:[#allocation3 + $0x158] sm:$0xff]  ;;  %v4624_v21 = vld [vmem:[#allocation3 + $0x169] sm:$0xff] }
 0x786   :  { %4438 = vst.msk [vmem:[#allocation3 + $0x1f9] sm:$0xff] %vm91_vm0, %v4286_v0  ;;  %v4310_v0 = vmax.f32 %v4246_v58, 0.0  ;;  %v14222_v56 = vld [vmem:[#allocation3 + $0x170] sm:$0xff]  ;;  %v4627_v14 = vld [vmem:[#allocation3 + $0x1b9] sm:$0xff] }
 0x787   :  { %4439 = vst.msk [vmem:[#allocation3 + $0x201] sm:$0xff] %vm91_vm0, %v4287_v18  ;;  %v14094_v18 = vld [vmem:[#allocation3 + $0x20] sm:$0xff] }
 0x788   :  { %4440 = vst.msk [vmem:[#allocation3 + $0x211] sm:$0xff] %vm91_vm0, %v4288_v16  ;;  %v4613_v16 = vld [vmem:[#allocation3 + $0xe1] sm:$0xff] }
 0x789   :  { %4441 = vst.msk [vmem:[#allocation3 + $0x219] sm:$0xff] %vm91_vm0, %v4289_v24  ;;  %v14100_v24 = vld [vmem:[#allocation3 + $0x68] sm:$0xff] }
 0x78a   :  { %4442 = vst.msk [vmem:[#allocation3 + $0x229] sm:$0xff] %vm91_vm0, %v4290_v63  ;;  %4754 = vrot.lane.b32.xlu0 %v4610_v23, %s9516_s28  ;;  %v14111_v63 = vld [vmem:[#allocation3 + $0x90] sm:$0xff]  ;;  %v14238_v58 = vld [vmem:[#allocation3 + $0x1c8] sm:$0xff] }
 0x78b   :  { %4443 = vst.msk [vmem:[#allocation3 + $0x231] sm:$0xff] %vm91_vm0, %v4291_v4  ;;  %4752 = vrot.lane.b32.xlu2 %v4609_v6, %s9516_s28  ;;  %v14119_v4 = vld [vmem:[#allocation3 + $0x50] sm:$0xff]  ;;  %v14214_v52 = vld [vmem:[#allocation3 + $0x1e0] sm:$0xff] }
 0x78c   :  { %4444 = vst.msk [vmem:[#allocation3 + $0x241] sm:$0xff] %vm91_vm0, %v4292_v7  ;;  %4750 = vrot.lane.b32.xlu1 %v4608_v8, %s9516_s28  ;;  %v14131_v7 = vld [vmem:[#allocation3 + $0x78] sm:$0xff]  ;;  %v14248_v59 = vld [vmem:[#allocation3 + $0x1e8] sm:$0xff] }
 0x78d   :  { %4445 = vst.msk [vmem:[#allocation3 + $0x249] sm:$0xff] %vm91_vm0, %v4293_v35  ;;  %v4466_v35 = vld [vmem:[#allocation3] sm:$0xff]  ;;  %v4626_v23 = vld [vmem:[#allocation3 + $0x1b1] sm:$0xff] }
 0x78e   :  { %4446 = vst.msk [vmem:[#allocation3 + $0x259] sm:$0xff] %vm91_vm0, %v4294_v26  ;;  %v14145_v26 = vld [vmem:[#allocation3 + $0x60] sm:$0xff] }
 0x78f   :  { %4447 = vst.msk [vmem:[#allocation3 + $0x261] sm:$0xff] %vm91_vm0, %v4295_v61  ;;  %v14156_v61 = vld [vmem:[#allocation3 + $0x80] sm:$0xff]  ;;  %v14259_v6 = vld [vmem:[#allocation3 + $0x210] sm:$0xff] }
 0x790   :  { %4448 = vst.msk [vmem:[#allocation3 + $0x271] sm:$0xff] %vm91_vm0, %v4296_v34  ;;  %v4618_v34 = vld [vmem:[#allocation3 + $0x121] sm:$0xff] }
 0x791   :  { %4449 = vst.msk [vmem:[#allocation3 + $0x279] sm:$0xff] %vm91_vm0, %v4297_v15  ;;  %v4617_v15 = vld [vmem:[#allocation3 + $0x111] sm:$0xff]  ;;  %v14243_v46 = vld [vmem:[#allocation3 + $0x228] sm:$0xff] }
 0x792   :  { %4450 = vst.msk [vmem:[#allocation3 + $0x289] sm:$0xff] %vm91_vm0, %v4298_v60  ;;  %4760 = vrot.lane.b32.xlu0 %v4613_v16, %s9516_s28  ;;  %v14179_v60 = vld [vmem:[#allocation3 + $0x140] sm:$0xff]  ;;  %v14282_v16 = vld [vmem:[#allocation3 + $0x218] sm:$0xff] }
 0x793   :  { %4451 = vst.msk [vmem:[#allocation3 + $0x291] sm:$0xff] %vm91_vm0, %v4299_v51  ;;  %4758 = vrot.lane.b32.xlu2 %v4612_v9, %s9516_s28  ;;  %v14191_v51 = vld [vmem:[#allocation3 + $0x168] sm:$0xff] }
 0x794   :  { %4452 = vst.msk [vmem:[#allocation3 + $0x2a1] sm:$0xff] %vm91_vm0, %v4300_v50  ;;  %4756 = vrot.lane.b32.xlu1 %v4611_v12, %s9516_s28  ;;  %v4622_v50 = vld [vmem:[#allocation3 + $0x151] sm:$0xff]  ;;  %v14252_v17 = vld [vmem:[#allocation3 + $0x248] sm:$0xff] }
 0x795   :  { %4453 = vst.msk [vmem:[#allocation3 + $0x2a9] sm:$0xff] %vm91_vm0, %v4301_v5  ;;  %v14205_v5 = vld [vmem:[#allocation3 + $0x110] sm:$0xff]  ;;  %v14286_v9 = vld [vmem:[#allocation3 + $0x258] sm:$0xff] }
 0x796   :  { %4454 = vst.msk [vmem:[#allocation3 + $0x2b9] sm:$0xff] %vm91_vm0, %v4302_v13  ;;  %v14218_v13 = vld [vmem:[#allocation3 + $0x138] sm:$0xff] }
 0x797   :  { %4455 = vst.msk [vmem:[#allocation3 + $0x2c1] sm:$0xff] %vm91_vm0, %v4303_v38  ;;  %v14226_v38 = vld [vmem:[#allocation3 + $0x200] sm:$0xff]  ;;  %v14263_v8 = vld [vmem:[#allocation3 + $0x270] sm:$0xff] }
 0x798   :  { %4456 = vst.msk [vmem:[#allocation3 + $0x2d1] sm:$0xff] %vm91_vm0, %v4304_v44  ;;  %v4625_v44 = vld [vmem:[#allocation3 + $0x171] sm:$0xff] }
 0x799   :  { %4457 = vst.msk [vmem:[#allocation3 + $0x2d9] sm:$0xff] %vm91_vm0, %v4305_v27  ;;  %v4623_v27 = vld [vmem:[#allocation3 + $0x159] sm:$0xff] }
 0x79a   :  { %4458 = vst.msk [vmem:[#allocation3 + $0x2e9] sm:$0xff] %vm91_vm0, %v4306_v19  ;;  %4766 = vrot.lane.b32.xlu0 %v4616_v45, %s9516_s28  ;;  %v4467_v19 = vld [vmem:[#allocation3 + $0x8] sm:$0xff] }
 0x79b   :  { %4459 = vst.msk [vmem:[#allocation3 + $0x2f1] sm:$0xff] %vm91_vm0, %v4307_v40  ;;  %4764 = vrot.lane.b32.xlu2 %v4615_v39, %s9516_s28  ;;  %v4631_v45 = vld [vmem:[#allocation3 + $0x1e9] sm:$0xff]  ;;  %v4630_v39 = vld [vmem:[#allocation3 + $0x1e1] sm:$0xff] }
 0x79c   :  { %4460 = vst.msk [vmem:[#allocation3 + $0x301] sm:$0xff] %vm91_vm0, %v4308_v31  ;;  %4762 = vrot.lane.b32.xlu1 %v4614_v48, %s9516_s28  ;;  %v14255_v31 = vld [vmem:[#allocation3 + $0x1d0] sm:$0xff]  ;;  %v14296_v48 = vld [vmem:[#allocation3 + $0x240] sm:$0xff] }
 0x79d   :  { %4461 = vst.msk [vmem:[#allocation3 + $0x309] sm:$0xff] %vm91_vm0, %v4309_v41  ;;  %v4628_v41 = vld [vmem:[#allocation3 + $0x1c9] sm:$0xff]  ;;  %v14290_v12 = vld [vmem:[#allocation3 + $0x2b8] sm:$0xff] }
 0x79e   :  { %4462 = vst.msk [vmem:[#allocation3 + $0x319] sm:$0xff] %vm91_vm0, %v4310_v0  ;;  %v14269_v0 = vld [vmem:[#allocation3 + $0x1f8] sm:$0xff] }
 0x79f   :  { %4463 = vst.msk [vmem:[#allocation3 + $0x321] sm:$0xff] %vm91_vm0, %v4311_v42  ;;  %v14274_v42 = vld [vmem:[#allocation3 + $0x230] sm:$0xff] }
 0x7a0   :  { %4464 = vst.msk [vmem:[#allocation3 + $0x331] sm:$0xff] %vm91_vm0, %v4312_v1  ;;  %v14278_v1 = vld [vmem:[#allocation3 + $0x290] sm:$0xff] }
 0x7a1   :  { %4533 = vst.msk [vmem:[#allocation2 + $0x18] sm:$0xff] %vm91_vm0, %v14094_v18 }
 0x7a2   :  { %4536 = vst.msk [vmem:[#allocation2 + $0x30] sm:$0xff] %vm91_vm0, %v14097_v47  ;;  %4772 = vrot.lane.b32.xlu0 %v4619_v55, %s9516_s28  ;;  %v14302_v55 = vld [vmem:[#allocation3 + $0x278] sm:$0xff] }
 0x7a3   :  { %4539 = vst.msk [vmem:[#allocation2 + $0x48] sm:$0xff] %vm91_vm0, %v14100_v24  ;;  %4770 = vrot.lane.b32.xlu2 %v4618_v34, %s9516_s28  ;;  %v14306_v34 = vld [vmem:[#allocation3 + $0x2d8] sm:$0xff] }
 0x7a4   :  { %4534 = vst.msk [vmem:[#allocation2 + $0x20] sm:$0xff] %vm91_vm0, %v14106_v53  ;;  %4768 = vrot.lane.b32.xlu1 %v4617_v15, %s9516_s28  ;;  %v14310_v15 = vld [vmem:[#allocation3 + $0x260] sm:$0xff] }
 0x7a5   :  { %4542 = vst.msk [vmem:[#allocation2 + $0x60] sm:$0xff] %vm91_vm0, %v14111_v63 }
 0x7a6   :  { %4532 = vst.msk [vmem:[#allocation2 + $0x10] sm:$0xff] %vm91_vm0, %v14115_v25 }
 0x7a7   :  { %4537 = vst.msk [vmem:[#allocation2 + $0x38] sm:$0xff] %vm91_vm0, %v14119_v4 }
 0x7a8   :  { %4545 = vst.msk [vmem:[#allocation2 + $0x78] sm:$0xff] %vm91_vm0, %v14123_v54 }
 0x7a9   :  { %4535 = vst.msk [vmem:[#allocation2 + $0x28] sm:$0xff] %vm91_vm0, %v14127_v3 }
 0x7aa   :  { %4540 = vst.msk [vmem:[#allocation2 + $0x50] sm:$0xff] %vm91_vm0, %v14131_v7  ;;  %4778 = vrot.lane.b32.xlu0 %v4622_v50, %s9516_s28  ;;  %v14314_v50 = vld [vmem:[#allocation3 + $0x2a0] sm:$0xff] }
 0x7ab   :  { %4530 = vst.msk [vmem:[#allocation2] sm:$0xff] %vm91_vm0, %v4466_v35  ;;  %4776 = vrot.lane.b32.xlu2 %v4621_v2, %s9516_s28  ;;  %v4629_v35 = vld [vmem:[#allocation3 + $0x1d1] sm:$0xff]  ;;  %v14318_v2 = vld [vmem:[#allocation3 + $0x300] sm:$0xff] }
 0x7ac   :  { %4914 = vst.msk [vmem:[#allocation2] sm:$0xff] %vm476_vm1, %v4723_v30  ;;  %4774 = vrot.lane.b32.xlu1 %v4620_v62, %s9516_s28  ;;  %v14322_v62 = vld [vmem:[#allocation3 + $0x288] sm:$0xff] }
 0x7ad   :  { %4548 = vst.msk [vmem:[#allocation2 + $0x90] sm:$0xff] %vm91_vm0, %v14142_v28 }
 0x7ae   :  { %4538 = vst.msk [vmem:[#allocation2 + $0x40] sm:$0xff] %vm91_vm0, %v14145_v26 }
 0x7af   :  { %4543 = vst.msk [vmem:[#allocation2 + $0x68] sm:$0xff] %vm91_vm0, %v14148_v43 }
 0x7b0   :  { %4551 = vst.msk [vmem:[#allocation2 + $0xa8] sm:$0xff] %vm91_vm0, %v14152_v33 }
 0x7b1   :  { %4541 = vst.msk [vmem:[#allocation2 + $0x58] sm:$0xff] %vm91_vm0, %v14156_v61 }
 0x7b2   :  { %4546 = vst.msk [vmem:[#allocation2 + $0x80] sm:$0xff] %vm91_vm0, %v14160_v57  ;;  %4784 = vrot.lane.b32.xlu0 %v4625_v44, %s9516_s28  ;;  %v4634_v44 = vld [vmem:[#allocation3 + $0x211] sm:$0xff] }
 0x7b3   :  { %4554 = vst.msk [vmem:[#allocation2 + $0xc0] sm:$0xff] %vm91_vm0, %v14164_v49  ;;  %4782 = vrot.lane.b32.xlu2 %v4624_v21, %s9516_s28  ;;  %v4633_v21 = vld [vmem:[#allocation3 + $0x201] sm:$0xff] }
 0x7b4   :  { %4544 = vst.msk [vmem:[#allocation2 + $0x70] sm:$0xff] %vm91_vm0, %v14170_v11  ;;  %4780 = vrot.lane.b32.xlu1 %v4623_v27, %s9516_s28  ;;  %v14328_v27 = vld [vmem:[#allocation3 + $0x2c0] sm:$0xff] }
 0x7b5   :  { %4549 = vst.msk [vmem:[#allocation2 + $0x98] sm:$0xff] %vm91_vm0, %v14175_v10 }
 0x7b6   :  { %4557 = vst.msk [vmem:[#allocation2 + $0xd8] sm:$0xff] %vm91_vm0, %v14179_v60 }
 0x7b7   :  { %4547 = vst.msk [vmem:[#allocation2 + $0x88] sm:$0xff] %vm91_vm0, %v14183_v37 }
 0x7b8   :  { %4552 = vst.msk [vmem:[#allocation2 + $0xb0] sm:$0xff] %vm91_vm0, %v14187_v36 }
 0x7b9   :  { %4560 = vst.msk [vmem:[#allocation2 + $0xf0] sm:$0xff] %vm91_vm0, %v14191_v51 }
 0x7ba   :  { %4550 = vst.msk [vmem:[#allocation2 + $0xa0] sm:$0xff] %vm91_vm0, %v14195_v32  ;;  %4790 = vrot.lane.b32.xlu0 %v4628_v41, %s9516_s28  ;;  %v14340_v41 = vld [vmem:[#allocation3 + $0x2a8] sm:$0xff] }
 0x7bb   :  { %4555 = vst.msk [vmem:[#allocation2 + $0xc8] sm:$0xff] %vm91_vm0, %v14199_v22  ;;  %4788 = vrot.lane.b32.xlu2 %v4627_v14, %s9516_s28  ;;  %v14336_v14 = vld [vmem:[#allocation3 + $0x320] sm:$0xff] }
 0x7bc   :  { %4553 = vst.msk [vmem:[#allocation2 + $0xb8] sm:$0xff] %vm91_vm0, %v14205_v5  ;;  %4786 = vrot.lane.b32.xlu1 %v4626_v23, %s9516_s28 }
 0x7bd   :  { %4558 = vst.msk [vmem:[#allocation2 + $0xe0] sm:$0xff] %vm91_vm0, %v14210_v29 }
 0x7be   :  { %4566 = vst.msk [vmem:[#allocation2 + $0x120] sm:$0xff] %vm91_vm0, %v14214_v52 }
 0x7bf   :  { %4556 = vst.msk [vmem:[#allocation2 + $0xd0] sm:$0xff] %vm91_vm0, %v14218_v13 }
 0x7c0   :  { %4561 = vst.msk [vmem:[#allocation2 + $0xf8] sm:$0xff] %vm91_vm0, %v14222_v56 }
 0x7c1   :  { %4569 = vst.msk [vmem:[#allocation2 + $0x138] sm:$0xff] %vm91_vm0, %v14226_v38 }
 0x7c2   :  { %4559 = vst.msk [vmem:[#allocation2 + $0xe8] sm:$0xff] %vm91_vm0, %v14230_v20  ;;  %4796 = vrot.lane.b32.xlu0 %v4631_v45, %s9516_s28  ;;  %v14345_v45 = vld [vmem:[#allocation3 + $0x2e8] sm:$0xff] }
 0x7c3   :  { %4531 = vst.msk [vmem:[#allocation2 + $0x8] sm:$0xff] %vm91_vm0, %v4467_v19  ;;  %4794 = vrot.lane.b32.xlu2 %v4630_v39, %s9516_s28  ;;  %v4632_v19 = vld [vmem:[#allocation3 + $0x1f9] sm:$0xff] }
 0x7c4   :  { %4564 = vst.msk [vmem:[#allocation2 + $0x110] sm:$0xff] %vm91_vm0, %v14238_v58  ;;  %4792 = vrot.lane.b32.xlu1 %v4629_v35, %s9516_s28  ;;  %v14349_v35 = vld [vmem:[#allocation3 + $0x2d0] sm:$0xff] }
 0x7c5   :  { %v4729_v40 = vpop.permute.xlu2 %4728  ;;  %4572 = vst.msk [vmem:[#allocation2 + $0x150] sm:$0xff] %vm91_vm0, %v14243_v46 }
 0x7c6   :  { %4917 = vst.msk [vmem:[#allocation2 + $0x18] sm:$0xff] %vm476_vm1, %v4729_v40 }
 0x7c7   :  { %4567 = vst.msk [vmem:[#allocation2 + $0x128] sm:$0xff] %vm91_vm0, %v14248_v59 }
 0x7c8   :  { %4575 = vst.msk [vmem:[#allocation2 + $0x168] sm:$0xff] %vm91_vm0, %v14252_v17 }
 0x7c9   :  { %4565 = vst.msk [vmem:[#allocation2 + $0x118] sm:$0xff] %vm91_vm0, %v14255_v31 }
 0x7ca   :  { %4570 = vst.msk [vmem:[#allocation2 + $0x140] sm:$0xff] %vm91_vm0, %v14259_v6  ;;  %4802 = vrot.lane.b32.xlu0 %v4634_v44, %s9516_s28  ;;  %v4637_v44 = vld [vmem:[#allocation3 + $0x231] sm:$0xff] }
 0x7cb   :  { %4578 = vst.msk [vmem:[#allocation2 + $0x180] sm:$0xff] %vm91_vm0, %v14263_v8  ;;  %4800 = vrot.lane.b32.xlu2 %v4633_v21, %s9516_s28  ;;  %v4636_v21 = vld [vmem:[#allocation3 + $0x229] sm:$0xff] }
 0x7cc   :  { %4568 = vst.msk [vmem:[#allocation2 + $0x130] sm:$0xff] %vm91_vm0, %v14269_v0  ;;  %4798 = vrot.lane.b32.xlu1 %v4632_v19, %s9516_s28  ;;  %v14356_v19 = vld [vmem:[#allocation3 + $0x2f0] sm:$0xff] }
 0x7cd   :  { %4573 = vst.msk [vmem:[#allocation2 + $0x158] sm:$0xff] %vm91_vm0, %v14274_v42  ;;  %v4735_v23 = vpop.permute.xlu2 %4734 }
 0x7ce   :  { %4581 = vst.msk [vmem:[#allocation2 + $0x198] sm:$0xff] %vm91_vm0, %v14278_v1 }
 0x7cf   :  { %4571 = vst.msk [vmem:[#allocation2 + $0x148] sm:$0xff] %vm91_vm0, %v14282_v16 }
 0x7d0   :  { %4576 = vst.msk [vmem:[#allocation2 + $0x170] sm:$0xff] %vm91_vm0, %v14286_v9 }
 0x7d1   :  { %v4725_v30 = vpop.permute.xlu0 %4724  ;;  %4584 = vst.msk [vmem:[#allocation2 + $0x1b0] sm:$0xff] %vm91_vm0, %v14290_v12 }
 0x7d2   :  { %4915 = vst.msk [vmem:[#allocation2 + $0x8] sm:$0xff] %vm476_vm1, %v4725_v30  ;;  %v14352_v30 = vld [vmem:[#allocation3 + $0x308] sm:$0xff]  ;;  %4808 = vrot.lane.b32.xlu0 %v4637_v44, %s9516_s28  ;;  %v4640_v44 = vld [vmem:[#allocation3 + $0x259] sm:$0xff] }
 0x7d3   :  { %4574 = vst.msk [vmem:[#allocation2 + $0x160] sm:$0xff] %vm91_vm0, %v14296_v48  ;;  %4806 = vrot.lane.b32.xlu2 %v4636_v21, %s9516_s28  ;;  %v4639_v21 = vld [vmem:[#allocation3 + $0x249] sm:$0xff] }
 0x7d4   :  { %4579 = vst.msk [vmem:[#allocation2 + $0x188] sm:$0xff] %vm91_vm0, %v14302_v55 }
 0x7d5   :  { %4587 = vst.msk [vmem:[#allocation2 + $0x1c8] sm:$0xff] %vm91_vm0, %v14306_v34 }
 0x7d6   :  { %17302 = vst [vmem:[#allocation18_spill] sm:$0xff] %v14318_v2 }
 0x7d7   :  { %4577 = vst.msk [vmem:[#allocation2 + $0x178] sm:$0xff] %vm91_vm0, %v14310_v15 }
 0x7d8   :  { %4582 = vst.msk [vmem:[#allocation2 + $0x1a0] sm:$0xff] %vm91_vm0, %v14314_v50 }
 0x7d9   :  { %4590 = vst.msk [vmem:[#allocation2 + $0x1e0] sm:$0xff] %vm91_vm0, %v14318_v2  ;;  %v4643_v2 = vld [vmem:[#allocation3 + $0x279] sm:$0xff] }
 0x7da   :  { %4580 = vst.msk [vmem:[#allocation2 + $0x190] sm:$0xff] %vm91_vm0, %v14322_v62  ;;  %4814 = vrot.lane.b32.xlu0 %v4640_v44, %s9516_s28 }
 0x7db   :  { %17303 = vst [vmem:[#allocation19_spill] sm:$0xff] %v14336_v14  ;;  %4812 = vrot.lane.b32.xlu2 %v4639_v21, %s9516_s28  ;;  %v4646_v21 = vld [vmem:[#allocation3 + $0x2a1] sm:$0xff] }
 0x7dc   :  { %v4731_v40 = vpop.permute.xlu0 %4730  ;;  %4585 = vst.msk [vmem:[#allocation2 + $0x1b8] sm:$0xff] %vm91_vm0, %v14328_v27 }
 0x7dd   :  { %4918 = vst.msk [vmem:[#allocation2 + $0x20] sm:$0xff] %vm476_vm1, %v4731_v40  ;;  %v4635_v40 = vld [vmem:[#allocation3 + $0x219] sm:$0xff] }
 0x7de   :  { %4920 = vst.msk [vmem:[#allocation2 + $0x30] sm:$0xff] %vm476_vm1, %v4735_v23  ;;  %v4727_v39 = vpop.permute.xlu1 %4726  ;;  %4804 = vrot.lane.b32.xlu1 %v4635_v40, %s9516_s28  ;;  %v14365_v23 = vld [vmem:[#allocation3 + $0x318] sm:$0xff]  ;;  %v4638_v40 = vld [vmem:[#allocation3 + $0x241] sm:$0xff] }
 0x7df   :  { %4593 = vst.msk [vmem:[#allocation2 + $0x1f8] sm:$0xff] %vm91_vm0, %v14336_v14 }
 0x7e0   :  { %4583 = vst.msk [vmem:[#allocation2 + $0x1a8] sm:$0xff] %vm91_vm0, %v14340_v41 }
 0x7e1   :  { %4916 = vst.msk [vmem:[#allocation2 + $0x10] sm:$0xff] %vm476_vm1, %v4727_v39  ;;  %v4741_v39 = vpop.permute.xlu2 %4740 }
 0x7e2   :  { %17304 = vst [vmem:[#allocation20_spill] sm:$0xff] %v14352_v30  ;;  %4820 = vrot.lane.b32.xlu0 %v4643_v2, %s9516_s28  ;;  %v4644_v2 = vld [vmem:[#allocation3 + $0x289] sm:$0xff] }
 0x7e3   :  { %4588 = vst.msk [vmem:[#allocation2 + $0x1d0] sm:$0xff] %vm91_vm0, %v14345_v45 }
 0x7e4   :  { %17305 = vst [vmem:[#allocation21_spill] sm:$0xff] %v14356_v19 }
 0x7e5   :  { %4586 = vst.msk [vmem:[#allocation2 + $0x1c0] sm:$0xff] %vm91_vm0, %v14349_v35 }
 0x7e6   :  { %4591 = vst.msk [vmem:[#allocation2 + $0x1e8] sm:$0xff] %vm91_vm0, %v14352_v30  ;;  %4810 = vrot.lane.b32.xlu1 %v4638_v40, %s9516_s28  ;;  %v4642_v30 = vld [vmem:[#allocation3 + $0x271] sm:$0xff]  ;;  %v4733_v44 = vpop.permute.xlu1 %4732 }
 0x7e7   :  { %17306 = vst [vmem:[#allocation26_spill] sm:$0xff] %v14365_v23  ;;  %4818 = vrot.lane.b32.xlu2 %v4642_v30, %s9516_s28 }
 0x7e8   :  { %4589 = vst.msk [vmem:[#allocation2 + $0x1d8] sm:$0xff] %vm91_vm0, %v14356_v19 }
 0x7e9   :  { %4923 = vst.msk [vmem:[#allocation2 + $0x48] sm:$0xff] %vm476_vm1, %v4741_v39  ;;  %v4747_v14 = vpop.permute.xlu2 %4746  ;;  %v4641_v39 = vld [vmem:[#allocation3 + $0x261] sm:$0xff] }
 0x7ea   :  { %4592 = vst.msk [vmem:[#allocation2 + $0x1f0] sm:$0xff] %vm91_vm0, %v14365_v23  ;;  %v4737_v23 = vpop.permute.xlu0 %4736  ;;  %4826 = vrot.lane.b32.xlu0 %v4646_v21, %s9516_s28 }
 0x7eb   :  { %4926 = vst.msk [vmem:[#allocation2 + $0x60] sm:$0xff] %vm476_vm1, %v4747_v14  ;;  %v4645_v14 = vld [vmem:[#allocation3 + $0x291] sm:$0xff] }
 0x7ec   :  { %4921 = vst.msk [vmem:[#allocation2 + $0x38] sm:$0xff] %vm476_vm1, %v4737_v23  ;;  %v4648_v23 = vld [vmem:[#allocation3 + $0x2b9] sm:$0xff] }
 0x7ed   :  { %4919 = vst.msk [vmem:[#allocation2 + $0x28] sm:$0xff] %vm476_vm1, %v4733_v44  ;;  %v4647_v44 = vld [vmem:[#allocation3 + $0x2a9] sm:$0xff] }
 0x7ee   :  { %4816 = vrot.lane.b32.xlu1 %v4641_v39, %s9516_s28  ;;  %v4739_v39 = vpop.permute.xlu1 %4738 }
 0x7ef   :  { %4824 = vrot.lane.b32.xlu2 %v4645_v14, %s9516_s28  ;;  %4922 = vst.msk [vmem:[#allocation2 + $0x40] sm:$0xff] %vm476_vm1, %v4739_v39  ;;  %v4651_v39 = vld [vmem:[#allocation3 + $0x2d9] sm:$0xff] }
 0x7f1   :  { %v4753_v19 = vpop.permute.xlu2 %4752 }
 0x7f2   :  { %4929 = vst.msk [vmem:[#allocation2 + $0x78] sm:$0xff] %vm476_vm1, %v4753_v19  ;;  %v4743_v30 = vpop.permute.xlu0 %4742  ;;  %v4649_v19 = vld [vmem:[#allocation3 + $0x2c1] sm:$0xff] }
 0x7f3   :  { %4924 = vst.msk [vmem:[#allocation2 + $0x50] sm:$0xff] %vm476_vm1, %v4743_v30  ;;  %4832 = vrot.lane.b32.xlu0 %v4649_v19, %s9516_s28  ;;  %v4499_v30 = vld [vmem:[#allocation3 + $0x1b8] sm:$0xff] }
 0x7f4   :  { %4563 = vst.msk [vmem:[#allocation2 + $0x108] sm:$0xff] %vm91_vm0, %v4499_v30  ;;  %v4650_v19 = vld [vmem:[#allocation3 + $0x2d1] sm:$0xff] }
 0x7f5   :  { %v4653_v30 = vld [vmem:[#allocation3 + $0x2f1] sm:$0xff] }
 0x7f6   :  { %4822 = vrot.lane.b32.xlu1 %v4644_v2, %s9516_s28  ;;  %v4745_v2 = vpop.permute.xlu1 %4744 }
 0x7f7   :  { %4830 = vrot.lane.b32.xlu2 %v4648_v23, %s9516_s28  ;;  %4925 = vst.msk [vmem:[#allocation2 + $0x58] sm:$0xff] %vm476_vm1, %v4745_v2  ;;  %v4654_v2 = vld [vmem:[#allocation3 + $0x301] sm:$0xff] }
 0x7f9   :  { %v4759_v40 = vpop.permute.xlu2 %4758 }
 0x7fa   :  { %4932 = vst.msk [vmem:[#allocation2 + $0x90] sm:$0xff] %vm476_vm1, %v4759_v40  ;;  %v4749_v21 = vpop.permute.xlu0 %4748  ;;  %v4652_v40 = vld [vmem:[#allocation3 + $0x2e9] sm:$0xff] }
 0x7fb   :  { %4927 = vst.msk [vmem:[#allocation2 + $0x68] sm:$0xff] %vm476_vm1, %v4749_v21  ;;  %4838 = vrot.lane.b32.xlu0 %v4652_v40, %s9516_s28 }
 0x7fe   :  { %4828 = vrot.lane.b32.xlu1 %v4647_v44, %s9516_s28  ;;  %v4751_v21 = vpop.permute.xlu1 %4750 }
 0x7ff   :  { %4836 = vrot.lane.b32.xlu2 %v4651_v39, %s9516_s28  ;;  %4928 = vst.msk [vmem:[#allocation2 + $0x70] sm:$0xff] %vm476_vm1, %v4751_v21  ;;  %v4656_v21 = vld [vmem:[#allocation3 + $0x319] sm:$0xff] }
 0x801   :  { %v4765_v14 = vpop.permute.xlu2 %4764 }
 0x802   :  { %4935 = vst.msk [vmem:[#allocation2 + $0xa8] sm:$0xff] %vm476_vm1, %v4765_v14  ;;  %v4755_v23 = vpop.permute.xlu0 %4754  ;;  %v4655_v14 = vld [vmem:[#allocation3 + $0x309] sm:$0xff] }
 0x803   :  { %4930 = vst.msk [vmem:[#allocation2 + $0x80] sm:$0xff] %vm476_vm1, %v4755_v23  ;;  %4844 = vrot.lane.b32.xlu0 %v4655_v14, %s9516_s28  ;;  %v4978_v23 = vld [vmem:[#allocation3 + $0x2] sm:$0xff] }
 0x806   :  { %4834 = vrot.lane.b32.xlu1 %v4650_v19, %s9516_s28  ;;  %v4757_v19 = vpop.permute.xlu1 %4756 }
 0x807   :  { %4842 = vrot.lane.b32.xlu2 %v4654_v2, %s9516_s28  ;;  %4931 = vst.msk [vmem:[#allocation2 + $0x88] sm:$0xff] %vm476_vm1, %v4757_v19  ;;  %v4981_v19 = vld [vmem:[#allocation3 + $0x22] sm:$0xff] }
 0x809   :  { %v4771_v44 = vpop.permute.xlu2 %4770 }
 0x80a   :  { %4938 = vst.msk [vmem:[#allocation2 + $0xc0] sm:$0xff] %vm476_vm1, %v4771_v44  ;;  %v4761_v40 = vpop.permute.xlu0 %4760  ;;  %v4657_v44 = vld [vmem:[#allocation3 + $0x321] sm:$0xff] }
 0x80b   :  { %4933 = vst.msk [vmem:[#allocation2 + $0x98] sm:$0xff] %vm476_vm1, %v4761_v40  ;;  %5106 = vrot.lane.b32.xlu0 %v4978_v23, %s9517_s24  ;;  %v4498_v40 = vld [vmem:[#allocation3 + $0x1b0] sm:$0xff]  ;;  %v4980_v23 = vld [vmem:[#allocation3 + $0x1a] sm:$0xff] }
 0x80c   :  { %4562 = vst.msk [vmem:[#allocation2 + $0x100] sm:$0xff] %vm91_vm0, %v4498_v40  ;;  %v4982_v40 = vld [vmem:[#allocation3 + $0x32] sm:$0xff] }
 0x80e   :  { %4840 = vrot.lane.b32.xlu1 %v4653_v30, %s9516_s28  ;;  %v4763_v30 = vpop.permute.xlu1 %4762 }
 0x80f   :  { %4848 = vrot.lane.b32.xlu2 %v4657_v44, %s9516_s28  ;;  %4934 = vst.msk [vmem:[#allocation2 + $0xa0] sm:$0xff] %vm476_vm1, %v4763_v30  ;;  %v4983_v30 = vld [vmem:[#allocation3 + $0x3a] sm:$0xff] }
 0x811   :  { %v4777_v39 = vpop.permute.xlu2 %4776 }
 0x812   :  { %4941 = vst.msk [vmem:[#allocation2 + $0xd8] sm:$0xff] %vm476_vm1, %v4777_v39  ;;  %v4767_v14 = vpop.permute.xlu0 %4766  ;;  %v4979_v39 = vld [vmem:[#allocation3 + $0xa] sm:$0xff] }
 0x813   :  { %4936 = vst.msk [vmem:[#allocation2 + $0xb0] sm:$0xff] %vm476_vm1, %v4767_v14  ;;  %5112 = vrot.lane.b32.xlu0 %v4981_v19, %s9517_s24 }
 0x816   :  { %4846 = vrot.lane.b32.xlu1 %v4656_v21, %s9516_s28  ;;  %v4769_v14 = vpop.permute.xlu1 %4768 }
 0x817   :  { %5110 = vrot.lane.b32.xlu2 %v4980_v23, %s9517_s24  ;;  %4937 = vst.msk [vmem:[#allocation2 + $0xb8] sm:$0xff] %vm476_vm1, %v4769_v14  ;;  %v4985_v14 = vld [vmem:[#allocation3 + $0x52] sm:$0xff] }
 0x819   :  { %v4783_v2 = vpop.permute.xlu2 %4782 }
 0x81a   :  { %4944 = vst.msk [vmem:[#allocation2 + $0xf0] sm:$0xff] %vm476_vm1, %v4783_v2  ;;  %v4773_v44 = vpop.permute.xlu0 %4772  ;;  %v4984_v2 = vld [vmem:[#allocation3 + $0x4a] sm:$0xff] }
 0x81b   :  { %4939 = vst.msk [vmem:[#allocation2 + $0xc8] sm:$0xff] %vm476_vm1, %v4773_v44  ;;  %5118 = vrot.lane.b32.xlu0 %v4984_v2, %s9517_s24  ;;  %v4987_v44 = vld [vmem:[#allocation3 + $0x6a] sm:$0xff] }
 0x81e   :  { %5108 = vrot.lane.b32.xlu1 %v4979_v39, %s9517_s24  ;;  %v4775_v23 = vpop.permute.xlu1 %4774 }
 0x81f   :  { %5116 = vrot.lane.b32.xlu2 %v4983_v30, %s9517_s24  ;;  %4940 = vst.msk [vmem:[#allocation2 + $0xd0] sm:$0xff] %vm476_vm1, %v4775_v23  ;;  %v4988_v23 = vld [vmem:[#allocation3 + $0x7a] sm:$0xff] }
 0x821   :  { %v4789_v21 = vpop.permute.xlu2 %4788 }
 0x822   :  { %4947 = vst.msk [vmem:[#allocation2 + $0x108] sm:$0xff] %vm476_vm1, %v4789_v21  ;;  %v4779_v19 = vpop.permute.xlu0 %4778  ;;  %v4986_v21 = vld [vmem:[#allocation3 + $0x62] sm:$0xff] }
 0x823   :  { %4942 = vst.msk [vmem:[#allocation2 + $0xe0] sm:$0xff] %vm476_vm1, %v4779_v19  ;;  %5124 = vrot.lane.b32.xlu0 %v4987_v44, %s9517_s24  ;;  %v4990_v19 = vld [vmem:[#allocation3 + $0x92] sm:$0xff] }
 0x826   :  { %5114 = vrot.lane.b32.xlu1 %v4982_v40, %s9517_s24  ;;  %v4781_v40 = vpop.permute.xlu1 %4780 }
 0x827   :  { %5122 = vrot.lane.b32.xlu2 %v4986_v21, %s9517_s24  ;;  %4943 = vst.msk [vmem:[#allocation2 + $0xe8] sm:$0xff] %vm476_vm1, %v4781_v40  ;;  %v4991_v40 = vld [vmem:[#allocation3 + $0x9a] sm:$0xff] }
 0x829   :  { %v4795_v39 = vpop.permute.xlu2 %4794 }
 0x82a   :  { %4950 = vst.msk [vmem:[#allocation2 + $0x120] sm:$0xff] %vm476_vm1, %v4795_v39  ;;  %v4785_v2 = vpop.permute.xlu0 %4784  ;;  %v4989_v39 = vld [vmem:[#allocation3 + $0x82] sm:$0xff] }
 0x82b   :  { %4945 = vst.msk [vmem:[#allocation2 + $0xf8] sm:$0xff] %vm476_vm1, %v4785_v2  ;;  %5130 = vrot.lane.b32.xlu0 %v4990_v19, %s9517_s24  ;;  %v4993_v2 = vld [vmem:[#allocation3 + $0xb2] sm:$0xff] }
 0x82e   :  { %5120 = vrot.lane.b32.xlu1 %v4985_v14, %s9517_s24  ;;  %v4787_v14 = vpop.permute.xlu1 %4786 }
 0x82f   :  { %5128 = vrot.lane.b32.xlu2 %v4989_v39, %s9517_s24  ;;  %4946 = vst.msk [vmem:[#allocation2 + $0x100] sm:$0xff] %vm476_vm1, %v4787_v14  ;;  %v4994_v14 = vld [vmem:[#allocation3 + $0xc2] sm:$0xff] }
 0x831   :  { %v4801_v30 = vpop.permute.xlu2 %4800 }
 0x832   :  { %4953 = vst.msk [vmem:[#allocation2 + $0x138] sm:$0xff] %vm476_vm1, %v4801_v30  ;;  %v4791_v44 = vpop.permute.xlu0 %4790  ;;  %v4992_v30 = vld [vmem:[#allocation3 + $0xaa] sm:$0xff] }
 0x833   :  { %4948 = vst.msk [vmem:[#allocation2 + $0x110] sm:$0xff] %vm476_vm1, %v4791_v44  ;;  %5136 = vrot.lane.b32.xlu0 %v4993_v2, %s9517_s24  ;;  %v4996_v44 = vld [vmem:[#allocation3 + $0xda] sm:$0xff] }
 0x836   :  { %5126 = vrot.lane.b32.xlu1 %v4988_v23, %s9517_s24  ;;  %v4793_v23 = vpop.permute.xlu1 %4792 }
 0x837   :  { %5134 = vrot.lane.b32.xlu2 %v4992_v30, %s9517_s24  ;;  %4949 = vst.msk [vmem:[#allocation2 + $0x118] sm:$0xff] %vm476_vm1, %v4793_v23  ;;  %v4997_v23 = vld [vmem:[#allocation3 + $0xe2] sm:$0xff] }
 0x839   :  { %v4807_v21 = vpop.permute.xlu2 %4806 }
 0x83a   :  { %4956 = vst.msk [vmem:[#allocation2 + $0x150] sm:$0xff] %vm476_vm1, %v4807_v21  ;;  %v4797_v19 = vpop.permute.xlu0 %4796  ;;  %v4995_v21 = vld [vmem:[#allocation3 + $0xca] sm:$0xff] }
 0x83b   :  { %4951 = vst.msk [vmem:[#allocation2 + $0x128] sm:$0xff] %vm476_vm1, %v4797_v19  ;;  %5142 = vrot.lane.b32.xlu0 %v4996_v44, %s9517_s24  ;;  %v4999_v19 = vld [vmem:[#allocation3 + $0xfa] sm:$0xff] }
 0x83e   :  { %5132 = vrot.lane.b32.xlu1 %v4991_v40, %s9517_s24  ;;  %v4799_v40 = vpop.permute.xlu1 %4798 }
 0x83f   :  { %5140 = vrot.lane.b32.xlu2 %v4995_v21, %s9517_s24  ;;  %4952 = vst.msk [vmem:[#allocation2 + $0x130] sm:$0xff] %vm476_vm1, %v4799_v40  ;;  %v5000_v40 = vld [vmem:[#allocation3 + $0x10a] sm:$0xff] }
 0x841   :  { %v4813_v39 = vpop.permute.xlu2 %4812 }
 0x842   :  { %4959 = vst.msk [vmem:[#allocation2 + $0x168] sm:$0xff] %vm476_vm1, %v4813_v39  ;;  %v4803_v2 = vpop.permute.xlu0 %4802  ;;  %v4998_v39 = vld [vmem:[#allocation3 + $0xf2] sm:$0xff] }
 0x843   :  { %4954 = vst.msk [vmem:[#allocation2 + $0x140] sm:$0xff] %vm476_vm1, %v4803_v2  ;;  %5148 = vrot.lane.b32.xlu0 %v4999_v19, %s9517_s24  ;;  %v5002_v2 = vld [vmem:[#allocation3 + $0x122] sm:$0xff] }
 0x846   :  { %5138 = vrot.lane.b32.xlu1 %v4994_v14, %s9517_s24 }
 0x847   :  { %5146 = vrot.lane.b32.xlu2 %v4998_v39, %s9517_s24 }
 0x849   :  { %v4819_v30 = vpop.permute.xlu2 %4818 }
 0x84a   :  { %4962 = vst.msk [vmem:[#allocation2 + $0x180] sm:$0xff] %vm476_vm1, %v4819_v30  ;;  %v4809_v44 = vpop.permute.xlu0 %4808  ;;  %v5001_v30 = vld [vmem:[#allocation3 + $0x112] sm:$0xff] }
 0x84b   :  { %4957 = vst.msk [vmem:[#allocation2 + $0x158] sm:$0xff] %vm476_vm1, %v4809_v44  ;;  %5154 = vrot.lane.b32.xlu0 %v5002_v2, %s9517_s24  ;;  %v5005_v44 = vld [vmem:[#allocation3 + $0x142] sm:$0xff] }
 0x84e   :  { %5144 = vrot.lane.b32.xlu1 %v4997_v23, %s9517_s24 }
 0x84f   :  { %5152 = vrot.lane.b32.xlu2 %v5001_v30, %s9517_s24 }
 0x850   :  { %v4805_v14 = vpop.permute.xlu1 %4804 }
 0x851   :  { %v4825_v21 = vpop.permute.xlu2 %4824  ;;  %4955 = vst.msk [vmem:[#allocation2 + $0x148] sm:$0xff] %vm476_vm1, %v4805_v14  ;;  %v5003_v14 = vld [vmem:[#allocation3 + $0x12a] sm:$0xff] }
 0x852   :  { %4965 = vst.msk [vmem:[#allocation2 + $0x198] sm:$0xff] %vm476_vm1, %v4825_v21  ;;  %v4815_v19 = vpop.permute.xlu0 %4814  ;;  %v5004_v21 = vld [vmem:[#allocation3 + $0x13a] sm:$0xff] }
 0x853   :  { %4960 = vst.msk [vmem:[#allocation2 + $0x170] sm:$0xff] %vm476_vm1, %v4815_v19  ;;  %5160 = vrot.lane.b32.xlu0 %v5005_v44, %s9517_s24  ;;  %v5008_v19 = vld [vmem:[#allocation3 + $0x16a] sm:$0xff] }
 0x856   :  { %5150 = vrot.lane.b32.xlu1 %v5000_v40, %s9517_s24 }
 0x857   :  { %5158 = vrot.lane.b32.xlu2 %v5004_v21, %s9517_s24 }
 0x858   :  { %v4811_v23 = vpop.permute.xlu1 %4810 }
 0x859   :  { %v4831_v39 = vpop.permute.xlu2 %4830  ;;  %4958 = vst.msk [vmem:[#allocation2 + $0x160] sm:$0xff] %vm476_vm1, %v4811_v23  ;;  %v5006_v23 = vld [vmem:[#allocation3 + $0x152] sm:$0xff] }
 0x85a   :  { %4968 = vst.msk [vmem:[#allocation2 + $0x1b0] sm:$0xff] %vm476_vm1, %v4831_v39  ;;  %v4821_v2 = vpop.permute.xlu0 %4820  ;;  %v5007_v39 = vld [vmem:[#allocation3 + $0x15a] sm:$0xff] }
 0x85b   :  { %4963 = vst.msk [vmem:[#allocation2 + $0x188] sm:$0xff] %vm476_vm1, %v4821_v2  ;;  %5166 = vrot.lane.b32.xlu0 %v5008_v19, %s9517_s24  ;;  %v5011_v2 = vld [vmem:[#allocation3 + $0x1ba] sm:$0xff] }
 0x85e   :  { %5156 = vrot.lane.b32.xlu1 %v5003_v14, %s9517_s24 }
 0x85f   :  { %5164 = vrot.lane.b32.xlu2 %v5007_v39, %s9517_s24 }
 0x860   :  { %v4817_v40 = vpop.permute.xlu1 %4816 }
 0x861   :  { %v4837_v30 = vpop.permute.xlu2 %4836  ;;  %4961 = vst.msk [vmem:[#allocation2 + $0x178] sm:$0xff] %vm476_vm1, %v4817_v40  ;;  %v5009_v40 = vld [vmem:[#allocation3 + $0x172] sm:$0xff] }
 0x862   :  { %4971 = vst.msk [vmem:[#allocation2 + $0x1c8] sm:$0xff] %vm476_vm1, %v4837_v30  ;;  %v4827_v44 = vpop.permute.xlu0 %4826  ;;  %v5010_v30 = vld [vmem:[#allocation3 + $0x1b2] sm:$0xff] }
 0x863   :  { %4966 = vst.msk [vmem:[#allocation2 + $0x1a0] sm:$0xff] %vm476_vm1, %v4827_v44  ;;  %5172 = vrot.lane.b32.xlu0 %v5011_v2, %s9517_s24  ;;  %v5014_v44 = vld [vmem:[#allocation3 + $0x1e2] sm:$0xff] }
 0x866   :  { %5162 = vrot.lane.b32.xlu1 %v5006_v23, %s9517_s24 }
 0x867   :  { %5170 = vrot.lane.b32.xlu2 %v5010_v30, %s9517_s24 }
 0x868   :  { %v4823_v14 = vpop.permute.xlu1 %4822 }
 0x869   :  { %v4843_v21 = vpop.permute.xlu2 %4842  ;;  %4964 = vst.msk [vmem:[#allocation2 + $0x190] sm:$0xff] %vm476_vm1, %v4823_v14  ;;  %v5012_v14 = vld [vmem:[#allocation3 + $0x1ca] sm:$0xff] }
 0x86a   :  { %4974 = vst.msk [vmem:[#allocation2 + $0x1e0] sm:$0xff] %vm476_vm1, %v4843_v21  ;;  %v4833_v19 = vpop.permute.xlu0 %4832  ;;  %v5013_v21 = vld [vmem:[#allocation3 + $0x1d2] sm:$0xff] }
 0x86b   :  { %4969 = vst.msk [vmem:[#allocation2 + $0x1b8] sm:$0xff] %vm476_vm1, %v4833_v19  ;;  %5178 = vrot.lane.b32.xlu0 %v5014_v44, %s9517_s24  ;;  %v5017_v19 = vld [vmem:[#allocation3 + $0x202] sm:$0xff] }
 0x86e   :  { %5168 = vrot.lane.b32.xlu1 %v5009_v40, %s9517_s24 }
 0x86f   :  { %5176 = vrot.lane.b32.xlu2 %v5013_v21, %s9517_s24 }
 0x870   :  { %v4829_v23 = vpop.permute.xlu1 %4828 }
 0x871   :  { %v4849_v39 = vpop.permute.xlu2 %4848  ;;  %4967 = vst.msk [vmem:[#allocation2 + $0x1a8] sm:$0xff] %vm476_vm1, %v4829_v23  ;;  %v5015_v23 = vld [vmem:[#allocation3 + $0x1ea] sm:$0xff] }
 0x872   :  { %4977 = vst.msk [vmem:[#allocation2 + $0x1f8] sm:$0xff] %vm476_vm1, %v4849_v39  ;;  %v4839_v2 = vpop.permute.xlu0 %4838  ;;  %v5016_v39 = vld [vmem:[#allocation3 + $0x1fa] sm:$0xff] }
 0x873   :  { %4972 = vst.msk [vmem:[#allocation2 + $0x1d0] sm:$0xff] %vm476_vm1, %v4839_v2  ;;  %5184 = vrot.lane.b32.xlu0 %v5017_v19, %s9517_s24  ;;  %v5020_v2 = vld [vmem:[#allocation3 + $0x22a] sm:$0xff] }
 0x876   :  { %5174 = vrot.lane.b32.xlu1 %v5012_v14, %s9517_s24 }
 0x877   :  { %5182 = vrot.lane.b32.xlu2 %v5016_v39, %s9517_s24 }
 0x878   :  { %v4835_v40 = vpop.permute.xlu1 %4834 }
 0x879   :  { %v5111_v30 = vpop.permute.xlu2 %5110  ;;  %4970 = vst.msk [vmem:[#allocation2 + $0x1c0] sm:$0xff] %vm476_vm1, %v4835_v40  ;;  %v5018_v40 = vld [vmem:[#allocation3 + $0x212] sm:$0xff] }
 0x87a   :  { %5300 = vst.msk [vmem:[#allocation2 + $0x10] sm:$0xff] %vm861_vm2, %v5111_v30  ;;  %v4845_v44 = vpop.permute.xlu0 %4844  ;;  %v5019_v30 = vld [vmem:[#allocation3 + $0x21a] sm:$0xff] }
 0x87b   :  { %4975 = vst.msk [vmem:[#allocation2 + $0x1e8] sm:$0xff] %vm476_vm1, %v4845_v44  ;;  %5190 = vrot.lane.b32.xlu0 %v5020_v2, %s9517_s24  ;;  %v5023_v44 = vld [vmem:[#allocation3 + $0x24a] sm:$0xff] }
 0x87e   :  { %5180 = vrot.lane.b32.xlu1 %v5015_v23, %s9517_s24 }
 0x87f   :  { %5188 = vrot.lane.b32.xlu2 %v5019_v30, %s9517_s24 }
 0x880   :  { %v4841_v14 = vpop.permute.xlu1 %4840 }
 0x881   :  { %v5117_v21 = vpop.permute.xlu2 %5116  ;;  %4973 = vst.msk [vmem:[#allocation2 + $0x1d8] sm:$0xff] %vm476_vm1, %v4841_v14  ;;  %v5021_v14 = vld [vmem:[#allocation3 + $0x232] sm:$0xff] }
 0x882   :  { %5303 = vst.msk [vmem:[#allocation2 + $0x28] sm:$0xff] %vm861_vm2, %v5117_v21  ;;  %v5107_v19 = vpop.permute.xlu0 %5106  ;;  %v5022_v21 = vld [vmem:[#allocation3 + $0x242] sm:$0xff] }
 0x883   :  { %5298 = vst.msk [vmem:[#allocation2] sm:$0xff] %vm861_vm2, %v5107_v19  ;;  %5196 = vrot.lane.b32.xlu0 %v5023_v44, %s9517_s24  ;;  %v5026_v19 = vld [vmem:[#allocation3 + $0x272] sm:$0xff] }
 0x886   :  { %5186 = vrot.lane.b32.xlu1 %v5018_v40, %s9517_s24 }
 0x887   :  { %5194 = vrot.lane.b32.xlu2 %v5022_v21, %s9517_s24 }
 0x888   :  { %v4847_v23 = vpop.permute.xlu1 %4846 }
 0x889   :  { %v5123_v39 = vpop.permute.xlu2 %5122  ;;  %4976 = vst.msk [vmem:[#allocation2 + $0x1f0] sm:$0xff] %vm476_vm1, %v4847_v23  ;;  %v5024_v23 = vld [vmem:[#allocation3 + $0x25a] sm:$0xff] }
 0x88a   :  { %5306 = vst.msk [vmem:[#allocation2 + $0x40] sm:$0xff] %vm861_vm2, %v5123_v39  ;;  %v5113_v2 = vpop.permute.xlu0 %5112  ;;  %v5025_v39 = vld [vmem:[#allocation3 + $0x262] sm:$0xff] }
 0x88b   :  { %5301 = vst.msk [vmem:[#allocation2 + $0x18] sm:$0xff] %vm861_vm2, %v5113_v2  ;;  %5202 = vrot.lane.b32.xlu0 %v5026_v19, %s9517_s24  ;;  %v5029_v2 = vld [vmem:[#allocation3 + $0x292] sm:$0xff] }
 0x88e   :  { %5192 = vrot.lane.b32.xlu1 %v5021_v14, %s9517_s24 }
 0x88f   :  { %5200 = vrot.lane.b32.xlu2 %v5025_v39, %s9517_s24 }
 0x890   :  { %v5109_v40 = vpop.permute.xlu1 %5108 }
 0x891   :  { %v5129_v30 = vpop.permute.xlu2 %5128  ;;  %5299 = vst.msk [vmem:[#allocation2 + $0x8] sm:$0xff] %vm861_vm2, %v5109_v40  ;;  %v5027_v40 = vld [vmem:[#allocation3 + $0x27a] sm:$0xff] }
 0x892   :  { %5309 = vst.msk [vmem:[#allocation2 + $0x58] sm:$0xff] %vm861_vm2, %v5129_v30  ;;  %v5119_v44 = vpop.permute.xlu0 %5118  ;;  %v5028_v30 = vld [vmem:[#allocation3 + $0x28a] sm:$0xff] }
 0x893   :  { %5304 = vst.msk [vmem:[#allocation2 + $0x30] sm:$0xff] %vm861_vm2, %v5119_v44  ;;  %5208 = vrot.lane.b32.xlu0 %v5029_v2, %s9517_s24  ;;  %v5032_v44 = vld [vmem:[#allocation3 + $0x2ba] sm:$0xff] }
 0x896   :  { %5198 = vrot.lane.b32.xlu1 %v5024_v23, %s9517_s24 }
 0x897   :  { %5206 = vrot.lane.b32.xlu2 %v5028_v30, %s9517_s24 }
 0x898   :  { %v5115_v14 = vpop.permute.xlu1 %5114 }
 0x899   :  { %v5135_v21 = vpop.permute.xlu2 %5134  ;;  %5302 = vst.msk [vmem:[#allocation2 + $0x20] sm:$0xff] %vm861_vm2, %v5115_v14  ;;  %v5030_v14 = vld [vmem:[#allocation3 + $0x2a2] sm:$0xff] }
 0x89a   :  { %5312 = vst.msk [vmem:[#allocation2 + $0x70] sm:$0xff] %vm861_vm2, %v5135_v21  ;;  %v5125_v19 = vpop.permute.xlu0 %5124  ;;  %v5031_v21 = vld [vmem:[#allocation3 + $0x2aa] sm:$0xff] }
 0x89b   :  { %5307 = vst.msk [vmem:[#allocation2 + $0x48] sm:$0xff] %vm861_vm2, %v5125_v19  ;;  %5214 = vrot.lane.b32.xlu0 %v5032_v44, %s9517_s24  ;;  %v5035_v19 = vld [vmem:[#allocation3 + $0x2da] sm:$0xff] }
 0x89e   :  { %5204 = vrot.lane.b32.xlu1 %v5027_v40, %s9517_s24 }
 0x89f   :  { %5212 = vrot.lane.b32.xlu2 %v5031_v21, %s9517_s24 }
 0x8a0   :  { %v5121_v23 = vpop.permute.xlu1 %5120 }
 0x8a1   :  { %v5141_v39 = vpop.permute.xlu2 %5140  ;;  %5305 = vst.msk [vmem:[#allocation2 + $0x38] sm:$0xff] %vm861_vm2, %v5121_v23  ;;  %v5033_v23 = vld [vmem:[#allocation3 + $0x2c2] sm:$0xff] }
 0x8a2   :  { %5315 = vst.msk [vmem:[#allocation2 + $0x88] sm:$0xff] %vm861_vm2, %v5141_v39  ;;  %v5131_v2 = vpop.permute.xlu0 %5130  ;;  %v5034_v39 = vld [vmem:[#allocation3 + $0x2d2] sm:$0xff] }
 0x8a3   :  { %5310 = vst.msk [vmem:[#allocation2 + $0x60] sm:$0xff] %vm861_vm2, %v5131_v2  ;;  %5220 = vrot.lane.b32.xlu0 %v5035_v19, %s9517_s24  ;;  %v5038_v2 = vld [vmem:[#allocation3 + $0x302] sm:$0xff] }
 0x8a6   :  { %5210 = vrot.lane.b32.xlu1 %v5030_v14, %s9517_s24 }
 0x8a7   :  { %5218 = vrot.lane.b32.xlu2 %v5034_v39, %s9517_s24 }
 0x8a8   :  { %v5127_v40 = vpop.permute.xlu1 %5126 }
 0x8a9   :  { %v5147_v30 = vpop.permute.xlu2 %5146  ;;  %5308 = vst.msk [vmem:[#allocation2 + $0x50] sm:$0xff] %vm861_vm2, %v5127_v40  ;;  %v5036_v40 = vld [vmem:[#allocation3 + $0x2ea] sm:$0xff] }
 0x8aa   :  { %5318 = vst.msk [vmem:[#allocation2 + $0xa0] sm:$0xff] %vm861_vm2, %v5147_v30  ;;  %v5137_v44 = vpop.permute.xlu0 %5136  ;;  %v5037_v30 = vld [vmem:[#allocation3 + $0x2f2] sm:$0xff] }
 0x8ab   :  { %5313 = vst.msk [vmem:[#allocation2 + $0x78] sm:$0xff] %vm861_vm2, %v5137_v44  ;;  %5226 = vrot.lane.b32.xlu0 %v5038_v2, %s9517_s24  ;;  %v5041_v44 = vld [vmem:[#allocation3 + $0x322] sm:$0xff] }
 0x8ae   :  { %5216 = vrot.lane.b32.xlu1 %v5033_v23, %s9517_s24 }
 0x8af   :  { %5224 = vrot.lane.b32.xlu2 %v5037_v30, %s9517_s24 }
 0x8b0   :  { %v5133_v14 = vpop.permute.xlu1 %5132 }
 0x8b1   :  { %v5153_v21 = vpop.permute.xlu2 %5152  ;;  %5311 = vst.msk [vmem:[#allocation2 + $0x68] sm:$0xff] %vm861_vm2, %v5133_v14  ;;  %v5039_v14 = vld [vmem:[#allocation3 + $0x30a] sm:$0xff] }
 0x8b2   :  { %5321 = vst.msk [vmem:[#allocation2 + $0xb8] sm:$0xff] %vm861_vm2, %v5153_v21  ;;  %v5143_v19 = vpop.permute.xlu0 %5142  ;;  %v5040_v21 = vld [vmem:[#allocation3 + $0x31a] sm:$0xff] }
 0x8b3   :  { %5316 = vst.msk [vmem:[#allocation2 + $0x90] sm:$0xff] %vm861_vm2, %v5143_v19  ;;  %5232 = vrot.lane.b32.xlu0 %v5041_v44, %s9517_s24  ;;  %v5393_v44 = vld [vmem:[#allocation3 + $0x188] sm:$0xff] }
 0x8b6   :  { %5222 = vrot.lane.b32.xlu1 %v5036_v40, %s9517_s24 }
 0x8b7   :  { %5230 = vrot.lane.b32.xlu2 %v5040_v21, %s9517_s24 }
 0x8b8   :  { %v5139_v23 = vpop.permute.xlu1 %5138 }
 0x8b9   :  { %v5159_v39 = vpop.permute.xlu2 %5158  ;;  %5314 = vst.msk [vmem:[#allocation2 + $0x80] sm:$0xff] %vm861_vm2, %v5139_v23 }
 0x8ba   :  { %5324 = vst.msk [vmem:[#allocation2 + $0xd0] sm:$0xff] %vm861_vm2, %v5159_v39  ;;  %v5149_v2 = vpop.permute.xlu0 %5148 }
 0x8bb   :  { %5319 = vst.msk [vmem:[#allocation2 + $0xa8] sm:$0xff] %vm861_vm2, %v5149_v2  ;;  %5494 = vrot.lane.b32.xlu0 %v14106_v53, %s9518_s21 }
 0x8be   :  { %5228 = vrot.lane.b32.xlu1 %v5039_v14, %s9517_s24 }
 0x8bf   :  { %5492 = vrot.lane.b32.xlu2 %v14094_v18, %s9518_s21 }
 0x8c0   :  { %v5145_v40 = vpop.permute.xlu1 %5144 }
 0x8c1   :  { %v5165_v30 = vpop.permute.xlu2 %5164  ;;  %5317 = vst.msk [vmem:[#allocation2 + $0x98] sm:$0xff] %vm861_vm2, %v5145_v40 }
 0x8c2   :  { %5327 = vst.msk [vmem:[#allocation2 + $0xe8] sm:$0xff] %vm861_vm2, %v5165_v30  ;;  %v5155_v19 = vpop.permute.xlu0 %5154  ;;  %v17307_v30 = vld [vmem:[#allocation20_spill] sm:$0xff] }
 0x8c3   :  { %5322 = vst.msk [vmem:[#allocation2 + $0xc0] sm:$0xff] %vm861_vm2, %v5155_v19  ;;  %5500 = vrot.lane.b32.xlu0 %v14119_v4, %s9518_s21 }
 0x8c6   :  { %5490 = vrot.lane.b32.xlu1 %v14115_v25, %s9518_s21 }
 0x8c7   :  { %5498 = vrot.lane.b32.xlu2 %v14097_v47, %s9518_s21 }
 0x8c8   :  { %v5151_v23 = vpop.permute.xlu1 %5150 }
 0x8c9   :  { %v5171_v39 = vpop.permute.xlu2 %5170  ;;  %5320 = vst.msk [vmem:[#allocation2 + $0xb0] sm:$0xff] %vm861_vm2, %v5151_v23  ;;  %v17310_v23 = vld [vmem:[#allocation19_spill] sm:$0xff] }
 0x8ca   :  { %5330 = vst.msk [vmem:[#allocation2 + $0x100] sm:$0xff] %vm861_vm2, %v5171_v39  ;;  %v5161_v18 = vpop.permute.xlu0 %5160  ;;  %v5424_v39 = vld [vmem:[#allocation3 + $0x330] sm:$0xff] }
 0x8cb   :  { %5325 = vst.msk [vmem:[#allocation2 + $0xd8] sm:$0xff] %vm861_vm2, %v5161_v18  ;;  %5506 = vrot.lane.b32.xlu0 %v14131_v7, %s9518_s21  ;;  %v17311_v18 = vld [vmem:[#allocation26_spill] sm:$0xff] }
 0x8ce   :  { %5496 = vrot.lane.b32.xlu1 %v14127_v3, %s9518_s21 }
 0x8cf   :  { %5504 = vrot.lane.b32.xlu2 %v14100_v24, %s9518_s21 }
 0x8d0   :  { %v5157_v25 = vpop.permute.xlu1 %5156 }
 0x8d1   :  { %v5177_v53 = vpop.permute.xlu2 %5176  ;;  %5323 = vst.msk [vmem:[#allocation2 + $0xc8] sm:$0xff] %vm861_vm2, %v5157_v25 }
 0x8d2   :  { %5333 = vst.msk [vmem:[#allocation2 + $0x118] sm:$0xff] %vm861_vm2, %v5177_v53  ;;  %v5167_v47 = vpop.permute.xlu0 %5166 }
 0x8d3   :  { %5328 = vst.msk [vmem:[#allocation2 + $0xf0] sm:$0xff] %vm861_vm2, %v5167_v47  ;;  %5512 = vrot.lane.b32.xlu0 %v14148_v43, %s9518_s21 }
 0x8d6   :  { %5502 = vrot.lane.b32.xlu1 %v14145_v26, %s9518_s21 }
 0x8d7   :  { %5510 = vrot.lane.b32.xlu2 %v14111_v63, %s9518_s21 }
 0x8d8   :  { %v5163_v3 = vpop.permute.xlu1 %5162 }
 0x8d9   :  { %v5183_v4 = vpop.permute.xlu2 %5182  ;;  %5326 = vst.msk [vmem:[#allocation2 + $0xe0] sm:$0xff] %vm861_vm2, %v5163_v3  ;;  %v5746_v3 = vld [vmem:[#allocation3 + $0x19] sm:$0xff] }
 0x8da   :  { %5336 = vst.msk [vmem:[#allocation2 + $0x130] sm:$0xff] %vm861_vm2, %v5183_v4  ;;  %v5173_v24 = vpop.permute.xlu0 %5172  ;;  %v5747_v4 = vld [vmem:[#allocation3 + $0x21] sm:$0xff] }
 0x8db   :  { %5331 = vst.msk [vmem:[#allocation2 + $0x108] sm:$0xff] %vm861_vm2, %v5173_v24  ;;  %5518 = vrot.lane.b32.xlu0 %v14160_v57, %s9518_s21  ;;  %v5425_v24 = vld [vmem:[#allocation3 + $0x338] sm:$0xff] }
 0x8de   :  { %5508 = vrot.lane.b32.xlu1 %v14156_v61, %s9518_s21 }
 0x8df   :  { %5516 = vrot.lane.b32.xlu2 %v14123_v54, %s9518_s21 }
 0x8e0   :  { %v5169_v26 = vpop.permute.xlu1 %5168 }
 0x8e1   :  { %v5189_v7 = vpop.permute.xlu2 %5188  ;;  %5329 = vst.msk [vmem:[#allocation2 + $0xf8] sm:$0xff] %vm861_vm2, %v5169_v26 }
 0x8e2   :  { %5339 = vst.msk [vmem:[#allocation2 + $0x148] sm:$0xff] %vm861_vm2, %v5189_v7  ;;  %v5179_v63 = vpop.permute.xlu0 %5178 }
 0x8e3   :  { %5334 = vst.msk [vmem:[#allocation2 + $0x120] sm:$0xff] %vm861_vm2, %v5179_v63  ;;  %5524 = vrot.lane.b32.xlu0 %v14175_v10, %s9518_s21 }
 0x8e6   :  { %5514 = vrot.lane.b32.xlu1 %v14170_v11, %s9518_s21 }
 0x8e7   :  { %5522 = vrot.lane.b32.xlu2 %v14142_v28, %s9518_s21 }
 0x8e8   :  { %v5175_v61 = vpop.permute.xlu1 %5174 }
 0x8e9   :  { %v5195_v43 = vpop.permute.xlu2 %5194  ;;  %5332 = vst.msk [vmem:[#allocation2 + $0x110] sm:$0xff] %vm861_vm2, %v5175_v61  ;;  %v5749_v61 = vld [vmem:[#allocation3 + $0x39] sm:$0xff] }
 0x8ea   :  { %5342 = vst.msk [vmem:[#allocation2 + $0x160] sm:$0xff] %vm861_vm2, %v5195_v43  ;;  %v5185_v54 = vpop.permute.xlu0 %5184  ;;  %v5750_v43 = vld [vmem:[#allocation3 + $0x49] sm:$0xff] }
 0x8eb   :  { %5337 = vst.msk [vmem:[#allocation2 + $0x138] sm:$0xff] %vm861_vm2, %v5185_v54  ;;  %5530 = vrot.lane.b32.xlu0 %v14187_v36, %s9518_s21  ;;  %v5748_v54 = vld [vmem:[#allocation3 + $0x31] sm:$0xff] }
 0x8ee   :  { %5520 = vrot.lane.b32.xlu1 %v14183_v37, %s9518_s21 }
 0x8ef   :  { %5528 = vrot.lane.b32.xlu2 %v14152_v33, %s9518_s21 }
 0x8f0   :  { %v5181_v11 = vpop.permute.xlu1 %5180 }
 0x8f1   :  { %v5201_v57 = vpop.permute.xlu2 %5200  ;;  %5335 = vst.msk [vmem:[#allocation2 + $0x128] sm:$0xff] %vm861_vm2, %v5181_v11 }
 0x8f2   :  { %5345 = vst.msk [vmem:[#allocation2 + $0x178] sm:$0xff] %vm861_vm2, %v5201_v57  ;;  %v5191_v28 = vpop.permute.xlu0 %5190 }
 0x8f3   :  { %5340 = vst.msk [vmem:[#allocation2 + $0x150] sm:$0xff] %vm861_vm2, %v5191_v28  ;;  %5536 = vrot.lane.b32.xlu0 %v14199_v22, %s9518_s21 }
 0x8f6   :  { %5526 = vrot.lane.b32.xlu1 %v14195_v32, %s9518_s21 }
 0x8f7   :  { %5534 = vrot.lane.b32.xlu2 %v14164_v49, %s9518_s21 }
 0x8f8   :  { %v5187_v37 = vpop.permute.xlu1 %5186 }
 0x8f9   :  { %v5207_v10 = vpop.permute.xlu2 %5206  ;;  %5338 = vst.msk [vmem:[#allocation2 + $0x140] sm:$0xff] %vm861_vm2, %v5187_v37  ;;  %v5752_v37 = vld [vmem:[#allocation3 + $0x61] sm:$0xff] }
 0x8fa   :  { %5348 = vst.msk [vmem:[#allocation2 + $0x190] sm:$0xff] %vm861_vm2, %v5207_v10  ;;  %v5197_v33 = vpop.permute.xlu0 %5196  ;;  %v5753_v10 = vld [vmem:[#allocation3 + $0x69] sm:$0xff] }
 0x8fb   :  { %5343 = vst.msk [vmem:[#allocation2 + $0x168] sm:$0xff] %vm861_vm2, %v5197_v33  ;;  %5542 = vrot.lane.b32.xlu0 %v14210_v29, %s9518_s21  ;;  %v5751_v33 = vld [vmem:[#allocation3 + $0x51] sm:$0xff] }
 0x8fe   :  { %5532 = vrot.lane.b32.xlu1 %v14205_v5, %s9518_s21 }
 0x8ff   :  { %5540 = vrot.lane.b32.xlu2 %v14179_v60, %s9518_s21 }
 0x900   :  { %v5193_v32 = vpop.permute.xlu1 %5192 }
 0x901   :  { %v5213_v36 = vpop.permute.xlu2 %5212  ;;  %5341 = vst.msk [vmem:[#allocation2 + $0x158] sm:$0xff] %vm861_vm2, %v5193_v32 }
 0x902   :  { %5351 = vst.msk [vmem:[#allocation2 + $0x1a8] sm:$0xff] %vm861_vm2, %v5213_v36  ;;  %v5203_v49 = vpop.permute.xlu0 %5202 }
 0x903   :  { %5346 = vst.msk [vmem:[#allocation2 + $0x180] sm:$0xff] %vm861_vm2, %v5203_v49  ;;  %5548 = vrot.lane.b32.xlu0 %v14222_v56, %s9518_s21  ;;  %v5392_v56 = vld [vmem:[#allocation3 + $0x180] sm:$0xff] }
 0x906   :  { %5538 = vrot.lane.b32.xlu1 %v14218_v13, %s9518_s21 }
 0x907   :  { %5546 = vrot.lane.b32.xlu2 %v14191_v51, %s9518_s21 }
 0x908   :  { %v5199_v5 = vpop.permute.xlu1 %5198 }
 0x909   :  { %v5219_v22 = vpop.permute.xlu2 %5218  ;;  %5344 = vst.msk [vmem:[#allocation2 + $0x170] sm:$0xff] %vm861_vm2, %v5199_v5  ;;  %v5755_v5 = vld [vmem:[#allocation3 + $0x81] sm:$0xff] }
 0x90a   :  { %5354 = vst.msk [vmem:[#allocation2 + $0x1c0] sm:$0xff] %vm861_vm2, %v5219_v22  ;;  %v5209_v60 = vpop.permute.xlu0 %5208  ;;  %v5756_v22 = vld [vmem:[#allocation3 + $0x91] sm:$0xff] }
 0x90b   :  { %5349 = vst.msk [vmem:[#allocation2 + $0x198] sm:$0xff] %vm861_vm2, %v5209_v60  ;;  %5554 = vrot.lane.b32.xlu0 %v14238_v58, %s9518_s21  ;;  %v5754_v60 = vld [vmem:[#allocation3 + $0x79] sm:$0xff] }
 0x90e   :  { %5544 = vrot.lane.b32.xlu1 %v14230_v20, %s9518_s21 }
 0x90f   :  { %5552 = vrot.lane.b32.xlu2 %v5393_v44, %s9518_s21 }
 0x910   :  { %v5205_v13 = vpop.permute.xlu1 %5204 }
 0x911   :  { %v5225_v29 = vpop.permute.xlu2 %5224  ;;  %5347 = vst.msk [vmem:[#allocation2 + $0x188] sm:$0xff] %vm861_vm2, %v5205_v13 }
 0x912   :  { %5357 = vst.msk [vmem:[#allocation2 + $0x1d8] sm:$0xff] %vm861_vm2, %v5225_v29  ;;  %v5215_v51 = vpop.permute.xlu0 %5214 }
 0x913   :  { %5352 = vst.msk [vmem:[#allocation2 + $0x1b0] sm:$0xff] %vm861_vm2, %v5215_v51  ;;  %5560 = vrot.lane.b32.xlu0 %v14248_v59, %s9518_s21  ;;  %v5758_v51 = vld [vmem:[#allocation3 + $0xa9] sm:$0xff] }
 0x916   :  { %5550 = vrot.lane.b32.xlu1 %v5392_v56, %s9518_s21  ;;  %v5759_v56 = vld [vmem:[#allocation3 + $0xb1] sm:$0xff] }
 0x917   :  { %5558 = vrot.lane.b32.xlu2 %v14214_v52, %s9518_s21 }
 0x918   :  { %v5211_v21 = vpop.permute.xlu1 %5210 }
 0x919   :  { %v5231_v20 = vpop.permute.xlu2 %5230  ;;  %5350 = vst.msk [vmem:[#allocation2 + $0x1a0] sm:$0xff] %vm861_vm2, %v5211_v21 }
 0x91a   :  { %5360 = vst.msk [vmem:[#allocation2 + $0x1f0] sm:$0xff] %vm861_vm2, %v5231_v20  ;;  %v5221_v58 = vpop.permute.xlu0 %5220  ;;  %v5757_v20 = vld [vmem:[#allocation3 + $0x99] sm:$0xff] }
 0x91b   :  { %5355 = vst.msk [vmem:[#allocation2 + $0x1c8] sm:$0xff] %vm861_vm2, %v5221_v58  ;;  %5566 = vrot.lane.b32.xlu0 %v14259_v6, %s9518_s21 }
 0x91e   :  { %5556 = vrot.lane.b32.xlu1 %v14255_v31, %s9518_s21 }
 0x91f   :  { %5564 = vrot.lane.b32.xlu2 %v14226_v38, %s9518_s21 }
 0x920   :  { %v5217_v2 = vpop.permute.xlu1 %5216 }
 0x921   :  { %v5493_v14 = vpop.permute.xlu2 %5492  ;;  %5353 = vst.msk [vmem:[#allocation2 + $0x1b8] sm:$0xff] %vm861_vm2, %v5217_v2  ;;  %v5762_v2 = vld [vmem:[#allocation3 + $0xd9] sm:$0xff] }
 0x922   :  { %5683 = vst.msk [vmem:[#allocation2 + $0x8] sm:$0xff] %vm1247_vm3, %v5493_v14  ;;  %v5227_v52 = vpop.permute.xlu0 %5226 }
 0x923   :  { %5358 = vst.msk [vmem:[#allocation2 + $0x1e0] sm:$0xff] %vm861_vm2, %v5227_v52  ;;  %5572 = vrot.lane.b32.xlu0 %v14274_v42, %s9518_s21  ;;  %v5761_v52 = vld [vmem:[#allocation3 + $0xc9] sm:$0xff] }
 0x926   :  { %5562 = vrot.lane.b32.xlu1 %v14269_v0, %s9518_s21 }
 0x927   :  { %5570 = vrot.lane.b32.xlu2 %v14243_v46, %s9518_s21 }
 0x928   :  { %v5223_v31 = vpop.permute.xlu1 %5222 }
 0x929   :  { %v5499_v59 = vpop.permute.xlu2 %5498  ;;  %5356 = vst.msk [vmem:[#allocation2 + $0x1d0] sm:$0xff] %vm861_vm2, %v5223_v31 }
 0x92a   :  { %5686 = vst.msk [vmem:[#allocation2 + $0x20] sm:$0xff] %vm1247_vm3, %v5499_v59  ;;  %v5233_v38 = vpop.permute.xlu0 %5232  ;;  %v5760_v59 = vld [vmem:[#allocation3 + $0xc1] sm:$0xff] }
 0x92b   :  { %5361 = vst.msk [vmem:[#allocation2 + $0x1f8] sm:$0xff] %vm861_vm2, %v5233_v38  ;;  %5578 = vrot.lane.b32.xlu0 %v14286_v9, %s9518_s21 }
 0x92e   :  { %5568 = vrot.lane.b32.xlu1 %v14282_v16, %s9518_s21 }
 0x92f   :  { %5576 = vrot.lane.b32.xlu2 %v14252_v17, %s9518_s21 }
 0x930   :  { %v5229_v0 = vpop.permute.xlu1 %5228 }
 0x931   :  { %v5505_v6 = vpop.permute.xlu2 %5504  ;;  %5359 = vst.msk [vmem:[#allocation2 + $0x1e8] sm:$0xff] %vm861_vm2, %v5229_v0  ;;  %v5765_v0 = vld [vmem:[#allocation3 + $0xf9] sm:$0xff] }
 0x932   :  { %5689 = vst.msk [vmem:[#allocation2 + $0x38] sm:$0xff] %vm1247_vm3, %v5505_v6  ;;  %v5495_v46 = vpop.permute.xlu0 %5494 }
 0x933   :  { %5684 = vst.msk [vmem:[#allocation2 + $0x10] sm:$0xff] %vm1247_vm3, %v5495_v46  ;;  %5584 = vrot.lane.b32.xlu0 %v14302_v55, %s9518_s21  ;;  %v5764_v46 = vld [vmem:[#allocation3 + $0xf1] sm:$0xff] }
 0x936   :  { %5574 = vrot.lane.b32.xlu1 %v14296_v48, %s9518_s21 }
 0x937   :  { %5582 = vrot.lane.b32.xlu2 %v14263_v8, %s9518_s21 }
 0x938   :  { %v5491_v16 = vpop.permute.xlu1 %5490 }
 0x939   :  { %v5511_v42 = vpop.permute.xlu2 %5510  ;;  %5682 = vst.msk [vmem:[#allocation2] sm:$0xff] %vm1247_vm3, %v5491_v16 }
 0x93a   :  { %5692 = vst.msk [vmem:[#allocation2 + $0x50] sm:$0xff] %vm1247_vm3, %v5511_v42  ;;  %v5501_v17 = vpop.permute.xlu0 %5500  ;;  %v5763_v42 = vld [vmem:[#allocation3 + $0xe1] sm:$0xff] }
 0x93b   :  { %5687 = vst.msk [vmem:[#allocation2 + $0x28] sm:$0xff] %vm1247_vm3, %v5501_v17  ;;  %5590 = vrot.lane.b32.xlu0 %v14314_v50, %s9518_s21 }
 0x93e   :  { %5580 = vrot.lane.b32.xlu1 %v14310_v15, %s9518_s21 }
 0x93f   :  { %5588 = vrot.lane.b32.xlu2 %v14278_v1, %s9518_s21 }
 0x940   :  { %v5497_v48 = vpop.permute.xlu1 %5496 }
 0x941   :  { %v5517_v9 = vpop.permute.xlu2 %5516  ;;  %5685 = vst.msk [vmem:[#allocation2 + $0x18] sm:$0xff] %vm1247_vm3, %v5497_v48  ;;  %v5768_v48 = vld [vmem:[#allocation3 + $0x121] sm:$0xff] }
 0x942   :  { %5695 = vst.msk [vmem:[#allocation2 + $0x68] sm:$0xff] %vm1247_vm3, %v5517_v9  ;;  %v5507_v8 = vpop.permute.xlu0 %5506 }
 0x943   :  { %5690 = vst.msk [vmem:[#allocation2 + $0x40] sm:$0xff] %vm1247_vm3, %v5507_v8  ;;  %5596 = vrot.lane.b32.xlu0 %v14328_v27, %s9518_s21  ;;  %v5767_v8 = vld [vmem:[#allocation3 + $0x111] sm:$0xff] }
 0x946   :  { %5586 = vrot.lane.b32.xlu1 %v14322_v62, %s9518_s21 }
 0x947   :  { %5594 = vrot.lane.b32.xlu2 %v14290_v12, %s9518_s21 }
 0x948   :  { %v5503_v15 = vpop.permute.xlu1 %5502 }
 0x949   :  { %v5523_v55 = vpop.permute.xlu2 %5522  ;;  %5688 = vst.msk [vmem:[#allocation2 + $0x30] sm:$0xff] %vm1247_vm3, %v5503_v15 }
 0x94a   :  { %5698 = vst.msk [vmem:[#allocation2 + $0x80] sm:$0xff] %vm1247_vm3, %v5523_v55  ;;  %v5513_v1 = vpop.permute.xlu0 %5512  ;;  %v5766_v55 = vld [vmem:[#allocation3 + $0x109] sm:$0xff] }
 0x94b   :  { %5693 = vst.msk [vmem:[#allocation2 + $0x58] sm:$0xff] %vm1247_vm3, %v5513_v1  ;;  %5602 = vrot.lane.b32.xlu0 %v14345_v45, %s9518_s21  ;;  %v17308_v45 = vld [vmem:[#allocation18_spill] sm:$0xff] }
 0x94e   :  { %5592 = vrot.lane.b32.xlu1 %v14340_v41, %s9518_s21 }
 0x94f   :  { %5600 = vrot.lane.b32.xlu2 %v14306_v34, %s9518_s21  ;;  %v17309_v34 = vld [vmem:[#allocation21_spill] sm:$0xff] }
 0x950   :  { %v5509_v62 = vpop.permute.xlu1 %5508 }
 0x951   :  { %v5529_v50 = vpop.permute.xlu2 %5528  ;;  %5691 = vst.msk [vmem:[#allocation2 + $0x48] sm:$0xff] %vm1247_vm3, %v5509_v62  ;;  %v5771_v62 = vld [vmem:[#allocation3 + $0x141] sm:$0xff] }
 0x952   :  { %5701 = vst.msk [vmem:[#allocation2 + $0x98] sm:$0xff] %vm1247_vm3, %v5529_v50  ;;  %v5519_v12 = vpop.permute.xlu0 %5518 }
 0x953   :  { %5696 = vst.msk [vmem:[#allocation2 + $0x70] sm:$0xff] %vm1247_vm3, %v5519_v12  ;;  %5608 = vrot.lane.b32.xlu0 %v17307_v30, %s9518_s21  ;;  %v5770_v12 = vld [vmem:[#allocation3 + $0x139] sm:$0xff] }
 0x956   :  { %5598 = vrot.lane.b32.xlu1 %v14349_v35, %s9518_s21 }
 0x957   :  { %5606 = vrot.lane.b32.xlu2 %v17308_v45, %s9518_s21 }
 0x958   :  { %v5515_v41 = vpop.permute.xlu1 %5514 }
 0x959   :  { %v5535_v27 = vpop.permute.xlu2 %5534  ;;  %5694 = vst.msk [vmem:[#allocation2 + $0x60] sm:$0xff] %vm1247_vm3, %v5515_v41 }
 0x95a   :  { %5704 = vst.msk [vmem:[#allocation2 + $0xb0] sm:$0xff] %vm1247_vm3, %v5535_v27  ;;  %v5525_v40 = vpop.permute.xlu0 %5524  ;;  %v5769_v27 = vld [vmem:[#allocation3 + $0x129] sm:$0xff] }
 0x95b   :  { %5699 = vst.msk [vmem:[#allocation2 + $0x88] sm:$0xff] %vm1247_vm3, %v5525_v40  ;;  %5614 = vrot.lane.b32.xlu0 %v5424_v39, %s9518_s21  ;;  %v5773_v40 = vld [vmem:[#allocation3 + $0x159] sm:$0xff] }
 0x95e   :  { %5604 = vrot.lane.b32.xlu1 %v17309_v34, %s9518_s21  ;;  %v5774_v34 = vld [vmem:[#allocation3 + $0x169] sm:$0xff] }
 0x95f   :  { %5612 = vrot.lane.b32.xlu2 %v17310_v23, %s9518_s21 }
 0x960   :  { %v5521_v19 = vpop.permute.xlu1 %5520 }
 0x961   :  { %v5541_v35 = vpop.permute.xlu2 %5540  ;;  %5697 = vst.msk [vmem:[#allocation2 + $0x78] sm:$0xff] %vm1247_vm3, %v5521_v19 }
 0x962   :  { %5707 = vst.msk [vmem:[#allocation2 + $0xc8] sm:$0xff] %vm1247_vm3, %v5541_v35  ;;  %v5531_v53 = vpop.permute.xlu0 %5530  ;;  %v5772_v35 = vld [vmem:[#allocation3 + $0x151] sm:$0xff] }
 0x963   :  { %5702 = vst.msk [vmem:[#allocation2 + $0xa0] sm:$0xff] %vm1247_vm3, %v5531_v53  ;;  %5876 = vrot.lane.b32.xlu0 %v5747_v4, %s9519_s15  ;;  %v5776_v53 = vld [vmem:[#allocation3 + $0x181] sm:$0xff] }
 0x966   :  { %5610 = vrot.lane.b32.xlu1 %v17311_v18, %s9518_s21  ;;  %v5777_v18 = vld [vmem:[#allocation3 + $0x189] sm:$0xff] }
 0x967   :  { %5874 = vrot.lane.b32.xlu2 %v5746_v3, %s9519_s15 }
 0x968   :  { %v5527_v47 = vpop.permute.xlu1 %5526 }
 0x969   :  { %v5547_v25 = vpop.permute.xlu2 %5546  ;;  %5700 = vst.msk [vmem:[#allocation2 + $0x90] sm:$0xff] %vm1247_vm3, %v5527_v47 }
 0x96a   :  { %5710 = vst.msk [vmem:[#allocation2 + $0xe0] sm:$0xff] %vm1247_vm3, %v5547_v25  ;;  %v5537_v7 = vpop.permute.xlu0 %5536  ;;  %v5775_v25 = vld [vmem:[#allocation3 + $0x171] sm:$0xff] }
 0x96b   :  { %5705 = vst.msk [vmem:[#allocation2 + $0xb8] sm:$0xff] %vm1247_vm3, %v5537_v7  ;;  %5882 = vrot.lane.b32.xlu0 %v5750_v43, %s9519_s15  ;;  %v5779_v7 = vld [vmem:[#allocation3 + $0x1d1] sm:$0xff] }
 0x96e   :  { %5616 = vrot.lane.b32.xlu1 %v5425_v24, %s9518_s21  ;;  %v5780_v24 = vld [vmem:[#allocation3 + $0x1e1] sm:$0xff] }
 0x96f   :  { %5880 = vrot.lane.b32.xlu2 %v5749_v61, %s9519_s15 }
 0x970   :  { %v5533_v63 = vpop.permute.xlu1 %5532 }
 0x971   :  { %v5553_v26 = vpop.permute.xlu2 %5552  ;;  %5703 = vst.msk [vmem:[#allocation2 + $0xa8] sm:$0xff] %vm1247_vm3, %v5533_v63 }
 0x972   :  { %5713 = vst.msk [vmem:[#allocation2 + $0xf8] sm:$0xff] %vm1247_vm3, %v5553_v26  ;;  %v5543_v57 = vpop.permute.xlu0 %5542  ;;  %v5778_v26 = vld [vmem:[#allocation3 + $0x1c9] sm:$0xff] }
 0x973   :  { %5708 = vst.msk [vmem:[#allocation2 + $0xd0] sm:$0xff] %vm1247_vm3, %v5543_v57  ;;  %5888 = vrot.lane.b32.xlu0 %v5753_v10, %s9519_s15  ;;  %v5782_v57 = vld [vmem:[#allocation3 + $0x1f9] sm:$0xff] }
 0x976   :  { %5878 = vrot.lane.b32.xlu1 %v5748_v54, %s9519_s15  ;;  %v5783_v54 = vld [vmem:[#allocation3 + $0x201] sm:$0xff] }
 0x977   :  { %5886 = vrot.lane.b32.xlu2 %v5752_v37, %s9519_s15 }
 0x978   :  { %v5539_v28 = vpop.permute.xlu1 %5538 }
 0x979   :  { %v5559_v11 = vpop.permute.xlu2 %5558  ;;  %5706 = vst.msk [vmem:[#allocation2 + $0xc0] sm:$0xff] %vm1247_vm3, %v5539_v28 }
 0x97a   :  { %5716 = vst.msk [vmem:[#allocation2 + $0x110] sm:$0xff] %vm1247_vm3, %v5559_v11  ;;  %v5549_v36 = vpop.permute.xlu0 %5548  ;;  %v14800_v11 = vld [vmem:[#allocation3 + $0x1e9] sm:$0xff] }
 0x97b   :  { %5711 = vst.msk [vmem:[#allocation2 + $0xe8] sm:$0xff] %vm1247_vm3, %v5549_v36  ;;  %5894 = vrot.lane.b32.xlu0 %v5756_v22, %s9519_s15  ;;  %v5785_v36 = vld [vmem:[#allocation3 + $0x219] sm:$0xff] }
 0x97e   :  { %5884 = vrot.lane.b32.xlu1 %v5751_v33, %s9519_s15  ;;  %v5786_v33 = vld [vmem:[#allocation3 + $0x229] sm:$0xff] }
 0x97f   :  { %5892 = vrot.lane.b32.xlu2 %v5755_v5, %s9519_s15 }
 0x980   :  { %v5545_v49 = vpop.permute.xlu1 %5544 }
 0x981   :  { %v5565_v32 = vpop.permute.xlu2 %5564  ;;  %5709 = vst.msk [vmem:[#allocation2 + $0xd8] sm:$0xff] %vm1247_vm3, %v5545_v49 }
 0x982   :  { %5719 = vst.msk [vmem:[#allocation2 + $0x128] sm:$0xff] %vm1247_vm3, %v5565_v32  ;;  %v5555_v29 = vpop.permute.xlu0 %5554  ;;  %v5784_v32 = vld [vmem:[#allocation3 + $0x211] sm:$0xff] }
 0x983   :  { %5714 = vst.msk [vmem:[#allocation2 + $0x100] sm:$0xff] %vm1247_vm3, %v5555_v29  ;;  %5900 = vrot.lane.b32.xlu0 %v5759_v56, %s9519_s15  ;;  %v5788_v29 = vld [vmem:[#allocation3 + $0x241] sm:$0xff] }
 0x986   :  { %5890 = vrot.lane.b32.xlu1 %v5754_v60, %s9519_s15  ;;  %v5789_v60 = vld [vmem:[#allocation3 + $0x249] sm:$0xff] }
 0x987   :  { %5898 = vrot.lane.b32.xlu2 %v5758_v51, %s9519_s15 }
 0x988   :  { %v5551_v44 = vpop.permute.xlu1 %5550 }
 0x989   :  { %v5571_v13 = vpop.permute.xlu2 %5570  ;;  %5712 = vst.msk [vmem:[#allocation2 + $0xf0] sm:$0xff] %vm1247_vm3, %v5551_v44 }
 0x98a   :  { %5722 = vst.msk [vmem:[#allocation2 + $0x140] sm:$0xff] %vm1247_vm3, %v5571_v13  ;;  %v5561_v21 = vpop.permute.xlu0 %5560  ;;  %v5787_v13 = vld [vmem:[#allocation3 + $0x231] sm:$0xff] }
 0x98b   :  { %5717 = vst.msk [vmem:[#allocation2 + $0x118] sm:$0xff] %vm1247_vm3, %v5561_v21  ;;  %5906 = vrot.lane.b32.xlu0 %v5762_v2, %s9519_s15  ;;  %v5791_v21 = vld [vmem:[#allocation3 + $0x261] sm:$0xff] }
 0x98e   :  { %5896 = vrot.lane.b32.xlu1 %v5757_v20, %s9519_s15  ;;  %v5792_v20 = vld [vmem:[#allocation3 + $0x271] sm:$0xff] }
 0x98f   :  { %5904 = vrot.lane.b32.xlu2 %v5761_v52, %s9519_s15 }
 0x990   :  { %v5557_v14 = vpop.permute.xlu1 %5556 }
 0x991   :  { %v5577_v58 = vpop.permute.xlu2 %5576  ;;  %5715 = vst.msk [vmem:[#allocation2 + $0x108] sm:$0xff] %vm1247_vm3, %v5557_v14 }
 0x992   :  { %5725 = vst.msk [vmem:[#allocation2 + $0x158] sm:$0xff] %vm1247_vm3, %v5577_v58  ;;  %v5567_v31 = vpop.permute.xlu0 %5566  ;;  %v5790_v58 = vld [vmem:[#allocation3 + $0x259] sm:$0xff] }
 0x993   :  { %5720 = vst.msk [vmem:[#allocation2 + $0x130] sm:$0xff] %vm1247_vm3, %v5567_v31  ;;  %5912 = vrot.lane.b32.xlu0 %v5765_v0, %s9519_s15  ;;  %v5794_v31 = vld [vmem:[#allocation3 + $0x289] sm:$0xff] }
 0x996   :  { %5902 = vrot.lane.b32.xlu1 %v5760_v59, %s9519_s15  ;;  %v5795_v59 = vld [vmem:[#allocation3 + $0x291] sm:$0xff] }
 0x997   :  { %5910 = vrot.lane.b32.xlu2 %v5764_v46, %s9519_s15 }
 0x998   :  { %v5563_v6 = vpop.permute.xlu1 %5562 }
 0x999   :  { %v5583_v38 = vpop.permute.xlu2 %5582  ;;  %5718 = vst.msk [vmem:[#allocation2 + $0x120] sm:$0xff] %vm1247_vm3, %v5563_v6 }
 0x99a   :  { %5728 = vst.msk [vmem:[#allocation2 + $0x170] sm:$0xff] %vm1247_vm3, %v5583_v38  ;;  %v5573_v16 = vpop.permute.xlu0 %5572  ;;  %v5793_v38 = vld [vmem:[#allocation3 + $0x279] sm:$0xff] }
 0x99b   :  { %5723 = vst.msk [vmem:[#allocation2 + $0x148] sm:$0xff] %vm1247_vm3, %v5573_v16  ;;  %5918 = vrot.lane.b32.xlu0 %v5768_v48, %s9519_s15  ;;  %v5797_v16 = vld [vmem:[#allocation3 + $0x2a9] sm:$0xff] }
 0x99e   :  { %5908 = vrot.lane.b32.xlu1 %v5763_v42, %s9519_s15  ;;  %v5798_v42 = vld [vmem:[#allocation3 + $0x2b9] sm:$0xff] }
 0x99f   :  { %5916 = vrot.lane.b32.xlu2 %v5767_v8, %s9519_s15 }
 0x9a0   :  { %v5569_v9 = vpop.permute.xlu1 %5568 }
 0x9a1   :  { %v5589_v17 = vpop.permute.xlu2 %5588  ;;  %5721 = vst.msk [vmem:[#allocation2 + $0x138] sm:$0xff] %vm1247_vm3, %v5569_v9 }
 0x9a2   :  { %5731 = vst.msk [vmem:[#allocation2 + $0x188] sm:$0xff] %vm1247_vm3, %v5589_v17  ;;  %v5579_v15 = vpop.permute.xlu0 %5578  ;;  %v5796_v17 = vld [vmem:[#allocation3 + $0x2a1] sm:$0xff] }
 0x9a3   :  { %5726 = vst.msk [vmem:[#allocation2 + $0x160] sm:$0xff] %vm1247_vm3, %v5579_v15  ;;  %5924 = vrot.lane.b32.xlu0 %v5771_v62, %s9519_s15  ;;  %v5800_v15 = vld [vmem:[#allocation3 + $0x2d1] sm:$0xff] }
 0x9a6   :  { %5914 = vrot.lane.b32.xlu1 %v5766_v55, %s9519_s15  ;;  %v5801_v55 = vld [vmem:[#allocation3 + $0x2d9] sm:$0xff] }
 0x9a7   :  { %5922 = vrot.lane.b32.xlu2 %v5770_v12, %s9519_s15 }
 0x9a8   :  { %v5575_v50 = vpop.permute.xlu1 %5574 }
 0x9a9   :  { %v5595_v1 = vpop.permute.xlu2 %5594  ;;  %5724 = vst.msk [vmem:[#allocation2 + $0x150] sm:$0xff] %vm1247_vm3, %v5575_v50 }
 0x9aa   :  { %5734 = vst.msk [vmem:[#allocation2 + $0x1a0] sm:$0xff] %vm1247_vm3, %v5595_v1  ;;  %v5585_v41 = vpop.permute.xlu0 %5584  ;;  %v5799_v1 = vld [vmem:[#allocation3 + $0x2c1] sm:$0xff] }
 0x9ab   :  { %5729 = vst.msk [vmem:[#allocation2 + $0x178] sm:$0xff] %vm1247_vm3, %v5585_v41  ;;  %5930 = vrot.lane.b32.xlu0 %v5774_v34, %s9519_s15  ;;  %v5803_v41 = vld [vmem:[#allocation3 + $0x2f1] sm:$0xff] }
 0x9ae   :  { %5920 = vrot.lane.b32.xlu1 %v5769_v27, %s9519_s15  ;;  %v5804_v27 = vld [vmem:[#allocation3 + $0x301] sm:$0xff] }
 0x9af   :  { %5928 = vrot.lane.b32.xlu2 %v5773_v40, %s9519_s15 }
 0x9b0   :  { %v5581_v45 = vpop.permute.xlu1 %5580 }
 0x9b1   :  { %v5601_v30 = vpop.permute.xlu2 %5600  ;;  %5727 = vst.msk [vmem:[#allocation2 + $0x168] sm:$0xff] %vm1247_vm3, %v5581_v45 }
 0x9b2   :  { %5737 = vst.msk [vmem:[#allocation2 + $0x1b8] sm:$0xff] %vm1247_vm3, %v5601_v30  ;;  %v5591_v19 = vpop.permute.xlu0 %5590  ;;  %v5802_v30 = vld [vmem:[#allocation3 + $0x2e9] sm:$0xff] }
 0x9b3   :  { %5732 = vst.msk [vmem:[#allocation2 + $0x190] sm:$0xff] %vm1247_vm3, %v5591_v19  ;;  %5936 = vrot.lane.b32.xlu0 %v5777_v18, %s9519_s15  ;;  %v5806_v19 = vld [vmem:[#allocation3 + $0x319] sm:$0xff] }
 0x9b6   :  { %5926 = vrot.lane.b32.xlu1 %v5772_v35, %s9519_s15  ;;  %v5807_v35 = vld [vmem:[#allocation3 + $0x321] sm:$0xff] }
 0x9b7   :  { %5934 = vrot.lane.b32.xlu2 %v5776_v53, %s9519_s15 }
 0x9b8   :  { %v5587_v23 = vpop.permute.xlu1 %5586 }
 0x9b9   :  { %v5607_v39 = vpop.permute.xlu2 %5606  ;;  %5730 = vst.msk [vmem:[#allocation2 + $0x180] sm:$0xff] %vm1247_vm3, %v5587_v23 }
 0x9ba   :  { %5740 = vst.msk [vmem:[#allocation2 + $0x1d0] sm:$0xff] %vm1247_vm3, %v5607_v39  ;;  %v5597_v47 = vpop.permute.xlu0 %5596  ;;  %v5805_v39 = vld [vmem:[#allocation3 + $0x309] sm:$0xff] }
 0x9bb   :  { %5735 = vst.msk [vmem:[#allocation2 + $0x1a8] sm:$0xff] %vm1247_vm3, %v5597_v47  ;;  %5942 = vrot.lane.b32.xlu0 %v5780_v24, %s9519_s15  ;;  %v5809_v47 = vld [vmem:[#allocation3 + $0x339] sm:$0xff] }
 0x9be   :  { %5932 = vrot.lane.b32.xlu1 %v5775_v25, %s9519_s15  ;;  %v6130_v25 = vld [vmem:[#allocation3 + $0x1a] sm:$0xff] }
 0x9bf   :  { %5940 = vrot.lane.b32.xlu2 %v5779_v7, %s9519_s15 }
 0x9c0   :  { %v5593_v3 = vpop.permute.xlu1 %5592 }
 0x9c1   :  { %v5613_v4 = vpop.permute.xlu2 %5612  ;;  %5733 = vst.msk [vmem:[#allocation2 + $0x198] sm:$0xff] %vm1247_vm3, %v5593_v3 }
 0x9c2   :  { %5743 = vst.msk [vmem:[#allocation2 + $0x1e8] sm:$0xff] %vm1247_vm3, %v5613_v4  ;;  %v5603_v63 = vpop.permute.xlu0 %5602  ;;  %v5808_v4 = vld [vmem:[#allocation3 + $0x331] sm:$0xff] }
 0x9c3   :  { %5738 = vst.msk [vmem:[#allocation2 + $0x1c0] sm:$0xff] %vm1247_vm3, %v5603_v63  ;;  %5948 = vrot.lane.b32.xlu0 %v5783_v54, %s9519_s15  ;;  %v14863_v63 = vld [vmem:[#allocation3 + $0x32] sm:$0xff] }
 0x9c6   :  { %5938 = vrot.lane.b32.xlu1 %v5778_v26, %s9519_s15  ;;  %v14861_v26 = vld [vmem:[#allocation3 + $0x3a] sm:$0xff] }
 0x9c7   :  { %5946 = vrot.lane.b32.xlu2 %v5782_v57, %s9519_s15 }
 0x9c8   :  { %v5599_v61 = vpop.permute.xlu1 %5598 }
 0x9c9   :  { %v5875_v43 = vpop.permute.xlu2 %5874  ;;  %5736 = vst.msk [vmem:[#allocation2 + $0x1b0] sm:$0xff] %vm1247_vm3, %v5599_v61 }
 0x9ca   :  { %6066 = vst.msk [vmem:[#allocation2] sm:$0xff] %vm1632_vm4, %v5875_v43  ;;  %v5609_v28 = vpop.permute.xlu0 %5608  ;;  %v6131_v43 = vld [vmem:[#allocation3 + $0x22] sm:$0xff] }
 0x9cb   :  { %5741 = vst.msk [vmem:[#allocation2 + $0x1d8] sm:$0xff] %vm1247_vm3, %v5609_v28  ;;  %5954 = vrot.lane.b32.xlu0 %v5786_v33, %s9519_s15  ;;  %v14873_v28 = vld [vmem:[#allocation3 + $0x62] sm:$0xff] }
 0x9ce   :  { %5944 = vrot.lane.b32.xlu1 %v14800_v11, %s9519_s15 }
 0x9cf   :  { %5952 = vrot.lane.b32.xlu2 %v5785_v36, %s9519_s15 }
 0x9d0   :  { %v5605_v37 = vpop.permute.xlu1 %5604 }
 0x9d1   :  { %v5881_v10 = vpop.permute.xlu2 %5880  ;;  %5739 = vst.msk [vmem:[#allocation2 + $0x1c8] sm:$0xff] %vm1247_vm3, %v5605_v37  ;;  %v14881_v37 = vld [vmem:[#allocation3 + $0x4a] sm:$0xff] }
 0x9d2   :  { %6069 = vst.msk [vmem:[#allocation2 + $0x18] sm:$0xff] %vm1632_vm4, %v5881_v10  ;;  %v5615_v49 = vpop.permute.xlu0 %5614  ;;  %v14875_v10 = vld [vmem:[#allocation3 + $0x52] sm:$0xff] }
 0x9d3   :  { %5744 = vst.msk [vmem:[#allocation2 + $0x1f0] sm:$0xff] %vm1247_vm3, %v5615_v49  ;;  %5960 = vrot.lane.b32.xlu0 %v5789_v60, %s9519_s15  ;;  %v14888_v49 = vld [vmem:[#allocation3 + $0x82] sm:$0xff] }
 0x9d6   :  { %5950 = vrot.lane.b32.xlu1 %v5784_v32, %s9519_s15 }
 0x9d7   :  { %5958 = vrot.lane.b32.xlu2 %v5788_v29, %s9519_s15 }
 0x9d8   :  { %v5611_v5 = vpop.permute.xlu1 %5610 }
 0x9d9   :  { %v5887_v22 = vpop.permute.xlu2 %5886  ;;  %5742 = vst.msk [vmem:[#allocation2 + $0x1e0] sm:$0xff] %vm1247_vm3, %v5611_v5  ;;  %v14896_v5 = vld [vmem:[#allocation3 + $0x6a] sm:$0xff] }
 0x9da   :  { %6072 = vst.msk [vmem:[#allocation2 + $0x30] sm:$0xff] %vm1632_vm4, %v5887_v22  ;;  %v5877_v44 = vpop.permute.xlu0 %5876  ;;  %v14890_v22 = vld [vmem:[#allocation3 + $0x7a] sm:$0xff] }
 0x9db   :  { %6067 = vst.msk [vmem:[#allocation2 + $0x8] sm:$0xff] %vm1632_vm4, %v5877_v44  ;;  %5966 = vrot.lane.b32.xlu0 %v5792_v20, %s9519_s15  ;;  %v14903_v44 = vld [vmem:[#allocation3 + $0xaa] sm:$0xff] }
 0x9de   :  { %5956 = vrot.lane.b32.xlu1 %v5787_v13, %s9519_s15 }
 0x9df   :  { %5964 = vrot.lane.b32.xlu2 %v5791_v21, %s9519_s15 }
 0x9e0   :  { %v5617_v51 = vpop.permute.xlu1 %5616 }
 0x9e1   :  { %v5893_v56 = vpop.permute.xlu2 %5892  ;;  %5745 = vst.msk [vmem:[#allocation2 + $0x1f8] sm:$0xff] %vm1247_vm3, %v5617_v51  ;;  %v14911_v51 = vld [vmem:[#allocation3 + $0x92] sm:$0xff] }
 0x9e2   :  { %6075 = vst.msk [vmem:[#allocation2 + $0x48] sm:$0xff] %vm1632_vm4, %v5893_v56  ;;  %v5883_v14 = vpop.permute.xlu0 %5882  ;;  %v14905_v56 = vld [vmem:[#allocation3 + $0x9a] sm:$0xff] }
 0x9e3   :  { %6070 = vst.msk [vmem:[#allocation2 + $0x20] sm:$0xff] %vm1632_vm4, %v5883_v14  ;;  %5972 = vrot.lane.b32.xlu0 %v5795_v59, %s9519_s15  ;;  %v14918_v14 = vld [vmem:[#allocation3 + $0xca] sm:$0xff] }
 0x9e6   :  { %5962 = vrot.lane.b32.xlu1 %v5790_v58, %s9519_s15 }
 0x9e7   :  { %5970 = vrot.lane.b32.xlu2 %v5794_v31, %s9519_s15 }
 0x9e8   :  { %v5879_v52 = vpop.permute.xlu1 %5878 }
 0x9e9   :  { %v5899_v2 = vpop.permute.xlu2 %5898  ;;  %6068 = vst.msk [vmem:[#allocation2 + $0x10] sm:$0xff] %vm1632_vm4, %v5879_v52  ;;  %v14926_v52 = vld [vmem:[#allocation3 + $0xb2] sm:$0xff] }
 0x9ea   :  { %6078 = vst.msk [vmem:[#allocation2 + $0x60] sm:$0xff] %vm1632_vm4, %v5899_v2  ;;  %v5889_v6 = vpop.permute.xlu0 %5888  ;;  %v14920_v2 = vld [vmem:[#allocation3 + $0xc2] sm:$0xff] }
 0x9eb   :  { %6073 = vst.msk [vmem:[#allocation2 + $0x38] sm:$0xff] %vm1632_vm4, %v5889_v6  ;;  %5978 = vrot.lane.b32.xlu0 %v5798_v42, %s9519_s15  ;;  %v6148_v6 = vld [vmem:[#allocation3 + $0xf2] sm:$0xff] }
 0x9ee   :  { %5968 = vrot.lane.b32.xlu1 %v5793_v38, %s9519_s15 }
 0x9ef   :  { %5976 = vrot.lane.b32.xlu2 %v5797_v16, %s9519_s15 }
 0x9f0   :  { %v5885_v46 = vpop.permute.xlu1 %5884 }
 0x9f1   :  { %v5905_v0 = vpop.permute.xlu2 %5904  ;;  %6071 = vst.msk [vmem:[#allocation2 + $0x28] sm:$0xff] %vm1632_vm4, %v5885_v46  ;;  %v14938_v46 = vld [vmem:[#allocation3 + $0xda] sm:$0xff] }
 0x9f2   :  { %6081 = vst.msk [vmem:[#allocation2 + $0x78] sm:$0xff] %vm1632_vm4, %v5905_v0  ;;  %v5895_v9 = vpop.permute.xlu0 %5894  ;;  %v14933_v0 = vld [vmem:[#allocation3 + $0xe2] sm:$0xff] }
 0x9f3   :  { %6076 = vst.msk [vmem:[#allocation2 + $0x50] sm:$0xff] %vm1632_vm4, %v5895_v9  ;;  %5984 = vrot.lane.b32.xlu0 %v5801_v55, %s9519_s15  ;;  %v6151_v9 = vld [vmem:[#allocation3 + $0x112] sm:$0xff] }
 0x9f6   :  { %5974 = vrot.lane.b32.xlu1 %v5796_v17, %s9519_s15 }
 0x9f7   :  { %5982 = vrot.lane.b32.xlu2 %v5800_v15, %s9519_s15 }
 0x9f8   :  { %v5891_v8 = vpop.permute.xlu1 %5890 }
 0x9f9   :  { %v5911_v48 = vpop.permute.xlu2 %5910  ;;  %6074 = vst.msk [vmem:[#allocation2 + $0x40] sm:$0xff] %vm1632_vm4, %v5891_v8  ;;  %v6149_v8 = vld [vmem:[#allocation3 + $0xfa] sm:$0xff] }
 0x9fa   :  { %6084 = vst.msk [vmem:[#allocation2 + $0x90] sm:$0xff] %vm1632_vm4, %v5911_v48  ;;  %v5901_v50 = vpop.permute.xlu0 %5900  ;;  %v6150_v48 = vld [vmem:[#allocation3 + $0x10a] sm:$0xff] }
 0x9fb   :  { %6079 = vst.msk [vmem:[#allocation2 + $0x68] sm:$0xff] %vm1632_vm4, %v5901_v50  ;;  %5990 = vrot.lane.b32.xlu0 %v5804_v27, %s9519_s15  ;;  %v6154_v50 = vld [vmem:[#allocation3 + $0x13a] sm:$0xff] }
 0x9fe   :  { %5980 = vrot.lane.b32.xlu1 %v5799_v1, %s9519_s15 }
 0x9ff   :  { %5988 = vrot.lane.b32.xlu2 %v5803_v41, %s9519_s15 }
 0xa00   :  { %v5897_v12 = vpop.permute.xlu1 %5896 }
 0xa01   :  { %v5917_v62 = vpop.permute.xlu2 %5916  ;;  %6077 = vst.msk [vmem:[#allocation2 + $0x58] sm:$0xff] %vm1632_vm4, %v5897_v12  ;;  %v6152_v12 = vld [vmem:[#allocation3 + $0x122] sm:$0xff] }
 0xa02   :  { %6087 = vst.msk [vmem:[#allocation2 + $0xa8] sm:$0xff] %vm1632_vm4, %v5917_v62  ;;  %v5907_v45 = vpop.permute.xlu0 %5906  ;;  %v6153_v62 = vld [vmem:[#allocation3 + $0x12a] sm:$0xff] }
 0xa03   :  { %6082 = vst.msk [vmem:[#allocation2 + $0x80] sm:$0xff] %vm1632_vm4, %v5907_v45  ;;  %5996 = vrot.lane.b32.xlu0 %v5807_v35, %s9519_s15  ;;  %v6157_v45 = vld [vmem:[#allocation3 + $0x15a] sm:$0xff] }
 0xa06   :  { %5986 = vrot.lane.b32.xlu1 %v5802_v30, %s9519_s15 }
 0xa07   :  { %5994 = vrot.lane.b32.xlu2 %v5806_v19, %s9519_s15 }
 0xa08   :  { %v5903_v40 = vpop.permute.xlu1 %5902 }
 0xa09   :  { %v5923_v34 = vpop.permute.xlu2 %5922  ;;  %6080 = vst.msk [vmem:[#allocation2 + $0x70] sm:$0xff] %vm1632_vm4, %v5903_v40  ;;  %v6155_v40 = vld [vmem:[#allocation3 + $0x142] sm:$0xff] }
 0xa0a   :  { %6090 = vst.msk [vmem:[#allocation2 + $0xc0] sm:$0xff] %vm1632_vm4, %v5923_v34  ;;  %v5913_v23 = vpop.permute.xlu0 %5912  ;;  %v6156_v34 = vld [vmem:[#allocation3 + $0x152] sm:$0xff] }
 0xa0b   :  { %6085 = vst.msk [vmem:[#allocation2 + $0x98] sm:$0xff] %vm1632_vm4, %v5913_v23  ;;  %6258 = vrot.lane.b32.xlu0 %v6130_v25, %s9520_s8  ;;  %v6160_v23 = vld [vmem:[#allocation3 + $0x182] sm:$0xff] }
 0xa0e   :  { %5992 = vrot.lane.b32.xlu1 %v5805_v39, %s9519_s15 }
 0xa0f   :  { %6000 = vrot.lane.b32.xlu2 %v5809_v47, %s9519_s15 }
 0xa10   :  { %v5909_v53 = vpop.permute.xlu1 %5908 }
 0xa11   :  { %v5929_v18 = vpop.permute.xlu2 %5928  ;;  %6083 = vst.msk [vmem:[#allocation2 + $0x88] sm:$0xff] %vm1632_vm4, %v5909_v53  ;;  %v6158_v53 = vld [vmem:[#allocation3 + $0x16a] sm:$0xff] }
 0xa12   :  { %6093 = vst.msk [vmem:[#allocation2 + $0xd8] sm:$0xff] %vm1632_vm4, %v5929_v18  ;;  %v5919_v3 = vpop.permute.xlu0 %5918  ;;  %v6159_v18 = vld [vmem:[#allocation3 + $0x172] sm:$0xff] }
 0xa13   :  { %6088 = vst.msk [vmem:[#allocation2 + $0xb0] sm:$0xff] %vm1632_vm4, %v5919_v3  ;;  %6264 = vrot.lane.b32.xlu0 %v14861_v26, %s9520_s8  ;;  %v6163_v3 = vld [vmem:[#allocation3 + $0x1d2] sm:$0xff] }
 0xa16   :  { %5998 = vrot.lane.b32.xlu1 %v5808_v4, %s9519_s15 }
 0xa17   :  { %6262 = vrot.lane.b32.xlu2 %v14863_v63, %s9520_s8 }
 0xa18   :  { %v5915_v7 = vpop.permute.xlu1 %5914 }
 0xa19   :  { %v5935_v24 = vpop.permute.xlu2 %5934  ;;  %6086 = vst.msk [vmem:[#allocation2 + $0xa0] sm:$0xff] %vm1632_vm4, %v5915_v7  ;;  %v6161_v7 = vld [vmem:[#allocation3 + $0x18a] sm:$0xff] }
 0xa1a   :  { %6096 = vst.msk [vmem:[#allocation2 + $0xf0] sm:$0xff] %vm1632_vm4, %v5935_v24  ;;  %v5925_v61 = vpop.permute.xlu0 %5924  ;;  %v6162_v24 = vld [vmem:[#allocation3 + $0x1ca] sm:$0xff] }
 0xa1b   :  { %6091 = vst.msk [vmem:[#allocation2 + $0xc8] sm:$0xff] %vm1632_vm4, %v5925_v61  ;;  %6270 = vrot.lane.b32.xlu0 %v14873_v28, %s9520_s8 }
 0xa1e   :  { %6260 = vrot.lane.b32.xlu1 %v6131_v43, %s9520_s8 }
 0xa1f   :  { %6268 = vrot.lane.b32.xlu2 %v14875_v10, %s9520_s8 }
 0xa20   :  { %v5921_v57 = vpop.permute.xlu1 %5920 }
 0xa21   :  { %v5941_v54 = vpop.permute.xlu2 %5940  ;;  %6089 = vst.msk [vmem:[#allocation2 + $0xb8] sm:$0xff] %vm1632_vm4, %v5921_v57  ;;  %v14975_v57 = vld [vmem:[#allocation3 + $0x1fa] sm:$0xff] }
 0xa22   :  { %6099 = vst.msk [vmem:[#allocation2 + $0x108] sm:$0xff] %vm1632_vm4, %v5941_v54  ;;  %v5931_v33 = vpop.permute.xlu0 %5930 }
 0xa23   :  { %6094 = vst.msk [vmem:[#allocation2 + $0xe0] sm:$0xff] %vm1632_vm4, %v5931_v33  ;;  %6276 = vrot.lane.b32.xlu0 %v14888_v49, %s9520_s8  ;;  %v14977_v33 = vld [vmem:[#allocation3 + $0x1ea] sm:$0xff] }
 0xa26   :  { %6266 = vrot.lane.b32.xlu1 %v14881_v37, %s9520_s8 }
 0xa27   :  { %6274 = vrot.lane.b32.xlu2 %v14890_v22, %s9520_s8 }
 0xa28   :  { %v5927_v32 = vpop.permute.xlu1 %5926 }
 0xa29   :  { %v5947_v36 = vpop.permute.xlu2 %5946  ;;  %6092 = vst.msk [vmem:[#allocation2 + $0xd0] sm:$0xff] %vm1632_vm4, %v5927_v32 }
 0xa2a   :  { %6102 = vst.msk [vmem:[#allocation2 + $0x120] sm:$0xff] %vm1632_vm4, %v5947_v36  ;;  %v5937_v60 = vpop.permute.xlu0 %5936  ;;  %v14983_v36 = vld [vmem:[#allocation3 + $0x1e2] sm:$0xff] }
 0xa2b   :  { %6097 = vst.msk [vmem:[#allocation2 + $0xf8] sm:$0xff] %vm1632_vm4, %v5937_v60  ;;  %6282 = vrot.lane.b32.xlu0 %v14903_v44, %s9520_s8 }
 0xa2e   :  { %6272 = vrot.lane.b32.xlu1 %v14896_v5, %s9520_s8 }
 0xa2f   :  { %6280 = vrot.lane.b32.xlu2 %v14905_v56, %s9520_s8 }
 0xa30   :  { %v5933_v13 = vpop.permute.xlu1 %5932 }
 0xa31   :  { %v5953_v29 = vpop.permute.xlu2 %5952  ;;  %6095 = vst.msk [vmem:[#allocation2 + $0xe8] sm:$0xff] %vm1632_vm4, %v5933_v13  ;;  %v14990_v13 = vld [vmem:[#allocation3 + $0x21a] sm:$0xff] }
 0xa32   :  { %6105 = vst.msk [vmem:[#allocation2 + $0x138] sm:$0xff] %vm1632_vm4, %v5953_v29  ;;  %v5943_v20 = vpop.permute.xlu0 %5942 }
 0xa33   :  { %6100 = vst.msk [vmem:[#allocation2 + $0x110] sm:$0xff] %vm1632_vm4, %v5943_v20  ;;  %6288 = vrot.lane.b32.xlu0 %v14918_v14, %s9520_s8  ;;  %v14992_v20 = vld [vmem:[#allocation3 + $0x212] sm:$0xff] }
 0xa36   :  { %6278 = vrot.lane.b32.xlu1 %v14911_v51, %s9520_s8 }
 0xa37   :  { %6286 = vrot.lane.b32.xlu2 %v14920_v2, %s9520_s8 }
 0xa38   :  { %v5939_v58 = vpop.permute.xlu1 %5938 }
 0xa39   :  { %v5959_v21 = vpop.permute.xlu2 %5958  ;;  %6098 = vst.msk [vmem:[#allocation2 + $0x100] sm:$0xff] %vm1632_vm4, %v5939_v58 }
 0xa3a   :  { %6108 = vst.msk [vmem:[#allocation2 + $0x150] sm:$0xff] %vm1632_vm4, %v5959_v21  ;;  %v5949_v59 = vpop.permute.xlu0 %5948  ;;  %v14998_v21 = vld [vmem:[#allocation3 + $0x202] sm:$0xff] }
 0xa3b   :  { %6103 = vst.msk [vmem:[#allocation2 + $0x128] sm:$0xff] %vm1632_vm4, %v5949_v59  ;;  %6294 = vrot.lane.b32.xlu0 %v6148_v6, %s9520_s8  ;;  %v15007_v6 = vld [vmem:[#allocation3 + $0x232] sm:$0xff] }
 0xa3e   :  { %6284 = vrot.lane.b32.xlu1 %v14926_v52, %s9520_s8 }
 0xa3f   :  { %6292 = vrot.lane.b32.xlu2 %v14933_v0, %s9520_s8 }
 0xa40   :  { %v5945_v38 = vpop.permute.xlu1 %5944 }
 0xa41   :  { %v5965_v31 = vpop.permute.xlu2 %5964  ;;  %6101 = vst.msk [vmem:[#allocation2 + $0x118] sm:$0xff] %vm1632_vm4, %v5945_v38  ;;  %v15005_v38 = vld [vmem:[#allocation3 + $0x242] sm:$0xff] }
 0xa42   :  { %6111 = vst.msk [vmem:[#allocation2 + $0x168] sm:$0xff] %vm1632_vm4, %v5965_v31  ;;  %v5955_v42 = vpop.permute.xlu0 %5954 }
 0xa43   :  { %6106 = vst.msk [vmem:[#allocation2 + $0x140] sm:$0xff] %vm1632_vm4, %v5955_v42  ;;  %6300 = vrot.lane.b32.xlu0 %v6151_v9, %s9520_s8  ;;  %v15013_v42 = vld [vmem:[#allocation3 + $0x22a] sm:$0xff] }
 0xa46   :  { %6290 = vrot.lane.b32.xlu1 %v14938_v46, %s9520_s8 }
 0xa47   :  { %6298 = vrot.lane.b32.xlu2 %v6150_v48, %s9520_s8  ;;  %v15020_v48 = vld [vmem:[#allocation3 + $0x262] sm:$0xff] }
 0xa48   :  { %v5951_v17 = vpop.permute.xlu1 %5950 }
 0xa49   :  { %v5971_v16 = vpop.permute.xlu2 %5970  ;;  %6104 = vst.msk [vmem:[#allocation2 + $0x130] sm:$0xff] %vm1632_vm4, %v5951_v17 }
 0xa4a   :  { %6114 = vst.msk [vmem:[#allocation2 + $0x180] sm:$0xff] %vm1632_vm4, %v5971_v16  ;;  %v5961_v55 = vpop.permute.xlu0 %5960 }
 0xa4b   :  { %6109 = vst.msk [vmem:[#allocation2 + $0x158] sm:$0xff] %vm1632_vm4, %v5961_v55  ;;  %6306 = vrot.lane.b32.xlu0 %v6154_v50, %s9520_s8  ;;  %v15028_v55 = vld [vmem:[#allocation3 + $0x24a] sm:$0xff] }
 0xa4e   :  { %6296 = vrot.lane.b32.xlu1 %v6149_v8, %s9520_s8  ;;  %v15022_v8 = vld [vmem:[#allocation3 + $0x25a] sm:$0xff] }
 0xa4f   :  { %6304 = vrot.lane.b32.xlu2 %v6153_v62, %s9520_s8  ;;  %v6178_v62 = vld [vmem:[#allocation3 + $0x28a] sm:$0xff] }
 0xa50   :  { %v5957_v1 = vpop.permute.xlu1 %5956 }
 0xa51   :  { %v5977_v15 = vpop.permute.xlu2 %5976  ;;  %6107 = vst.msk [vmem:[#allocation2 + $0x148] sm:$0xff] %vm1632_vm4, %v5957_v1 }
 0xa52   :  { %6117 = vst.msk [vmem:[#allocation2 + $0x198] sm:$0xff] %vm1632_vm4, %v5977_v15  ;;  %v5967_v27 = vpop.permute.xlu0 %5966 }
 0xa53   :  { %6112 = vst.msk [vmem:[#allocation2 + $0x170] sm:$0xff] %vm1632_vm4, %v5967_v27  ;;  %6312 = vrot.lane.b32.xlu0 %v6157_v45, %s9520_s8  ;;  %v6176_v27 = vld [vmem:[#allocation3 + $0x272] sm:$0xff] }
 0xa56   :  { %6302 = vrot.lane.b32.xlu1 %v6152_v12, %s9520_s8  ;;  %v6177_v12 = vld [vmem:[#allocation3 + $0x27a] sm:$0xff] }
 0xa57   :  { %6310 = vrot.lane.b32.xlu2 %v6156_v34, %s9520_s8  ;;  %v6181_v34 = vld [vmem:[#allocation3 + $0x2aa] sm:$0xff] }
 0xa58   :  { %v5963_v30 = vpop.permute.xlu1 %5962 }
 0xa59   :  { %v5983_v41 = vpop.permute.xlu2 %5982  ;;  %6110 = vst.msk [vmem:[#allocation2 + $0x160] sm:$0xff] %vm1632_vm4, %v5963_v30 }
 0xa5a   :  { %6120 = vst.msk [vmem:[#allocation2 + $0x1b0] sm:$0xff] %vm1632_vm4, %v5983_v41  ;;  %v5973_v35 = vpop.permute.xlu0 %5972 }
 0xa5b   :  { %6115 = vst.msk [vmem:[#allocation2 + $0x188] sm:$0xff] %vm1632_vm4, %v5973_v35  ;;  %6318 = vrot.lane.b32.xlu0 %v6160_v23, %s9520_s8  ;;  %v6179_v35 = vld [vmem:[#allocation3 + $0x292] sm:$0xff] }
 0xa5e   :  { %6308 = vrot.lane.b32.xlu1 %v6155_v40, %s9520_s8  ;;  %v6180_v40 = vld [vmem:[#allocation3 + $0x2a2] sm:$0xff] }
 0xa5f   :  { %6316 = vrot.lane.b32.xlu2 %v6159_v18, %s9520_s8  ;;  %v6184_v18 = vld [vmem:[#allocation3 + $0x2d2] sm:$0xff] }
 0xa60   :  { %v5969_v39 = vpop.permute.xlu1 %5968 }
 0xa61   :  { %v5989_v19 = vpop.permute.xlu2 %5988  ;;  %6113 = vst.msk [vmem:[#allocation2 + $0x178] sm:$0xff] %vm1632_vm4, %v5969_v39 }
 0xa62   :  { %6123 = vst.msk [vmem:[#allocation2 + $0x1c8] sm:$0xff] %vm1632_vm4, %v5989_v19  ;;  %v5979_v25 = vpop.permute.xlu0 %5978 }
 0xa63   :  { %6118 = vst.msk [vmem:[#allocation2 + $0x1a0] sm:$0xff] %vm1632_vm4, %v5979_v25  ;;  %6324 = vrot.lane.b32.xlu0 %v6163_v3, %s9520_s8  ;;  %v6182_v25 = vld [vmem:[#allocation3 + $0x2ba] sm:$0xff] }
 0xa66   :  { %6314 = vrot.lane.b32.xlu1 %v6158_v53, %s9520_s8  ;;  %v6183_v53 = vld [vmem:[#allocation3 + $0x2c2] sm:$0xff] }
 0xa67   :  { %6322 = vrot.lane.b32.xlu2 %v6162_v24, %s9520_s8  ;;  %v6187_v24 = vld [vmem:[#allocation3 + $0x2f2] sm:$0xff] }
 0xa68   :  { %v5975_v4 = vpop.permute.xlu1 %5974 }
 0xa69   :  { %v5995_v47 = vpop.permute.xlu2 %5994  ;;  %6116 = vst.msk [vmem:[#allocation2 + $0x190] sm:$0xff] %vm1632_vm4, %v5975_v4 }
 0xa6a   :  { %6126 = vst.msk [vmem:[#allocation2 + $0x1e0] sm:$0xff] %vm1632_vm4, %v5995_v47  ;;  %v5985_v43 = vpop.permute.xlu0 %5984 }
 0xa6b   :  { %6121 = vst.msk [vmem:[#allocation2 + $0x1b8] sm:$0xff] %vm1632_vm4, %v5985_v43  ;;  %6330 = vrot.lane.b32.xlu0 %v14975_v57, %s9520_s8  ;;  %v6185_v43 = vld [vmem:[#allocation3 + $0x2da] sm:$0xff] }
 0xa6e   :  { %6320 = vrot.lane.b32.xlu1 %v6161_v7, %s9520_s8  ;;  %v6186_v7 = vld [vmem:[#allocation3 + $0x2ea] sm:$0xff] }
 0xa6f   :  { %6328 = vrot.lane.b32.xlu2 %v14977_v33, %s9520_s8 }
 0xa70   :  { %v5981_v54 = vpop.permute.xlu1 %5980 }
 0xa71   :  { %v6001_v61 = vpop.permute.xlu2 %6000  ;;  %6119 = vst.msk [vmem:[#allocation2 + $0x1a8] sm:$0xff] %vm1632_vm4, %v5981_v54 }
 0xa72   :  { %6129 = vst.msk [vmem:[#allocation2 + $0x1f8] sm:$0xff] %vm1632_vm4, %v6001_v61  ;;  %v5991_v32 = vpop.permute.xlu0 %5990 }
 0xa73   :  { %6124 = vst.msk [vmem:[#allocation2 + $0x1d0] sm:$0xff] %vm1632_vm4, %v5991_v32  ;;  %6336 = vrot.lane.b32.xlu0 %v14990_v13, %s9520_s8 }
 0xa76   :  { %6326 = vrot.lane.b32.xlu1 %v14983_v36, %s9520_s8 }
 0xa77   :  { %6334 = vrot.lane.b32.xlu2 %v14992_v20, %s9520_s8 }
 0xa78   :  { %v5987_v29 = vpop.permute.xlu1 %5986 }
 0xa79   :  { %v6263_v60 = vpop.permute.xlu2 %6262  ;;  %6122 = vst.msk [vmem:[#allocation2 + $0x1c0] sm:$0xff] %vm1632_vm4, %v5987_v29  ;;  %v6189_v29 = vld [vmem:[#allocation3 + $0x30a] sm:$0xff] }
 0xa7a   :  { %6452 = vst.msk [vmem:[#allocation2 + $0x10] sm:$0xff] %vm2017_vm5, %v6263_v60  ;;  %v5997_v58 = vpop.permute.xlu0 %5996  ;;  %v6190_v60 = vld [vmem:[#allocation3 + $0x31a] sm:$0xff] }
 0xa7b   :  { %6127 = vst.msk [vmem:[#allocation2 + $0x1e8] sm:$0xff] %vm1632_vm4, %v5997_v58  ;;  %6342 = vrot.lane.b32.xlu0 %v15005_v38, %s9520_s8  ;;  %v6188_v58 = vld [vmem:[#allocation3 + $0x302] sm:$0xff] }
 0xa7e   :  { %6332 = vrot.lane.b32.xlu1 %v14998_v21, %s9520_s8 }
 0xa7f   :  { %6340 = vrot.lane.b32.xlu2 %v15007_v6, %s9520_s8 }
 0xa80   :  { %v5993_v31 = vpop.permute.xlu1 %5992 }
 0xa81   :  { %v6269_v59 = vpop.permute.xlu2 %6268  ;;  %6125 = vst.msk [vmem:[#allocation2 + $0x1d8] sm:$0xff] %vm1632_vm4, %v5993_v31 }
 0xa82   :  { %6455 = vst.msk [vmem:[#allocation2 + $0x28] sm:$0xff] %vm2017_vm5, %v6269_v59  ;;  %v6259_v16 = vpop.permute.xlu0 %6258 }
 0xa83   :  { %6450 = vst.msk [vmem:[#allocation2] sm:$0xff] %vm2017_vm5, %v6259_v16  ;;  %6348 = vrot.lane.b32.xlu0 %v15020_v48, %s9520_s8 }
 0xa86   :  { %6338 = vrot.lane.b32.xlu1 %v15013_v42, %s9520_s8 }
 0xa87   :  { %6346 = vrot.lane.b32.xlu2 %v15022_v8, %s9520_s8 }
 0xa88   :  { %v5999_v9 = vpop.permute.xlu1 %5998 }
 0xa89   :  { %v6275_v17 = vpop.permute.xlu2 %6274  ;;  %6128 = vst.msk [vmem:[#allocation2 + $0x1f0] sm:$0xff] %vm1632_vm4, %v5999_v9  ;;  %v6192_v9 = vld [vmem:[#allocation3 + $0x332] sm:$0xff] }
 0xa8a   :  { %6458 = vst.msk [vmem:[#allocation2 + $0x40] sm:$0xff] %vm2017_vm5, %v6275_v17  ;;  %v6265_v15 = vpop.permute.xlu0 %6264  ;;  %v6193_v17 = vld [vmem:[#allocation3 + $0x33a] sm:$0xff] }
 0xa8b   :  { %6453 = vst.msk [vmem:[#allocation2 + $0x18] sm:$0xff] %vm2017_vm5, %v6265_v15  ;;  %6354 = vrot.lane.b32.xlu0 %v6178_v62, %s9520_s8  ;;  %v6191_v15 = vld [vmem:[#allocation3 + $0x322] sm:$0xff] }
 0xa8e   :  { %6344 = vrot.lane.b32.xlu1 %v15028_v55, %s9520_s8 }
 0xa8f   :  { %6352 = vrot.lane.b32.xlu2 %v6177_v12, %s9520_s8  ;;  %v6517_v12 = vld [vmem:[#allocation3 + $0x48] sm:$0xff] }
 0xa90   :  { %v6261_v50 = vpop.permute.xlu1 %6260 }
 0xa91   :  { %v6281_v1 = vpop.permute.xlu2 %6280  ;;  %6451 = vst.msk [vmem:[#allocation2 + $0x8] sm:$0xff] %vm2017_vm5, %v6261_v50 }
 0xa92   :  { %6461 = vst.msk [vmem:[#allocation2 + $0x58] sm:$0xff] %vm2017_vm5, %v6281_v1  ;;  %v6271_v41 = vpop.permute.xlu0 %6270 }
 0xa93   :  { %6456 = vst.msk [vmem:[#allocation2 + $0x30] sm:$0xff] %vm2017_vm5, %v6271_v41  ;;  %6360 = vrot.lane.b32.xlu0 %v6181_v34, %s9520_s8  ;;  %v6515_v41 = vld [vmem:[#allocation3 + $0x30] sm:$0xff] }
 0xa96   :  { %6350 = vrot.lane.b32.xlu1 %v6176_v27, %s9520_s8  ;;  %v6516_v27 = vld [vmem:[#allocation3 + $0x38] sm:$0xff] }
 0xa97   :  { %6358 = vrot.lane.b32.xlu2 %v6180_v40, %s9520_s8  ;;  %v6520_v40 = vld [vmem:[#allocation3 + $0x68] sm:$0xff] }
 0xa98   :  { %v6267_v45 = vpop.permute.xlu1 %6266 }
 0xa99   :  { %v6287_v30 = vpop.permute.xlu2 %6286  ;;  %6454 = vst.msk [vmem:[#allocation2 + $0x20] sm:$0xff] %vm2017_vm5, %v6267_v45 }
 0xa9a   :  { %6464 = vst.msk [vmem:[#allocation2 + $0x70] sm:$0xff] %vm2017_vm5, %v6287_v30  ;;  %v6277_v19 = vpop.permute.xlu0 %6276 }
 0xa9b   :  { %6459 = vst.msk [vmem:[#allocation2 + $0x48] sm:$0xff] %vm2017_vm5, %v6277_v19  ;;  %6366 = vrot.lane.b32.xlu0 %v6184_v18, %s9520_s8  ;;  %v6518_v19 = vld [vmem:[#allocation3 + $0x50] sm:$0xff] }
 0xa9e   :  { %6356 = vrot.lane.b32.xlu1 %v6179_v35, %s9520_s8  ;;  %v6519_v35 = vld [vmem:[#allocation3 + $0x60] sm:$0xff] }
 0xa9f   :  { %6364 = vrot.lane.b32.xlu2 %v6183_v53, %s9520_s8  ;;  %v6523_v53 = vld [vmem:[#allocation3 + $0x90] sm:$0xff] }
 0xaa0   :  { %v6273_v23 = vpop.permute.xlu1 %6272 }
 0xaa1   :  { %v6293_v39 = vpop.permute.xlu2 %6292  ;;  %6457 = vst.msk [vmem:[#allocation2 + $0x38] sm:$0xff] %vm2017_vm5, %v6273_v23 }
 0xaa2   :  { %6467 = vst.msk [vmem:[#allocation2 + $0x88] sm:$0xff] %vm2017_vm5, %v6293_v39  ;;  %v6283_v47 = vpop.permute.xlu0 %6282 }
 0xaa3   :  { %6462 = vst.msk [vmem:[#allocation2 + $0x60] sm:$0xff] %vm2017_vm5, %v6283_v47  ;;  %6372 = vrot.lane.b32.xlu0 %v6187_v24, %s9520_s8  ;;  %v6521_v47 = vld [vmem:[#allocation3 + $0x78] sm:$0xff] }
 0xaa6   :  { %6362 = vrot.lane.b32.xlu1 %v6182_v25, %s9520_s8  ;;  %v6522_v25 = vld [vmem:[#allocation3 + $0x80] sm:$0xff] }
 0xaa7   :  { %6370 = vrot.lane.b32.xlu2 %v6186_v7, %s9520_s8  ;;  %v6526_v7 = vld [vmem:[#allocation3 + $0xb0] sm:$0xff] }
 0xaa8   :  { %v6279_v3 = vpop.permute.xlu1 %6278 }
 0xaa9   :  { %v6299_v4 = vpop.permute.xlu2 %6298  ;;  %6460 = vst.msk [vmem:[#allocation2 + $0x50] sm:$0xff] %vm2017_vm5, %v6279_v3 }
 0xaaa   :  { %6470 = vst.msk [vmem:[#allocation2 + $0xa0] sm:$0xff] %vm2017_vm5, %v6299_v4  ;;  %v6289_v61 = vpop.permute.xlu0 %6288 }
 0xaab   :  { %6465 = vst.msk [vmem:[#allocation2 + $0x78] sm:$0xff] %vm2017_vm5, %v6289_v61  ;;  %6378 = vrot.lane.b32.xlu0 %v6190_v60, %s9520_s8  ;;  %v6524_v61 = vld [vmem:[#allocation3 + $0x98] sm:$0xff] }
 0xaae   :  { %6368 = vrot.lane.b32.xlu1 %v6185_v43, %s9520_s8  ;;  %v6525_v43 = vld [vmem:[#allocation3 + $0xa8] sm:$0xff] }
 0xaaf   :  { %6376 = vrot.lane.b32.xlu2 %v6189_v29, %s9520_s8  ;;  %v6900_v29 = vld [vmem:[#allocation3 + $0x39] sm:$0xff] }
 0xab0   :  { %v6285_v32 = vpop.permute.xlu1 %6284 }
 0xab1   :  { %v6305_v54 = vpop.permute.xlu2 %6304  ;;  %6463 = vst.msk [vmem:[#allocation2 + $0x68] sm:$0xff] %vm2017_vm5, %v6285_v32 }
 0xab2   :  { %6473 = vst.msk [vmem:[#allocation2 + $0xb8] sm:$0xff] %vm2017_vm5, %v6305_v54  ;;  %v6295_v59 = vpop.permute.xlu0 %6294 }
 0xab3   :  { %6468 = vst.msk [vmem:[#allocation2 + $0x90] sm:$0xff] %vm2017_vm5, %v6295_v59  ;;  %6384 = vrot.lane.b32.xlu0 %v6193_v17, %s9520_s8  ;;  %v6901_v17 = vld [vmem:[#allocation3 + $0x49] sm:$0xff] }
 0xab6   :  { %6374 = vrot.lane.b32.xlu1 %v6188_v58, %s9520_s8  ;;  %v6899_v58 = vld [vmem:[#allocation3 + $0x31] sm:$0xff] }
 0xab7   :  { %6382 = vrot.lane.b32.xlu2 %v6192_v9, %s9520_s8  ;;  %v6527_v9 = vld [vmem:[#allocation3 + $0xc0] sm:$0xff] }
 0xab8   :  { %v6291_v16 = vpop.permute.xlu1 %6290 }
 0xab9   :  { %v6311_v31 = vpop.permute.xlu2 %6310  ;;  %6466 = vst.msk [vmem:[#allocation2 + $0x80] sm:$0xff] %vm2017_vm5, %v6291_v16 }
 0xaba   :  { %6476 = vst.msk [vmem:[#allocation2 + $0xd0] sm:$0xff] %vm2017_vm5, %v6311_v31  ;;  %v6301_v1 = vpop.permute.xlu0 %6300 }
 0xabb   :  { %6471 = vst.msk [vmem:[#allocation2 + $0xa8] sm:$0xff] %vm2017_vm5, %v6301_v1  ;;  %6647 = vrot.lane.b32.xlu0 %v6517_v12, %s9521_s9 }
 0xabe   :  { %6380 = vrot.lane.b32.xlu1 %v6191_v15, %s9520_s8 }
 0xabf   :  { %6645 = vrot.lane.b32.xlu2 %v6516_v27, %s9521_s9  ;;  %v6903_v27 = vld [vmem:[#allocation3 + $0x61] sm:$0xff] }
 0xac0   :  { %v6297_v62 = vpop.permute.xlu1 %6296 }
 0xac1   :  { %v6317_v50 = vpop.permute.xlu2 %6316  ;;  %6469 = vst.msk [vmem:[#allocation2 + $0x98] sm:$0xff] %vm2017_vm5, %v6297_v62 }
 0xac2   :  { %6479 = vst.msk [vmem:[#allocation2 + $0xe8] sm:$0xff] %vm2017_vm5, %v6317_v50  ;;  %v6307_v30 = vpop.permute.xlu0 %6306  ;;  %v6902_v50 = vld [vmem:[#allocation3 + $0x51] sm:$0xff] }
 0xac3   :  { %6474 = vst.msk [vmem:[#allocation2 + $0xc0] sm:$0xff] %vm2017_vm5, %v6307_v30  ;;  %6653 = vrot.lane.b32.xlu0 %v6520_v40, %s9521_s9 }
 0xac6   :  { %6643 = vrot.lane.b32.xlu1 %v6515_v41, %s9521_s9  ;;  %v6529_v41 = vld [vmem:[#allocation3 + $0xd8] sm:$0xff] }
 0xac7   :  { %6651 = vrot.lane.b32.xlu2 %v6519_v35, %s9521_s9 }
 0xac8   :  { %v6303_v34 = vpop.permute.xlu1 %6302 }
 0xac9   :  { %v6323_v45 = vpop.permute.xlu2 %6322  ;;  %6472 = vst.msk [vmem:[#allocation2 + $0xb0] sm:$0xff] %vm2017_vm5, %v6303_v34  ;;  %v6904_v34 = vld [vmem:[#allocation3 + $0x69] sm:$0xff] }
 0xaca   :  { %6482 = vst.msk [vmem:[#allocation2 + $0x100] sm:$0xff] %vm2017_vm5, %v6323_v45  ;;  %v6313_v39 = vpop.permute.xlu0 %6312 }
 0xacb   :  { %6477 = vst.msk [vmem:[#allocation2 + $0xd8] sm:$0xff] %vm2017_vm5, %v6313_v39  ;;  %6659 = vrot.lane.b32.xlu0 %v6523_v53, %s9521_s9  ;;  %v6906_v39 = vld [vmem:[#allocation3 + $0x81] sm:$0xff] }
 0xace   :  { %6649 = vrot.lane.b32.xlu1 %v6518_v19, %s9521_s9 }
 0xacf   :  { %6657 = vrot.lane.b32.xlu2 %v6522_v25, %s9521_s9  ;;  %v6547_v25 = vld [vmem:[#allocation3 + $0x1e0] sm:$0xff] }
 0xad0   :  { %v6309_v18 = vpop.permute.xlu1 %6308 }
 0xad1   :  { %v6329_v23 = vpop.permute.xlu2 %6328  ;;  %6475 = vst.msk [vmem:[#allocation2 + $0xc8] sm:$0xff] %vm2017_vm5, %v6309_v18 }
 0xad2   :  { %6485 = vst.msk [vmem:[#allocation2 + $0x118] sm:$0xff] %vm2017_vm5, %v6329_v23  ;;  %v6319_v4 = vpop.permute.xlu0 %6318  ;;  %v6905_v23 = vld [vmem:[#allocation3 + $0x79] sm:$0xff] }
 0xad3   :  { %6480 = vst.msk [vmem:[#allocation2 + $0xf0] sm:$0xff] %vm2017_vm5, %v6319_v4  ;;  %6665 = vrot.lane.b32.xlu0 %v6526_v7, %s9521_s9  ;;  %v6548_v7 = vld [vmem:[#allocation3 + $0x1e8] sm:$0xff] }
 0xad6   :  { %6655 = vrot.lane.b32.xlu1 %v6521_v47, %s9521_s9 }
 0xad7   :  { %6663 = vrot.lane.b32.xlu2 %v6525_v43, %s9521_s9 }
 0xad8   :  { %v6315_v24 = vpop.permute.xlu1 %6314 }
 0xad9   :  { %v6335_v3 = vpop.permute.xlu2 %6334  ;;  %6478 = vst.msk [vmem:[#allocation2 + $0xe0] sm:$0xff] %vm2017_vm5, %v6315_v24  ;;  %v6931_v24 = vld [vmem:[#allocation3 + $0x1e1] sm:$0xff] }
 0xada   :  { %6488 = vst.msk [vmem:[#allocation2 + $0x130] sm:$0xff] %vm2017_vm5, %v6335_v3  ;;  %v6325_v54 = vpop.permute.xlu0 %6324 }
 0xadb   :  { %6483 = vst.msk [vmem:[#allocation2 + $0x108] sm:$0xff] %vm2017_vm5, %v6325_v54  ;;  %7411 = vrot.lane.b32.xlu0 %v14863_v63, %s9523_s23 }
 0xade   :  { %6661 = vrot.lane.b32.xlu1 %v6524_v61, %s9521_s9  ;;  %v6907_v61 = vld [vmem:[#allocation3 + $0x91] sm:$0xff] }
 0xadf   :  { %7029 = vrot.lane.b32.xlu2 %v6900_v29, %s9522_s26 }
 0xae0   :  { %v6321_v60 = vpop.permute.xlu1 %6320 }
 0xae1   :  { %v6341_v32 = vpop.permute.xlu2 %6340  ;;  %6481 = vst.msk [vmem:[#allocation2 + $0xf8] sm:$0xff] %vm2017_vm5, %v6321_v60  ;;  %v6908_v60 = vld [vmem:[#allocation3 + $0x99] sm:$0xff] }
 0xae2   :  { %6491 = vst.msk [vmem:[#allocation2 + $0x148] sm:$0xff] %vm2017_vm5, %v6341_v32  ;;  %v6331_v59 = vpop.permute.xlu0 %6330 }
 0xae3   :  { %6486 = vst.msk [vmem:[#allocation2 + $0x120] sm:$0xff] %vm2017_vm5, %v6331_v59  ;;  %7031 = vrot.lane.b32.xlu0 %v6901_v17, %s9522_s26  ;;  %v6550_v59 = vld [vmem:[#allocation3 + $0x200] sm:$0xff] }
 0xae6   :  { %7027 = vrot.lane.b32.xlu1 %v6899_v58, %s9522_s26  ;;  %v6933_v58 = vld [vmem:[#allocation3 + $0x1f9] sm:$0xff] }
 0xae7   :  { %6667 = vrot.lane.b32.xlu2 %v6527_v9, %s9521_s9 }
 0xae8   :  { %v6327_v16 = vpop.permute.xlu1 %6326 }
 0xae9   :  { %v6347_v31 = vpop.permute.xlu2 %6346  ;;  %6484 = vst.msk [vmem:[#allocation2 + $0x110] sm:$0xff] %vm2017_vm5, %v6327_v16 }
 0xaea   :  { %6494 = vst.msk [vmem:[#allocation2 + $0x160] sm:$0xff] %vm2017_vm5, %v6347_v31  ;;  %v6337_v63 = vpop.permute.xlu0 %6336 }
 0xaeb   :  { %6489 = vst.msk [vmem:[#allocation2 + $0x138] sm:$0xff] %vm2017_vm5, %v6337_v63  ;;  %7417 = vrot.lane.b32.xlu0 %v14875_v10, %s9523_s23  ;;  %v6528_v10 = vld [vmem:[#allocation3 + $0xc8] sm:$0xff] }
 0xaee   :  { %7413 = vrot.lane.b32.xlu1 %v14861_v26, %s9523_s23 }
 0xaef   :  { %7415 = vrot.lane.b32.xlu2 %v14881_v37, %s9523_s23 }
 0xaf0   :  { %v6333_v1 = vpop.permute.xlu1 %6332 }
 0xaf1   :  { %v6353_v15 = vpop.permute.xlu2 %6352  ;;  %6487 = vst.msk [vmem:[#allocation2 + $0x128] sm:$0xff] %vm2017_vm5, %v6333_v1  ;;  %v9488_v1 = vld [vmem:[%s17023_s4 + $0x18] sm:$0xff] }
 0xaf2   :  { %6497 = vst.msk [vmem:[#allocation2 + $0x178] sm:$0xff] %vm2017_vm5, %v6353_v15  ;;  %v6343_v62 = vpop.permute.xlu0 %6342 }
 0xaf3   :  { %6492 = vst.msk [vmem:[#allocation2 + $0x150] sm:$0xff] %vm2017_vm5, %v6343_v62  ;;  %7035 = vrot.lane.b32.xlu0 %v6903_v27, %s9522_s26  ;;  %v9487_v27 = vld [vmem:[%s17023_s4 + $0x10] sm:$0xff] }
 0xaf6   :  { %7033 = vrot.lane.b32.xlu1 %v6902_v50, %s9522_s26  ;;  %v6934_v50 = vld [vmem:[#allocation3 + $0x201] sm:$0xff] }
 0xaf7   :  { %6671 = vrot.lane.b32.xlu2 %v6529_v41, %s9521_s9  ;;  %v6909_v41 = vld [vmem:[#allocation3 + $0xa9] sm:$0xff] }
 0xaf8   :  { %v6339_v12 = vpop.permute.xlu1 %6338 }
 0xaf9   :  { %v6359_v26 = vpop.permute.xlu2 %6358  ;;  %6490 = vst.msk [vmem:[#allocation2 + $0x140] sm:$0xff] %vm2017_vm5, %v6339_v12 }
 0xafa   :  { %6500 = vst.msk [vmem:[#allocation2 + $0x190] sm:$0xff] %vm2017_vm5, %v6359_v26  ;;  %v6349_v37 = vpop.permute.xlu0 %6348 }
 0xafb   :  { %6495 = vst.msk [vmem:[#allocation2 + $0x168] sm:$0xff] %vm2017_vm5, %v6349_v37  ;;  %7421 = vrot.lane.b32.xlu0 %v14896_v5, %s9523_s23  ;;  %v6530_v5 = vld [vmem:[#allocation3 + $0xe0] sm:$0xff] }
 0xafe   :  { %6669 = vrot.lane.b32.xlu1 %v6528_v10, %s9521_s9 }
 0xaff   :  { %7419 = vrot.lane.b32.xlu2 %v14873_v28, %s9523_s23 }
 0xb00   :  { %v6345_v45 = vpop.permute.xlu1 %6344 }
 0xb01   :  { %v6365_v30 = vpop.permute.xlu2 %6364  ;;  %6493 = vst.msk [vmem:[#allocation2 + $0x158] sm:$0xff] %vm2017_vm5, %v6345_v45  ;;  %v9485_v45 = vld [vmem:[%s17023_s4] sm:$0xff] }
 0xb02   :  { %6503 = vst.msk [vmem:[#allocation2 + $0x1a8] sm:$0xff] %vm2017_vm5, %v6365_v30  ;;  %v6355_v40 = vpop.permute.xlu0 %6354 }
 0xb03   :  { %6498 = vst.msk [vmem:[#allocation2 + $0x180] sm:$0xff] %vm2017_vm5, %v6355_v40  ;;  %7041 = vrot.lane.b32.xlu0 %v6906_v39, %s9522_s26  ;;  %v6936_v39 = vld [vmem:[#allocation3 + $0x219] sm:$0xff] }
 0xb06   :  { %7037 = vrot.lane.b32.xlu1 %v6904_v34, %s9522_s26  ;;  %v6551_v34 = vld [vmem:[#allocation3 + $0x210] sm:$0xff] }
 0xb07   :  { %7039 = vrot.lane.b32.xlu2 %v6905_v23, %s9522_s26  ;;  %v6935_v23 = vld [vmem:[#allocation3 + $0x211] sm:$0xff] }
 0xb08   :  { %v6351_v19 = vpop.permute.xlu1 %6350 }
 0xb09   :  { %v6371_v35 = vpop.permute.xlu2 %6370  ;;  %6496 = vst.msk [vmem:[#allocation2 + $0x170] sm:$0xff] %vm2017_vm5, %v6351_v19 }
 0xb0a   :  { %6506 = vst.msk [vmem:[#allocation2 + $0x1c0] sm:$0xff] %vm2017_vm5, %v6371_v35  ;;  %v6361_v28 = vpop.permute.xlu0 %6360 }
 0xb0b   :  { %6501 = vst.msk [vmem:[#allocation2 + $0x198] sm:$0xff] %vm2017_vm5, %v6361_v28  ;;  %6707 = vrot.lane.b32.xlu0 %v6547_v25, %s9521_s9 }
 0xb0e   :  { %6673 = vrot.lane.b32.xlu1 %v6530_v5, %s9521_s9 }
 0xb0f   :  { %7425 = vrot.lane.b32.xlu2 %v14888_v49, %s9523_s23 }
 0xb10   :  { %v6357_v53 = vpop.permute.xlu1 %6356 }
 0xb11   :  { %v6377_v18 = vpop.permute.xlu2 %6376  ;;  %6499 = vst.msk [vmem:[#allocation2 + $0x188] sm:$0xff] %vm2017_vm5, %v6357_v53  ;;  %v6911_v53 = vld [vmem:[#allocation3 + $0xc1] sm:$0xff] }
 0xb12   :  { %6509 = vst.msk [vmem:[#allocation2 + $0x1d8] sm:$0xff] %vm2017_vm5, %v6377_v18  ;;  %v6367_v47 = vpop.permute.xlu0 %6366  ;;  %v6912_v18 = vld [vmem:[#allocation3 + $0xc9] sm:$0xff] }
 0xb13   :  { %6504 = vst.msk [vmem:[#allocation2 + $0x1b0] sm:$0xff] %vm2017_vm5, %v6367_v47  ;;  %7093 = vrot.lane.b32.xlu0 %v14800_v11, %s9522_s26 }
 0xb16   :  { %7423 = vrot.lane.b32.xlu1 %v14890_v22, %s9523_s23 }
 0xb17   :  { %7091 = vrot.lane.b32.xlu2 %v6931_v24, %s9522_s26 }
 0xb18   :  { %v6363_v3 = vpop.permute.xlu1 %6362 }
 0xb19   :  { %v6383_v4 = vpop.permute.xlu2 %6382  ;;  %6502 = vst.msk [vmem:[#allocation2 + $0x1a0] sm:$0xff] %vm2017_vm5, %v6363_v3 }
 0xb1a   :  { %6512 = vst.msk [vmem:[#allocation2 + $0x1f0] sm:$0xff] %vm2017_vm5, %v6383_v4  ;;  %v6373_v49 = vpop.permute.xlu0 %6372  ;;  %v6553_v4 = vld [vmem:[#allocation3 + $0x228] sm:$0xff] }
 0xb1b   :  { %6507 = vst.msk [vmem:[#allocation2 + $0x1c8] sm:$0xff] %vm2017_vm5, %v6373_v49  ;;  %7043 = vrot.lane.b32.xlu0 %v6907_v61, %s9522_s26  ;;  %v6937_v61 = vld [vmem:[#allocation3 + $0x229] sm:$0xff] }
 0xb1e   :  { %6709 = vrot.lane.b32.xlu1 %v6548_v7, %s9521_s9 }
 0xb1f   :  { %7477 = vrot.lane.b32.xlu2 %v14977_v33, %s9523_s23 }
 0xb20   :  { %v6369_v43 = vpop.permute.xlu1 %6368 }
 0xb21   :  { %v6646_v22 = vpop.permute.xlu2 %6645  ;;  %6505 = vst.msk [vmem:[#allocation2 + $0x1b8] sm:$0xff] %vm2017_vm5, %v6369_v43  ;;  %v6938_v43 = vld [vmem:[#allocation3 + $0x231] sm:$0xff] }
 0xb22   :  { %6836 = vst.msk [vmem:[#allocation2 + $0x8] sm:$0xff] %vm2403_vm6, %v6646_v22  ;;  %v6379_v11 = vpop.permute.xlu0 %6378 }
 0xb23   :  { %6510 = vst.msk [vmem:[#allocation2 + $0x1e0] sm:$0xff] %vm2017_vm5, %v6379_v11  ;;  %7429 = vrot.lane.b32.xlu0 %v14905_v56, %s9523_s23  ;;  %v6549_v56 = vld [vmem:[#allocation3 + $0x1f8] sm:$0xff] }
 0xb26   :  { %7475 = vrot.lane.b32.xlu1 %v14983_v36, %s9523_s23 }
 0xb27   :  { %7427 = vrot.lane.b32.xlu2 %v14911_v51, %s9523_s23  ;;  %v7771_v51 = vld [vmem:[%s17023_s4 + $0x20] sm:$0xf] }
 0xb28   :  { %v6375_v32 = vpop.permute.xlu1 %6374  ;;  %v7789_v17 = vunpack.c.l.b16 %v7771_v51 }
 0xb29   :  { %v6652_v54 = vpop.permute.xlu2 %6651  ;;  %6508 = vst.msk [vmem:[#allocation2 + $0x1d0] sm:$0xff] %vm2017_vm5, %v6375_v32  ;;  %v6913_v32 = vld [vmem:[#allocation3 + $0xd9] sm:$0xff] }
 0xb2a   :  { %6839 = vst.msk [vmem:[#allocation2 + $0x20] sm:$0xff] %vm2403_vm6, %v6652_v54  ;;  %v6385_v33 = vpop.permute.xlu0 %6384  ;;  %v7794_v63 = vpack.c.b16 %v7789_v17, %v7789_v17 }
 0xb2b   :  { %6513 = vst.msk [vmem:[#allocation2 + $0x1f8] sm:$0xff] %vm2017_vm5, %v6385_v33  ;;  %7095 = vrot.lane.b32.xlu0 %v6933_v58, %s9522_s26 }
 0xb2c   :  { %v7896_v15 = vsel %vm3467_vm8, %v7794_v63, 0 }
 0xb2d   :  { %7901 = vmatpush.bf16.msra.mxu1 %v7896_v15  ;;  %9494 = vmatpush.bf16.msra.mxu3 %v7896_v15 }
 0xb2e   :  { %7045 = vrot.lane.b32.xlu1 %v6908_v60, %s9522_s26 }
 0xb2f   :  { %6713 = vrot.lane.b32.xlu2 %v6550_v59, %s9521_s9 }
 0xb30   :  { %v6381_v29 = vpop.permute.xlu1 %6380 }
 0xb31   :  { %v6658_v36 = vpop.permute.xlu2 %6657  ;;  %6511 = vst.msk [vmem:[#allocation2 + $0x1e8] sm:$0xff] %vm2017_vm5, %v6381_v29  ;;  %7902 = vmatpush.bf16.msra.mxu1 %v9488_v1  ;;  %9495 = vmatpush.bf16.msra.mxu3 %v9488_v1 }
 0xb32   :  { %6842 = vst.msk [vmem:[#allocation2 + $0x38] sm:$0xff] %vm2403_vm6, %v6658_v36  ;;  %v6648_v31 = vpop.permute.xlu0 %6647 }
 0xb33   :  { %6837 = vst.msk [vmem:[#allocation2 + $0x10] sm:$0xff] %vm2403_vm6, %v6648_v31  ;;  %7481 = vrot.lane.b32.xlu0 %v14998_v21, %s9523_s23  ;;  %v6910_v21 = vld [vmem:[#allocation3 + $0xb1] sm:$0xff]  ;;  %v6939_v31 = vld [vmem:[#allocation3 + $0x241] sm:$0xff] }
 0xb35   :  { %7903 = vmatpush.bf16.msra.mxu1 %v9487_v27  ;;  %9496 = vmatpush.bf16.msra.mxu3 %v9487_v27  ;;  %v6915_v27 = vld [vmem:[#allocation3 + $0xf1] sm:$0xff] }
 0xb36   :  { %6711 = vrot.lane.b32.xlu1 %v6549_v56, %s9521_s9 }
 0xb37   :  { %7479 = vrot.lane.b32.xlu2 %v14975_v57, %s9523_s23  ;;  %v9486_v57 = vld [vmem:[%s17023_s4 + $0x8] sm:$0xff] }
 0xb38   :  { %v6644_v9 = vpop.permute.xlu1 %6643 }
 0xb39   :  { %v6664_v16 = vpop.permute.xlu2 %6663  ;;  %6835 = vst.msk [vmem:[#allocation2] sm:$0xff] %vm2403_vm6, %v6644_v9  ;;  %7904 = vmatpush.bf16.msra.mxu1 %v9486_v57  ;;  %9497 = vmatpush.bf16.msra.mxu3 %v9486_v57 }
 0xb3a   :  { %6845 = vst.msk [vmem:[#allocation2 + $0x50] sm:$0xff] %vm2403_vm6, %v6664_v16  ;;  %v6654_v62 = vpop.permute.xlu0 %6653  ;;  %v6556_v16 = vld [vmem:[#allocation3 + $0x248] sm:$0xff] }
 0xb3b   :  { %6840 = vst.msk [vmem:[#allocation2 + $0x28] sm:$0xff] %vm2403_vm6, %v6654_v62  ;;  %7431 = vrot.lane.b32.xlu0 %v14903_v44, %s9523_s23  ;;  %v6552_v44 = vld [vmem:[#allocation3 + $0x218] sm:$0xff] }
 0xb3d   :  { %7905 = vmatpush.bf16.msra.mxu1 %v9485_v45  ;;  %9498 = vmatpush.bf16.msra.mxu3 %v9485_v45  ;;  %v7300_v45 = vld [vmem:[#allocation3 + $0xfa] sm:$0xff] }
 0xb3e   :  { %7097 = vrot.lane.b32.xlu1 %v6934_v50, %s9522_s26  ;;  %v6940_v50 = vld [vmem:[#allocation3 + $0x249] sm:$0xff] }
 0xb3f   :  { %7049 = vrot.lane.b32.xlu2 %v6910_v21, %s9522_s26  ;;  %v6532_v21 = vld [vmem:[#allocation3 + $0xf8] sm:$0xff] }
 0xb40   :  { %v6650_v12 = vpop.permute.xlu1 %6649 }
 0xb41   :  { %v7030_v26 = vpop.permute.xlu2 %7029  ;;  %6838 = vst.msk [vmem:[#allocation2 + $0x18] sm:$0xff] %vm2403_vm6, %v6650_v12 }
 0xb42   :  { %7220 = vst.msk [vmem:[#allocation2 + $0x8] sm:$0xff] %vm2788_vm7, %v7030_v26  ;;  %v6660_v10 = vpop.permute.xlu0 %6659 }
 0xb43   :  { %6843 = vst.msk [vmem:[#allocation2 + $0x40] sm:$0xff] %vm2403_vm6, %v6660_v10  ;;  %6717 = vrot.lane.b32.xlu0 %v6552_v44, %s9521_s9  ;;  %v7299_v44 = vld [vmem:[#allocation3 + $0xf2] sm:$0xff] }
 0xb46   :  { %7047 = vrot.lane.b32.xlu1 %v6909_v41, %s9522_s26 }
 0xb47   :  { %6715 = vrot.lane.b32.xlu2 %v6551_v34, %s9521_s9  ;;  %v6916_v34 = vld [vmem:[#allocation3 + $0xf9] sm:$0xff] }
 0xb48   :  { %v6656_v30 = vpop.permute.xlu1 %6655 }
 0xb49   :  { %v6668_v37 = vpop.permute.xlu2 %6667  ;;  %6841 = vst.msk [vmem:[#allocation2 + $0x30] sm:$0xff] %vm2403_vm6, %v6656_v30 }
 0xb4a   :  { %6847 = vst.msk [vmem:[#allocation2 + $0x60] sm:$0xff] %vm2403_vm6, %v6668_v37  ;;  %v6666_v40 = vpop.permute.xlu0 %6665 }
 0xb4b   :  { %6846 = vst.msk [vmem:[#allocation2 + $0x58] sm:$0xff] %vm2403_vm6, %v6666_v40  ;;  %7483 = vrot.lane.b32.xlu0 %v14992_v20, %s9523_s23 }
 0xb4e   :  { %7433 = vrot.lane.b32.xlu1 %v14926_v52, %s9523_s23 }
 0xb4f   :  { %7101 = vrot.lane.b32.xlu2 %v6936_v39, %s9522_s26 }
 0xb50   :  { %v6662_v19 = vpop.permute.xlu1 %6661 }
 0xb51   :  { %v7416_v35 = vpop.permute.xlu2 %7415  ;;  %6844 = vst.msk [vmem:[#allocation2 + $0x48] sm:$0xff] %vm2403_vm6, %v6662_v19 }
 0xb52   :  { %v7412_v5 = vpop.permute.xlu0 %7411 }
 0xb53   :  { %7053 = vrot.lane.b32.xlu0 %v6912_v18, %s9522_s26  ;;  %v6557_v18 = vld [vmem:[#allocation3 + $0x258] sm:$0xff] }
 0xb56   :  { %7099 = vrot.lane.b32.xlu1 %v6935_v23, %s9522_s26 }
 0xb57   :  { %7051 = vrot.lane.b32.xlu2 %v6911_v53, %s9522_s26 }
 0xb58   :  { %v7028_v52 = vpop.permute.xlu1 %7027 }
 0xb59   :  { %v6672_v28 = vpop.permute.xlu2 %6671  ;;  %7219 = vst.msk [vmem:[#allocation2] sm:$0xff] %vm2788_vm7, %v7028_v52  ;;  %v6558_v52 = vld [vmem:[#allocation3 + $0x260] sm:$0xff] }
 0xb5a   :  { %6849 = vst.msk [vmem:[#allocation2 + $0x70] sm:$0xff] %vm2403_vm6, %v6672_v28  ;;  %v7032_v20 = vpop.permute.xlu0 %7031  ;;  %v6941_v28 = vld [vmem:[#allocation3 + $0x259] sm:$0xff] }
 0xb5b   :  { %7603 = vst.msk [vmem:[#allocation2] sm:$0xff] %vm3173_vm9, %v7412_v5  ;;  %6719 = vrot.lane.b32.xlu0 %v6553_v4, %s9521_s9 }
 0xb5c   :  { %7221 = vst.msk [vmem:[#allocation2 + $0x10] sm:$0xff] %vm2788_vm7, %v7032_v20 }
 0xb5d   :  { %7605 = vst.msk [vmem:[#allocation2 + $0x10] sm:$0xff] %vm3173_vm9, %v7416_v35 }
 0xb5e   :  { %7485 = vrot.lane.b32.xlu1 %v14990_v13, %s9523_s23 }
 0xb5f   :  { %7437 = vrot.lane.b32.xlu2 %v14918_v14, %s9523_s23  ;;  %v6554_v14 = vld [vmem:[#allocation3 + $0x230] sm:$0xff] }
 0xb60   :  { %v7414_v47 = vpop.permute.xlu1 %7413 }
 0xb61   :  { %v7420_v25 = vpop.permute.xlu2 %7419  ;;  %7604 = vst.msk [vmem:[#allocation2 + $0x8] sm:$0xff] %vm3173_vm9, %v7414_v47 }
 0xb62   :  { %v7418_v3 = vpop.permute.xlu0 %7417  ;;  %v7667_v7 = vld [vmem:[#allocation2] sm:$0xff] }
 0xb63   :  { %7105 = vrot.lane.b32.xlu0 %v6938_v43, %s9522_s26  ;;  %v6534_v43 = vld [vmem:[#allocation3 + $0x110] sm:$0xff] }
 0xb64   :  { %v7669_v58 = vld [vmem:[#allocation2 + $0x10] sm:$0xff] }
 0xb66   :  { %7435 = vrot.lane.b32.xlu1 %v14920_v2, %s9523_s23 }
 0xb67   :  { %7103 = vrot.lane.b32.xlu2 %v6937_v61, %s9522_s26 }
 0xb68   :  { %v7034_v24 = vpop.permute.xlu1 %7033  ;;  %v7668_v49 = vld [vmem:[#allocation2 + $0x8] sm:$0xff] }
 0xb69   :  { %v7040_v13 = vpop.permute.xlu2 %7039  ;;  %7222 = vst.msk [vmem:[#allocation2 + $0x18] sm:$0xff] %vm2788_vm7, %v7034_v24  ;;  %v7731_v22 = vpack.c.bf16 %v7668_v49, %v7667_v7 }
 0xb6a   :  { %7225 = vst.msk [vmem:[#allocation2 + $0x30] sm:$0xff] %vm2788_vm7, %v7040_v13  ;;  %v7036_v2 = vpop.permute.xlu0 %7035  ;;  %v6942_v13 = vld [vmem:[#allocation3 + $0x261] sm:$0xff] }
 0xb6b   :  { %7606 = vst.msk [vmem:[#allocation2 + $0x18] sm:$0xff] %vm3173_vm9, %v7418_v3  ;;  %9385 = vmatmul.msk.bf16.vlgmr.msra.gmra.mxu1 %vm3370_vm10, %v7731_v22  ;;  %7055 = vrot.lane.b32.xlu0 %v6913_v32, %s9522_s26  ;;  %v6917_v22 = vld [vmem:[#allocation3 + $0x109] sm:$0xff]  ;;  %v7302_v32 = vld [vmem:[#allocation3 + $0x112] sm:$0xff] }
 0xb6c   :  { %7223 = vst.msk [vmem:[#allocation2 + $0x20] sm:$0xff] %vm2788_vm7, %v7036_v2 }
 0xb6d   :  { %7607 = vst.msk [vmem:[#allocation2 + $0x20] sm:$0xff] %vm3173_vm9, %v7420_v25 }
 0xb6e   :  { %6721 = vrot.lane.b32.xlu1 %v6554_v14, %s9521_s9 }
 0xb6f   :  { %7489 = vrot.lane.b32.xlu2 %v15007_v6, %s9523_s23  ;;  %v6914_v6 = vld [vmem:[#allocation3 + $0xe1] sm:$0xff] }
 0xb70   :  { %v6670_v54 = vpop.permute.xlu1 %6669 }
 0xb71   :  { %v7426_v11 = vpop.permute.xlu2 %7425  ;;  %6848 = vst.msk [vmem:[#allocation2 + $0x68] sm:$0xff] %vm2403_vm6, %v6670_v54 }
 0xb72   :  { %v7422_v60 = vpop.permute.xlu0 %7421  ;;  %v7670_v36 = vld [vmem:[#allocation2 + $0x18] sm:$0xff] }
 0xb73   :  { %v7732_v59 = vpack.c.bf16 %v7670_v36, %v7669_v58  ;;  %7441 = vrot.lane.b32.xlu0 %v14933_v0, %s9523_s23  ;;  %v6555_v0 = vld [vmem:[#allocation3 + $0x240] sm:$0xff] }
 0xb74   :  { %v7671_v15 = vld [vmem:[#allocation2 + $0x20] sm:$0xff] }
 0xb76   :  { %7487 = vrot.lane.b32.xlu1 %v15013_v42, %s9523_s23 }
 0xb77   :  { %7439 = vrot.lane.b32.xlu2 %v14938_v46, %s9523_s23 }
 0xb78   :  { %v7038_v29 = vpop.permute.xlu1 %7037 }
 0xb79   :  { %v7092_v33 = vpop.permute.xlu2 %7091  ;;  %7224 = vst.msk [vmem:[#allocation2 + $0x28] sm:$0xff] %vm2788_vm7, %v7038_v29 }
 0xb7a   :  { %7608 = vst.msk [vmem:[#allocation2 + $0x28] sm:$0xff] %vm3173_vm9, %v7422_v60  ;;  %v7042_v42 = vpop.permute.xlu0 %7041  ;;  %v7301_v60 = vld [vmem:[#allocation3 + $0x10a] sm:$0xff] }
 0xb7b   :  { %9386 = vmatmul.msk.bf16.gmra.mxu1 %vm3370_vm10, %v7732_v59  ;;  %7226 = vst.msk [vmem:[#allocation2 + $0x38] sm:$0xff] %vm2788_vm7, %v7042_v42  ;;  %7107 = vrot.lane.b32.xlu0 %v6939_v31, %s9522_s26  ;;  %v6943_v59 = vld [vmem:[#allocation3 + $0x271] sm:$0xff] }
 0xb7c   :  { %7610 = vst.msk [vmem:[#allocation2 + $0x38] sm:$0xff] %vm3173_vm9, %v7426_v11  ;;  %v6559_v42 = vld [vmem:[#allocation3 + $0x270] sm:$0xff] }
 0xb7e   :  { %7057 = vrot.lane.b32.xlu1 %v6914_v6, %s9522_s26  ;;  %v6560_v6 = vld [vmem:[#allocation3 + $0x278] sm:$0xff] }
 0xb7f   :  { %6725 = vrot.lane.b32.xlu2 %v6556_v16, %s9521_s9 }
 0xb80   :  { %v6674_v51 = vpop.permute.xlu1 %6673 }
 0xb81   :  { %v7478_v56 = vpop.permute.xlu2 %7477  ;;  %6850 = vst.msk [vmem:[#allocation2 + $0x78] sm:$0xff] %vm2403_vm6, %v6674_v51  ;;  %v7672_v9 = vld [vmem:[#allocation2 + $0x28] sm:$0xff] }
 0xb82   :  { %v6708_v46 = vpop.permute.xlu0 %6707  ;;  %v7733_v1 = vpack.c.bf16 %v7672_v9, %v7671_v15  ;;  %v7327_v9 = vld [vmem:[#allocation3 + $0x272] sm:$0xff] }
 0xb83   :  { %6867 = vst.msk [vmem:[#allocation2 + $0x100] sm:$0xff] %vm2403_vm6, %v6708_v46  ;;  %7493 = vrot.lane.b32.xlu0 %v15028_v55, %s9523_s23  ;;  %v7674_v37 = vld [vmem:[#allocation2 + $0x38] sm:$0xff] }
 0xb84   :  { %7251 = vst.msk [vmem:[#allocation2 + $0x100] sm:$0xff] %vm2788_vm7, %v7092_v33  ;;  %v6918_v33 = vld [vmem:[#allocation3 + $0x111] sm:$0xff] }
 0xb86   :  { %6723 = vrot.lane.b32.xlu1 %v6555_v0, %s9521_s9 }
 0xb87   :  { %7491 = vrot.lane.b32.xlu2 %v15005_v38, %s9523_s23  ;;  %v6531_v38 = vld [vmem:[#allocation3 + $0xf0] sm:$0xff] }
 0xb88   :  { %v7424_v63 = vpop.permute.xlu1 %7423 }
 0xb89   :  { %v7428_v17 = vpop.permute.xlu2 %7427  ;;  %7609 = vst.msk [vmem:[#allocation2 + $0x30] sm:$0xff] %vm3173_vm9, %v7424_v63  ;;  %v6944_v63 = vld [vmem:[#allocation3 + $0x279] sm:$0xff] }
 0xb8a   :  { %v7094_v62 = vpop.permute.xlu0 %7093 }
 0xb8b   :  { %9387 = vmatmul.msk.bf16.gmra.mxu1 %vm3370_vm10, %v7733_v1  ;;  %7059 = vrot.lane.b32.xlu0 %v6915_v27, %s9522_s26 }
 0xb8e   :  { %7109 = vrot.lane.b32.xlu1 %v6940_v50, %s9522_s26 }
 0xb8f   :  { %6677 = vrot.lane.b32.xlu2 %v6532_v21, %s9521_s9 }
 0xb90   :  { %v6710_v12 = vpop.permute.xlu1 %6709  ;;  %v7673_v41 = vld [vmem:[#allocation2 + $0x30] sm:$0xff] }
 0xb91   :  { %v6714_v26 = vpop.permute.xlu2 %6713  ;;  %6868 = vst.msk [vmem:[#allocation2 + $0x108] sm:$0xff] %vm2403_vm6, %v6710_v12  ;;  %v7734_v30 = vpack.c.bf16 %v7674_v37, %v7673_v41  ;;  %v6535_v12 = vld [vmem:[#allocation3 + $0x120] sm:$0xff] }
 0xb92   :  { %6870 = vst.msk [vmem:[#allocation2 + $0x118] sm:$0xff] %vm2403_vm6, %v6714_v26  ;;  %v7044_v55 = vpop.permute.xlu0 %7043  ;;  %v6536_v26 = vld [vmem:[#allocation3 + $0x128] sm:$0xff] }
 0xb93   :  { %7252 = vst.msk [vmem:[#allocation2 + $0x108] sm:$0xff] %vm2788_vm7, %v7094_v62  ;;  %7445 = vrot.lane.b32.xlu0 %v7300_v45, %s9523_s23  ;;  %v6919_v62 = vld [vmem:[#allocation3 + $0x121] sm:$0xff] }
 0xb94   :  { %7636 = vst.msk [vmem:[#allocation2 + $0x108] sm:$0xff] %vm3173_vm9, %v7478_v56  ;;  %v7303_v37 = vld [vmem:[#allocation3 + $0x122] sm:$0xff] }
 0xb95   :  { %7227 = vst.msk [vmem:[#allocation2 + $0x40] sm:$0xff] %vm2788_vm7, %v7044_v55 }
 0xb96   :  { %6675 = vrot.lane.b32.xlu1 %v6531_v38, %s9521_s9  ;;  %7611 = vst.msk [vmem:[#allocation2 + $0x40] sm:$0xff] %vm3173_vm9, %v7428_v17  ;;  %v7328_v17 = vld [vmem:[#allocation3 + $0x27a] sm:$0xff] }
 0xb97   :  { %7443 = vrot.lane.b32.xlu2 %v7299_v44, %s9523_s23 }
 0xb98   :  { %v7476_v10 = vpop.permute.xlu1 %7475 }
 0xb99   :  { %v7480_v57 = vpop.permute.xlu2 %7479  ;;  %7635 = vst.msk [vmem:[#allocation2 + $0x100] sm:$0xff] %vm3173_vm9, %v7476_v10  ;;  %v7304_v10 = vld [vmem:[#allocation3 + $0x12a] sm:$0xff] }
 0xb9a   :  { %v7430_v40 = vpop.permute.xlu0 %7429 }
 0xb9b   :  { %9388 = vmatmul.msk.bf16.gmra.mxu1 %vm3370_vm10, %v7734_v30  ;;  %v7700_v23 = vld [vmem:[#allocation2 + $0x108] sm:$0xff]  ;;  %7111 = vrot.lane.b32.xlu0 %v6941_v28, %s9522_s26 }
 0xb9c   :  { %v6920_v30 = vld [vmem:[#allocation3 + $0x129] sm:$0xff] }
 0xb9d   :  { %v7675_v47 = vld [vmem:[#allocation2 + $0x40] sm:$0xff] }
 0xb9e   :  { %7061 = vrot.lane.b32.xlu1 %v6916_v34, %s9522_s26 }
 0xb9f   :  { %6729 = vrot.lane.b32.xlu2 %v6558_v52, %s9521_s9 }
 0xba0   :  { %v7046_v19 = vpop.permute.xlu1 %7045  ;;  %v7699_v39 = vld [vmem:[#allocation2 + $0x100] sm:$0xff] }
 0xba1   :  { %v7050_v35 = vpop.permute.xlu2 %7049  ;;  %7228 = vst.msk [vmem:[#allocation2 + $0x48] sm:$0xff] %vm2788_vm7, %v7046_v19  ;;  %v7747_v5 = vpack.c.bf16 %v7700_v23, %v7699_v39  ;;  %v6945_v39 = vld [vmem:[#allocation3 + $0x289] sm:$0xff] }
 0xba2   :  { %7230 = vst.msk [vmem:[#allocation2 + $0x58] sm:$0xff] %vm2788_vm7, %v7050_v35  ;;  %v7096_v53 = vpop.permute.xlu0 %7095  ;;  %v6562_v23 = vld [vmem:[#allocation3 + $0x290] sm:$0xff] }
 0xba3   :  { %7612 = vst.msk [vmem:[#allocation2 + $0x48] sm:$0xff] %vm3173_vm9, %v7430_v40  ;;  %9401 = vmatmul.msk.bf16.vlgmr.msra.gmra.mxu3 %vm3370_vm10, %v7747_v5  ;;  %7497 = vrot.lane.b32.xlu0 %v15020_v48, %s9523_s23  ;;  %v6533_v48 = vld [vmem:[#allocation3 + $0x108] sm:$0xff] }
 0xba4   :  { %v6561_v5 = vld [vmem:[#allocation3 + $0x288] sm:$0xff] }
 0xba6   :  { %6727 = vrot.lane.b32.xlu1 %v6557_v18, %s9521_s9 }
 0xba7   :  { %7495 = vrot.lane.b32.xlu2 %v15022_v8, %s9523_s23 }
 0xba8   :  { %v6712_v25 = vpop.permute.xlu1 %6711 }
 0xba9   :  { %v6716_v20 = vpop.permute.xlu2 %6715  ;;  %6869 = vst.msk [vmem:[#allocation2 + $0x110] sm:$0xff] %vm2403_vm6, %v6712_v25  ;;  %v6946_v25 = vld [vmem:[#allocation3 + $0x291] sm:$0xff] }
 0xbaa   :  { %6871 = vst.msk [vmem:[#allocation2 + $0x120] sm:$0xff] %vm2403_vm6, %v6716_v20  ;;  %v7676_v4 = vld [vmem:[#allocation2 + $0x48] sm:$0xff]  ;;  %v7482_v24 = vpop.permute.xlu0 %7481 }
 0xbab   :  { %7253 = vst.msk [vmem:[#allocation2 + $0x110] sm:$0xff] %vm2788_vm7, %v7096_v53  ;;  %v7735_v3 = vpack.c.bf16 %v7676_v4, %v7675_v47  ;;  %7063 = vrot.lane.b32.xlu0 %v6917_v22, %s9522_s26  ;;  %v7330_v53 = vld [vmem:[#allocation3 + $0x292] sm:$0xff]  ;;  %v7329_v20 = vld [vmem:[#allocation3 + $0x28a] sm:$0xff]  ;;  %v6538_v22 = vld [vmem:[#allocation3 + $0x140] sm:$0xff] }
 0xbac   :  { %7637 = vst.msk [vmem:[#allocation2 + $0x110] sm:$0xff] %vm3173_vm9, %v7480_v57 }
 0xbad   :  { %9389 = vmatmul.msk.bf16.gmra.mxu1 %vm3370_vm10, %v7735_v3 }
 0xbae   :  { %7113 = vrot.lane.b32.xlu1 %v6942_v13, %s9522_s26 }
 0xbaf   :  { %6681 = vrot.lane.b32.xlu2 %v6534_v43, %s9521_s9  ;;  %v6537_v43 = vld [vmem:[#allocation3 + $0x138] sm:$0xff] }
 0xbb0   :  { %v7098_v49 = vpop.permute.xlu1 %7097 }
 0xbb1   :  { %v7102_v7 = vpop.permute.xlu2 %7101  ;;  %7254 = vst.msk [vmem:[#allocation2 + $0x118] sm:$0xff] %vm2788_vm7, %v7098_v49  ;;  %v6921_v49 = vld [vmem:[#allocation3 + $0x139] sm:$0xff] }
 0xbb2   :  { %7638 = vst.msk [vmem:[#allocation2 + $0x118] sm:$0xff] %vm3173_vm9, %v7482_v24  ;;  %v7432_v8 = vpop.permute.xlu0 %7431 }
 0xbb3   :  { %v7701_v2 = vld [vmem:[#allocation2 + $0x110] sm:$0xff]  ;;  %7449 = vrot.lane.b32.xlu0 %v7302_v32, %s9523_s23  ;;  %v7305_v32 = vld [vmem:[#allocation3 + $0x13a] sm:$0xff] }
 0xbb6   :  { %6679 = vrot.lane.b32.xlu1 %v6533_v48, %s9521_s9 }
 0xbb7   :  { %7447 = vrot.lane.b32.xlu2 %v7301_v60, %s9523_s23  ;;  %v6922_v60 = vld [vmem:[#allocation3 + $0x141] sm:$0xff] }
 0xbb8   :  { %v7048_v14 = vpop.permute.xlu1 %7047 }
 0xbb9   :  { %v7052_v61 = vpop.permute.xlu2 %7051  ;;  %7229 = vst.msk [vmem:[#allocation2 + $0x50] sm:$0xff] %vm2788_vm7, %v7048_v14  ;;  %v7702_v11 = vld [vmem:[#allocation2 + $0x118] sm:$0xff] }
 0xbba   :  { %7231 = vst.msk [vmem:[#allocation2 + $0x60] sm:$0xff] %vm2788_vm7, %v7052_v61  ;;  %v7748_v54 = vpack.c.bf16 %v7702_v11, %v7701_v2  ;;  %v6718_v36 = vpop.permute.xlu0 %6717 }
 0xbbb   :  { %7613 = vst.msk [vmem:[#allocation2 + $0x50] sm:$0xff] %vm3173_vm9, %v7432_v8  ;;  %7115 = vrot.lane.b32.xlu0 %v6943_v59, %s9522_s26  ;;  %v6564_v59 = vld [vmem:[#allocation3 + $0x2a8] sm:$0xff] }
 0xbbc   :  { %9402 = vmatmul.msk.bf16.gmra.mxu3 %vm3370_vm10, %v7748_v54  ;;  %6872 = vst.msk [vmem:[#allocation2 + $0x128] sm:$0xff] %vm2403_vm6, %v6718_v36  ;;  %v7306_v54 = vld [vmem:[#allocation3 + $0x142] sm:$0xff] }
 0xbbd   :  { %7256 = vst.msk [vmem:[#allocation2 + $0x128] sm:$0xff] %vm2788_vm7, %v7102_v7 }
 0xbbe   :  { %7065 = vrot.lane.b32.xlu1 %v6918_v33, %s9522_s26 }
 0xbbf   :  { %6733 = vrot.lane.b32.xlu2 %v6560_v6, %s9521_s9  ;;  %v6563_v6 = vld [vmem:[#allocation3 + $0x2a0] sm:$0xff] }
 0xbc0   :  { %v7434_v58 = vpop.permute.xlu1 %7433 }
 0xbc1   :  { %v7438_v29 = vpop.permute.xlu2 %7437  ;;  %7614 = vst.msk [vmem:[#allocation2 + $0x58] sm:$0xff] %vm3173_vm9, %v7434_v58  ;;  %v6947_v58 = vld [vmem:[#allocation3 + $0x2a1] sm:$0xff] }
 0xbc2   :  { %v7484_v56 = vpop.permute.xlu0 %7483  ;;  %v7677_v16 = vld [vmem:[#allocation2 + $0x50] sm:$0xff] }
 0xbc3   :  { %7501 = vrot.lane.b32.xlu0 %v7328_v17, %s9523_s23  ;;  %v7331_v17 = vld [vmem:[#allocation3 + $0x2a2] sm:$0xff] }
 0xbc6   :  { %6731 = vrot.lane.b32.xlu1 %v6559_v42, %s9521_s9 }
 0xbc7   :  { %7499 = vrot.lane.b32.xlu2 %v7327_v9, %s9523_s23  ;;  %v6948_v9 = vld [vmem:[#allocation3 + $0x2a9] sm:$0xff] }
 0xbc8   :  { %v7100_v31 = vpop.permute.xlu1 %7099  ;;  %v7678_v0 = vld [vmem:[#allocation2 + $0x58] sm:$0xff] }
 0xbc9   :  { %v7104_v51 = vpop.permute.xlu2 %7103  ;;  %7255 = vst.msk [vmem:[#allocation2 + $0x120] sm:$0xff] %vm2788_vm7, %v7100_v31  ;;  %v7736_v46 = vpack.c.bf16 %v7678_v0, %v7677_v16 }
 0xbca   :  { %7639 = vst.msk [vmem:[#allocation2 + $0x120] sm:$0xff] %vm3173_vm9, %v7484_v56  ;;  %v7054_v15 = vpop.permute.xlu0 %7053 }
 0xbcb   :  { %9390 = vmatmul.msk.bf16.gmra.mxu1 %vm3370_vm10, %v7736_v46  ;;  %7232 = vst.msk [vmem:[#allocation2 + $0x68] sm:$0xff] %vm2788_vm7, %v7054_v15  ;;  %7067 = vrot.lane.b32.xlu0 %v6919_v62, %s9522_s26  ;;  %v7332_v46 = vld [vmem:[#allocation3 + $0x2aa] sm:$0xff]  ;;  %v6540_v62 = vld [vmem:[#allocation3 + $0x158] sm:$0xff] }
 0xbcc   :  { %7616 = vst.msk [vmem:[#allocation2 + $0x68] sm:$0xff] %vm3173_vm9, %v7438_v29 }
 0xbce   :  { %7117 = vrot.lane.b32.xlu1 %v6944_v63, %s9522_s26 }
 0xbcf   :  { %6685 = vrot.lane.b32.xlu2 %v6536_v26, %s9521_s9  ;;  %v6539_v26 = vld [vmem:[#allocation3 + $0x150] sm:$0xff] }
 0xbd0   :  { %v7486_v50 = vpop.permute.xlu1 %7485 }
 0xbd1   :  { %v7490_v1 = vpop.permute.xlu2 %7489  ;;  %7640 = vst.msk [vmem:[#allocation2 + $0x128] sm:$0xff] %vm3173_vm9, %v7486_v50  ;;  %v7703_v55 = vld [vmem:[#allocation2 + $0x120] sm:$0xff]  ;;  %v6923_v50 = vld [vmem:[#allocation3 + $0x151] sm:$0xff] }
 0xbd2   :  { %v6720_v27 = vpop.permute.xlu0 %6719 }
 0xbd3   :  { %6873 = vst.msk [vmem:[#allocation2 + $0x130] sm:$0xff] %vm2403_vm6, %v6720_v27  ;;  %7453 = vrot.lane.b32.xlu0 %v7304_v10, %s9523_s23  ;;  %v7680_v35 = vld [vmem:[#allocation2 + $0x68] sm:$0xff]  ;;  %v7307_v10 = vld [vmem:[#allocation3 + $0x152] sm:$0xff] }
 0xbd4   :  { %7257 = vst.msk [vmem:[#allocation2 + $0x130] sm:$0xff] %vm2788_vm7, %v7104_v51 }
 0xbd6   :  { %6683 = vrot.lane.b32.xlu1 %v6535_v12, %s9521_s9 }
 0xbd7   :  { %7451 = vrot.lane.b32.xlu2 %v7303_v37, %s9523_s23  ;;  %v6924_v37 = vld [vmem:[#allocation3 + $0x159] sm:$0xff] }
 0xbd8   :  { %v7436_v38 = vpop.permute.xlu1 %7435  ;;  %v7704_v57 = vld [vmem:[#allocation2 + $0x128] sm:$0xff] }
 0xbd9   :  { %v7440_v21 = vpop.permute.xlu2 %7439  ;;  %7615 = vst.msk [vmem:[#allocation2 + $0x60] sm:$0xff] %vm3173_vm9, %v7436_v38  ;;  %v7749_v41 = vpack.c.bf16 %v7704_v57, %v7703_v55 }
 0xbda   :  { %v7106_v45 = vpop.permute.xlu0 %7105 }
 0xbdb   :  { %9403 = vmatmul.msk.bf16.gmra.mxu3 %vm3370_vm10, %v7749_v41  ;;  %7119 = vrot.lane.b32.xlu0 %v6945_v39, %s9522_s26  ;;  %v7308_v41 = vld [vmem:[#allocation3 + $0x15a] sm:$0xff] }
 0xbde   :  { %7069 = vrot.lane.b32.xlu1 %v6920_v30, %s9522_s26 }
 0xbdf   :  { %6737 = vrot.lane.b32.xlu2 %v6562_v23, %s9521_s9 }
 0xbe0   :  { %v6722_v34 = vpop.permute.xlu1 %6721  ;;  %v7679_v40 = vld [vmem:[#allocation2 + $0x60] sm:$0xff] }
 0xbe1   :  { %v6726_v44 = vpop.permute.xlu2 %6725  ;;  %6874 = vst.msk [vmem:[#allocation2 + $0x138] sm:$0xff] %vm2403_vm6, %v6722_v34  ;;  %v7737_v19 = vpack.c.bf16 %v7680_v35, %v7679_v40  ;;  %v6949_v34 = vld [vmem:[#allocation3 + $0x2b9] sm:$0xff] }
 0xbe2   :  { %6876 = vst.msk [vmem:[#allocation2 + $0x148] sm:$0xff] %vm2403_vm6, %v6726_v44  ;;  %v7056_v28 = vpop.permute.xlu0 %7055  ;;  %v6566_v40 = vld [vmem:[#allocation3 + $0x2c0] sm:$0xff]  ;;  %v6565_v35 = vld [vmem:[#allocation3 + $0x2b8] sm:$0xff] }
 0xbe3   :  { %7258 = vst.msk [vmem:[#allocation2 + $0x138] sm:$0xff] %vm2788_vm7, %v7106_v45  ;;  %9391 = vmatmul.msk.bf16.gmra.mxu1 %vm3370_vm10, %v7737_v19  ;;  %7505 = vrot.lane.b32.xlu0 %v7330_v53, %s9523_s23  ;;  %v7333_v53 = vld [vmem:[#allocation3 + $0x2ba] sm:$0xff] }
 0xbe4   :  { %7642 = vst.msk [vmem:[#allocation2 + $0x138] sm:$0xff] %vm3173_vm9, %v7490_v1 }
 0xbe5   :  { %7233 = vst.msk [vmem:[#allocation2 + $0x70] sm:$0xff] %vm2788_vm7, %v7056_v28 }
 0xbe6   :  { %6735 = vrot.lane.b32.xlu1 %v6561_v5, %s9521_s9  ;;  %7617 = vst.msk [vmem:[#allocation2 + $0x70] sm:$0xff] %vm3173_vm9, %v7440_v21 }
 0xbe7   :  { %7503 = vrot.lane.b32.xlu2 %v7329_v20, %s9523_s23  ;;  %v6950_v20 = vld [vmem:[#allocation3 + $0x2c1] sm:$0xff] }
 0xbe8   :  { %v7488_v18 = vpop.permute.xlu1 %7487 }
 0xbe9   :  { %v7492_v52 = vpop.permute.xlu2 %7491  ;;  %7641 = vst.msk [vmem:[#allocation2 + $0x130] sm:$0xff] %vm3173_vm9, %v7488_v18  ;;  %v7334_v18 = vld [vmem:[#allocation3 + $0x2c2] sm:$0xff] }
 0xbea   :  { %v7442_v47 = vpop.permute.xlu0 %7441 }
 0xbeb   :  { %v7706_v24 = vld [vmem:[#allocation2 + $0x138] sm:$0xff]  ;;  %7071 = vrot.lane.b32.xlu0 %v6921_v49, %s9522_s26 }
 0xbed   :  { %v7681_v14 = vld [vmem:[#allocation2 + $0x70] sm:$0xff] }
 0xbee   :  { %7121 = vrot.lane.b32.xlu1 %v6946_v25, %s9522_s26 }
 0xbef   :  { %6689 = vrot.lane.b32.xlu2 %v6538_v22, %s9521_s9 }
 0xbf0   :  { %v7058_v3 = vpop.permute.xlu1 %7057  ;;  %v7705_v13 = vld [vmem:[#allocation2 + $0x130] sm:$0xff] }
 0xbf1   :  { %v6678_v4 = vpop.permute.xlu2 %6677  ;;  %7234 = vst.msk [vmem:[#allocation2 + $0x78] sm:$0xff] %vm2788_vm7, %v7058_v3  ;;  %v7750_v7 = vpack.c.bf16 %v7706_v24, %v7705_v13  ;;  %v6925_v3 = vld [vmem:[#allocation3 + $0x169] sm:$0xff] }
 0xbf2   :  { %6852 = vst.msk [vmem:[#allocation2 + $0x88] sm:$0xff] %vm2403_vm6, %v6678_v4  ;;  %v7108_v48 = vpop.permute.xlu0 %7107  ;;  %v6542_v13 = vld [vmem:[#allocation3 + $0x170] sm:$0xff]  ;;  %v6541_v24 = vld [vmem:[#allocation3 + $0x168] sm:$0xff] }
 0xbf3   :  { %7618 = vst.msk [vmem:[#allocation2 + $0x78] sm:$0xff] %vm3173_vm9, %v7442_v47  ;;  %9404 = vmatmul.msk.bf16.gmra.mxu3 %vm3370_vm10, %v7750_v7  ;;  %7457 = vrot.lane.b32.xlu0 %v7306_v54, %s9523_s23 }
 0xbf6   :  { %6687 = vrot.lane.b32.xlu1 %v6537_v43, %s9521_s9 }
 0xbf7   :  { %7455 = vrot.lane.b32.xlu2 %v7305_v32, %s9523_s23 }
 0xbf8   :  { %v6724_v61 = vpop.permute.xlu1 %6723 }
 0xbf9   :  { %v7444_v8 = vpop.permute.xlu2 %7443  ;;  %6875 = vst.msk [vmem:[#allocation2 + $0x140] sm:$0xff] %vm2403_vm6, %v6724_v61  ;;  %v7310_v61 = vld [vmem:[#allocation3 + $0x172] sm:$0xff] }
 0xbfa   :  { %v7682_v2 = vld [vmem:[#allocation2 + $0x78] sm:$0xff]  ;;  %7259 = vst.msk [vmem:[#allocation2 + $0x140] sm:$0xff] %vm2788_vm7, %v7108_v48  ;;  %v7494_v33 = vpop.permute.xlu0 %7493 }
 0xbfb   :  { %v7738_v11 = vpack.c.bf16 %v7682_v2, %v7681_v14  ;;  %7643 = vst.msk [vmem:[#allocation2 + $0x140] sm:$0xff] %vm3173_vm9, %v7492_v52  ;;  %7123 = vrot.lane.b32.xlu0 %v6947_v58, %s9522_s26  ;;  %v7309_v14 = vld [vmem:[#allocation3 + $0x16a] sm:$0xff] }
 0xbfc   :  { %v6926_v2 = vld [vmem:[#allocation3 + $0x171] sm:$0xff] }
 0xbfd   :  { %9392 = vmatmul.msk.bf16.gmra.mxu1 %vm3370_vm10, %v7738_v11 }
 0xbfe   :  { %7073 = vrot.lane.b32.xlu1 %v6922_v60, %s9522_s26  ;;  %v6951_v60 = vld [vmem:[#allocation3 + $0x2d1] sm:$0xff] }
 0xbff   :  { %6741 = vrot.lane.b32.xlu2 %v6564_v59, %s9521_s9 }
 0xc00   :  { %v7110_v29 = vpop.permute.xlu1 %7109 }
 0xc01   :  { %v6730_v36 = vpop.permute.xlu2 %6729  ;;  %7260 = vst.msk [vmem:[#allocation2 + $0x148] sm:$0xff] %vm2788_vm7, %v7110_v29 }
 0xc02   :  { %6878 = vst.msk [vmem:[#allocation2 + $0x158] sm:$0xff] %vm2403_vm6, %v6730_v36  ;;  %v7060_v42 = vpop.permute.xlu0 %7059  ;;  %v7707_v31 = vld [vmem:[#allocation2 + $0x140] sm:$0xff]  ;;  %v6567_v36 = vld [vmem:[#allocation3 + $0x2d0] sm:$0xff] }
 0xc03   :  { %7644 = vst.msk [vmem:[#allocation2 + $0x148] sm:$0xff] %vm3173_vm9, %v7494_v33  ;;  %7509 = vrot.lane.b32.xlu0 %v7332_v46, %s9523_s23  ;;  %v6568_v33 = vld [vmem:[#allocation3 + $0x2d8] sm:$0xff] }
 0xc06   :  { %6739 = vrot.lane.b32.xlu1 %v6563_v6, %s9521_s9 }
 0xc07   :  { %7507 = vrot.lane.b32.xlu2 %v7331_v17, %s9523_s23 }
 0xc08   :  { %v6676_v51 = vpop.permute.xlu1 %6675 }
 0xc09   :  { %v7496_v56 = vpop.permute.xlu2 %7495  ;;  %6851 = vst.msk [vmem:[#allocation2 + $0x80] sm:$0xff] %vm2403_vm6, %v6676_v51  ;;  %v7336_v51 = vld [vmem:[#allocation3 + $0x2da] sm:$0xff] }
 0xc0a   :  { %v7708_v16 = vld [vmem:[#allocation2 + $0x148] sm:$0xff]  ;;  %7235 = vst.msk [vmem:[#allocation2 + $0x80] sm:$0xff] %vm2788_vm7, %v7060_v42  ;;  %v7446_v63 = vpop.permute.xlu0 %7445 }
 0xc0b   :  { %v7751_v0 = vpack.c.bf16 %v7708_v16, %v7707_v31  ;;  %7619 = vst.msk [vmem:[#allocation2 + $0x80] sm:$0xff] %vm3173_vm9, %v7444_v8  ;;  %7075 = vrot.lane.b32.xlu0 %v6923_v50, %s9522_s26  ;;  %v7335_v31 = vld [vmem:[#allocation3 + $0x2d2] sm:$0xff] }
 0xc0c   :  { %v6952_v16 = vld [vmem:[#allocation3 + $0x2d9] sm:$0xff] }
 0xc0d   :  { %9405 = vmatmul.msk.bf16.gmra.mxu3 %vm3370_vm10, %v7751_v0 }
 0xc0e   :  { %7125 = vrot.lane.b32.xlu1 %v6948_v9, %s9522_s26  ;;  %v6927_v9 = vld [vmem:[#allocation3 + $0x181] sm:$0xff] }
 0xc0f   :  { %6693 = vrot.lane.b32.xlu2 %v6540_v62, %s9521_s9 }
 0xc10   :  { %v7062_v1 = vpop.permute.xlu1 %7061 }
 0xc11   :  { %v6682_v15 = vpop.permute.xlu2 %6681  ;;  %7236 = vst.msk [vmem:[#allocation2 + $0x88] sm:$0xff] %vm2788_vm7, %v7062_v1 }
 0xc12   :  { %6854 = vst.msk [vmem:[#allocation2 + $0x98] sm:$0xff] %vm2403_vm6, %v6682_v15  ;;  %v7112_v12 = vpop.permute.xlu0 %7111  ;;  %v7683_v38 = vld [vmem:[#allocation2 + $0x80] sm:$0xff] }
 0xc13   :  { %7620 = vst.msk [vmem:[#allocation2 + $0x88] sm:$0xff] %vm3173_vm9, %v7446_v63  ;;  %7461 = vrot.lane.b32.xlu0 %v7308_v41, %s9523_s23  ;;  %v6544_v63 = vld [vmem:[#allocation3 + $0x188] sm:$0xff]  ;;  %v6543_v15 = vld [vmem:[#allocation3 + $0x180] sm:$0xff] }
 0xc16   :  { %6691 = vrot.lane.b32.xlu1 %v6539_v26, %s9521_s9 }
 0xc17   :  { %7459 = vrot.lane.b32.xlu2 %v7307_v10, %s9523_s23 }
 0xc18   :  { %v6728_v21 = vpop.permute.xlu1 %6727 }
 0xc19   :  { %v7448_v27 = vpop.permute.xlu2 %7447  ;;  %6877 = vst.msk [vmem:[#allocation2 + $0x150] sm:$0xff] %vm2403_vm6, %v6728_v21  ;;  %v7312_v21 = vld [vmem:[#allocation3 + $0x18a] sm:$0xff] }
 0xc1a   :  { %v7684_v55 = vld [vmem:[#allocation2 + $0x88] sm:$0xff]  ;;  %7261 = vst.msk [vmem:[#allocation2 + $0x150] sm:$0xff] %vm2788_vm7, %v7112_v12  ;;  %v7498_v30 = vpop.permute.xlu0 %7497 }
 0xc1b   :  { %v7739_v57 = vpack.c.bf16 %v7684_v55, %v7683_v38  ;;  %7645 = vst.msk [vmem:[#allocation2 + $0x150] sm:$0xff] %vm3173_vm9, %v7496_v56  ;;  %7127 = vrot.lane.b32.xlu0 %v6949_v34, %s9522_s26  ;;  %v7311_v38 = vld [vmem:[#allocation3 + $0x182] sm:$0xff] }
 0xc1c   :  { %v6928_v55 = vld [vmem:[#allocation3 + $0x189] sm:$0xff] }
 0xc1d   :  { %9393 = vmatmul.msk.bf16.gmra.mxu1 %vm3370_vm10, %v7739_v57 }
 0xc1e   :  { %7077 = vrot.lane.b32.xlu1 %v6924_v37, %s9522_s26  ;;  %v15444_v37 = vpop.f32.mrf.mxu1 }
 0xc1f   :  { %6745 = vrot.lane.b32.xlu2 %v6566_v40, %s9521_s9 }
 0xc20   :  { %v7114_v44 = vpop.permute.xlu1 %7113 }
 0xc21   :  { %v6734_v45 = vpop.permute.xlu2 %6733  ;;  %7262 = vst.msk [vmem:[#allocation2 + $0x158] sm:$0xff] %vm2788_vm7, %v7114_v44  ;;  %v6569_v44 = vld [vmem:[#allocation3 + $0x2e8] sm:$0xff] }
 0xc22   :  { %6880 = vst.msk [vmem:[#allocation2 + $0x168] sm:$0xff] %vm2403_vm6, %v6734_v45  ;;  %v7064_v19 = vpop.permute.xlu0 %7063  ;;  %v7709_v5 = vld [vmem:[#allocation2 + $0x150] sm:$0xff] }
 0xc23   :  { %7646 = vst.msk [vmem:[#allocation2 + $0x158] sm:$0xff] %vm3173_vm9, %v7498_v30  ;;  %7513 = vrot.lane.b32.xlu0 %v7334_v18, %s9523_s23  ;;  %v6953_v30 = vld [vmem:[#allocation3 + $0x2e9] sm:$0xff]  ;;  %v6954_v18 = vld [vmem:[#allocation3 + $0x2f1] sm:$0xff] }
 0xc24   :  { %v6570_v45 = vld [vmem:[#allocation3 + $0x2f0] sm:$0xff] }
 0xc26   :  { %6743 = vrot.lane.b32.xlu1 %v6565_v35, %s9521_s9 }
 0xc27   :  { %7511 = vrot.lane.b32.xlu2 %v7333_v53, %s9523_s23 }
 0xc28   :  { %v6680_v23 = vpop.permute.xlu1 %6679 }
 0xc29   :  { %v7500_v39 = vpop.permute.xlu2 %7499  ;;  %6853 = vst.msk [vmem:[#allocation2 + $0x90] sm:$0xff] %vm2403_vm6, %v6680_v23 }
 0xc2a   :  { %v7710_v28 = vld [vmem:[#allocation2 + $0x158] sm:$0xff]  ;;  %7237 = vst.msk [vmem:[#allocation2 + $0x90] sm:$0xff] %vm2788_vm7, %v7064_v19  ;;  %v7450_v25 = vpop.permute.xlu0 %7449 }
 0xc2b   :  { %v7752_v52 = vpack.c.bf16 %v7710_v28, %v7709_v5  ;;  %7621 = vst.msk [vmem:[#allocation2 + $0x90] sm:$0xff] %vm3173_vm9, %v7448_v27  ;;  %7079 = vrot.lane.b32.xlu0 %v6925_v3, %s9522_s26  ;;  %v7338_v5 = vld [vmem:[#allocation3 + $0x2f2] sm:$0xff]  ;;  %v15453_v28 = vpop.f32.mrf.mxu1 }
 0xc2c   :  { %v6545_v3 = vld [vmem:[#allocation3 + $0x198] sm:$0xff] }
 0xc2d   :  { %9406 = vmatmul.msk.bf16.gmra.mxu3 %vm3370_vm10, %v7752_v52  ;;  %v7337_v52 = vld [vmem:[#allocation3 + $0x2ea] sm:$0xff] }
 0xc2e   :  { %7129 = vrot.lane.b32.xlu1 %v6950_v20, %s9522_s26 }
 0xc2f   :  { %6697 = vrot.lane.b32.xlu2 %v6542_v13, %s9521_s9 }
 0xc30   :  { %v7066_v4 = vpop.permute.xlu1 %7065 }
 0xc31   :  { %v6686_v47 = vpop.permute.xlu2 %6685  ;;  %7238 = vst.msk [vmem:[#allocation2 + $0x98] sm:$0xff] %vm2788_vm7, %v7066_v4  ;;  %v6546_v4 = vld [vmem:[#allocation3 + $0x1a0] sm:$0xff] }
 0xc32   :  { %6856 = vst.msk [vmem:[#allocation2 + $0xa8] sm:$0xff] %vm2403_vm6, %v6686_v47  ;;  %v7116_v7 = vpop.permute.xlu0 %7115  ;;  %v7685_v43 = vld [vmem:[#allocation2 + $0x90] sm:$0xff]  ;;  %v6929_v47 = vld [vmem:[#allocation3 + $0x199] sm:$0xff] }
 0xc33   :  { %7622 = vst.msk [vmem:[#allocation2 + $0x98] sm:$0xff] %vm3173_vm9, %v7450_v25  ;;  %7465 = vrot.lane.b32.xlu0 %v7310_v61, %s9523_s23  ;;  %v15465_v13 = vpop.f32.mrf.mxu1  ;;  %v7313_v61 = vld [vmem:[#allocation3 + $0x19a] sm:$0xff] }
 0xc36   :  { %6695 = vrot.lane.b32.xlu1 %v6541_v24, %s9521_s9 }
 0xc37   :  { %7463 = vrot.lane.b32.xlu2 %v7309_v14, %s9523_s23  ;;  %v6930_v14 = vld [vmem:[#allocation3 + $0x1a1] sm:$0xff] }
 0xc38   :  { %v6732_v22 = vpop.permute.xlu1 %6731 }
 0xc39   :  { %v7452_v49 = vpop.permute.xlu2 %7451  ;;  %6879 = vst.msk [vmem:[#allocation2 + $0x160] sm:$0xff] %vm2403_vm6, %v6732_v22 }
 0xc3a   :  { %7263 = vst.msk [vmem:[#allocation2 + $0x160] sm:$0xff] %vm2788_vm7, %v7116_v7  ;;  %v7686_v48 = vld [vmem:[#allocation2 + $0x98] sm:$0xff]  ;;  %v7502_v11 = vpop.permute.xlu0 %7501 }
 0xc3b   :  { %7647 = vst.msk [vmem:[#allocation2 + $0x160] sm:$0xff] %vm3173_vm9, %v7500_v39  ;;  %v7740_v8 = vpack.c.bf16 %v7686_v48, %v7685_v43  ;;  %7131 = vrot.lane.b32.xlu0 %v6951_v60, %s9522_s26  ;;  %v7314_v48 = vld [vmem:[#allocation3 + $0x1a2] sm:$0xff] }
 0xc3c   :  { %v6955_v60 = vld [vmem:[#allocation3 + $0x301] sm:$0xff] }
 0xc3d   :  { %9394 = vmatmul.msk.bf16.gmra.mxu1 %vm3370_vm10, %v7740_v8 }
 0xc3e   :  { %7081 = vrot.lane.b32.xlu1 %v6926_v2, %s9522_s26 }
 0xc3f   :  { %6749 = vrot.lane.b32.xlu2 %v6568_v33, %s9521_s9  ;;  %v6572_v33 = vld [vmem:[#allocation3 + $0x308] sm:$0xff] }
 0xc40   :  { %v7118_v32 = vpop.permute.xlu1 %7117 }
 0xc41   :  { %v6738_v54 = vpop.permute.xlu2 %6737  ;;  %7264 = vst.msk [vmem:[#allocation2 + $0x168] sm:$0xff] %vm2788_vm7, %v7118_v32  ;;  %v15474_v32 = vpop.f32.mrf.mxu1 }
 0xc42   :  { %6882 = vst.msk [vmem:[#allocation2 + $0x178] sm:$0xff] %vm2403_vm6, %v6738_v54  ;;  %v7068_v29 = vpop.permute.xlu0 %7067  ;;  %v7711_v6 = vld [vmem:[#allocation2 + $0x160] sm:$0xff] }
 0xc43   :  { %7648 = vst.msk [vmem:[#allocation2 + $0x168] sm:$0xff] %vm3173_vm9, %v7502_v11  ;;  %7517 = vrot.lane.b32.xlu0 %v7336_v51, %s9523_s23 }
 0xc46   :  { %6747 = vrot.lane.b32.xlu1 %v6567_v36, %s9521_s9  ;;  %v6571_v36 = vld [vmem:[#allocation3 + $0x300] sm:$0xff] }
 0xc47   :  { %7515 = vrot.lane.b32.xlu2 %v7335_v31, %s9523_s23  ;;  %v7340_v31 = vld [vmem:[#allocation3 + $0x30a] sm:$0xff] }
 0xc48   :  { %v6684_v59 = vpop.permute.xlu1 %6683 }
 0xc49   :  { %v7504_v58 = vpop.permute.xlu2 %7503  ;;  %6855 = vst.msk [vmem:[#allocation2 + $0xa0] sm:$0xff] %vm2403_vm6, %v6684_v59 }
 0xc4a   :  { %7239 = vst.msk [vmem:[#allocation2 + $0xa0] sm:$0xff] %vm2788_vm7, %v7068_v29  ;;  %v7712_v42 = vld [vmem:[#allocation2 + $0x168] sm:$0xff]  ;;  %v7454_v0 = vpop.permute.xlu0 %7453 }
 0xc4b   :  { %7623 = vst.msk [vmem:[#allocation2 + $0xa0] sm:$0xff] %vm3173_vm9, %v7452_v49  ;;  %v7753_v56 = vpack.c.bf16 %v7712_v42, %v7711_v6  ;;  %7083 = vrot.lane.b32.xlu0 %v6927_v9, %s9522_s26 }
 0xc4d   :  { %9407 = vmatmul.msk.bf16.gmra.mxu3 %vm3370_vm10, %v7753_v56  ;;  %v15484_v56 = vpop.f32.mrf.mxu1 }
 0xc4e   :  { %7133 = vrot.lane.b32.xlu1 %v6952_v16, %s9522_s26  ;;  %v7339_v16 = vld [vmem:[#allocation3 + $0x302] sm:$0xff] }
 0xc4f   :  { %6701 = vrot.lane.b32.xlu2 %v6544_v63, %s9521_s9  ;;  %v6957_v63 = vld [vmem:[#allocation3 + $0x319] sm:$0xff] }
 0xc50   :  { %v7070_v17 = vpop.permute.xlu1 %7069 }
 0xc51   :  { %v6690_v46 = vpop.permute.xlu2 %6689  ;;  %7240 = vst.msk [vmem:[#allocation2 + $0xa8] sm:$0xff] %vm2788_vm7, %v7070_v17 }
 0xc52   :  { %6858 = vst.msk [vmem:[#allocation2 + $0xb8] sm:$0xff] %vm2403_vm6, %v6690_v46  ;;  %v7120_v1 = vpop.permute.xlu0 %7119  ;;  %v7687_v26 = vld [vmem:[#allocation2 + $0xa0] sm:$0xff] }
 0xc53   :  { %7624 = vst.msk [vmem:[#allocation2 + $0xa8] sm:$0xff] %vm3173_vm9, %v7454_v0  ;;  %7469 = vrot.lane.b32.xlu0 %v7312_v21, %s9523_s23  ;;  %v6956_v0 = vld [vmem:[#allocation3 + $0x309] sm:$0xff] }
 0xc56   :  { %6699 = vrot.lane.b32.xlu1 %v6543_v15, %s9521_s9  ;;  %v15494_v15 = vpop.f32.mrf.mxu1 }
 0xc57   :  { %7467 = vrot.lane.b32.xlu2 %v7311_v38, %s9523_s23 }
 0xc58   :  { %v6736_v62 = vpop.permute.xlu1 %6735 }
 0xc59   :  { %v7456_v50 = vpop.permute.xlu2 %7455  ;;  %6881 = vst.msk [vmem:[#allocation2 + $0x170] sm:$0xff] %vm2403_vm6, %v6736_v62 }
 0xc5a   :  { %7265 = vst.msk [vmem:[#allocation2 + $0x170] sm:$0xff] %vm2788_vm7, %v7120_v1  ;;  %v7688_v12 = vld [vmem:[#allocation2 + $0xa8] sm:$0xff]  ;;  %v7506_v57 = vpop.permute.xlu0 %7505  ;;  %v6574_v1 = vld [vmem:[#allocation3 + $0x320] sm:$0xff] }
 0xc5b   :  { %7649 = vst.msk [vmem:[#allocation2 + $0x170] sm:$0xff] %vm3173_vm9, %v7504_v58  ;;  %v7741_v27 = vpack.c.bf16 %v7688_v12, %v7687_v26  ;;  %7135 = vrot.lane.b32.xlu0 %v6953_v30, %s9522_s26 }
 0xc5d   :  { %9395 = vmatmul.msk.bf16.gmra.mxu1 %vm3370_vm10, %v7741_v27 }
 0xc5e   :  { %7085 = vrot.lane.b32.xlu1 %v6928_v55, %s9522_s26  ;;  %v7342_v55 = vld [vmem:[#allocation3 + $0x322] sm:$0xff] }
 0xc5f   :  { %6753 = vrot.lane.b32.xlu2 %v6570_v45, %s9521_s9 }
 0xc60   :  { %v7122_v10 = vpop.permute.xlu1 %7121 }
 0xc61   :  { %v6742_v41 = vpop.permute.xlu2 %6741  ;;  %7266 = vst.msk [vmem:[#allocation2 + $0x178] sm:$0xff] %vm2788_vm7, %v7122_v10  ;;  %v15506_v10 = vpop.f32.mrf.mxu1 }
 0xc62   :  { %6884 = vst.msk [vmem:[#allocation2 + $0x188] sm:$0xff] %vm2403_vm6, %v6742_v41  ;;  %v7072_v34 = vpop.permute.xlu0 %7071  ;;  %v7713_v19 = vld [vmem:[#allocation2 + $0x170] sm:$0xff]  ;;  %v6958_v41 = vld [vmem:[#allocation3 + $0x321] sm:$0xff] }
 0xc63   :  { %7650 = vst.msk [vmem:[#allocation2 + $0x178] sm:$0xff] %vm3173_vm9, %v7506_v57  ;;  %7521 = vrot.lane.b32.xlu0 %v7338_v5, %s9523_s23  ;;  %v7341_v57 = vld [vmem:[#allocation3 + $0x31a] sm:$0xff] }
 0xc66   :  { %6751 = vrot.lane.b32.xlu1 %v6569_v44, %s9521_s9 }
 0xc67   :  { %7519 = vrot.lane.b32.xlu2 %v7337_v52, %s9523_s23 }
 0xc68   :  { %v6688_v35 = vpop.permute.xlu1 %6687 }
 0xc69   :  { %v7508_v40 = vpop.permute.xlu2 %7507  ;;  %6857 = vst.msk [vmem:[#allocation2 + $0xb0] sm:$0xff] %vm2403_vm6, %v6688_v35  ;;  %v6575_v35 = vld [vmem:[#allocation3 + $0x330] sm:$0xff]  ;;  %v15515_v5 = vpop.f32.mrf.mxu1 }
 0xc6a   :  { %7241 = vst.msk [vmem:[#allocation2 + $0xb0] sm:$0xff] %vm2788_vm7, %v7072_v34  ;;  %v7714_v39 = vld [vmem:[#allocation2 + $0x178] sm:$0xff]  ;;  %v7458_v53 = vpop.permute.xlu0 %7457 }
 0xc6b   :  { %7625 = vst.msk [vmem:[#allocation2 + $0xb0] sm:$0xff] %vm3173_vm9, %v7456_v50  ;;  %v7754_v23 = vpack.c.bf16 %v7714_v39, %v7713_v19  ;;  %7087 = vrot.lane.b32.xlu0 %v6929_v47, %s9522_s26  ;;  %v6573_v50 = vld [vmem:[#allocation3 + $0x318] sm:$0xff] }
 0xc6c   :  { %v6959_v34 = vld [vmem:[#allocation3 + $0x331] sm:$0xff]  ;;  %v6960_v47 = vld [vmem:[#allocation3 + $0x339] sm:$0xff] }
 0xc6d   :  { %9408 = vmatmul.msk.bf16.gmra.mxu3 %vm3370_vm10, %v7754_v23 }
 0xc6e   :  { %7137 = vrot.lane.b32.xlu1 %v6954_v18, %s9522_s26 }
 0xc6f   :  { %6705 = vrot.lane.b32.xlu2 %v6546_v4, %s9521_s9 }
 0xc70   :  { %v7074_v25 = vpop.permute.xlu1 %7073 }
 0xc71   :  { %v6694_v20 = vpop.permute.xlu2 %6693  ;;  %7242 = vst.msk [vmem:[#allocation2 + $0xb8] sm:$0xff] %vm2788_vm7, %v7074_v25  ;;  %v7343_v25 = vld [vmem:[#allocation3 + $0x332] sm:$0xff] }
 0xc72   :  { %6860 = vst.msk [vmem:[#allocation2 + $0xc8] sm:$0xff] %vm2403_vm6, %v6694_v20  ;;  %v7124_v24 = vpop.permute.xlu0 %7123  ;;  %v7689_v22 = vld [vmem:[#allocation2 + $0xb0] sm:$0xff]  ;;  %v7344_v20 = vld [vmem:[#allocation3 + $0x33a] sm:$0xff] }
 0xc73   :  { %7626 = vst.msk [vmem:[#allocation2 + $0xb8] sm:$0xff] %vm3173_vm9, %v7458_v53  ;;  %7473 = vrot.lane.b32.xlu0 %v7314_v48, %s9523_s23  ;;  %v15531_v48 = vpop.f32.mrf.mxu3 }
 0xc76   :  { %6703 = vrot.lane.b32.xlu1 %v6545_v3, %s9521_s9 }
 0xc77   :  { %7471 = vrot.lane.b32.xlu2 %v7313_v61, %s9523_s23 }
 0xc78   :  { %v6740_v49 = vpop.permute.xlu1 %6739 }
 0xc79   :  { %v7460_v7 = vpop.permute.xlu2 %7459  ;;  %6883 = vst.msk [vmem:[#allocation2 + $0x180] sm:$0xff] %vm2403_vm6, %v6740_v49  ;;  %v6577_v49 = vld [vmem:[#allocation3 + $0x348] sm:$0xff] }
 0xc7a   :  { %7267 = vst.msk [vmem:[#allocation2 + $0x180] sm:$0xff] %vm2788_vm7, %v7124_v24  ;;  %v7690_v43 = vld [vmem:[#allocation2 + $0xb8] sm:$0xff]  ;;  %v7510_v2 = vpop.permute.xlu0 %7509 }
 0xc7b   :  { %7651 = vst.msk [vmem:[#allocation2 + $0x180] sm:$0xff] %vm3173_vm9, %v7508_v40  ;;  %v7742_v8 = vpack.c.bf16 %v7690_v43, %v7689_v22  ;;  %7139 = vrot.lane.b32.xlu0 %v6955_v60, %s9522_s26  ;;  %v6576_v40 = vld [vmem:[#allocation3 + $0x338] sm:$0xff]  ;;  %v6578_v22 = vld [vmem:[#allocation3 + $0x350] sm:$0xff]  ;;  %v15526_v43 = vpop.f32.mrf.mxu1 }
 0xc7d   :  { %9396 = vmatmul.msk.bf16.gmra.mxu1 %vm3370_vm10, %v7742_v8 }
 0xc7e   :  { %7089 = vrot.lane.b32.xlu1 %v6930_v14, %s9522_s26 }
 0xc7f   :  { %6757 = vrot.lane.b32.xlu2 %v6572_v33, %s9521_s9  ;;  %v6962_v33 = vld [vmem:[#allocation3 + $0x351] sm:$0xff] }
 0xc80   :  { %v7126_v54 = vpop.permute.xlu1 %7125 }
 0xc81   :  { %v6746_v11 = vpop.permute.xlu2 %6745  ;;  %7268 = vst.msk [vmem:[#allocation2 + $0x188] sm:$0xff] %vm2788_vm7, %v7126_v54  ;;  %v7346_v54 = vld [vmem:[#allocation3 + $0x352] sm:$0xff] }
 0xc82   :  { %6886 = vst.msk [vmem:[#allocation2 + $0x198] sm:$0xff] %vm2403_vm6, %v6746_v11  ;;  %v7076_v29 = vpop.permute.xlu0 %7075  ;;  %v7715_v6 = vld [vmem:[#allocation2 + $0x180] sm:$0xff] }
 0xc83   :  { %7652 = vst.msk [vmem:[#allocation2 + $0x188] sm:$0xff] %vm3173_vm9, %v7510_v2  ;;  %7525 = vrot.lane.b32.xlu0 %v7340_v31, %s9523_s23 }
 0xc86   :  { %6755 = vrot.lane.b32.xlu1 %v6571_v36, %s9521_s9  ;;  %v7345_v36 = vld [vmem:[#allocation3 + $0x34a] sm:$0xff] }
 0xc87   :  { %7523 = vrot.lane.b32.xlu2 %v7339_v16, %s9523_s23 }
 0xc88   :  { %v6692_v59 = vpop.permute.xlu1 %6691 }
 0xc89   :  { %v7512_v58 = vpop.permute.xlu2 %7511  ;;  %6859 = vst.msk [vmem:[#allocation2 + $0xc0] sm:$0xff] %vm2403_vm6, %v6692_v59 }
 0xc8a   :  { %7243 = vst.msk [vmem:[#allocation2 + $0xc0] sm:$0xff] %vm2788_vm7, %v7076_v29  ;;  %v7716_v42 = vld [vmem:[#allocation2 + $0x188] sm:$0xff]  ;;  %v7462_v46 = vpop.permute.xlu0 %7461  ;;  %v15538_v29 = vpop.f32.mrf.mxu1 }
 0xc8b   :  { %7627 = vst.msk [vmem:[#allocation2 + $0xc0] sm:$0xff] %vm3173_vm9, %v7460_v7  ;;  %v7755_v51 = vpack.c.bf16 %v7716_v42, %v7715_v6  ;;  %7143 = vrot.lane.b32.xlu0 %v6957_v63, %s9522_s26  ;;  %v6961_v7 = vld [vmem:[#allocation3 + $0x349] sm:$0xff]  ;;  %v15543_v42 = vpop.f32.mrf.mxu3 }
 0xc8d   :  { %9409 = vmatmul.msk.bf16.gmra.mxu3 %vm3370_vm10, %v7755_v51 }
 0xc8e   :  { %7141 = vrot.lane.b32.xlu1 %v6956_v0, %s9522_s26 }
 0xc8f   :  { %6761 = vrot.lane.b32.xlu2 %v6574_v1, %s9521_s9 }
 0xc90   :  { %v7078_v9 = vpop.permute.xlu1 %7077 }
 0xc91   :  { %v6698_v17 = vpop.permute.xlu2 %6697  ;;  %7244 = vst.msk [vmem:[#allocation2 + $0xc8] sm:$0xff] %vm2788_vm7, %v7078_v9 }
 0xc92   :  { %6862 = vst.msk [vmem:[#allocation2 + $0xd8] sm:$0xff] %vm2403_vm6, %v6698_v17  ;;  %v7128_v62 = vpop.permute.xlu0 %7127  ;;  %v7691_v27 = vld [vmem:[#allocation2 + $0xc0] sm:$0xff]  ;;  %v15547_v51 = vpop.f32.mrf.mxu1 }
 0xc93   :  { %7628 = vst.msk [vmem:[#allocation2 + $0xc8] sm:$0xff] %vm3173_vm9, %v7462_v46  ;;  %7529 = vrot.lane.b32.xlu0 %v7342_v55, %s9523_s23  ;;  %v15550_v46 = vpop.f32.mrf.mxu3 }
 0xc96   :  { %6759 = vrot.lane.b32.xlu1 %v6573_v50, %s9521_s9 }
 0xc97   :  { %7527 = vrot.lane.b32.xlu2 %v7341_v57, %s9523_s23 }
 0xc98   :  { %v6744_v12 = vpop.permute.xlu1 %6743 }
 0xc99   :  { %v7464_v26 = vpop.permute.xlu2 %7463  ;;  %6885 = vst.msk [vmem:[#allocation2 + $0x190] sm:$0xff] %vm2403_vm6, %v6744_v12 }
 0xc9a   :  { %7269 = vst.msk [vmem:[#allocation2 + $0x190] sm:$0xff] %vm2788_vm7, %v7128_v62  ;;  %v7692_v21 = vld [vmem:[#allocation2 + $0xc8] sm:$0xff]  ;;  %v7514_v30 = vpop.permute.xlu0 %7513  ;;  %v15555_v50 = vpop.f32.mrf.mxu1 }
 0xc9b   :  { %7653 = vst.msk [vmem:[#allocation2 + $0x190] sm:$0xff] %vm3173_vm9, %v7512_v58  ;;  %v7743_v38 = vpack.c.bf16 %v7692_v21, %v7691_v27  ;;  %7147 = vrot.lane.b32.xlu0 %v6959_v34, %s9522_s26  ;;  %v15560_v12 = vpop.f32.mrf.mxu3 }
 0xc9d   :  { %9397 = vmatmul.msk.bf16.gmra.mxu1 %vm3370_vm10, %v7743_v38 }
 0xc9e   :  { %7145 = vrot.lane.b32.xlu1 %v6958_v41, %s9522_s26 }
 0xc9f   :  { %6765 = vrot.lane.b32.xlu2 %v6576_v40, %s9521_s9 }
 0xca0   :  { %v7130_v44 = vpop.permute.xlu1 %7129 }
 0xca1   :  { %v6750_v45 = vpop.permute.xlu2 %6749  ;;  %7270 = vst.msk [vmem:[#allocation2 + $0x198] sm:$0xff] %vm2788_vm7, %v7130_v44 }
 0xca2   :  { %6888 = vst.msk [vmem:[#allocation2 + $0x1a8] sm:$0xff] %vm2403_vm6, %v6750_v45  ;;  %v7080_v19 = vpop.permute.xlu0 %7079  ;;  %v7717_v52 = vld [vmem:[#allocation2 + $0x190] sm:$0xff]  ;;  %v15562_v21 = vpop.f32.mrf.mxu1 }
 0xca3   :  { %7654 = vst.msk [vmem:[#allocation2 + $0x198] sm:$0xff] %vm3173_vm9, %v7514_v30  ;;  %7533 = vrot.lane.b32.xlu0 %v7344_v20, %s9523_s23  ;;  %v15566_v45 = vpop.f32.mrf.mxu3 }
 0xca6   :  { %6763 = vrot.lane.b32.xlu1 %v6575_v35, %s9521_s9 }
 0xca7   :  { %7531 = vrot.lane.b32.xlu2 %v7343_v25, %s9523_s23 }
 0xca8   :  { %v6696_v23 = vpop.permute.xlu1 %6695 }
 0xca9   :  { %v7516_v39 = vpop.permute.xlu2 %7515  ;;  %6861 = vst.msk [vmem:[#allocation2 + $0xd0] sm:$0xff] %vm2403_vm6, %v6696_v23 }
 0xcaa   :  { %7245 = vst.msk [vmem:[#allocation2 + $0xd0] sm:$0xff] %vm2788_vm7, %v7080_v19  ;;  %v7718_v18 = vld [vmem:[#allocation2 + $0x198] sm:$0xff]  ;;  %v7466_v4 = vpop.permute.xlu0 %7465  ;;  %v15571_v35 = vpop.f32.mrf.mxu1 }
 0xcab   :  { %7629 = vst.msk [vmem:[#allocation2 + $0xd0] sm:$0xff] %vm3173_vm9, %v7464_v26  ;;  %v7756_v53 = vpack.c.bf16 %v7718_v18, %v7717_v52  ;;  %7151 = vrot.lane.b32.xlu0 %v6961_v7, %s9522_s26  ;;  %v15575_v19 = vpop.f32.mrf.mxu3 }
 0xcad   :  { %9410 = vmatmul.msk.bf16.gmra.mxu3 %vm3370_vm10, %v7756_v53 }
 0xcae   :  { %7149 = vrot.lane.b32.xlu1 %v6960_v47, %s9522_s26 }
 0xcaf   :  { %6769 = vrot.lane.b32.xlu2 %v6578_v22, %s9521_s9 }
 0xcb0   :  { %v7082_v24 = vpop.permute.xlu1 %7081 }
 0xcb1   :  { %v6702_v3 = vpop.permute.xlu2 %6701  ;;  %7246 = vst.msk [vmem:[#allocation2 + $0xd8] sm:$0xff] %vm2788_vm7, %v7082_v24 }
 0xcb2   :  { %6864 = vst.msk [vmem:[#allocation2 + $0xe8] sm:$0xff] %vm2403_vm6, %v6702_v3  ;;  %v7132_v8 = vpop.permute.xlu0 %7131  ;;  %v7693_v2 = vld [vmem:[#allocation2 + $0xd0] sm:$0xff]  ;;  %v15577_v18 = vpop.f32.mrf.mxu1 }
 0xcb3   :  { %7630 = vst.msk [vmem:[#allocation2 + $0xd8] sm:$0xff] %vm3173_vm9, %v7466_v4  ;;  %7537 = vrot.lane.b32.xlu0 %v7346_v54, %s9523_s23  ;;  %v15583_v47 = vpop.f32.mrf.mxu3 }
 0xcb6   :  { %6767 = vrot.lane.b32.xlu1 %v6577_v49, %s9521_s9 }
 0xcb7   :  { %7535 = vrot.lane.b32.xlu2 %v7345_v36, %s9523_s23 }
 0xcb8   :  { %v6748_v14 = vpop.permute.xlu1 %6747 }
 0xcb9   :  { %v7468_v61 = vpop.permute.xlu2 %7467  ;;  %6887 = vst.msk [vmem:[#allocation2 + $0x1a0] sm:$0xff] %vm2403_vm6, %v6748_v14 }
 0xcba   :  { %7271 = vst.msk [vmem:[#allocation2 + $0x1a0] sm:$0xff] %vm2788_vm7, %v7132_v8  ;;  %v7694_v11 = vld [vmem:[#allocation2 + $0xd8] sm:$0xff]  ;;  %v7518_v58 = vpop.permute.xlu0 %7517  ;;  %v15588_v7 = vpop.f32.mrf.mxu1 }
 0xcbb   :  { %7655 = vst.msk [vmem:[#allocation2 + $0x1a0] sm:$0xff] %vm3173_vm9, %v7516_v39  ;;  %v7744_v60 = vpack.c.bf16 %v7694_v11, %v7693_v2  ;;  %v15590_v22 = vpop.f32.mrf.mxu3 }
 0xcbc   :  { %17312 = vst [vmem:[#allocation27_spill] sm:$0xff] %v15588_v7 }
 0xcbd   :  { %9398 = vmatmul.msk.bf16.gmra.mxu1 %vm3370_vm10, %v7744_v60 }
 0xcbe   :  { %7153 = vrot.lane.b32.xlu1 %v6962_v33, %s9522_s26 }
 0xcc0   :  { %v7134_v6 = vpop.permute.xlu1 %7133 }
 0xcc1   :  { %v6754_v59 = vpop.permute.xlu2 %6753  ;;  %7272 = vst.msk [vmem:[#allocation2 + $0x1a8] sm:$0xff] %vm2788_vm7, %v7134_v6 }
 0xcc2   :  { %6890 = vst.msk [vmem:[#allocation2 + $0x1b8] sm:$0xff] %vm2403_vm6, %v6754_v59  ;;  %v7084_v31 = vpop.permute.xlu0 %7083  ;;  %v7719_v17 = vld [vmem:[#allocation2 + $0x1a0] sm:$0xff]  ;;  %v15594_v54 = vpop.f32.mrf.mxu1 }
 0xcc3   :  { %7656 = vst.msk [vmem:[#allocation2 + $0x1a8] sm:$0xff] %vm3173_vm9, %v7518_v58  ;;  %v15598_v33 = vpop.f32.mrf.mxu3 }
 0xcc8   :  { %v6700_v0 = vpop.permute.xlu1 %6699 }
 0xcc9   :  { %v7520_v16 = vpop.permute.xlu2 %7519  ;;  %6863 = vst.msk [vmem:[#allocation2 + $0xe0] sm:$0xff] %vm2403_vm6, %v6700_v0 }
 0xcca   :  { %7247 = vst.msk [vmem:[#allocation2 + $0xe0] sm:$0xff] %vm2788_vm7, %v7084_v31  ;;  %v7720_v9 = vld [vmem:[#allocation2 + $0x1a8] sm:$0xff]  ;;  %v7470_v1 = vpop.permute.xlu0 %7469  ;;  %v15603_v59 = vpop.f32.mrf.mxu1 }
 0xccb   :  { %7631 = vst.msk [vmem:[#allocation2 + $0xe0] sm:$0xff] %vm3173_vm9, %v7468_v61  ;;  %v7757_v63 = vpack.c.bf16 %v7720_v9, %v7719_v17  ;;  %v15605_v0 = vpop.f32.mrf.mxu3 }
 0xccc   :  { %17313 = vst [vmem:[#allocation28_spill] sm:$0xff] %v15603_v59 }
 0xccd   :  { %9411 = vmatmul.msk.bf16.gmra.mxu3 %vm3370_vm10, %v7757_v63 }
 0xcd0   :  { %v7086_v26 = vpop.permute.xlu1 %7085 }
 0xcd1   :  { %v6706_v62 = vpop.permute.xlu2 %6705  ;;  %7248 = vst.msk [vmem:[#allocation2 + $0xe8] sm:$0xff] %vm2788_vm7, %v7086_v26 }
 0xcd2   :  { %6866 = vst.msk [vmem:[#allocation2 + $0xf8] sm:$0xff] %vm2403_vm6, %v6706_v62  ;;  %v7136_v27 = vpop.permute.xlu0 %7135  ;;  %v7695_v57 = vld [vmem:[#allocation2 + $0xe0] sm:$0xff] }
 0xcd3   :  { %7632 = vst.msk [vmem:[#allocation2 + $0xe8] sm:$0xff] %vm3173_vm9, %v7470_v1  ;;  %v15611_v1 = vpop.f32.mrf.mxu1 }
 0xcd8   :  { %v6752_v55 = vpop.permute.xlu1 %6751 }
 0xcd9   :  { %v7472_v38 = vpop.permute.xlu2 %7471  ;;  %6889 = vst.msk [vmem:[#allocation2 + $0x1b0] sm:$0xff] %vm2403_vm6, %v6752_v55 }
 0xcda   :  { %v7696_v41 = vld [vmem:[#allocation2 + $0xe8] sm:$0xff]  ;;  %7273 = vst.msk [vmem:[#allocation2 + $0x1b0] sm:$0xff] %vm2788_vm7, %v7136_v27  ;;  %v7522_v44 = vpop.permute.xlu0 %7521 }
 0xcdb   :  { %v7745_v30 = vpack.c.bf16 %v7696_v41, %v7695_v57  ;;  %7657 = vst.msk [vmem:[#allocation2 + $0x1b0] sm:$0xff] %vm3173_vm9, %v7520_v16  ;;  %v15618_v57 = vpop.f32.mrf.mxu1 }
 0xcdc   :  { %17315 = vst [vmem:[#allocation30_spill] sm:$0xff] %v15618_v57 }
 0xcdd   :  { %9399 = vmatmul.msk.bf16.gmra.mxu1 %vm3370_vm10, %v7745_v30 }
 0xce0   :  { %v7138_v40 = vpop.permute.xlu1 %7137 }
 0xce1   :  { %v6758_v34 = vpop.permute.xlu2 %6757  ;;  %7274 = vst.msk [vmem:[#allocation2 + $0x1b8] sm:$0xff] %vm2788_vm7, %v7138_v40 }
 0xce2   :  { %6892 = vst.msk [vmem:[#allocation2 + $0x1c8] sm:$0xff] %vm2403_vm6, %v6758_v34  ;;  %v7088_v39 = vpop.permute.xlu0 %7087  ;;  %v7721_v53 = vld [vmem:[#allocation2 + $0x1b0] sm:$0xff] }
 0xce3   :  { %7658 = vst.msk [vmem:[#allocation2 + $0x1b8] sm:$0xff] %vm3173_vm9, %v7522_v44 }
 0xce8   :  { %v6704_v52 = vpop.permute.xlu1 %6703 }
 0xce9   :  { %v7524_v23 = vpop.permute.xlu2 %7523  ;;  %6865 = vst.msk [vmem:[#allocation2 + $0xf0] sm:$0xff] %vm2403_vm6, %v6704_v52 }
 0xcea   :  { %v7722_v20 = vld [vmem:[#allocation2 + $0x1b8] sm:$0xff]  ;;  %7249 = vst.msk [vmem:[#allocation2 + $0xf0] sm:$0xff] %vm2788_vm7, %v7088_v39  ;;  %v7474_v4 = vpop.permute.xlu0 %7473 }
 0xceb   :  { %v7758_v25 = vpack.c.bf16 %v7722_v20, %v7721_v53  ;;  %7633 = vst.msk [vmem:[#allocation2 + $0xf0] sm:$0xff] %vm3173_vm9, %v7472_v38  ;;  %v15614_v38 = vpop.f32.mrf.mxu3 }
 0xcec   :  { %17314 = vst [vmem:[#allocation29_spill] sm:$0xff] %v15614_v38 }
 0xced   :  { %9412 = vmatmul.msk.bf16.gmra.mxu3 %vm3370_vm10, %v7758_v25 }
 0xcf0   :  { %v7090_v24 = vpop.permute.xlu1 %7089 }
 0xcf1   :  { %v6762_v3 = vpop.permute.xlu2 %6761  ;;  %7250 = vst.msk [vmem:[#allocation2 + $0xf8] sm:$0xff] %vm2788_vm7, %v7090_v24 }
 0xcf2   :  { %6894 = vst.msk [vmem:[#allocation2 + $0x1d8] sm:$0xff] %vm2403_vm6, %v6762_v3  ;;  %v7140_v49 = vpop.permute.xlu0 %7139  ;;  %v7697_v61 = vld [vmem:[#allocation2 + $0xf0] sm:$0xff] }
 0xcf3   :  { %7634 = vst.msk [vmem:[#allocation2 + $0xf8] sm:$0xff] %vm3173_vm9, %v7474_v4  ;;  %v15622_v40 = vpop.f32.mrf.mxu3 }
 0xcf8   :  { %v6756_v14 = vpop.permute.xlu1 %6755 }
 0xcf9   :  { %v7528_v8 = vpop.permute.xlu2 %7527  ;;  %6891 = vst.msk [vmem:[#allocation2 + $0x1c0] sm:$0xff] %vm2403_vm6, %v6756_v14 }
 0xcfa   :  { %v7698_v2 = vld [vmem:[#allocation2 + $0xf8] sm:$0xff]  ;;  %7275 = vst.msk [vmem:[#allocation2 + $0x1c0] sm:$0xff] %vm2788_vm7, %v7140_v49  ;;  %v7526_v60 = vpop.permute.xlu0 %7525 }
 0xcfb   :  { %v7746_v11 = vpack.c.bf16 %v7698_v2, %v7697_v61  ;;  %7659 = vst.msk [vmem:[#allocation2 + $0x1c0] sm:$0xff] %vm3173_vm9, %v7524_v23  ;;  %v15626_v23 = vpop.f32.mrf.mxu1  ;;  %v15630_v53 = vpop.f32.mrf.mxu3 }
 0xcfd   :  { %9400 = vmatmul.msk.bf16.gmra.mxu1 %vm3370_vm10, %v7746_v11 }
 0xd00   :  { %v7142_v58 = vpop.permute.xlu1 %7141 }
 0xd01   :  { %v6766_v36 = vpop.permute.xlu2 %6765  ;;  %7276 = vst.msk [vmem:[#allocation2 + $0x1c8] sm:$0xff] %vm2788_vm7, %v7142_v58 }
 0xd02   :  { %6896 = vst.msk [vmem:[#allocation2 + $0x1e8] sm:$0xff] %vm2403_vm6, %v6766_v36  ;;  %v7144_v6 = vpop.permute.xlu0 %7143  ;;  %v7723_v17 = vld [vmem:[#allocation2 + $0x1c0] sm:$0xff] }
 0xd03   :  { %7660 = vst.msk [vmem:[#allocation2 + $0x1c8] sm:$0xff] %vm3173_vm9, %v7526_v60  ;;  %v15632_v3 = vpop.f32.mrf.mxu1  ;;  %v15638_v61 = vpop.f32.mrf.mxu3 }
 0xd04   :  { %17316 = vst [vmem:[#allocation8_spill] sm:$0xff] %v15632_v3 }
 0xd08   :  { %v6760_v16 = vpop.permute.xlu1 %6759 }
 0xd09   :  { %v7532_v31 = vpop.permute.xlu2 %7531  ;;  %6893 = vst.msk [vmem:[#allocation2 + $0x1d0] sm:$0xff] %vm2403_vm6, %v6760_v16 }
 0xd0a   :  { %v7724_v9 = vld [vmem:[#allocation2 + $0x1c8] sm:$0xff]  ;;  %7277 = vst.msk [vmem:[#allocation2 + $0x1d0] sm:$0xff] %vm2788_vm7, %v7144_v6  ;;  %v7530_v62 = vpop.permute.xlu0 %7529 }
 0xd0b   :  { %v7759_v63 = vpack.c.bf16 %v7724_v9, %v7723_v17  ;;  %7661 = vst.msk [vmem:[#allocation2 + $0x1d0] sm:$0xff] %vm3173_vm9, %v7528_v8  ;;  %v15640_v11 = vpop.f32.mrf.mxu1  ;;  %v15644_v60 = vpop.f32.mrf.mxu3  ;;  %v8201_v17 = vmul.f32 %v15453_v28, %v15453_v28 }
 0xd0c   :  { %17317 = vst [vmem:[#allocation11_spill] sm:$0xff] %v15644_v60 }
 0xd0d   :  { %9413 = vmatmul.msk.bf16.gmra.mxu3 %vm3370_vm10, %v7759_v63  ;;  %v8200_v63 = vmul.f32 %v15444_v37, %v15444_v37 }
 0xd10   :  { %v7146_v27 = vpop.permute.xlu1 %7145 }
 0xd11   :  { %v6770_v26 = vpop.permute.xlu2 %6769  ;;  %7278 = vst.msk [vmem:[#allocation2 + $0x1d8] sm:$0xff] %vm2788_vm7, %v7146_v27  ;;  %v8067_v27 = vsel %vm91_vm0, %v15444_v37, 0.0 }
 0xd12   :  { %6898 = vst.msk [vmem:[#allocation2 + $0x1f8] sm:$0xff] %vm2403_vm6, %v6770_v26  ;;  %v7148_v55 = vpop.permute.xlu0 %7147  ;;  %v7725_v30 = vld [vmem:[#allocation2 + $0x1d0] sm:$0xff]  ;;  %v8202_v26 = vmul.f32 %v15465_v13, %v15465_v13 }
 0xd13   :  { %7662 = vst.msk [vmem:[#allocation2 + $0x1d8] sm:$0xff] %vm3173_vm9, %v7530_v62  ;;  %v15649_v16 = vpop.f32.mrf.mxu3  ;;  %v8068_v62 = vsel %vm91_vm0, %v15453_v28, 0.0 }
 0xd14   :  { %17318 = vst [vmem:[#allocation13_spill] sm:$0xff] %v15649_v16 }
 0xd18   :  { %v6764_v41 = vpop.permute.xlu1 %6763 }
 0xd19   :  { %6895 = vst.msk [vmem:[#allocation2 + $0x1e0] sm:$0xff] %vm2403_vm6, %v6764_v41  ;;  %v7536_v4 = vpop.permute.xlu2 %7535  ;;  %v8070_v41 = vsel %vm91_vm0, %v15465_v13, 0.0 }
 0xd1a   :  { %v7726_v44 = vld [vmem:[#allocation2 + $0x1d8] sm:$0xff]  ;;  %7279 = vst.msk [vmem:[#allocation2 + $0x1e0] sm:$0xff] %vm2788_vm7, %v7148_v55  ;;  %v7534_v39 = vpop.permute.xlu0 %7533  ;;  %v8265_v55 = vsel %vm91_vm0, %v8201_v17, 0.0  ;;  %v8206_v17 = vmul.f32 %v15506_v10, %v15506_v10 }
 0xd1b   :  { %v7760_v34 = vpack.c.bf16 %v7726_v44, %v7725_v30  ;;  %7663 = vst.msk [vmem:[#allocation2 + $0x1e0] sm:$0xff] %vm3173_vm9, %v7532_v31  ;;  %v15646_v31 = vpop.f32.mrf.mxu1  ;;  %v8203_v30 = vmul.f32 %v15474_v32, %v15474_v32  ;;  %v8069_v44 = vadd.f32 %v8068_v62, %v8067_v27 }
 0xd1d   :  { %9414 = vmatmul.msk.bf16.gmra.mxu3 %vm3370_vm10, %v7760_v34  ;;  %v15668_v34 = vpop.f32.mrf.mxu3 }
 0xd1e   :  { %17320 = vst [vmem:[#allocation17_spill] sm:$0xff] %v15668_v34 }
 0xd20   :  { %v7150_v52 = vpop.permute.xlu1 %7149 }
 0xd21   :  { %7280 = vst.msk [vmem:[#allocation2 + $0x1e8] sm:$0xff] %vm2788_vm7, %v7150_v52  ;;  %v8267_v52 = vsel %vm91_vm0, %v8202_v26, 0.0 }
 0xd22   :  { %7664 = vst.msk [vmem:[#allocation2 + $0x1e8] sm:$0xff] %vm3173_vm9, %v7534_v39  ;;  %v7152_v20 = vpop.permute.xlu0 %7151  ;;  %v7727_v24 = vld [vmem:[#allocation2 + $0x1e0] sm:$0xff]  ;;  %v8264_v39 = vsel %vm91_vm0, %v8200_v63, 0.0 }
 0xd23   :  { %v15653_v9 = vpop.f32.mrf.mxu1 }
 0xd24   :  { %17319 = vst [vmem:[#allocation15_spill] sm:$0xff] %v15653_v9 }
 0xd28   :  { %v6768_v25 = vpop.permute.xlu1 %6767 }
 0xd29   :  { %6897 = vst.msk [vmem:[#allocation2 + $0x1f0] sm:$0xff] %vm2403_vm6, %v6768_v25  ;;  %v7728_v49 = vld [vmem:[#allocation2 + $0x1e8] sm:$0xff]  ;;  %v8204_v25 = vmul.f32 %v15484_v56, %v15484_v56 }
 0xd2a   :  { %7281 = vst.msk [vmem:[#allocation2 + $0x1f0] sm:$0xff] %vm2788_vm7, %v7152_v20  ;;  %v7761_v8 = vpack.c.bf16 %v7728_v49, %v7727_v24  ;;  %v7538_v14 = vpop.permute.xlu0 %7537  ;;  %v8072_v20 = vsel %vm91_vm0, %v15474_v32, 0.0  ;;  %v8266_v24 = vadd.f32 %v8265_v55, %v8264_v39  ;;  %v8269_v49 = vsel %vm91_vm0, %v8203_v30, 0.0 }
 0xd2b   :  { %7665 = vst.msk [vmem:[#allocation2 + $0x1f0] sm:$0xff] %vm3173_vm9, %v7536_v4  ;;  %v8071_v4 = vadd.f32 %v8070_v41, %v8069_v44  ;;  %v15686_v26 = vpop.f32.mrf.mxu1  ;;  %v8078_v55 = vsel %vm91_vm0, %v15506_v10, 0.0  ;;  %v8207_v41 = vmul.f32 %v15515_v5, %v15515_v5  ;;  %v8275_v39 = vsel %vm91_vm0, %v8206_v17, 0.0 }
 0xd2c   :  { %v8210_v17 = vmul.f32 %v15547_v51, %v15547_v51 }
 0xd2d   :  { %9415 = vmatmul.msk.bf16.gmra.mxu3 %vm3370_vm10, %v7761_v8  ;;  %v8074_v8 = vsel %vm91_vm0, %v15484_v56, 0.0 }
 0xd30   :  { %v7154_v2 = vpop.permute.xlu1 %7153 }
 0xd31   :  { %7282 = vst.msk [vmem:[#allocation2 + $0x1f8] sm:$0xff] %vm2788_vm7, %v7154_v2  ;;  %v8268_v2 = vadd.f32 %v8267_v52, %v8266_v24  ;;  %v8080_v52 = vsel %vm91_vm0, %v15515_v5, 0.0  ;;  %v15698_v24 = vpop.f32.mrf.mxu3 }
 0xd32   :  { %7666 = vst.msk [vmem:[#allocation2 + $0x1f8] sm:$0xff] %vm3173_vm9, %v7538_v14  ;;  %v7729_v36 = vld [vmem:[#allocation2 + $0x1f0] sm:$0xff]  ;;  %v8205_v14 = vmul.f32 %v15494_v15, %v15494_v15 }
 0xd33   :  { %v8270_v62 = vadd.f32 %v8269_v49, %v8268_v2  ;;  %17321 = vst [vmem:[#allocation5_spill] sm:$0xff] %v15698_v24  ;;  %v8277_v49 = vsel %vm91_vm0, %v8207_v41, 0.0  ;;  %v8086_v41 = vsel %vm91_vm0, %v15547_v51, 0.0 }
 0xd34   :  { %v8273_v27 = vsel %vm91_vm0, %v8205_v14, 0.0  ;;  %v8209_v14 = vmul.f32 %v15538_v29, %v15538_v29 }
 0xd39   :  { %v7730_v58 = vld [vmem:[#allocation2 + $0x1f8] sm:$0xff] }
 0xd3a   :  { %v7762_v6 = vpack.c.bf16 %v7730_v58, %v7729_v36  ;;  %v8073_v36 = vadd.f32 %v8072_v20, %v8071_v4  ;;  %v8271_v58 = vsel %vm91_vm0, %v8204_v25, 0.0  ;;  %v8208_v20 = vmul.f32 %v15526_v43, %v15526_v43 }
 0xd3b   :  { %v8272_v30 = vadd.f32 %v8271_v58, %v8270_v62 }
 0xd3c   :  { %v8075_v63 = vadd.f32 %v8074_v8, %v8073_v36  ;;  %v8082_v8 = vsel %vm91_vm0, %v15526_v43, 0.0  ;;  %v8279_v58 = vsel %vm91_vm0, %v8208_v20, 0.0  ;;  %v8088_v20 = vsel %vm91_vm0, %v15555_v50, 0.0 }
 0xd3d   :  { %9416 = vmatmul.msk.bf16.gmra.mxu3 %vm3370_vm10, %v7762_v6  ;;  %v8076_v6 = vsel %vm91_vm0, %v15494_v15, 0.0  ;;  %v8274_v4 = vadd.f32 %v8273_v27, %v8272_v30  ;;  %v15710_v27 = vpop.f32.mrf.mxu1  ;;  %v8211_v30 = vmul.f32 %v15555_v50, %v15555_v50 }
 0xd3e   :  { %v8077_v44 = vadd.f32 %v8076_v6, %v8075_v63  ;;  %v8084_v6 = vsel %vm91_vm0, %v15538_v29, 0.0  ;;  %17322 = vst [vmem:[#allocation6_spill] sm:$0xff] %v15710_v27 }
 0xd3f   :  { %v8276_v2 = vadd.f32 %v8275_v39, %v8274_v4 }
 0xd40   :  { %v8079_v25 = vadd.f32 %v8078_v55, %v8077_v44  ;;  %v8281_v55 = vsel %vm91_vm0, %v8209_v14, 0.0  ;;  %v8285_v14 = vsel %vm91_vm0, %v8211_v30, 0.0 }
 0xd41   :  { %v8278_v62 = vadd.f32 %v8277_v49, %v8276_v2  ;;  %v8090_v2 = vsel %vm91_vm0, %v15562_v21, 0.0 }
 0xd42   :  { %v8081_v36 = vadd.f32 %v8080_v52, %v8079_v25  ;;  %v8283_v52 = vsel %vm91_vm0, %v8210_v17, 0.0  ;;  %v8212_v25 = vmul.f32 %v15562_v21, %v15562_v21 }
 0xd43   :  { %v8280_v44 = vadd.f32 %v8279_v58, %v8278_v62  ;;  %v8214_v62 = vmul.f32 %v15577_v18, %v15577_v18 }
 0xd44   :  { %v8083_v63 = vadd.f32 %v8082_v8, %v8081_v36  ;;  %v15722_v8 = vpop.f32.mrf.mxu3  ;;  %v8213_v36 = vmul.f32 %v15571_v35, %v15571_v35  ;;  %v8287_v17 = vsel %vm91_vm0, %v8212_v25, 0.0 }
 0xd45   :  { %v8282_v4 = vadd.f32 %v8281_v55, %v8280_v44  ;;  %17323 = vst [vmem:[#allocation4_spill] sm:$0xff] %v15722_v8  ;;  %v8094_v44 = vsel %vm91_vm0, %v15577_v18, 0.0  ;;  %v8291_v25 = vsel %vm91_vm0, %v8214_v62, 0.0 }
 0xd46   :  { %v8085_v39 = vadd.f32 %v8084_v6, %v8083_v63  ;;  %v8092_v63 = vsel %vm91_vm0, %v15571_v35, 0.0  ;;  %v8289_v30 = vsel %vm91_vm0, %v8213_v36, 0.0 }
 0xd47   :  { %v8284_v58 = vadd.f32 %v8283_v52, %v8282_v4  ;;  %v15739_v4 = vpop.f32.mrf.mxu1 }
 0xd48   :  { %v8087_v49 = vadd.f32 %v8086_v41, %v8085_v39  ;;  %v8215_v39 = vmul.f32 %v15588_v7, %v15588_v7  ;;  %17324 = vst [vmem:[#allocation12_spill] sm:$0xff] %v15739_v4 }
 0xd49   :  { %v8286_v55 = vadd.f32 %v8285_v14, %v8284_v58  ;;  %v8216_v14 = vmul.f32 %v15594_v54, %v15594_v54 }
 0xd4a   :  { %v8089_v6 = vadd.f32 %v8088_v20, %v8087_v49  ;;  %v8096_v49 = vsel %vm91_vm0, %v15588_v7, 0.0  ;;  %v8293_v58 = vsel %vm91_vm0, %v8215_v39, 0.0  ;;  %v8100_v7 = vsel %vm91_vm0, %v15603_v59, 0.0 }
 0xd4b   :  { %v8288_v52 = vadd.f32 %v8287_v17, %v8286_v55  ;;  %v8217_v17 = vmul.f32 %v15603_v59, %v15603_v59  ;;  %v8295_v62 = vsel %vm91_vm0, %v8216_v14, 0.0  ;;  %v8104_v59 = vsel %vm91_vm0, %v15618_v57, 0.0 }
 0xd4c   :  { %v8091_v41 = vadd.f32 %v8090_v2, %v8089_v6  ;;  %v8098_v6 = vsel %vm91_vm0, %v15594_v54, 0.0 }
 0xd4d   :  { %v8290_v2 = vadd.f32 %v8289_v30, %v8288_v52  ;;  %v8218_v30 = vmul.f32 %v15611_v1, %v15611_v1  ;;  %v8297_v52 = vsel %vm91_vm0, %v8217_v17, 0.0 }
 0xd4e   :  { %v8093_v20 = vadd.f32 %v8092_v63, %v8091_v41  ;;  %v15751_v41 = vpop.f32.mrf.mxu3 }
 0xd4f   :  { %v8292_v63 = vadd.f32 %v8291_v25, %v8290_v2  ;;  %17325 = vst [vmem:[#allocation7_spill] sm:$0xff] %v15751_v41  ;;  %v8219_v25 = vmul.f32 %v15618_v57, %v15618_v57  ;;  %v8299_v14 = vsel %vm91_vm0, %v8218_v30, 0.0  ;;  %v8108_v57 = vsel %vm91_vm0, %v15632_v3, 0.0 }
 0xd50   :  { %v8095_v36 = vadd.f32 %v8094_v44, %v8093_v20  ;;  %v8102_v20 = vsel %vm91_vm0, %v15611_v1, 0.0 }
 0xd51   :  { %v8294_v44 = vadd.f32 %v8293_v58, %v8292_v63  ;;  %v8220_v58 = vmul.f32 %v15626_v23, %v15626_v23  ;;  %v8301_v63 = vsel %vm91_vm0, %v8219_v25, 0.0 }
 0xd52   :  { %v8097_v55 = vadd.f32 %v8096_v49, %v8095_v36 }
 0xd53   :  { %v8296_v49 = vadd.f32 %v8295_v62, %v8294_v44  ;;  %v8303_v30 = vsel %vm91_vm0, %v8220_v58, 0.0 }
 0xd54   :  { %v8099_v39 = vadd.f32 %v8098_v6, %v8097_v55  ;;  %v8106_v55 = vsel %vm91_vm0, %v15626_v23, 0.0 }
 0xd55   :  { %v8298_v6 = vadd.f32 %v8297_v52, %v8296_v49  ;;  %v8222_v52 = vmul.f32 %v15640_v11, %v15640_v11 }
 0xd56   :  { %v8101_v2 = vadd.f32 %v8100_v7, %v8099_v39  ;;  %v8221_v7 = vmul.f32 %v15632_v3, %v15632_v3  ;;  %v15775_v39 = vpop.f32.mrf.mxu3  ;;  %v8224_v3 = vmul.f32 %v15653_v9, %v15653_v9 }
 0xd57   :  { %v8300_v62 = vadd.f32 %v8299_v14, %v8298_v6  ;;  %17327 = vst [vmem:[#allocation23_spill] sm:$0xff] %v15775_v39  ;;  %v8307_v58 = vsel %vm91_vm0, %v8222_v52, 0.0 }
 0xd58   :  { %v8103_v17 = vadd.f32 %v8102_v20, %v8101_v2  ;;  %v8305_v49 = vsel %vm91_vm0, %v8221_v7, 0.0  ;;  %v8110_v2 = vsel %vm91_vm0, %v15640_v11, 0.0 }
 0xd59   :  { %v8302_v20 = vadd.f32 %v8301_v63, %v8300_v62 }
 0xd5a   :  { %v15763_v36 = vpop.f32.mrf.mxu1  ;;  %v8105_v44 = vadd.f32 %v8104_v59, %v8103_v17  ;;  %v8223_v59 = vmul.f32 %v15646_v31, %v15646_v31  ;;  %v8112_v17 = vsel %vm91_vm0, %v15646_v31, 0.0 }
 0xd5b   :  { %17326 = vst [vmem:[#allocation22_spill] sm:$0xff] %v15763_v36  ;;  %v8304_v14 = vadd.f32 %v8303_v30, %v8302_v20  ;;  %v8311_v20 = vsel %vm91_vm0, %v8224_v3, 0.0 }
 0xd5c   :  { %v8107_v25 = vadd.f32 %v8106_v55, %v8105_v44  ;;  %v8309_v7 = vsel %vm91_vm0, %v8223_v59, 0.0  ;;  %v8114_v44 = vsel %vm91_vm0, %v15653_v9, 0.0  ;;  %v8118_v9 = vsel %vm91_vm0, %v15710_v27, 0.0 }
 0xd5d   :  { %v8306_v63 = vadd.f32 %v8305_v49, %v8304_v14  ;;  %v8226_v49 = vmul.f32 %v15710_v27, %v15710_v27  ;;  %v8122_v27 = vsel %vm91_vm0, %v15763_v36, 0.0 }
 0xd5e   :  { %v8109_v6 = vadd.f32 %v8108_v57, %v8107_v25  ;;  %v8225_v57 = vmul.f32 %v15686_v26, %v15686_v26  ;;  %v8116_v25 = vsel %vm91_vm0, %v15686_v26, 0.0 }
 0xd5f   :  { %v8308_v30 = vadd.f32 %v8307_v58, %v8306_v63  ;;  %v8227_v58 = vmul.f32 %v15739_v4, %v15739_v4  ;;  %v8315_v63 = vsel %vm91_vm0, %v8226_v49, 0.0 }
 0xd60   :  { %v8111_v55 = vadd.f32 %v8110_v2, %v8109_v6  ;;  %v15804_v6 = vpop.f32.mrf.mxu3  ;;  %v8313_v59 = vsel %vm91_vm0, %v8225_v57, 0.0 }
 0xd61   :  { %v8310_v2 = vadd.f32 %v8309_v7, %v8308_v30  ;;  %17329 = vst [vmem:[#allocation25_spill] sm:$0xff] %v15804_v6  ;;  %v8228_v7 = vmul.f32 %v15763_v36, %v15763_v36  ;;  %v8317_v57 = vsel %vm91_vm0, %v8227_v58, 0.0 }
 0xd62   :  { %v15792_v62 = vpop.f32.mrf.mxu1  ;;  %v8113_v52 = vadd.f32 %v8112_v17, %v8111_v55  ;;  %v8120_v55 = vsel %vm91_vm0, %v15739_v4, 0.0 }
 0xd63   :  { %17328 = vst [vmem:[#allocation24_spill] sm:$0xff] %v15792_v62  ;;  %v8312_v17 = vadd.f32 %v8311_v20, %v8310_v2  ;;  %v8229_v20 = vmul.f32 %v15792_v62, %v15792_v62  ;;  %v8319_v2 = vsel %vm91_vm0, %v8228_v7, 0.0 }
 0xd64   :  { %v8115_v14 = vadd.f32 %v8114_v44, %v8113_v52 }
 0xd65   :  { %v8314_v44 = vadd.f32 %v8313_v59, %v8312_v17  ;;  %v8321_v58 = vsel %vm91_vm0, %v8229_v20, 0.0 }
 0xd66   :  { %v8117_v3 = vadd.f32 %v8116_v25, %v8115_v14  ;;  %v8124_v14 = vsel %vm91_vm0, %v15792_v62, 0.0  ;;  %v8232_v62 = vmul.f32 %v15531_v48, %v15531_v48 }
 0xd67   :  { %v8316_v25 = vadd.f32 %v8315_v63, %v8314_v44 }
 0xd68   :  { %v8119_v30 = vadd.f32 %v8118_v9, %v8117_v3 }
 0xd69   :  { %v8318_v59 = vadd.f32 %v8317_v57, %v8316_v25 }
 0xd6a   :  { %v8121_v49 = vadd.f32 %v8120_v55, %v8119_v30 }
 0xd6b   :  { %v8320_v4 = vadd.f32 %v8319_v2, %v8318_v59  ;;  %v8132_v59 = vsel %vm91_vm0, %v15543_v42, 0.0 }
 0xd6c   :  { %v8123_v17 = vadd.f32 %v8122_v27, %v8121_v49  ;;  %v8130_v49 = vsel %vm91_vm0, %v15531_v48, 0.0 }
 0xd6d   :  { %v8322_v7 = vadd.f32 %v8321_v58, %v8320_v4  ;;  %v8233_v4 = vmul.f32 %v15543_v42, %v15543_v42 }
 0xd6e   :  { %v8125_v63 = vadd.f32 %v8124_v14, %v8123_v17  ;;  %v8234_v17 = vmul.f32 %v15550_v46, %v15550_v46 }
 0xd70   :  { %v15828_v3 = vpop.f32.mrf.mxu3 }
 0xd71   :  { %17330 = vst [vmem:[#allocation9_spill] sm:$0xff] %v15828_v3 }
 0xd78   :  { %v15852_v58 = vpop.f32.mrf.mxu3 }
 0xd79   :  { %17331 = vst [vmem:[#allocation10_spill] sm:$0xff] %v15852_v58 }
 0xd7a   :  { %v15816_v52 = vpop.f32.mrf.mxu1 }
 0xd7b   :  { %v8230_v9 = vmul.f32 %v15816_v52, %v15816_v52  ;;  %v8126_v36 = vsel %vm91_vm0, %v15816_v52, 0.0 }
 0xd7c   :  { %v8127_v44 = vadd.f32 %v8126_v36, %v8125_v63 }
 0xd7d   :  { %v8323_v55 = vsel %vm91_vm0, %v8230_v9, 0.0  ;;  %v8327_v9 = vsel %vm91_vm0, %v8232_v62, 0.0 }
 0xd7e   :  { %v8324_v20 = vadd.f32 %v8323_v55, %v8322_v7  ;;  %v8329_v7 = vsel %vm91_vm0, %v8233_v4, 0.0 }
 0xd82   :  { %v15834_v30 = vpop.f32.mrf.mxu1 }
 0xd83   :  { %v8128_v27 = vsel %vm91_vm0, %v15834_v30, 0.0  ;;  %v8231_v57 = vmul.f32 %v15834_v30, %v15834_v30 }
 0xd84   :  { %v8129_v25 = vadd.f32 %v8128_v27, %v8127_v44  ;;  %v8134_v44 = vsel %vm91_vm0, %v15550_v46, 0.0  ;;  %v8235_v27 = vmul.f32 %v15560_v12, %v15560_v12 }
 0xd85   :  { %v8325_v36 = vsel %vm91_vm0, %v8231_v57, 0.0 }
 0xd86   :  { %v8131_v2 = vadd.f32 %v8130_v49, %v8129_v25  ;;  %v8326_v14 = vadd.f32 %v8325_v36, %v8324_v20  ;;  %v8331_v20 = vsel %vm91_vm0, %v8234_v17, 0.0  ;;  %v8136_v25 = vsel %vm91_vm0, %v15560_v12, 0.0 }
 0xd87   :  { %v8236_v49 = vmul.f32 %v15566_v45, %v15566_v45  ;;  %v8333_v4 = vsel %vm91_vm0, %v8235_v27, 0.0 }
 0xd88   :  { %v8133_v63 = vadd.f32 %v8132_v59, %v8131_v2  ;;  %v8328_v55 = vadd.f32 %v8327_v9, %v8326_v14  ;;  %v8138_v14 = vsel %vm91_vm0, %v15566_v45, 0.0  ;;  %v8237_v9 = vmul.f32 %v15575_v19, %v15575_v19 }
 0xd89   :  { %v8335_v17 = vsel %vm91_vm0, %v8236_v49, 0.0 }
 0xd8a   :  { %v8135_v57 = vadd.f32 %v8134_v44, %v8133_v63  ;;  %v8330_v62 = vadd.f32 %v8329_v7, %v8328_v55  ;;  %v8140_v55 = vsel %vm91_vm0, %v15575_v19, 0.0  ;;  %v8238_v7 = vmul.f32 %v15583_v47, %v15583_v47 }
 0xd8b   :  { %v8337_v27 = vsel %vm91_vm0, %v8237_v9, 0.0 }
 0xd8c   :  { %v8137_v36 = vadd.f32 %v8136_v25, %v8135_v57  ;;  %v8332_v2 = vadd.f32 %v8331_v20, %v8330_v62  ;;  %v8142_v20 = vsel %vm91_vm0, %v15583_v47, 0.0  ;;  %v8239_v25 = vmul.f32 %v15590_v22, %v15590_v22 }
 0xd8e   :  { %v8139_v59 = vadd.f32 %v8138_v14, %v8137_v36  ;;  %v8334_v63 = vadd.f32 %v8333_v4, %v8332_v2  ;;  %v8339_v2 = vsel %vm91_vm0, %v8238_v7, 0.0  ;;  %v8144_v4 = vsel %vm91_vm0, %v15590_v22, 0.0 }
 0xd8f   :  { %v8240_v14 = vmul.f32 %v15598_v33, %v15598_v33  ;;  %v8341_v9 = vsel %vm91_vm0, %v8239_v25, 0.0 }
 0xd90   :  { %v8141_v44 = vadd.f32 %v8140_v55, %v8139_v59  ;;  %v8336_v57 = vadd.f32 %v8335_v17, %v8334_v63  ;;  %v15874_v62 = vpop.f32.mrf.mxu3  ;;  %v8146_v17 = vsel %vm91_vm0, %v15598_v33, 0.0  ;;  %v8241_v55 = vmul.f32 %v15605_v0, %v15605_v0 }
 0xd91   :  { %17332 = vst [vmem:[#allocation14_spill] sm:$0xff] %v15874_v62  ;;  %v8343_v7 = vsel %vm91_vm0, %v8240_v14, 0.0 }
 0xd92   :  { %v8143_v36 = vadd.f32 %v8142_v20, %v8141_v44  ;;  %v8338_v49 = vadd.f32 %v8337_v27, %v8336_v57  ;;  %v8148_v27 = vsel %vm91_vm0, %v15605_v0, 0.0  ;;  %v8242_v20 = vmul.f32 %v15614_v38, %v15614_v38 }
 0xd93   :  { %v8345_v25 = vsel %vm91_vm0, %v8241_v55, 0.0 }
 0xd94   :  { %v8145_v59 = vadd.f32 %v8144_v4, %v8143_v36  ;;  %v8340_v63 = vadd.f32 %v8339_v2, %v8338_v49  ;;  %v8150_v4 = vsel %vm91_vm0, %v15614_v38, 0.0  ;;  %v8245_v38 = vmul.f32 %v15638_v61, %v15638_v61 }
 0xd96   :  { %v8147_v44 = vadd.f32 %v8146_v17, %v8145_v59  ;;  %v8342_v57 = vadd.f32 %v8341_v9, %v8340_v63  ;;  %v8243_v59 = vmul.f32 %v15622_v40, %v15622_v40  ;;  %v8347_v9 = vsel %vm91_vm0, %v8242_v20, 0.0 }
 0xd97   :  { %v8152_v17 = vsel %vm91_vm0, %v15622_v40, 0.0 }
 0xd98   :  { %v8149_v36 = vadd.f32 %v8148_v27, %v8147_v44  ;;  %v8344_v49 = vadd.f32 %v8343_v7, %v8342_v57  ;;  %v15896_v2 = vpop.f32.mrf.mxu3  ;;  %v8244_v44 = vmul.f32 %v15630_v53, %v15630_v53  ;;  %v8349_v55 = vsel %vm91_vm0, %v8243_v59, 0.0 }
 0xd99   :  { %17333 = vst [vmem:[#allocation16_spill] sm:$0xff] %v15896_v2  ;;  %v8154_v27 = vsel %vm91_vm0, %v15630_v53, 0.0  ;;  %v8353_v59 = vsel %vm91_vm0, %v8245_v38, 0.0 }
 0xd9a   :  { %v8151_v63 = vadd.f32 %v8150_v4, %v8149_v36  ;;  %v8346_v14 = vadd.f32 %v8345_v25, %v8344_v49  ;;  %v8351_v20 = vsel %vm91_vm0, %v8244_v44, 0.0  ;;  %v8156_v25 = vsel %vm91_vm0, %v15638_v61, 0.0 }
 0xd9b   :  { %v8246_v4 = vmul.f32 %v15644_v60, %v15644_v60 }
 0xd9c   :  { %v8153_v57 = vadd.f32 %v8152_v17, %v8151_v63  ;;  %v8348_v7 = vadd.f32 %v8347_v9, %v8346_v14  ;;  %v8158_v17 = vsel %vm91_vm0, %v15644_v60, 0.0  ;;  %v8249_v60 = vmul.f32 %v15698_v24, %v15698_v24 }
 0xd9e   :  { %v8350_v36 = vadd.f32 %v8349_v55, %v8348_v7  ;;  %v8155_v49 = vadd.f32 %v8154_v27, %v8153_v57  ;;  %v8247_v57 = vmul.f32 %v15649_v16, %v15649_v16  ;;  %v8355_v55 = vsel %vm91_vm0, %v8246_v4, 0.0 }
 0xd9f   :  { %v8160_v27 = vsel %vm91_vm0, %v15649_v16, 0.0 }
 0xda0   :  { %v8157_v63 = vadd.f32 %v8156_v25, %v8155_v49  ;;  %v8352_v14 = vadd.f32 %v8351_v20, %v8350_v36  ;;  %v15918_v9 = vpop.f32.mrf.mxu3  ;;  %v8248_v36 = vmul.f32 %v15668_v34, %v15668_v34  ;;  %v8357_v38 = vsel %vm91_vm0, %v8247_v57, 0.0 }
 0xda1   :  { %17334 = vst [vmem:[#allocation20_spill] sm:$0xff] %v15918_v9  ;;  %v8162_v25 = vsel %vm91_vm0, %v15668_v34, 0.0  ;;  %v8361_v57 = vsel %vm91_vm0, %v8249_v60, 0.0 }
 0xda2   :  { %v8159_v7 = vadd.f32 %v8158_v17, %v8157_v63  ;;  %v8354_v44 = vadd.f32 %v8353_v59, %v8352_v14  ;;  %v8359_v4 = vsel %vm91_vm0, %v8248_v36, 0.0  ;;  %v8164_v59 = vsel %vm91_vm0, %v15698_v24, 0.0 }
 0xda3   :  { %v8250_v17 = vmul.f32 %v15722_v8, %v15722_v8 }
 0xda4   :  { %v8161_v49 = vadd.f32 %v8160_v27, %v8159_v7  ;;  %v8356_v20 = vadd.f32 %v8355_v55, %v8354_v44  ;;  %v8166_v27 = vsel %vm91_vm0, %v15722_v8, 0.0  ;;  %v8253_v8 = vmul.f32 %v15804_v6, %v15804_v6 }
 0xda6   :  { %v8163_v63 = vadd.f32 %v8162_v25, %v8161_v49  ;;  %v8358_v14 = vadd.f32 %v8357_v38, %v8356_v20  ;;  %v8251_v49 = vmul.f32 %v15751_v41, %v15751_v41  ;;  %v8363_v38 = vsel %vm91_vm0, %v8250_v17, 0.0 }
 0xda7   :  { %v8168_v25 = vsel %vm91_vm0, %v15751_v41, 0.0 }
 0xda8   :  { %v8165_v7 = vadd.f32 %v8164_v59, %v8163_v63  ;;  %v8360_v44 = vadd.f32 %v8359_v4, %v8358_v14  ;;  %v15940_v55 = vpop.f32.mrf.mxu3  ;;  %v8252_v63 = vmul.f32 %v15775_v39, %v15775_v39  ;;  %v8365_v60 = vsel %vm91_vm0, %v8251_v49, 0.0 }
 0xda9   :  { %17335 = vst [vmem:[#allocation18_spill] sm:$0xff] %v15940_v55  ;;  %v8170_v59 = vsel %vm91_vm0, %v15775_v39, 0.0  ;;  %v8369_v49 = vsel %vm91_vm0, %v8253_v8, 0.0 }
 0xdaa   :  { %v8167_v20 = vadd.f32 %v8166_v27, %v8165_v7  ;;  %v8362_v36 = vadd.f32 %v8361_v57, %v8360_v44  ;;  %v8367_v17 = vsel %vm91_vm0, %v8252_v63, 0.0  ;;  %v8172_v57 = vsel %vm91_vm0, %v15804_v6, 0.0 }
 0xdab   :  { %v8254_v27 = vmul.f32 %v15828_v3, %v15828_v3 }
 0xdac   :  { %v8169_v14 = vadd.f32 %v8168_v25, %v8167_v20  ;;  %v8364_v4 = vadd.f32 %v8363_v38, %v8362_v36  ;;  %v8174_v25 = vsel %vm91_vm0, %v15828_v3, 0.0  ;;  %v8257_v3 = vmul.f32 %v15896_v2, %v15896_v2 }
 0xdae   :  { %v8171_v7 = vadd.f32 %v8170_v59, %v8169_v14  ;;  %v8366_v44 = vadd.f32 %v8365_v60, %v8364_v4  ;;  %v8255_v14 = vmul.f32 %v15852_v58, %v15852_v58  ;;  %v8371_v60 = vsel %vm91_vm0, %v8254_v27, 0.0 }
 0xdaf   :  { %v8176_v59 = vsel %vm91_vm0, %v15852_v58, 0.0 }
 0xdb0   :  { %v8173_v20 = vadd.f32 %v8172_v57, %v8171_v7  ;;  %v8368_v36 = vadd.f32 %v8367_v17, %v8366_v44  ;;  %v15962_v38 = vpop.f32.mrf.mxu3  ;;  %v8256_v7 = vmul.f32 %v15874_v62, %v15874_v62  ;;  %v8373_v8 = vsel %vm91_vm0, %v8255_v14, 0.0 }
 0xdb1   :  { %17336 = vst [vmem:[#allocation21_spill] sm:$0xff] %v15962_v38  ;;  %v8178_v57 = vsel %vm91_vm0, %v15874_v62, 0.0  ;;  %v8377_v14 = vsel %vm91_vm0, %v8257_v3, 0.0  ;;  %v8260_v3 = vmul.f32 %v15962_v38, %v15962_v38 }
 0xdb2   :  { %v8175_v4 = vadd.f32 %v8174_v25, %v8173_v20  ;;  %v8370_v63 = vadd.f32 %v8369_v49, %v8368_v36  ;;  %v8375_v27 = vsel %vm91_vm0, %v8256_v7, 0.0  ;;  %v8180_v49 = vsel %vm91_vm0, %v15896_v2, 0.0 }
 0xdb3   :  { %v8258_v25 = vmul.f32 %v15918_v9, %v15918_v9  ;;  %v8259_v7 = vmul.f32 %v15940_v55, %v15940_v55 }
 0xdb4   :  { %v8177_v44 = vadd.f32 %v8176_v59, %v8175_v4  ;;  %v8372_v17 = vadd.f32 %v8371_v60, %v8370_v63  ;;  %v8182_v59 = vsel %vm91_vm0, %v15918_v9, 0.0 }
 0xdb6   :  { %v8179_v20 = vadd.f32 %v8178_v57, %v8177_v44  ;;  %v8374_v36 = vadd.f32 %v8373_v8, %v8372_v17  ;;  %v8379_v17 = vsel %vm91_vm0, %v8258_v25, 0.0  ;;  %v8184_v8 = vsel %vm91_vm0, %v15940_v55, 0.0 }
 0xdb8   :  { %v8376_v4 = vadd.f32 %v8375_v27, %v8374_v36  ;;  %v8181_v63 = vadd.f32 %v8180_v49, %v8179_v20  ;;  %v15984_v60 = vpop.f32.mrf.mxu3  ;;  %v8381_v20 = vsel %vm91_vm0, %v8259_v7, 0.0  ;;  %v8186_v49 = vsel %vm91_vm0, %v15962_v38, 0.0  ;;  %v17363_v38 = vld [vmem:[#allocation20_spill] sm:$0xff] }
 0xdb9   :  { %17337 = vst [vmem:[#allocation19_spill] sm:$0xff] %v15984_v60  ;;  %v8261_v25 = vmul.f32 %v15984_v60, %v15984_v60 }
 0xdba   :  { %v8378_v62 = vadd.f32 %v8377_v14, %v8376_v4  ;;  %v8183_v44 = vadd.f32 %v8182_v59, %v8181_v63  ;;  %v8383_v14 = vsel %vm91_vm0, %v8260_v3, 0.0 }
 0xdbc   :  { %v8380_v57 = vadd.f32 %v8379_v17, %v8378_v62  ;;  %v8185_v36 = vadd.f32 %v8184_v8, %v8183_v44  ;;  %v8188_v62 = vsel %vm91_vm0, %v15984_v60, 0.0  ;;  %v8385_v8 = vsel %vm91_vm0, %v8261_v25, 0.0 }
 0xdbe   :  { %v8382_v27 = vadd.f32 %v8381_v20, %v8380_v57  ;;  %v8187_v4 = vadd.f32 %v8186_v49, %v8185_v36 }
 0xdc0   :  { %v15999_v63 = vpop.f32.mrf.mxu3  ;;  %v8384_v59 = vadd.f32 %v8383_v14, %v8382_v27  ;;  %v8189_v44 = vadd.f32 %v8188_v62, %v8187_v4 }
 0xdc1   :  { %17338 = vst [vmem:[#allocation26_spill] sm:$0xff] %v15999_v63  ;;  %v8262_v7 = vmul.f32 %v15999_v63, %v15999_v63  ;;  %v8190_v17 = vsel %vm91_vm0, %v15999_v63, 0.0  ;;  %v17361_v63 = vld [vmem:[#allocation14_spill] sm:$0xff] }
 0xdc2   :  { %v8386_v57 = vadd.f32 %v8385_v8, %v8384_v59  ;;  %v8191_v36 = vadd.f32 %v8190_v17, %v8189_v44 }
 0xdc3   :  { %v8387_v20 = vsel %vm91_vm0, %v8262_v7, 0.0 }
 0xdc4   :  { %v8388_v9 = vadd.f32 %v8387_v20, %v8386_v57 }
 0xdc8   :  { %v8064_v3 = vpop.f32.mrf.mxu3 }
 0xdc9   :  { %v8192_v49 = vsel %vm91_vm0, %v8064_v3, 0.0  ;;  %v8263_v27 = vmul.f32 %v8064_v3, %v8064_v3 }
 0xdca   :  { %v8193_v14 = vadd.f32 %v8192_v49, %v8191_v36 }
 0xdcb   :  { %v8389_v4 = vsel %vm91_vm0, %v8263_v27, 0.0 }
 0xdcc   :  { %v8194_v62 = vrot.slane %v8193_v14, 4  ;;  %v8390_v2 = vadd.f32 %v8389_v4, %v8388_v9 }
 0xdce   :  { %v8195_v58 = vadd.f32 %v8194_v62, %v8193_v14  ;;  %v8391_v6 = vrot.slane %v8390_v2, 4 }
 0xdd0   :  { %v8196_v39 = vrot.slane %v8195_v58, 2  ;;  %v8392_v41 = vadd.f32 %v8391_v6, %v8390_v2 }
 0xdd2   :  { %v8197_v24 = vadd.f32 %v8196_v39, %v8195_v58  ;;  %v8393_v25 = vrot.slane %v8392_v41, 2 }
 0xdd4   :  { %v8198_v59 = vrot.slane %v8197_v24, 1  ;;  %v8394_v44 = vadd.f32 %v8393_v25, %v8392_v41 }
 0xdd6   :  { %v8199_v17 = vadd.f32 %v8198_v59, %v8197_v24  ;;  %v8395_v7 = vrot.slane %v8394_v44, 1 }
 0xdd8   :  { %v8396_v8 = vadd.f32 %v8395_v7, %v8394_v44  ;;  %v16014_v34 = vmul.f32 0.001953125, %v8199_v17 }
 0xdda   :  { %v8398_v16 = vmul.f32 0.001953125, %v8396_v8  ;;  %v8399_v57 = vmul.f32 %v16014_v34, %v16014_v34  ;;  %v8465_v41 = vsub.f32 %v8064_v3, %v16014_v34  ;;  %v8404_v3 = vsub.f32 %v15465_v13, %v16014_v34 }
 0xddb   :  { %v8405_v44 = vsub.f32 %v15474_v32, %v16014_v34  ;;  %v8406_v17 = vsub.f32 %v15484_v56, %v16014_v34  ;;  %v8407_v7 = vsub.f32 %v15494_v15, %v16014_v34  ;;  %v8408_v8 = vsub.f32 %v15506_v10, %v16014_v34  ;;  %v16057_v10 = vld [vmem:[%s17024_s5] ss:$0 sm:$0xff] }
 0xddc   :  { %v8400_v6 = vsub.f32 %v8398_v16, %v8399_v57  ;;  %v8403_v16 = vsub.f32 %v15453_v28, %v16014_v34  ;;  %v8409_v57 = vsub.f32 %v15515_v5, %v16014_v34  ;;  %v8410_v28 = vsub.f32 %v15526_v43, %v16014_v34  ;;  %17339 = vst [vmem:[#allocation31_spill] sm:$0xff] %v16057_v10 }
 0xddd   :  { %v8411_v13 = vsub.f32 %v15538_v29, %v16014_v34  ;;  %v8412_v32 = vsub.f32 %v15547_v51, %v16014_v34  ;;  %v8413_v56 = vsub.f32 %v15555_v50, %v16014_v34  ;;  %v8414_v5 = vsub.f32 %v15562_v21, %v16014_v34  ;;  %v17340_v51 = vld [vmem:[#allocation27_spill] sm:$0xff]  ;;  %v17342_v21 = vld [vmem:[#allocation30_spill] sm:$0xff] }
 0xdde   :  { %v8401_v58 = vmax.f32 %v8400_v6, 0.0  ;;  %v8415_v43 = vsub.f32 %v15571_v35, %v16014_v34  ;;  %v8416_v29 = vsub.f32 %v15577_v18, %v16014_v34  ;;  %v8417_v6 = vsub.f32 %v17340_v51, %v16014_v34  ;;  %v17343_v18 = vld [vmem:[#allocation8_spill] sm:$0xff] }
 0xddf   :  { %v8418_v50 = vsub.f32 %v15594_v54, %v16014_v34  ;;  %v8422_v35 = vsub.f32 %v15626_v23, %v16014_v34  ;;  %v8425_v54 = vsub.f32 %v15646_v31, %v16014_v34  ;;  %v17349_v31 = vld [vmem:[#allocation24_spill] sm:$0xff]  ;;  %v17364_v55 = vsub.f32 %v15444_v37, %v16014_v34 }
 0xde0   :  { %v8466_v2 = vadd.f32 1e-05, %v8401_v58  ;;  %v8431_v24 = vsub.f32 %v17349_v31, %v16014_v34  ;;  %v8438_v31 = vsub.f32 %v15566_v45, %v16014_v34  ;;  %v8445_v45 = vsub.f32 %v15622_v40, %v16014_v34 }
 0xde2   :  { %9514 = vrsqrt.f32 %v8466_v2  ;;  %vm8473_vm2 = vweird.f32 %v8466_v2 }
 0xde8   :  { %v9515_v20 = vpop.eup %9514 }
 0xde9   :  { %v8468_v49 = vmul.f32 %v9515_v20, %v8466_v2  ;;  %vm8474_vm1 = vweird.f32 %v9515_v20  ;;  %v8420_v2 = vsub.f32 %v15611_v1, %v16014_v34  ;;  %v8427_v1 = vsub.f32 %v15686_v26, %v16014_v34 }
 0xdea   :  { %vm8475_vm3 = vmor %vm8473_vm2, %vm8474_vm1  ;;  %v8433_v26 = vsub.f32 %v15834_v30, %v16014_v34  ;;  %v8440_v30 = vsub.f32 %v15583_v47, %v16014_v34  ;;  %v8447_v47 = vsub.f32 %v15638_v61, %v16014_v34  ;;  %v17357_v61 = vld [vmem:[#allocation23_spill] sm:$0xff] }
 0xdeb   :  { %v8469_v27 = vmul.f32 %v9515_v20, %v8468_v49  ;;  %v8423_v49 = vsub.f32 %v17343_v18, %v16014_v34 }
 0xded   :  { %v8470_v14 = vmul.f32 0.5, %v8469_v27  ;;  %v8424_v27 = vsub.f32 %v15640_v11, %v16014_v34  ;;  %v17348_v11 = vld [vmem:[#allocation22_spill] sm:$0xff] }
 0xdee   :  { %v8430_v18 = vsub.f32 %v17348_v11, %v16014_v34  ;;  %v8437_v11 = vsub.f32 %v15560_v12, %v16014_v34  ;;  %v17350_v12 = vld [vmem:[#allocation29_spill] sm:$0xff] }
 0xdef   :  { %v8471_v4 = vsub.f32 1.5, %v8470_v14  ;;  %v17344_v14 = vld [vmem:[#allocation15_spill] sm:$0xff]  ;;  %v8444_v39 = vsub.f32 %v17350_v12, %v16014_v34 }
 0xdf1   :  { %v8472_v62 = vmul.f32 %v9515_v20, %v8471_v4  ;;  %v8426_v4 = vsub.f32 %v17344_v14, %v16014_v34  ;;  %v8432_v14 = vsub.f32 %v15816_v52, %v16014_v34  ;;  %v8439_v52 = vsub.f32 %v15575_v19, %v16014_v34 }
 0xdf2   :  { %v8446_v19 = vsub.f32 %v15630_v53, %v16014_v34 }
 0xdf3   :  { %v16029_v59 = vsel %vm8475_vm3, %v9515_v20, %v8472_v62  ;;  %v8421_v20 = vsub.f32 %v17342_v21, %v16014_v34  ;;  %v17345_v62 = vld [vmem:[#allocation6_spill] sm:$0xff] }
 0xdf4   :  { %v8540_v15 = vmul.f32 %v16029_v59, %v8465_v41  ;;  %v17341_v41 = vld [vmem:[#allocation28_spill] sm:$0xff]  ;;  %v8428_v51 = vsub.f32 %v17345_v62, %v16014_v34  ;;  %v8434_v62 = vsub.f32 %v15531_v48, %v16014_v34  ;;  %v8441_v48 = vsub.f32 %v15590_v22, %v16014_v34  ;;  %v17351_v22 = vld [vmem:[#allocation11_spill] sm:$0xff] }
 0xdf5   :  { %v8419_v58 = vsub.f32 %v17341_v41, %v16014_v34  ;;  %v17347_v41 = vld [vmem:[#allocation12_spill] sm:$0xff]  ;;  %v8448_v36 = vsub.f32 %v17351_v22, %v16014_v34  ;;  %v8478_v22 = vmul.f32 %v16029_v59, %v8403_v16  ;;  %v8481_v25 = vmul.f32 %v16029_v59, %v8406_v17 }
 0xdf6   :  { %v16090_v23 = vmul.f32 %v16057_v10, %v8540_v15  ;;  %v8429_v21 = vsub.f32 %v17347_v41, %v16014_v34  ;;  %v8435_v15 = vsub.f32 %v15543_v42, %v16014_v34  ;;  %v8436_v41 = vsub.f32 %v15550_v46, %v16014_v34 }
 0xdf7   :  { %v8442_v42 = vsub.f32 %v15598_v33, %v16014_v34  ;;  %v8443_v46 = vsub.f32 %v15605_v0, %v16014_v34  ;;  %v17352_v33 = vld [vmem:[#allocation13_spill] sm:$0xff]  ;;  %v8477_v10 = vmul.f32 %v16029_v59, %v17364_v55  ;;  %v8480_v0 = vmul.f32 %v16029_v59, %v8405_v44 }
 0xdf8   :  { %17346 = vst [vmem:[#allocation27_spill] sm:$0xff] %v16090_v23  ;;  %v8449_v9 = vsub.f32 %v17352_v33, %v16014_v34  ;;  %v17359_v33 = vld [vmem:[#allocation9_spill] sm:$0xff]  ;;  %v8479_v23 = vmul.f32 %v16029_v59, %v8404_v3  ;;  %v8482_v12 = vmul.f32 %v16029_v59, %v8407_v7  ;;  %v8483_v40 = vmul.f32 %v16029_v59, %v8408_v8  ;;  %v16196_v8 = vld [vmem:[%s17025_s6] ss:$0 sm:$0xff] }
 0xdf9   :  { %v16167_v60 = vmul.f32 %v16029_v59, %v8409_v57  ;;  %v16170_v53 = vmul.f32 %v16029_v59, %v8410_v28  ;;  %v16173_v37 = vmul.f32 %v16029_v59, %v8411_v13  ;;  %v16176_v55 = vmul.f32 %v16029_v59, %v8412_v32 }
 0xdfa   :  { %v16179_v16 = vmul.f32 %v16029_v59, %v8413_v56  ;;  %v16182_v3 = vmul.f32 %v16029_v59, %v8414_v5  ;;  %v16185_v44 = vmul.f32 %v16029_v59, %v8415_v43  ;;  %v16188_v17 = vmul.f32 %v16029_v59, %v8416_v29 }
 0xdfb   :  { %v16191_v7 = vmul.f32 %v16029_v59, %v8417_v6  ;;  %v16199_v57 = vmul.f32 %v16029_v59, %v8418_v50  ;;  %v16202_v28 = vmul.f32 %v16029_v59, %v8419_v58  ;;  %v16205_v13 = vmul.f32 %v16029_v59, %v8420_v2 }
 0xdfc   :  { %v16208_v32 = vmul.f32 %v16029_v59, %v8421_v20  ;;  %v16211_v56 = vmul.f32 %v16029_v59, %v8422_v35  ;;  %v16214_v5 = vmul.f32 %v16029_v59, %v8423_v49  ;;  %v16217_v43 = vmul.f32 %v16029_v59, %v8424_v27 }
 0xdfd   :  { %v16220_v29 = vmul.f32 %v16029_v59, %v8425_v54  ;;  %v16223_v6 = vmul.f32 %v16029_v59, %v8426_v4  ;;  %v16226_v50 = vmul.f32 %v16029_v59, %v8427_v1  ;;  %v16229_v58 = vmul.f32 %v16029_v59, %v8428_v51 }
 0xdfe   :  { %v16232_v2 = vmul.f32 %v16029_v59, %v8429_v21  ;;  %v16235_v20 = vmul.f32 %v16029_v59, %v8430_v18  ;;  %v16238_v35 = vmul.f32 %v16029_v59, %v8431_v24  ;;  %v16241_v49 = vmul.f32 %v16029_v59, %v8432_v14 }
 0xdff   :  { %v17365_v27 = vld [vmem:[#allocation27_spill] sm:$0xff]  ;;  %v16248_v4 = vmul.f32 %v16029_v59, %v8433_v26  ;;  %v16251_v1 = vmul.f32 %v16029_v59, %v8434_v62  ;;  %v16254_v51 = vmul.f32 %v16029_v59, %v8435_v15  ;;  %v16257_v21 = vmul.f32 %v16029_v59, %v8436_v41 }
 0xe00   :  { %v16245_v54 = vadd.f32 %v16196_v8, %v17365_v27  ;;  %v16260_v24 = vmul.f32 %v16029_v59, %v8437_v11  ;;  %v16263_v18 = vmul.f32 %v16029_v59, %v8438_v31  ;;  %v16266_v14 = vmul.f32 %v16029_v59, %v8439_v52 }
 0xe01   :  { %v16269_v26 = vmul.f32 %v16029_v59, %v8440_v30  ;;  %v16272_v62 = vmul.f32 %v16029_v59, %v8441_v48  ;;  %v16275_v15 = vmul.f32 %v16029_v59, %v8442_v42  ;;  %v16278_v41 = vmul.f32 %v16029_v59, %v8443_v46  ;;  %v17371_v46 = vld [vmem:[#allocation31_spill] sm:$0xff] }
 0xe02   :  { %17366 = vst [vmem:[#allocation28_spill] sm:$0xff] %v16245_v54  ;;  %v16281_v11 = vmul.f32 %v16029_v59, %v8444_v39  ;;  %v16284_v31 = vmul.f32 %v16029_v59, %v8445_v45  ;;  %v16287_v52 = vmul.f32 %v16029_v59, %v8446_v19  ;;  %v16290_v30 = vmul.f32 %v16029_v59, %v8447_v47  ;;  %v17372_v45 = vld [vmem:[#allocation17_spill] sm:$0xff] }
 0xe03   :  { %v16293_v48 = vmul.f32 %v16029_v59, %v8448_v36  ;;  %v16296_v42 = vmul.f32 %v16029_v59, %v8449_v9  ;;  %v8545_v27 = vmul.f32 %v17371_v46, %v8477_v10  ;;  %v8546_v39 = vmul.f32 %v17371_v46, %v8478_v22  ;;  %v17375_v47 = vld [vmem:[#allocation5_spill] sm:$0xff]  ;;  %v17378_v9 = vld [vmem:[#allocation4_spill] sm:$0xff]  ;;  %v17381_v22 = vld [vmem:[#allocation7_spill] sm:$0xff] }
 0xe04   :  { %17367 = vst [vmem:[#allocation30_spill] sm:$0xff] %v16284_v31  ;;  %v8547_v54 = vmul.f32 %v17371_v46, %v8479_v23  ;;  %v17373_v31 = vsub.f32 %v17372_v45, %v16014_v34  ;;  %v8548_v23 = vmul.f32 %v17371_v46, %v8480_v0  ;;  %v17382_v45 = vsub.f32 %v17381_v22, %v16014_v34 }
 0xe05   :  { %17368 = vst [vmem:[#allocation8_spill] sm:$0xff] %v16290_v30  ;;  %v17376_v30 = vsub.f32 %v17375_v47, %v16014_v34  ;;  %v17384_v47 = vsub.f32 %v17357_v61, %v16014_v34  ;;  %v8549_v0 = vmul.f32 %v17371_v46, %v8481_v25  ;;  %v17389_v22 = vsub.f32 %v17359_v33, %v16014_v34 }
 0xe06   :  { %17369 = vst [vmem:[#allocation15_spill] sm:$0xff] %v16293_v48  ;;  %v16305_v19 = vmul.f32 %v16029_v59, %v17373_v31  ;;  %v16324_v31 = vmul.f32 %v16029_v59, %v17382_v45  ;;  %v8550_v25 = vmul.f32 %v17371_v46, %v8482_v12  ;;  %v8613_v33 = vadd.f32 %v16196_v8, %v8545_v27  ;;  %v9418_v27 = vld [vmem:[%s17019_s0 + $0x21] sm:$0xff] }
 0xe07   :  { %17370 = vst [vmem:[#allocation6_spill] sm:$0xff] %v16296_v42  ;;  %v16311_v36 = vmul.f32 %v16029_v59, %v17376_v30  ;;  %v17379_v42 = vsub.f32 %v17378_v9, %v16014_v34  ;;  %v16330_v30 = vmul.f32 %v16029_v59, %v17384_v47  ;;  %v16343_v45 = vmul.f32 %v16029_v59, %v17389_v22 }
 0xe08   :  { %17374 = vst [vmem:[#allocation12_spill] sm:$0xff] %v16305_v19  ;;  %v8614_v22 = vadd.f32 %v16196_v8, %v8546_v39  ;;  %v8552_v12 = vmul.f32 %v17371_v46, %v16167_v60  ;;  %v17401_v39 = vld [vmem:[#allocation18_spill] sm:$0xff]  ;;  %v17404_v60 = vld [vmem:[#allocation21_spill] sm:$0xff] }
 0xe09   :  { %17377 = vst [vmem:[#allocation22_spill] sm:$0xff] %v16311_v36  ;;  %v16317_v10 = vmul.f32 %v16029_v59, %v17379_v42  ;;  %v17386_v36 = vld [vmem:[#allocation25_spill] sm:$0xff] }
 0xe0a   :  { %17383 = vst [vmem:[#allocation29_spill] sm:$0xff] %v16324_v31  ;;  %v17387_v9 = vsub.f32 %v17386_v36, %v16014_v34  ;;  %v17391_v31 = vld [vmem:[#allocation10_spill] sm:$0xff]  ;;  %v17394_v36 = vsub.f32 %v17361_v63, %v16014_v34  ;;  %v17399_v63 = vsub.f32 %v17363_v38, %v16014_v34  ;;  %v8620_v19 = vadd.f32 %v16196_v8, %v8552_v12 }
 0xe0b   :  { %17380 = vst [vmem:[#allocation24_spill] sm:$0xff] %v16317_v10  ;;  %v17392_v61 = vsub.f32 %v17391_v31, %v16014_v34  ;;  %v17396_v31 = vld [vmem:[#allocation16_spill] sm:$0xff]  ;;  %v9419_v38 = vld [vmem:[%s17019_s0 + $0x31] sm:$0xff] }
 0xe0c   :  { %17385 = vst [vmem:[#allocation11_spill] sm:$0xff] %v16330_v30  ;;  %v16336_v42 = vmul.f32 %v16029_v59, %v17387_v9  ;;  %v16355_v9 = vmul.f32 %v16029_v59, %v17394_v36  ;;  %v16372_v36 = vmul.f32 %v16029_v59, %v17399_v63  ;;  %v17407_v30 = vld [vmem:[#allocation19_spill] sm:$0xff]  ;;  %v17410_v10 = vld [vmem:[#allocation26_spill] sm:$0xff] }
 0xe0d   :  { %17390 = vst [vmem:[#allocation23_spill] sm:$0xff] %v16343_v45  ;;  %v16349_v47 = vmul.f32 %v16029_v59, %v17392_v61  ;;  %v8615_v45 = vadd.f32 %v16196_v8, %v8547_v54  ;;  %v17397_v61 = vsub.f32 %v17396_v31, %v16014_v34  ;;  %v9417_v54 = vld [vmem:[%s17019_s0 + $0x19] sm:$0xff]  ;;  %v17402_v31 = vsub.f32 %v17401_v39, %v16014_v34 }
 0xe0e   :  { %17388 = vst [vmem:[#allocation13_spill] sm:$0xff] %v16336_v42  ;;  %v8551_v42 = vmul.f32 %v17371_v46, %v8483_v40  ;;  %v8616_v40 = vadd.f32 %v16196_v8, %v8548_v23  ;;  %v17405_v23 = vsub.f32 %v17404_v60, %v16014_v34  ;;  %v17408_v39 = vsub.f32 %v17407_v30, %v16014_v34  ;;  %v9422_v30 = vld [vmem:[%s17019_s0 + $0x51] sm:$0xff] }
 0xe0f   :  { %17393 = vst [vmem:[#allocation9_spill] sm:$0xff] %v16349_v47  ;;  %v16366_v47 = vmul.f32 %v16029_v59, %v17397_v61  ;;  %v16390_v61 = vmul.f32 %v16029_v59, %v17402_v31  ;;  %v8554_v60 = vmul.f32 %v17371_v46, %v16173_v37  ;;  %v17411_v37 = vsub.f32 %v17410_v10, %v16014_v34 }
 0xe10   :  { %17395 = vst [vmem:[#allocation14_spill] sm:$0xff] %v16355_v9  ;;  %v16396_v63 = vmul.f32 %v16029_v59, %v17405_v23  ;;  %v9420_v9 = vld [vmem:[%s17019_s0 + $0x39] sm:$0xff]  ;;  %v16408_v31 = vmul.f32 %v16029_v59, %v17408_v39  ;;  %v8555_v23 = vmul.f32 %v17371_v46, %v16176_v55  ;;  %v8741_v39 = vadd.f32 %v9417_v54, %v8613_v33 }
 0xe11   :  { %17398 = vst [vmem:[#allocation20_spill] sm:$0xff] %v16366_v47  ;;  %v8617_v47 = vadd.f32 %v16196_v8, %v8549_v0  ;;  %v9421_v0 = vld [vmem:[%s17019_s0 + $0x49] sm:$0xff]  ;;  %v16426_v55 = vmul.f32 %v16029_v59, %v17411_v37  ;;  %v8744_v48 = vadd.f32 %v9420_v9, %v8616_v40  ;;  %v8557_v33 = vmul.f32 %v17371_v46, %v16182_v3  ;;  %v9425_v3 = vld [vmem:[%s17019_s0 + $0x79] sm:$0xff] }
 0xe12   :  { %17400 = vst [vmem:[#allocation27_spill] sm:$0xff] %v16372_v36  ;;  %v8553_v36 = vmul.f32 %v17371_v46, %v16170_v53  ;;  %v8618_v53 = vadd.f32 %v16196_v8, %v8550_v25  ;;  %v8556_v25 = vmul.f32 %v17371_v46, %v16179_v16  ;;  %v9424_v59 = vld [vmem:[%s17019_s0 + $0x69] sm:$0xff]  ;;  %v8559_v10 = vmul.f32 %v17371_v46, %v16188_v17 }
 0xe13   :  { %17403 = vst [vmem:[#allocation31_spill] sm:$0xff] %v16390_v61  ;;  %v8743_v61 = vadd.f32 %v9419_v38, %v8615_v45  ;;  %v8558_v45 = vmul.f32 %v17371_v46, %v16185_v44  ;;  %v8745_v16 = vadd.f32 %v9421_v0, %v8617_v47  ;;  %v8623_v9 = vadd.f32 %v16196_v8, %v8555_v23  ;;  %v9426_v44 = vld [vmem:[%s17019_s0 + $0x81] sm:$0xff]  ;;  %v9427_v38 = vld [vmem:[%s17019_s0 + $0x91] sm:$0xff] }
 0xe14   :  { %17406 = vst [vmem:[#allocation17_spill] sm:$0xff] %v16396_v63  ;;  %v8619_v63 = vadd.f32 %v16196_v8, %v8551_v42  ;;  %v9423_v42 = vld [vmem:[%s17019_s0 + $0x61] sm:$0xff]  ;;  %v8621_v34 = vadd.f32 %v16196_v8, %v8553_v36  ;;  %v8746_v12 = vadd.f32 %v9422_v30, %v8618_v53  ;;  %v8805_v40 = vmax.f32 %v8741_v39, 0.0 }
 0xe15   :  { %17409 = vst [vmem:[#allocation5_spill] sm:$0xff] %v16408_v31  ;;  %v8742_v31 = vadd.f32 %v9418_v27, %v8614_v22  ;;  %v8622_v22 = vadd.f32 %v16196_v8, %v8554_v60  ;;  %v8807_v47 = vmax.f32 %v8743_v61, 0.0  ;;  %v8560_v17 = vmul.f32 %v17371_v46, %v16191_v7  ;;  %v9428_v61 = vld [vmem:[%s17019_s0 + $0x99] sm:$0xff] }
 0xe16   :  { %v8747_v36 = vadd.f32 %v9423_v42, %v8619_v63  ;;  %v8624_v27 = vadd.f32 %v16196_v8, %v8556_v25  ;;  %v8748_v60 = vadd.f32 %v9424_v59, %v8620_v19  ;;  %v8808_v23 = vmax.f32 %v8744_v48, 0.0  ;;  %8869 = vst.msk [vmem:[%s17026_s7] sm:$0xff] %vm91_vm0, %v8805_v40 }
 0xe17   :  { %v8806_v54 = vmax.f32 %v8742_v31, 0.0  ;;  %v8561_v53 = vmul.f32 %v17371_v46, %v16199_v57  ;;  %v8625_v0 = vadd.f32 %v16196_v8, %v8557_v33  ;;  %v8749_v63 = vadd.f32 %v9425_v3, %v8621_v34  ;;  %v9429_v57 = vld [vmem:[%s17019_s0 + $0xa9] sm:$0xff]  ;;  %8871 = vst.msk [vmem:[%s17026_s7 + $0x10] sm:$0xff] %vm91_vm0, %v8807_v47 }
 0xe18   :  { %v8809_v31 = vmax.f32 %v8745_v16, 0.0  ;;  %v8562_v7 = vmul.f32 %v17371_v46, %v16202_v28  ;;  %v8626_v48 = vadd.f32 %v16196_v8, %v8558_v45  ;;  %v8750_v19 = vadd.f32 %v9426_v44, %v8622_v22  ;;  %v9430_v28 = vld [vmem:[%s17019_s0 + $0xb1] sm:$0xff]  ;;  %8872 = vst.msk [vmem:[%s17026_s7 + $0x18] sm:$0xff] %vm91_vm0, %v8808_v23 }
 0xe19   :  { %v8810_v30 = vmax.f32 %v8746_v12, 0.0  ;;  %8870 = vst.msk [vmem:[%s17026_s7 + $0x8] sm:$0xff] %vm91_vm0, %v8806_v54  ;;  %v8563_v39 = vmul.f32 %v17371_v46, %v16205_v13  ;;  %v8627_v37 = vadd.f32 %v16196_v8, %v8559_v10  ;;  %v8751_v25 = vadd.f32 %v9427_v38, %v8623_v9  ;;  %v9431_v13 = vld [vmem:[%s17019_s0 + $0xc1] sm:$0xff] }
 0xe1a   :  { %v8811_v42 = vmax.f32 %v8747_v36, 0.0  ;;  %v8564_v33 = vmul.f32 %v17371_v46, %v16208_v32  ;;  %v8628_v45 = vadd.f32 %v16196_v8, %v8560_v17  ;;  %v8752_v34 = vadd.f32 %v9428_v61, %v8624_v27  ;;  %v9432_v32 = vld [vmem:[%s17019_s0 + $0xc9] sm:$0xff]  ;;  %8873 = vst.msk [vmem:[%s17026_s7 + $0x20] sm:$0xff] %vm91_vm0, %v8809_v31 }
 0xe1b   :  { %v8812_v59 = vmax.f32 %v8748_v60, 0.0  ;;  %v8565_v16 = vmul.f32 %v17371_v46, %v16211_v56  ;;  %v8629_v10 = vadd.f32 %v16196_v8, %v8561_v53  ;;  %v8753_v22 = vadd.f32 %v9429_v57, %v8625_v0  ;;  %v9433_v56 = vld [vmem:[%s17019_s0 + $0xd9] sm:$0xff]  ;;  %8874 = vst.msk [vmem:[%s17026_s7 + $0x28] sm:$0xff] %vm91_vm0, %v8810_v30 }
 0xe1c   :  { %v8813_v9 = vmax.f32 %v8749_v63, 0.0  ;;  %v8566_v3 = vmul.f32 %v17371_v46, %v16214_v5  ;;  %v8630_v12 = vadd.f32 %v16196_v8, %v8562_v7  ;;  %v8754_v44 = vadd.f32 %v9430_v28, %v8626_v48  ;;  %v9434_v5 = vld [vmem:[%s17019_s0 + $0xe1] sm:$0xff]  ;;  %8875 = vst.msk [vmem:[%s17026_s7 + $0x30] sm:$0xff] %vm91_vm0, %v8811_v42 }
 0xe1d   :  { %v8814_v36 = vmax.f32 %v8750_v19, 0.0  ;;  %v8567_v40 = vmul.f32 %v17371_v46, %v16217_v43  ;;  %v8631_v54 = vadd.f32 %v16196_v8, %v8563_v39  ;;  %v8755_v47 = vadd.f32 %v9431_v13, %v8627_v37  ;;  %v9435_v43 = vld [vmem:[%s17019_s0 + $0xf1] sm:$0xff]  ;;  %8876 = vst.msk [vmem:[%s17026_s7 + $0x38] sm:$0xff] %vm91_vm0, %v8812_v59 }
 0xe1e   :  { %v8815_v17 = vmax.f32 %v8751_v25, 0.0  ;;  %v8568_v27 = vmul.f32 %v17371_v46, %v16220_v29  ;;  %v8632_v38 = vadd.f32 %v16196_v8, %v8564_v33  ;;  %v8756_v60 = vadd.f32 %v9432_v32, %v8628_v45  ;;  %v9436_v29 = vld [vmem:[%s17019_s0 + $0xf9] sm:$0xff]  ;;  %8877 = vst.msk [vmem:[%s17026_s7 + $0x40] sm:$0xff] %vm91_vm0, %v8813_v9 }
 0xe1f   :  { %v8816_v23 = vmax.f32 %v8752_v34, 0.0  ;;  %v8569_v53 = vmul.f32 %v17371_v46, %v16223_v6  ;;  %v8633_v0 = vadd.f32 %v16196_v8, %v8565_v16  ;;  %v8757_v61 = vadd.f32 %v9433_v56, %v8629_v10  ;;  %v9437_v6 = vld [vmem:[%s17019_s0 + $0x109] sm:$0xff]  ;;  %8878 = vst.msk [vmem:[%s17026_s7 + $0x48] sm:$0xff] %vm91_vm0, %v8814_v36 }
 0xe20   :  { %v8817_v63 = vmax.f32 %v8753_v22, 0.0  ;;  %v8570_v31 = vmul.f32 %v17371_v46, %v16226_v50  ;;  %v8634_v7 = vadd.f32 %v16196_v8, %v8566_v3  ;;  %v8758_v48 = vadd.f32 %v9434_v5, %v8630_v12  ;;  %v9438_v50 = vld [vmem:[%s17019_s0 + $0x111] sm:$0xff]  ;;  %8879 = vst.msk [vmem:[%s17026_s7 + $0x50] sm:$0xff] %vm91_vm0, %v8815_v17 }
 0xe21   :  { %v8818_v57 = vmax.f32 %v8754_v44, 0.0  ;;  %v8571_v19 = vmul.f32 %v17371_v46, %v16229_v58  ;;  %v8635_v30 = vadd.f32 %v16196_v8, %v8567_v40  ;;  %v8759_v39 = vadd.f32 %v9435_v43, %v8631_v54  ;;  %v9439_v58 = vld [vmem:[%s17019_s0 + $0x121] sm:$0xff]  ;;  %8880 = vst.msk [vmem:[%s17026_s7 + $0x58] sm:$0xff] %vm91_vm0, %v8816_v23 }
 0xe22   :  { %v8819_v37 = vmax.f32 %v8755_v47, 0.0  ;;  %v8572_v28 = vmul.f32 %v17371_v46, %v16232_v2  ;;  %v8636_v25 = vadd.f32 %v16196_v8, %v8568_v27  ;;  %v8760_v42 = vadd.f32 %v9436_v29, %v8632_v38  ;;  %v9440_v2 = vld [vmem:[%s17019_s0 + $0x129] sm:$0xff]  ;;  %8881 = vst.msk [vmem:[%s17026_s7 + $0x60] sm:$0xff] %vm91_vm0, %v8817_v63 }
 0xe23   :  { %v8820_v33 = vmax.f32 %v8756_v60, 0.0  ;;  %v8573_v45 = vmul.f32 %v17371_v46, %v16235_v20  ;;  %v8637_v13 = vadd.f32 %v16196_v8, %v8569_v53  ;;  %v8761_v34 = vadd.f32 %v9437_v6, %v8633_v0  ;;  %v9441_v20 = vld [vmem:[%s17019_s0 + $0x139] sm:$0xff]  ;;  %8882 = vst.msk [vmem:[%s17026_s7 + $0x68] sm:$0xff] %vm91_vm0, %v8818_v57 }
 0xe24   :  { %v8821_v59 = vmax.f32 %v8757_v61, 0.0  ;;  %v8574_v16 = vmul.f32 %v17371_v46, %v16238_v35  ;;  %v8638_v10 = vadd.f32 %v16196_v8, %v8570_v31  ;;  %v8762_v32 = vadd.f32 %v9438_v50, %v8634_v7  ;;  %v9442_v35 = vld [vmem:[%s17019_s0 + $0x141] sm:$0xff]  ;;  %8883 = vst.msk [vmem:[%s17026_s7 + $0x70] sm:$0xff] %vm91_vm0, %v8819_v37 }
 0xe25   :  { %v8822_v22 = vmax.f32 %v8758_v48, 0.0  ;;  %v8575_v9 = vmul.f32 %v17371_v46, %v16241_v49  ;;  %v8639_v3 = vadd.f32 %v16196_v8, %v8571_v19  ;;  %v8763_v12 = vadd.f32 %v9439_v58, %v8635_v30  ;;  %v9443_v49 = vld [vmem:[%s17019_s0 + $0x151] sm:$0xff]  ;;  %8884 = vst.msk [vmem:[%s17026_s7 + $0x78] sm:$0xff] %vm91_vm0, %v8820_v33 }
 0xe26   :  { %v8823_v56 = vmax.f32 %v8759_v39, 0.0  ;;  %v8576_v44 = vmul.f32 %v17371_v46, %v16248_v4  ;;  %v8640_v36 = vadd.f32 %v16196_v8, %v8572_v28  ;;  %v8764_v40 = vadd.f32 %v9440_v2, %v8636_v25  ;;  %v9444_v4 = vld [vmem:[%s17019_s0 + $0x159] sm:$0xff]  ;;  %8885 = vst.msk [vmem:[%s17026_s7 + $0x80] sm:$0xff] %vm91_vm0, %v8821_v59 }
 0xe27   :  { %v8824_v54 = vmax.f32 %v8760_v42, 0.0  ;;  %v8577_v5 = vmul.f32 %v17371_v46, %v16251_v1  ;;  %v8641_v47 = vadd.f32 %v16196_v8, %v8573_v45  ;;  %v8765_v17 = vadd.f32 %v9441_v20, %v8637_v13  ;;  %v9445_v1 = vld [vmem:[%s17019_s0 + $0x169] sm:$0xff]  ;;  %8886 = vst.msk [vmem:[%s17026_s7 + $0x88] sm:$0xff] %vm91_vm0, %v8822_v22 }
 0xe28   :  { %v8825_v27 = vmax.f32 %v8761_v34, 0.0  ;;  %v8578_v38 = vmul.f32 %v17371_v46, %v16254_v51  ;;  %v8642_v43 = vadd.f32 %v16196_v8, %v8574_v16  ;;  %v8766_v60 = vadd.f32 %v9442_v35, %v8638_v10  ;;  %v9446_v51 = vld [vmem:[%s17019_s0 + $0x171] sm:$0xff]  ;;  %8887 = vst.msk [vmem:[%s17026_s7 + $0x90] sm:$0xff] %vm91_vm0, %v8823_v56 }
 0xe29   :  { %v8826_v23 = vmax.f32 %v8762_v32, 0.0  ;;  %v8579_v53 = vmul.f32 %v17371_v46, %v16257_v21  ;;  %v8643_v0 = vadd.f32 %v16196_v8, %v8575_v9  ;;  %v8767_v29 = vadd.f32 %v9443_v49, %v8639_v3  ;;  %v9447_v21 = vld [vmem:[%s17019_s0 + $0x181] sm:$0xff]  ;;  %8888 = vst.msk [vmem:[%s17026_s7 + $0x98] sm:$0xff] %vm91_vm0, %v8824_v54 }
 0xe2a   :  { %v8827_v61 = vmax.f32 %v8763_v12, 0.0  ;;  %v8580_v63 = vmul.f32 %v17371_v46, %v16260_v24  ;;  %v8644_v31 = vadd.f32 %v16196_v8, %v8576_v44  ;;  %v8768_v7 = vadd.f32 %v9444_v4, %v8640_v36  ;;  %v9448_v24 = vld [vmem:[%s17019_s0 + $0x189] sm:$0xff]  ;;  %8889 = vst.msk [vmem:[%s17026_s7 + $0xa0] sm:$0xff] %vm91_vm0, %v8825_v27 }
 0xe2b   :  { %v8828_v6 = vmax.f32 %v8764_v40, 0.0  ;;  %v8581_v48 = vmul.f32 %v17371_v46, %v16263_v18  ;;  %v8645_v57 = vadd.f32 %v16196_v8, %v8577_v5  ;;  %v8769_v19 = vadd.f32 %v9445_v1, %v8641_v47  ;;  %v9449_v18 = vld [vmem:[%s17019_s0 + $0x1c9] sm:$0xff]  ;;  %8890 = vst.msk [vmem:[%s17026_s7 + $0xa8] sm:$0xff] %vm91_vm0, %v8826_v23 }
 0xe2c   :  { %v8829_v30 = vmax.f32 %v8765_v17, 0.0  ;;  %v8582_v50 = vmul.f32 %v17371_v46, %v16266_v14  ;;  %v8646_v39 = vadd.f32 %v16196_v8, %v8578_v38  ;;  %v8770_v37 = vadd.f32 %v9446_v51, %v8642_v43  ;;  %v9450_v14 = vld [vmem:[%s17019_s0 + $0x1d1] sm:$0xff]  ;;  %8891 = vst.msk [vmem:[%s17026_s7 + $0xb0] sm:$0xff] %vm91_vm0, %v8827_v61  ;;  %v9456_v17 = vld [vmem:[%s17019_s0 + $0x219] sm:$0xff] }
 0xe2d   :  { %v8830_v28 = vmax.f32 %v8766_v60, 0.0  ;;  %v8583_v25 = vmul.f32 %v17371_v46, %v16269_v26  ;;  %v8647_v58 = vadd.f32 %v16196_v8, %v8579_v53  ;;  %v8771_v42 = vadd.f32 %v9447_v21, %v8643_v0  ;;  %v9451_v26 = vld [vmem:[%s17019_s0 + $0x1e1] sm:$0xff]  ;;  %8892 = vst.msk [vmem:[%s17026_s7 + $0xb8] sm:$0xff] %vm91_vm0, %v8828_v6  ;;  %v17412_v36 = vld [vmem:[#allocation30_spill] sm:$0xff]  ;;  %v17414_v0 = vld [vmem:[#allocation15_spill] sm:$0xff] }
 0xe2e   :  { %v8831_v33 = vmax.f32 %v8767_v29, 0.0  ;;  %v8584_v45 = vmul.f32 %v17371_v46, %v16272_v62  ;;  %v8648_v13 = vadd.f32 %v16196_v8, %v8580_v63  ;;  %v8772_v2 = vadd.f32 %v9448_v24, %v8644_v31  ;;  %v9452_v62 = vld [vmem:[%s17019_s0 + $0x1e9] sm:$0xff]  ;;  %8893 = vst.msk [vmem:[%s17026_s7 + $0xc0] sm:$0xff] %vm91_vm0, %v8829_v30  ;;  %v17413_v43 = vld [vmem:[#allocation8_spill] sm:$0xff]  ;;  %v9458_v61 = vld [vmem:[%s17019_s0 + $0x231] sm:$0xff] }
 0xe2f   :  { %v8832_v34 = vmax.f32 %v8768_v7, 0.0  ;;  %v8585_v59 = vmul.f32 %v17371_v46, %v16275_v15  ;;  %v8649_v16 = vadd.f32 %v16196_v8, %v8581_v48  ;;  %v8773_v10 = vadd.f32 %v9449_v18, %v8645_v57  ;;  %v9453_v15 = vld [vmem:[%s17019_s0 + $0x1f9] sm:$0xff]  ;;  %8894 = vst.msk [vmem:[%s17026_s7 + $0xc8] sm:$0xff] %vm91_vm0, %v8830_v28  ;;  %v17415_v21 = vld [vmem:[#allocation6_spill] sm:$0xff]  ;;  %v9459_v48 = vld [vmem:[%s17019_s0 + $0x241] sm:$0xff] }
 0xe30   :  { %v8833_v20 = vmax.f32 %v8769_v19, 0.0  ;;  %v8586_v32 = vmul.f32 %v17371_v46, %v16278_v41  ;;  %v8650_v22 = vadd.f32 %v16196_v8, %v8582_v50  ;;  %v8774_v9 = vadd.f32 %v9450_v14, %v8646_v39  ;;  %v9454_v41 = vld [vmem:[%s17019_s0 + $0x201] sm:$0xff]  ;;  %8895 = vst.msk [vmem:[%s17026_s7 + $0xd0] sm:$0xff] %vm91_vm0, %v8831_v33  ;;  %v9460_v39 = vld [vmem:[%s17019_s0 + $0x249] sm:$0xff]  ;;  %v9461_v14 = vld [vmem:[%s17019_s0 + $0x259] sm:$0xff] }
 0xe31   :  { %v8834_v3 = vmax.f32 %v8770_v37, 0.0  ;;  %v8587_v35 = vmul.f32 %v17371_v46, %v16281_v11  ;;  %v8651_v12 = vadd.f32 %v16196_v8, %v8583_v25  ;;  %v8775_v56 = vadd.f32 %v9451_v26, %v8647_v58  ;;  %v9455_v11 = vld [vmem:[%s17019_s0 + $0x211] sm:$0xff]  ;;  %8896 = vst.msk [vmem:[%s17026_s7 + $0xd8] sm:$0xff] %vm91_vm0, %v8832_v34  ;;  %v17416_v19 = vld [vmem:[#allocation12_spill] sm:$0xff] }
 0xe32   :  { %v8835_v44 = vmax.f32 %v8771_v42, 0.0  ;;  %v8588_v49 = vmul.f32 %v17371_v46, %v17412_v36  ;;  %v8652_v40 = vadd.f32 %v16196_v8, %v8584_v45  ;;  %v8776_v54 = vadd.f32 %v9452_v62, %v8648_v13  ;;  %8897 = vst.msk [vmem:[%s17026_s7 + $0xe0] sm:$0xff] %vm91_vm0, %v8833_v20  ;;  %v17417_v28 = vld [vmem:[#allocation22_spill] sm:$0xff]  ;;  %v17418_v45 = vld [vmem:[#allocation24_spill] sm:$0xff] }
 0xe33   :  { %v8836_v5 = vmax.f32 %v8772_v2, 0.0  ;;  %v8589_v47 = vmul.f32 %v17371_v46, %v16287_v52  ;;  %v8653_v4 = vadd.f32 %v16196_v8, %v8585_v59  ;;  %v8777_v27 = vadd.f32 %v9453_v15, %v8649_v16  ;;  %v9457_v52 = vld [vmem:[%s17019_s0 + $0x229] sm:$0xff]  ;;  %8898 = vst.msk [vmem:[%s17026_s7 + $0xe8] sm:$0xff] %vm91_vm0, %v8834_v3  ;;  %v9462_v2 = vld [vmem:[%s17019_s0 + $0x261] sm:$0xff]  ;;  %v9463_v20 = vld [vmem:[%s17019_s0 + $0x271] sm:$0xff] }
 0xe34   :  { %v8837_v38 = vmax.f32 %v8773_v10, 0.0  ;;  %v8590_v1 = vmul.f32 %v17371_v46, %v17413_v43  ;;  %v8654_v60 = vadd.f32 %v16196_v8, %v8586_v32  ;;  %v8778_v23 = vadd.f32 %v9454_v41, %v8650_v22  ;;  %8899 = vst.msk [vmem:[%s17026_s7 + $0xf0] sm:$0xff] %vm91_vm0, %v8835_v44  ;;  %v17419_v16 = vld [vmem:[#allocation29_spill] sm:$0xff]  ;;  %v17420_v15 = vld [vmem:[#allocation11_spill] sm:$0xff] }
 0xe35   :  { %v8838_v53 = vmax.f32 %v8774_v9, 0.0  ;;  %v8591_v51 = vmul.f32 %v17371_v46, %v17414_v0  ;;  %v8655_v29 = vadd.f32 %v16196_v8, %v8587_v35  ;;  %v8779_v63 = vadd.f32 %v9455_v11, %v8651_v12  ;;  %8900 = vst.msk [vmem:[%s17026_s7 + $0xf8] sm:$0xff] %vm91_vm0, %v8836_v5  ;;  %v9464_v35 = vld [vmem:[%s17019_s0 + $0x279] sm:$0xff] }
 0xe36   :  { %v8839_v31 = vmax.f32 %v8775_v56, 0.0  ;;  %v8592_v7 = vmul.f32 %v17371_v46, %v17415_v21  ;;  %v8656_v6 = vadd.f32 %v16196_v8, %v8588_v49  ;;  %v8780_v57 = vadd.f32 %v9456_v17, %v8652_v40  ;;  %8901 = vst.msk [vmem:[%s17026_s7 + $0x100] sm:$0xff] %vm91_vm0, %v8837_v38  ;;  %v17421_v56 = vld [vmem:[#allocation13_spill] sm:$0xff] }
 0xe37   :  { %v8840_v24 = vmax.f32 %v8776_v54, 0.0  ;;  %v8593_v30 = vmul.f32 %v17371_v46, %v17416_v19  ;;  %v8657_v50 = vadd.f32 %v16196_v8, %v8589_v47  ;;  %v8781_v18 = vadd.f32 %v9457_v52, %v8653_v4  ;;  %8902 = vst.msk [vmem:[%s17026_s7 + $0x108] sm:$0xff] %vm91_vm0, %v8838_v53  ;;  %v9465_v49 = vld [vmem:[%s17019_s0 + $0x289] sm:$0xff]  ;;  %v17422_v54 = vld [vmem:[#allocation23_spill] sm:$0xff] }
 0xe38   :  { %v8841_v37 = vmax.f32 %v8777_v27, 0.0  ;;  %v8594_v25 = vmul.f32 %v17371_v46, %v17417_v28  ;;  %v8658_v58 = vadd.f32 %v16196_v8, %v8590_v1  ;;  %v8782_v42 = vadd.f32 %v9458_v61, %v8654_v60  ;;  %8903 = vst.msk [vmem:[%s17026_s7 + $0x110] sm:$0xff] %vm91_vm0, %v8839_v31  ;;  %v9466_v4 = vld [vmem:[%s17019_s0 + $0x291] sm:$0xff]  ;;  %v17423_v38 = vld [vmem:[#allocation9_spill] sm:$0xff]  ;;  %v17425_v31 = vld [vmem:[#allocation20_spill] sm:$0xff] }
 0xe39   :  { %v8842_v33 = vmax.f32 %v8778_v23, 0.0  ;;  %v8595_v13 = vmul.f32 %v17371_v46, %v17418_v45  ;;  %v8659_v26 = vadd.f32 %v16196_v8, %v8591_v51  ;;  %v8783_v34 = vadd.f32 %v9459_v48, %v8655_v29  ;;  %8904 = vst.msk [vmem:[%s17026_s7 + $0x118] sm:$0xff] %vm91_vm0, %v8840_v24  ;;  %v9467_v60 = vld [vmem:[%s17019_s0 + $0x2a1] sm:$0xff]  ;;  %v17424_v53 = vld [vmem:[#allocation14_spill] sm:$0xff]  ;;  %v17426_v24 = vld [vmem:[#allocation27_spill] sm:$0xff] }
 0xe3a   :  { %v8843_v59 = vmax.f32 %v8779_v63, 0.0  ;;  %v8596_v62 = vmul.f32 %v17371_v46, %v17419_v16  ;;  %v8660_v10 = vadd.f32 %v16196_v8, %v8592_v7  ;;  %v8784_v32 = vadd.f32 %v9460_v39, %v8656_v6  ;;  %8905 = vst.msk [vmem:[%s17026_s7 + $0x120] sm:$0xff] %vm91_vm0, %v8841_v37  ;;  %v9468_v29 = vld [vmem:[%s17019_s0 + $0x2a9] sm:$0xff]  ;;  %v9469_v6 = vld [vmem:[%s17019_s0 + $0x2b9] sm:$0xff] }
 0xe3b   :  { %v8844_v22 = vmax.f32 %v8780_v57, 0.0  ;;  %v8597_v9 = vmul.f32 %v17371_v46, %v17420_v15  ;;  %v8661_v3 = vadd.f32 %v16196_v8, %v8593_v30  ;;  %v8785_v12 = vadd.f32 %v9461_v14, %v8657_v50  ;;  %8906 = vst.msk [vmem:[%s17026_s7 + $0x128] sm:$0xff] %vm91_vm0, %v8842_v33  ;;  %v9470_v50 = vld [vmem:[%s17019_s0 + $0x2c1] sm:$0xff]  ;;  %v17427_v37 = vld [vmem:[#allocation31_spill] sm:$0xff] }
 0xe3c   :  { %v8845_v41 = vmax.f32 %v8781_v18, 0.0  ;;  %v8598_v44 = vmul.f32 %v17371_v46, %v17421_v56  ;;  %v8662_v36 = vadd.f32 %v16196_v8, %v8594_v25  ;;  %v8786_v40 = vadd.f32 %v9462_v2, %v8658_v58  ;;  %8907 = vst.msk [vmem:[%s17026_s7 + $0x130] sm:$0xff] %vm91_vm0, %v8843_v59  ;;  %v9471_v58 = vld [vmem:[%s17019_s0 + $0x2d1] sm:$0xff]  ;;  %v17428_v33 = vld [vmem:[#allocation17_spill] sm:$0xff] }
 0xe3d   :  { %v8846_v11 = vmax.f32 %v8782_v42, 0.0  ;;  %v8599_v5 = vmul.f32 %v17371_v46, %v17422_v54  ;;  %v8663_v47 = vadd.f32 %v16196_v8, %v8595_v13  ;;  %v8787_v17 = vadd.f32 %v9463_v20, %v8659_v26  ;;  %8908 = vst.msk [vmem:[%s17026_s7 + $0x138] sm:$0xff] %vm91_vm0, %v8844_v22  ;;  %v9472_v26 = vld [vmem:[%s17019_s0 + $0x2d9] sm:$0xff]  ;;  %v17429_v59 = vld [vmem:[#allocation5_spill] sm:$0xff] }
 0xe3e   :  { %v8847_v27 = vmax.f32 %v8783_v34, 0.0  ;;  %v8600_v43 = vmul.f32 %v17371_v46, %v17423_v38  ;;  %v8664_v1 = vadd.f32 %v16196_v8, %v8596_v62  ;;  %v8788_v52 = vadd.f32 %v9464_v35, %v8660_v10  ;;  %8909 = vst.msk [vmem:[%s17026_s7 + $0x140] sm:$0xff] %vm91_vm0, %v8845_v41  ;;  %v9473_v10 = vld [vmem:[%s17019_s0 + $0x2e9] sm:$0xff]  ;;  %v9475_v41 = vld [vmem:[%s17019_s0 + $0x301] sm:$0xff]  ;;  %v9479_v38 = vld [vmem:[%s17019_s0 + $0x331] sm:$0xff] }
 0xe3f   :  { %v8848_v23 = vmax.f32 %v8784_v32, 0.0  ;;  %v8601_v0 = vmul.f32 %v17371_v46, %v17424_v53  ;;  %v8665_v51 = vadd.f32 %v16196_v8, %v8597_v9  ;;  %v8789_v61 = vadd.f32 %v9465_v49, %v8661_v3  ;;  %8910 = vst.msk [vmem:[%s17026_s7 + $0x148] sm:$0xff] %vm91_vm0, %v8846_v11  ;;  %v9474_v9 = vld [vmem:[%s17019_s0 + $0x2f1] sm:$0xff]  ;;  %v9477_v11 = vld [vmem:[%s17019_s0 + $0x319] sm:$0xff] }
 0xe40   :  { %v8849_v63 = vmax.f32 %v8785_v12, 0.0  ;;  %v8602_v21 = vmul.f32 %v17371_v46, %v17425_v31  ;;  %v8666_v7 = vadd.f32 %v16196_v8, %v8598_v44  ;;  %v8790_v48 = vadd.f32 %v9466_v4, %v8662_v36  ;;  %8911 = vst.msk [vmem:[%s17026_s7 + $0x150] sm:$0xff] %vm91_vm0, %v8847_v27  ;;  %v9476_v44 = vld [vmem:[%s17019_s0 + $0x309] sm:$0xff]  ;;  %v9478_v4 = vld [vmem:[%s17019_s0 + $0x321] sm:$0xff] }
 0xe41   :  { %v8850_v57 = vmax.f32 %v8786_v40, 0.0  ;;  %v8603_v19 = vmul.f32 %v17371_v46, %v17426_v24  ;;  %v8667_v30 = vadd.f32 %v16196_v8, %v8599_v5  ;;  %v8791_v39 = vadd.f32 %v9467_v60, %v8663_v47  ;;  %8912 = vst.msk [vmem:[%s17026_s7 + $0x158] sm:$0xff] %vm91_vm0, %v8848_v23 }
 0xe42   :  { %v8851_v18 = vmax.f32 %v8787_v17, 0.0  ;;  %v8604_v28 = vmul.f32 %v17371_v46, %v17427_v37  ;;  %v8668_v25 = vadd.f32 %v16196_v8, %v8600_v43  ;;  %v8792_v14 = vadd.f32 %v9468_v29, %v8664_v1  ;;  %8913 = vst.msk [vmem:[%s17026_s7 + $0x160] sm:$0xff] %vm91_vm0, %v8849_v63  ;;  %v17430_v29 = vld [vmem:[#allocation28_spill] sm:$0xff] }
 0xe43   :  { %v8852_v42 = vmax.f32 %v8788_v52, 0.0  ;;  %v8605_v45 = vmul.f32 %v17371_v46, %v17428_v33  ;;  %v8669_v13 = vadd.f32 %v16196_v8, %v8601_v0  ;;  %v8793_v2 = vadd.f32 %v9469_v6, %v8665_v51  ;;  %8914 = vst.msk [vmem:[%s17026_s7 + $0x168] sm:$0xff] %vm91_vm0, %v8850_v57 }
 0xe44   :  { %v8853_v34 = vmax.f32 %v8789_v61, 0.0  ;;  %v8606_v16 = vmul.f32 %v17371_v46, %v17429_v59  ;;  %v8670_v62 = vadd.f32 %v16196_v8, %v8602_v21  ;;  %v8794_v20 = vadd.f32 %v9470_v50, %v8666_v7  ;;  %8915 = vst.msk [vmem:[%s17026_s7 + $0x170] sm:$0xff] %vm91_vm0, %v8851_v18 }
 0xe45   :  { %v8854_v32 = vmax.f32 %v8790_v48, 0.0  ;;  %v8607_v22 = vmul.f32 %v17371_v46, %v16426_v55  ;;  %v8671_v15 = vadd.f32 %v16196_v8, %v8603_v19  ;;  %v8795_v3 = vadd.f32 %v9471_v58, %v8667_v30  ;;  %8916 = vst.msk [vmem:[%s17026_s7 + $0x178] sm:$0xff] %vm91_vm0, %v8852_v42 }
 0xe46   :  { %v8855_v35 = vmax.f32 %v8791_v39, 0.0  ;;  %v8672_v12 = vadd.f32 %v16196_v8, %v8604_v28  ;;  %v8796_v46 = vadd.f32 %v9472_v26, %v8668_v25  ;;  %v8856_v55 = vmax.f32 %v8792_v14, 0.0  ;;  %8917 = vst.msk [vmem:[%s17026_s7 + $0x180] sm:$0xff] %vm91_vm0, %v8853_v34 }
 0xe47   :  { %v8673_v56 = vadd.f32 %v16196_v8, %v8605_v45  ;;  %v8797_v36 = vadd.f32 %v9473_v10, %v8669_v13  ;;  %v8857_v49 = vmax.f32 %v8793_v2, 0.0  ;;  %v8674_v40 = vadd.f32 %v16196_v8, %v8606_v16  ;;  %8918 = vst.msk [vmem:[%s17026_s7 + $0x188] sm:$0xff] %vm91_vm0, %v8854_v32 }
 0xe48   :  { %v8798_v54 = vadd.f32 %v9474_v9, %v8670_v62  ;;  %v8858_v5 = vmax.f32 %v8794_v20, 0.0  ;;  %v8675_v47 = vadd.f32 %v16196_v8, %v8607_v22  ;;  %v8799_v17 = vadd.f32 %v9475_v41, %v8671_v15  ;;  %8919 = vst.msk [vmem:[%s17026_s7 + $0x190] sm:$0xff] %vm91_vm0, %v8855_v35  ;;  %v9480_v8 = vld [vmem:[%s17019_s0 + $0x339] sm:$0xff] }
 0xe49   :  { %v8859_v27 = vmax.f32 %v8795_v3, 0.0  ;;  %v8800_v43 = vadd.f32 %v9476_v44, %v8672_v12  ;;  %v8860_v1 = vmax.f32 %v8796_v46, 0.0  ;;  %8920 = vst.msk [vmem:[%s17026_s7 + $0x198] sm:$0xff] %vm91_vm0, %v8856_v55  ;;  %v8801_v60 = vadd.f32 %v9477_v11, %v8673_v56 }
 0xe4a   :  { %v8861_v52 = vmax.f32 %v8797_v36, 0.0  ;;  %8921 = vst.msk [vmem:[%s17026_s7 + $0x1a0] sm:$0xff] %vm91_vm0, %v8857_v49  ;;  %v8802_v23 = vadd.f32 %v9478_v4, %v8674_v40  ;;  %v8862_v53 = vmax.f32 %v8798_v54, 0.0  ;;  %v8803_v0 = vadd.f32 %v9479_v38, %v8675_v47 }
 0xe4b   :  { %8922 = vst.msk [vmem:[%s17026_s7 + $0x1a8] sm:$0xff] %vm91_vm0, %v8858_v5  ;;  %v8863_v51 = vmax.f32 %v8799_v17, 0.0  ;;  %v8804_v61 = vadd.f32 %v9480_v8, %v17430_v29  ;;  %v8864_v63 = vmax.f32 %v8800_v43, 0.0  ;;  %v8865_v31 = vmax.f32 %v8801_v60, 0.0 }
 0xe4c   :  { %8923 = vst.msk [vmem:[%s17026_s7 + $0x1b0] sm:$0xff] %vm91_vm0, %v8859_v27  ;;  %v8866_v21 = vmax.f32 %v8802_v23, 0.0  ;;  %v8867_v7 = vmax.f32 %v8803_v0, 0.0 }
 0xe4d   :  { %8924 = vst.msk [vmem:[%s17026_s7 + $0x1b8] sm:$0xff] %vm91_vm0, %v8860_v1  ;;  %v8868_v6 = vmax.f32 %v8804_v61, 0.0 }
 0xe4e   :  { %8925 = vst.msk [vmem:[%s17026_s7 + $0x1c0] sm:$0xff] %vm91_vm0, %v8861_v52 }
 0xe4f   :  { %8926 = vst.msk [vmem:[%s17026_s7 + $0x1c8] sm:$0xff] %vm91_vm0, %v8862_v53 }
 0xe50   :  { %8927 = vst.msk [vmem:[%s17026_s7 + $0x1d0] sm:$0xff] %vm91_vm0, %v8863_v51 }
 0xe51   :  { %8928 = vst.msk [vmem:[%s17026_s7 + $0x1d8] sm:$0xff] %vm91_vm0, %v8864_v63 }
 0xe52   :  { %8929 = vst.msk [vmem:[%s17026_s7 + $0x1e0] sm:$0xff] %vm91_vm0, %v8865_v31 }
 0xe53   :  { %8930 = vst.msk [vmem:[%s17026_s7 + $0x1e8] sm:$0xff] %vm91_vm0, %v8866_v21 }
 0xe54   :  { %8931 = vst.msk [vmem:[%s17026_s7 + $0x1f0] sm:$0xff] %vm91_vm0, %v8867_v7 }
 0xe55   :  { %8932 = vst.msk [vmem:[%s17026_s7 + $0x1f8] sm:$0xff] %vm91_vm0, %v8868_v6 }

</bundles_post_ra>
